<compile_context>
chip_gen: v6e
topology: v6e:2x2x1
jax: 0.10.0
libtpu: 0.0.40
codegen_flags: <defaults>
</compile_context>

<pallas_src>
import functools

import jax
import jax.numpy as jnp
from jax.experimental import pallas as pl
from jax.experimental.pallas import tpu as pltpu

# Architecture constants fixed by SimpleDQN.
CP = 128          # padded channel / lane width
HIDDEN = 512      # fc1 width
K1, S1 = 8, 4     # conv1 kernel / stride
K2, S2 = 4, 2     # conv2 kernel / stride
K3, S3 = 3, 1     # conv3 kernel / stride


def _conv_out(n, k, s):
    return (n - k) // s + 1


def _dqn_dims(C, H, W):
    OH1, OW1 = _conv_out(H, K1, S1), _conv_out(W, K1, S1)
    OH2, OW2 = _conv_out(OH1, K2, S2), _conv_out(OW1, K2, S2)
    OH3, OW3 = _conv_out(OH2, K3, S3), _conv_out(OW2, K3, S3)
    assert min(OH1, OW1, OH2, OW2, OH3, OW3) >= 1, "input spatially too small"
    return dict(C=C, H=H, W=W,
                OH1=OH1, OW1=OW1, OH2=OH2, OW2=OW2, OH3=OH3, OW3=OW3,
                R1=2 * (OH2 + 1),     # conv1 output rows conv2 actually needs
                WN=OW2 + 1,           # conv1 output cols (per W parity) needed
                NPOS=OH3 * OW3,
                conv_out=64 * OH3 * OW3)


# ----------------------------------------------------------------------------
# Fused forward kernel (one grid step == BT batch elements)
# ----------------------------------------------------------------------------
def _dqn_kernel(xe_ref, xo_ref, w1_ref, b1_ref, w2_ref, b2_ref, w3_ref, b3_ref,
                w4_ref, b4_ref, w5_ref, b5_ref, out_ref, a1_ref, *, d, bt):
    f32, bf16 = jnp.float32, jnp.bfloat16
    R1, WN = d["R1"], d["WN"]
    OH2, OW2, OH3, OW3 = d["OH2"], d["OW2"], d["OH3"], d["OW3"]
    npos = d["NPOS"]
    KIN = xe_ref.shape[-1]                     # = S1*K1*C lanes per tap group

    # ---- conv1 (k=8, s=4) + ReLU: 4 matmuls, K = 32*C, M = BT*R1*WN --------
    # xe/xo[b, gh, gw, ir*8C + j*C + c] = x[b, c, 4*gh+ir, 8*gw + (0|4) + j]/1
    # (the /256 scale is folded into w1).  Even / odd output columns are
    # computed separately so conv2's stride-2 column access needs no strides.
    M1 = bt * R1 * WN
    acc_e = jnp.zeros((M1, CP), f32)
    acc_o = jnp.zeros((M1, CP), f32)
    for iq in range(2):                        # kernel rows 4*iq .. 4*iq+3
        ev = xe_ref[:, iq:iq + R1, :, :].reshape(M1, KIN)
        acc_e = acc_e + jnp.dot(ev, w1_ref[iq], preferred_element_type=f32)
        od = xo_ref[:, iq:iq + R1, :, :].reshape(M1, KIN)
        acc_o = acc_o + jnp.dot(od, w1_ref[iq], preferred_element_type=f32)
    a1_e = jnp.maximum(acc_e + b1_ref[...], 0.0).astype(bf16)
    a1_o = jnp.maximum(acc_o + b1_ref[...], 0.0).astype(bf16)
    # a1 layout: (parity, b, row//2, row%2, col//2, C) so every conv2 tap read
    # below is a contiguous slab (row/col strides of 2 become int/slice dims).
    a1_ref[0] = a1_e.reshape(bt, OH2 + 1, 2, WN, CP)
    a1_ref[1] = a1_o.reshape(bt, OH2 + 1, 2, WN, CP)

    # ---- conv2 (k=4, s=2) + ReLU: 16 matmuls, M = BT*OH2*OW2, K = 128 ------
    M2 = bt * OH2 * OW2
    acc = jnp.zeros((M2, CP), f32)
    for iq in range(2):
        for ir in range(2):
            for jq in range(2):
                for jr in range(2):
                    i, j = 2 * iq + ir, 2 * jq + jr
                    sl = a1_ref[jr, :, iq:iq + OH2, ir, jq:jq + OW2, :]
                    acc = acc + jnp.dot(sl.reshape(M2, CP), w2_ref[i, j],
                                        preferred_element_type=f32)
    a2 = jnp.maximum(acc + b2_ref[...], 0.0).astype(bf16)
    a2 = a2.reshape(bt, OH2, OW2, CP)

    # ---- conv3 (k=3, s=1) + ReLU: 9 matmuls, M = BT*OH3*OW3, K = 128 -------
    M3 = bt * OH3 * OW3
    acc = jnp.zeros((M3, CP), f32)
    for i in range(K3):
        for j in range(K3):
            sl = a2[:, i:i + OH3, j:j + OW3, :]
            acc = acc + jnp.dot(sl.reshape(M3, CP), w3_ref[i, j],
                                preferred_element_type=f32)
    h3 = jnp.maximum(acc + b3_ref[...], 0.0).astype(bf16)
    h3 = h3.reshape(bt, npos, CP)

    # ---- fc1 (conv_out -> 512) + ReLU: one (BT, npos*128) matmul -----------
    lhs = jnp.concatenate([h3[:, p, :] for p in range(npos)], axis=-1)
    h = jnp.dot(lhs, w4_ref[...], preferred_element_type=f32) + b4_ref[...]
    h = jnp.maximum(h, 0.0).astype(bf16)

    # ---- fc2 (512 -> n_actions, padded to 128 lanes) -----------------------
    q = jnp.dot(h, w5_ref[...], preferred_element_type=f32) + b5_ref[...]
    out_ref[...] = q


# ----------------------------------------------------------------------------
# One-time parameter preparation (PyTorch layout -> kernel layout)
# ----------------------------------------------------------------------------
def prepare_params(params, input_shape):
    """Rearrange PyTorch-layout SimpleDQN params for the fused kernel.

    Expected PyTorch shapes:
      w1 (32, C, 8, 8)  b1 (32,)     w2 (64, 32, 4, 4)  b2 (64,)
      w3 (64, 64, 3, 3) b3 (64,)     w4 (512, conv_out) b4 (512,)
      w5 (A, 512)       b5 (A,)      with conv_out = 64*OH3*OW3 (NCHW flatten)
    """
    C, H, W = input_shape
    d = _dqn_dims(C, H, W)
    f32, bf16 = jnp.float32, jnp.bfloat16
    npos = d["NPOS"]

    def pad_last(a, n):
        return jnp.pad(a, [(0, 0)] * (a.ndim - 1) + [(0, n - a.shape[-1])])

    # conv1: OIHW -> (2, 4*8*C, CP).  Row 4*iq+ir of the kernel, all 8 kernel
    # cols and C channels are packed into K (lane = ir*8C + j*C + c), matching
    # the packed input layout.  1/256 input scale folded in (exact).
    assert params["w1"].shape == (32, C, K1, K1)
    w1 = params["w1"].astype(f32) * (1.0 / 256.0)
    w1 = jnp.transpose(w1, (2, 3, 1, 0))            # (i, j, c, o)
    w1 = w1.reshape(2, S1, K1, C, 32)               # (iq, ir, j, c, o)
    w1 = w1.reshape(2, S1 * K1 * C, 32)             # lane = ir*8C + j*C + c
    w1p = pad_last(w1, CP).astype(bf16)
    b1 = pad_last(params["b1"].astype(f32), CP).reshape(1, CP)

    # conv2 / conv3: OIHW -> (KH, KW, CP, CP), cin/cout zero-padded to 128.
    def conv_w(w, cin, cout):
        w = jnp.transpose(w.astype(f32), (2, 3, 1, 0))      # (kh, kw, cin, cout)
        w = jnp.pad(w, ((0, 0), (0, 0), (0, CP - cin), (0, CP - cout)))
        return w.astype(bf16)

    w2p = conv_w(params["w2"], 32, 64)
    b2 = pad_last(params["b2"].astype(f32), CP).reshape(1, CP)
    w3p = conv_w(params["w3"], 64, 64)
    b3 = pad_last(params["b3"].astype(f32), CP).reshape(1, CP)

    # fc1: fold the PyTorch NCHW flatten (f = c*npos + p) into the weight:
    # w4p[p*CP + c, n] = W4[n, c*npos + p] (channels zero-padded to 128).
    assert params["w4"].shape == (HIDDEN, 64 * npos)
    w4 = params["w4"].astype(f32).reshape(HIDDEN, 64, npos)     # (n, c, p)
    w4 = jnp.transpose(w4, (2, 1, 0))                           # (p, c, n)
    w4 = jnp.pad(w4, ((0, 0), (0, CP - 64), (0, 0)))            # (p, CP, n)
    w4p = w4.reshape(npos * CP, HIDDEN).astype(bf16)
    b4 = params["b4"].astype(f32).reshape(1, HIDDEN)

    # fc2: (A, 512) -> (512, CP), outputs zero-padded to 128 lanes.
    n_actions = params["w5"].shape[0]
    assert n_actions <= CP
    w5p = pad_last(jnp.transpose(params["w5"].astype(f32), (1, 0)), CP).astype(bf16)
    b5 = pad_last(params["b5"].astype(f32), CP).reshape(1, CP)

    return dict(w1=w1p, b1=b1, w2=w2p, b2=b2, w3=w3p, b3=b3,
                w4=w4p, b4=b4, w5=w5p, b5=b5)


# ----------------------------------------------------------------------------
# Input packing (NCHW -> two lane-packed conv1 operands, done by XLA once)
# ----------------------------------------------------------------------------
def _pack_conv1_inputs(x_nchw, d):
    """Pack the input so conv1 needs only contiguous slab reads.

    xe/xo[b, gh, gw, ir*8C + j*C + c] = x[b, c, 4*gh + ir, 8*gw + (0|4) + j]
    (bf16; exact for integer pixel values, /256 is folded into w1).
    xe feeds even conv1 output columns, xo (shifted by 4 pixels) feeds odd
    columns, which is what lets conv2's stride-2 column access stay contiguous.
    """
    B, C, H, W = x_nchw.shape
    R1, WN = d["R1"], d["WN"]
    He = S1 * (R1 + 1)
    Wr = 2 * S1 * WN
    assert He <= H and S1 + Wr <= W, "internal sizing error"

    x = x_nchw.astype(jnp.bfloat16)

    def pack(col0):
        v = x[:, :, :He, col0:col0 + Wr]                       # (B, C, He, Wr)
        v = v.reshape(B, C, R1 + 1, S1, WN, 2 * S1)            # rows->(gh,ir) cols->(gw,j)
        v = jnp.transpose(v, (0, 2, 4, 3, 5, 1))               # (B, gh, gw, ir, j, c)
        return v.reshape(B, R1 + 1, WN, S1 * K1 * C)

    return pack(0), pack(S1)


# ----------------------------------------------------------------------------
# SimpleDQN forward (single fused pallas_call)
# ----------------------------------------------------------------------------
def simple_dqn_forward(x_nchw, prepared, *, n_actions, batch_tile=8):
    B, C, H, W = x_nchw.shape
    d = _dqn_dims(C, H, W)
    bt = min(batch_tile, B)
    nb = -(-B // bt)
    b_pad = nb * bt

    xe, xo = _pack_conv1_inputs(x_nchw, d)
    if b_pad != B:
        pad = ((0, b_pad - B), (0, 0), (0, 0), (0, 0))
        xe = jnp.pad(xe, pad)
        xo = jnp.pad(xo, pad)

    R1, WN = d["R1"], d["WN"]
    KIN = S1 * K1 * C
    kernel = functools.partial(_dqn_kernel, d=d, bt=bt)

    flops = 2 * b_pad * (d["OH1"] * d["OW1"] * K1 * K1 * C * 32 +
                         d["OH2"] * d["OW2"] * K2 * K2 * 32 * 64 +
                         d["OH3"] * d["OW3"] * K3 * K3 * 64 * 64 +
                         d["conv_out"] * HIDDEN + HIDDEN * CP)
    weight_bytes = sum(int(v.size) * v.dtype.itemsize for v in prepared.values())
    bytes_accessed = (int(xe.size) + int(xo.size)) * 2 + weight_bytes + b_pad * CP * 4

    grid_spec = pltpu.PrefetchScalarGridSpec(
        num_scalar_prefetch=0,
        grid=(nb,),
        in_specs=[
            pl.BlockSpec((bt, R1 + 1, WN, KIN), lambda b: (b, 0, 0, 0)),
            pl.BlockSpec((bt, R1 + 1, WN, KIN), lambda b: (b, 0, 0, 0)),
            # Weights / biases: full-array blocks, constant index maps ->
            # VMEM-resident, DMA'd once for the whole grid.
            pl.BlockSpec(prepared["w1"].shape, lambda b: (0, 0, 0)),
            pl.BlockSpec(prepared["b1"].shape, lambda b: (0, 0)),
            pl.BlockSpec(prepared["w2"].shape, lambda b: (0, 0, 0, 0)),
            pl.BlockSpec(prepared["b2"].shape, lambda b: (0, 0)),
            pl.BlockSpec(prepared["w3"].shape, lambda b: (0, 0, 0, 0)),
            pl.BlockSpec(prepared["b3"].shape, lambda b: (0, 0)),
            pl.BlockSpec(prepared["w4"].shape, lambda b: (0, 0)),
            pl.BlockSpec(prepared["b4"].shape, lambda b: (0, 0)),
            pl.BlockSpec(prepared["w5"].shape, lambda b: (0, 0)),
            pl.BlockSpec(prepared["b5"].shape, lambda b: (0, 0)),
        ],
        out_specs=pl.BlockSpec((bt, CP), lambda b: (b, 0)),
        scratch_shapes=[
            # conv1 output, bf16, (parity, b, row//2, row%2, col//2, C)
            pltpu.VMEM((2, bt, d["OH2"] + 1, 2, WN, CP), jnp.bfloat16),
        ],
    )

    out = pl.pallas_call(
        kernel,
        out_shape=jax.ShapeDtypeStruct((b_pad, CP), jnp.float32),
        grid_spec=grid_spec,
        compiler_params=pltpu.CompilerParams(
            dimension_semantics=("parallel",)),
        cost_estimate=pl.CostEstimate(flops=int(flops), transcendentals=0,
                                      bytes_accessed=int(bytes_accessed)),
    )(xe, xo, prepared["w1"], prepared["b1"], prepared["w2"], prepared["b2"],
      prepared["w3"], prepared["b3"], prepared["w4"], prepared["b4"],
      prepared["w5"], prepared["b5"])
    return out[:B, :n_actions]


# ----------------------------------------------------------------------------
# Deterministic init (PyTorch layouts) + pure-JAX reference for validation
# ----------------------------------------------------------------------------
def init_params(key, in_channels, hw, n_actions):
    H, W = hw
    conv_out = _dqn_dims(in_channels, H, W)["conv_out"]
    ks = jax.random.split(key, 10)

    def u(k, shape, fan_in):
        b = float(1.0 / (fan_in ** 0.5))
        return jax.random.uniform(k, shape, jnp.float32, -b, b)

    return {
        "w1": u(ks[0], (32, in_channels, K1, K1), in_channels * K1 * K1),
        "b1": u(ks[1], (32,), in_channels * K1 * K1),
        "w2": u(ks[2], (64, 32, K2, K2), 32 * K2 * K2),
        "b2": u(ks[3], (64,), 32 * K2 * K2),
        "w3": u(ks[4], (64, 64, K3, K3), 64 * K3 * K3),
        "b3": u(ks[5], (64,), 64 * K3 * K3),
        "w4": u(ks[6], (HIDDEN, conv_out), conv_out),
        "b4": u(ks[7], (HIDDEN,), conv_out),
        "w5": u(ks[8], (n_actions, HIDDEN), HIDDEN),
        "b5": u(ks[9], (n_actions,), HIDDEN),
    }


def reference_forward(x, params):
    """Pure-JAX (XLA) reference matching the PyTorch module."""
    dn = ("NCHW", "OIHW", "NCHW")
    h = x.astype(jnp.float32) / 256.0
    h = jax.lax.conv_general_dilated(h, params["w1"], (S1, S1), "VALID",
                                     dimension_numbers=dn)
    h = jax.nn.relu(h + params["b1"][None, :, None, None])
    h = jax.lax.conv_general_dilated(h, params["w2"], (S2, S2), "VALID",
                                     dimension_numbers=dn)
    h = jax.nn.relu(h + params["b2"][None, :, None, None])
    h = jax.lax.conv_general_dilated(h, params["w3"], (S3, S3), "VALID",
                                     dimension_numbers=dn)
    h = jax.nn.relu(h + params["b3"][None, :, None, None])
    h = h.reshape(h.shape[0], -1)                                # NCHW flatten
    h = jax.nn.relu(h @ params["w4"].T + params["b4"])
    return h @ params["w5"].T + params["b5"]


if __name__ == "__main__":
    # 44x44 input -> 10x10 -> 4x4 -> 2x2 spatial, conv_out = 64*2*2 = 256.
    B, C, H, W = 2, 4, 44, 44
    n_actions = 6

    key = jax.random.PRNGKey(0)
    kx, kp = jax.random.split(key)
    x = jax.random.uniform(kx, (B, C, H, W), jnp.float32, 0.0, 256.0)
    params = init_params(kp, C, (H, W), n_actions)

    prepared = prepare_params(params, (C, H, W))          # once, at load time

    fwd = jax.jit(simple_dqn_forward, static_argnames=("n_actions", "batch_tile"))
    out = fwd(x, prepared, n_actions=n_actions)
    jax.block_until_ready(out)

    assert out.shape == (B, n_actions), out.shape
    assert out.dtype == jnp.float32

    # Validate against the XLA reference (bf16 MXU operands -> loose tolerance).
    ref = reference_forward(x, params)
    err = float(jnp.max(jnp.abs(out - ref)))
    scale = float(jnp.max(jnp.abs(ref)))
    assert err <= 0.05 * scale + 0.05, (err, scale)

    print("KERNEL_OK")
</pallas_src>

<mosaic_0001>
module attributes {stable_mosaic.version = 11 : i64} {
  func.func @_dqn_kernel(%arg0: i32, %arg1: memref<2x11x5x128xbf16, #tpu.memory_space<vmem>>, %arg2: memref<2x11x5x128xbf16, #tpu.memory_space<vmem>>, %arg3: memref<2x128x128xbf16, #tpu.memory_space<vmem>>, %arg4: memref<1x128xf32, #tpu.memory_space<vmem>>, %arg5: memref<4x4x128x128xbf16, #tpu.memory_space<vmem>>, %arg6: memref<1x128xf32, #tpu.memory_space<vmem>>, %arg7: memref<3x3x128x128xbf16, #tpu.memory_space<vmem>>, %arg8: memref<1x128xf32, #tpu.memory_space<vmem>>, %arg9: memref<512x512xbf16, #tpu.memory_space<vmem>>, %arg10: memref<1x512xf32, #tpu.memory_space<vmem>>, %arg11: memref<512x128xbf16, #tpu.memory_space<vmem>>, %arg12: memref<1x128xf32, #tpu.memory_space<vmem>>, %arg13: memref<2x128xf32, #tpu.memory_space<vmem>>, %arg14: memref<2x2x5x2x5x128xbf16, #tpu.memory_space<vmem>>) attributes {dimension_semantics = [#tpu.dimension_semantics<parallel>], iteration_bounds = array<i64: 1>, scalar_prefetch = 0 : i64, scratch_operands = 1 : i64, tpu.core_type = #tpu.core_type<tc>, window_params = [{transform_indices = @transform_0, window_bounds = array<i64: 2, 11, 5, 128>}, {transform_indices = @transform_1, window_bounds = array<i64: 2, 11, 5, 128>}, {pipeline_mode = #tpu.pipeline_mode<synchronous>, transform_indices = @transform_2, window_bounds = array<i64: 2, 128, 128>}, {pipeline_mode = #tpu.pipeline_mode<synchronous>, transform_indices = @transform_3, window_bounds = array<i64: 1, 128>}, {pipeline_mode = #tpu.pipeline_mode<synchronous>, transform_indices = @transform_4, window_bounds = array<i64: 4, 4, 128, 128>}, {pipeline_mode = #tpu.pipeline_mode<synchronous>, transform_indices = @transform_5, window_bounds = array<i64: 1, 128>}, {pipeline_mode = #tpu.pipeline_mode<synchronous>, transform_indices = @transform_6, window_bounds = array<i64: 3, 3, 128, 128>}, {pipeline_mode = #tpu.pipeline_mode<synchronous>, transform_indices = @transform_7, window_bounds = array<i64: 1, 128>}, {pipeline_mode = #tpu.pipeline_mode<synchronous>, transform_indices = @transform_8, window_bounds = array<i64: 512, 512>}, {pipeline_mode = #tpu.pipeline_mode<synchronous>, transform_indices = @transform_9, window_bounds = array<i64: 1, 512>}, {pipeline_mode = #tpu.pipeline_mode<synchronous>, transform_indices = @transform_10, window_bounds = array<i64: 512, 128>}, {pipeline_mode = #tpu.pipeline_mode<synchronous>, transform_indices = @transform_11, window_bounds = array<i64: 1, 128>}, {transform_indices = @transform_12, window_bounds = array<i64: 2, 128>}]} {
    %cst = arith.constant 0.000000e+00 : f32
    %0 = vector.broadcast %cst : f32 to vector<100x128xf32>
    %cst_0 = arith.constant 0.000000e+00 : f32
    %1 = vector.broadcast %cst_0 : f32 to vector<100x128xf32>
    %c0 = arith.constant 0 : index
    %c0_1 = arith.constant 0 : index
    %c0_2 = arith.constant 0 : index
    %c0_3 = arith.constant 0 : index
    %2 = vector.load %arg1[%c0, %c0_1, %c0_2, %c0_3] : memref<2x11x5x128xbf16, #tpu.memory_space<vmem>>, vector<2x10x5x128xbf16>
    %3 = vector.shape_cast %2 : vector<2x10x5x128xbf16> to vector<100x128xbf16>
    %c0_4 = arith.constant 0 : index
    %c0_5 = arith.constant 0 : index
    %c0_6 = arith.constant 0 : index
    %4 = vector.load %arg3[%c0_4, %c0_5, %c0_6] : memref<2x128x128xbf16, #tpu.memory_space<vmem>>, vector<1x128x128xbf16>
    %5 = vector.shape_cast %4 : vector<1x128x128xbf16> to vector<128x128xbf16>
    %cst_7 = arith.constant dense<0.000000e+00> : vector<100x128xf32>
    %6 = tpu.matmul %3, %5, %cst_7 {dimension_numbers = #tpu.dot_dimension_numbers<[1], [0], [0], [1], [0, 0, 1, 1], [], []>} : vector<100x128xbf16>, vector<128x128xbf16>, vector<100x128xf32> -> vector<100x128xf32>
    %7 = arith.addf %0, %6 : vector<100x128xf32>
    %c0_8 = arith.constant 0 : index
    %c0_9 = arith.constant 0 : index
    %c0_10 = arith.constant 0 : index
    %c0_11 = arith.constant 0 : index
    %8 = vector.load %arg2[%c0_8, %c0_9, %c0_10, %c0_11] : memref<2x11x5x128xbf16, #tpu.memory_space<vmem>>, vector<2x10x5x128xbf16>
    %9 = vector.shape_cast %8 : vector<2x10x5x128xbf16> to vector<100x128xbf16>
    %c0_12 = arith.constant 0 : index
    %c0_13 = arith.constant 0 : index
    %c0_14 = arith.constant 0 : index
    %10 = vector.load %arg3[%c0_12, %c0_13, %c0_14] : memref<2x128x128xbf16, #tpu.memory_space<vmem>>, vector<1x128x128xbf16>
    %11 = vector.shape_cast %10 : vector<1x128x128xbf16> to vector<128x128xbf16>
    %cst_15 = arith.constant dense<0.000000e+00> : vector<100x128xf32>
    %12 = tpu.matmul %9, %11, %cst_15 {dimension_numbers = #tpu.dot_dimension_numbers<[1], [0], [0], [1], [0, 0, 1, 1], [], []>} : vector<100x128xbf16>, vector<128x128xbf16>, vector<100x128xf32> -> vector<100x128xf32>
    %13 = arith.addf %1, %12 : vector<100x128xf32>
    %c0_16 = arith.constant 0 : index
    %c1 = arith.constant 1 : index
    %c0_17 = arith.constant 0 : index
    %c0_18 = arith.constant 0 : index
    %14 = vector.load %arg1[%c0_16, %c1, %c0_17, %c0_18] : memref<2x11x5x128xbf16, #tpu.memory_space<vmem>>, vector<2x10x5x128xbf16>
    %15 = vector.shape_cast %14 : vector<2x10x5x128xbf16> to vector<100x128xbf16>
    %c1_19 = arith.constant 1 : index
    %c0_20 = arith.constant 0 : index
    %c0_21 = arith.constant 0 : index
    %16 = vector.load %arg3[%c1_19, %c0_20, %c0_21] : memref<2x128x128xbf16, #tpu.memory_space<vmem>>, vector<1x128x128xbf16>
    %17 = vector.shape_cast %16 : vector<1x128x128xbf16> to vector<128x128xbf16>
    %cst_22 = arith.constant dense<0.000000e+00> : vector<100x128xf32>
    %18 = tpu.matmul %15, %17, %cst_22 {dimension_numbers = #tpu.dot_dimension_numbers<[1], [0], [0], [1], [0, 0, 1, 1], [], []>} : vector<100x128xbf16>, vector<128x128xbf16>, vector<100x128xf32> -> vector<100x128xf32>
    %19 = arith.addf %7, %18 : vector<100x128xf32>
    %c0_23 = arith.constant 0 : index
    %c1_24 = arith.constant 1 : index
    %c0_25 = arith.constant 0 : index
    %c0_26 = arith.constant 0 : index
    %20 = vector.load %arg2[%c0_23, %c1_24, %c0_25, %c0_26] : memref<2x11x5x128xbf16, #tpu.memory_space<vmem>>, vector<2x10x5x128xbf16>
    %21 = vector.shape_cast %20 : vector<2x10x5x128xbf16> to vector<100x128xbf16>
    %c1_27 = arith.constant 1 : index
    %c0_28 = arith.constant 0 : index
    %c0_29 = arith.constant 0 : index
    %22 = vector.load %arg3[%c1_27, %c0_28, %c0_29] : memref<2x128x128xbf16, #tpu.memory_space<vmem>>, vector<1x128x128xbf16>
    %23 = vector.shape_cast %22 : vector<1x128x128xbf16> to vector<128x128xbf16>
    %cst_30 = arith.constant dense<0.000000e+00> : vector<100x128xf32>
    %24 = tpu.matmul %21, %23, %cst_30 {dimension_numbers = #tpu.dot_dimension_numbers<[1], [0], [0], [1], [0, 0, 1, 1], [], []>} : vector<100x128xbf16>, vector<128x128xbf16>, vector<100x128xf32> -> vector<100x128xf32>
    %25 = arith.addf %13, %24 : vector<100x128xf32>
    %c0_31 = arith.constant 0 : index
    %c0_32 = arith.constant 0 : index
    %26 = vector.load %arg4[%c0_31, %c0_32] : memref<1x128xf32, #tpu.memory_space<vmem>>, vector<1x128xf32>
    %27 = vector.broadcast %26 : vector<1x128xf32> to vector<100x128xf32>
    %28 = arith.addf %19, %27 : vector<100x128xf32>
    %cst_33 = arith.constant 0.000000e+00 : f32
    %29 = vector.broadcast %cst_33 : f32 to vector<100x128xf32>
    %30 = arith.maximumf %28, %29 : vector<100x128xf32>
    %31 = arith.truncf %30 : vector<100x128xf32> to vector<100x128xbf16>
    %c0_34 = arith.constant 0 : index
    %c0_35 = arith.constant 0 : index
    %32 = vector.load %arg4[%c0_34, %c0_35] : memref<1x128xf32, #tpu.memory_space<vmem>>, vector<1x128xf32>
    %33 = vector.broadcast %32 : vector<1x128xf32> to vector<100x128xf32>
    %34 = arith.addf %25, %33 : vector<100x128xf32>
    %cst_36 = arith.constant 0.000000e+00 : f32
    %35 = vector.broadcast %cst_36 : f32 to vector<100x128xf32>
    %36 = arith.maximumf %34, %35 : vector<100x128xf32>
    %37 = arith.truncf %36 : vector<100x128xf32> to vector<100x128xbf16>
    %38 = vector.shape_cast %31 : vector<100x128xbf16> to vector<2x5x2x5x128xbf16>
    %c0_37 = arith.constant 0 : index
    %c0_38 = arith.constant 0 : index
    %c0_39 = arith.constant 0 : index
    %c0_40 = arith.constant 0 : index
    %c0_41 = arith.constant 0 : index
    %c0_42 = arith.constant 0 : index
    %39 = vector.load %arg14[%c0_37, %c0_38, %c0_39, %c0_40, %c0_41, %c0_42] : memref<2x2x5x2x5x128xbf16, #tpu.memory_space<vmem>>, vector<1x2x5x2x5x128xbf16>
    %40 = vector.shape_cast %39 : vector<1x2x5x2x5x128xbf16> to vector<2x5x2x5x128xbf16>
    %41 = vector.shape_cast %38 : vector<2x5x2x5x128xbf16> to vector<1x2x5x2x5x128xbf16>
    tpu.vector_store %arg14[%c0_37, %c0_38, %c0_39, %c0_40, %c0_41, %c0_42], %41 {strides = array<i32>} : memref<2x2x5x2x5x128xbf16, #tpu.memory_space<vmem>>, vector<1x2x5x2x5x128xbf16>,
    %42 = vector.shape_cast %37 : vector<100x128xbf16> to vector<2x5x2x5x128xbf16>
    %c1_43 = arith.constant 1 : index
    %c0_44 = arith.constant 0 : index
    %c0_45 = arith.constant 0 : index
    %c0_46 = arith.constant 0 : index
    %c0_47 = arith.constant 0 : index
    %c0_48 = arith.constant 0 : index
    %43 = vector.load %arg14[%c1_43, %c0_44, %c0_45, %c0_46, %c0_47, %c0_48] : memref<2x2x5x2x5x128xbf16, #tpu.memory_space<vmem>>, vector<1x2x5x2x5x128xbf16>
    %44 = vector.shape_cast %43 : vector<1x2x5x2x5x128xbf16> to vector<2x5x2x5x128xbf16>
    %45 = vector.shape_cast %42 : vector<2x5x2x5x128xbf16> to vector<1x2x5x2x5x128xbf16>
    tpu.vector_store %arg14[%c1_43, %c0_44, %c0_45, %c0_46, %c0_47, %c0_48], %45 {strides = array<i32>} : memref<2x2x5x2x5x128xbf16, #tpu.memory_space<vmem>>, vector<1x2x5x2x5x128xbf16>,
    %cst_49 = arith.constant 0.000000e+00 : f32
    %46 = vector.broadcast %cst_49 : f32 to vector<32x128xf32>
    %c0_50 = arith.constant 0 : index
    %c0_51 = arith.constant 0 : index
    %c0_52 = arith.constant 0 : index
    %c0_53 = arith.constant 0 : index
    %c0_54 = arith.constant 0 : index
    %c0_55 = arith.constant 0 : index
    %47 = vector.load %arg14[%c0_50, %c0_51, %c0_52, %c0_53, %c0_54, %c0_55] : memref<2x2x5x2x5x128xbf16, #tpu.memory_space<vmem>>, vector<1x2x4x1x4x128xbf16>
    %48 = vector.shape_cast %47 : vector<1x2x4x1x4x128xbf16> to vector<2x4x4x128xbf16>
    %49 = vector.shape_cast %48 : vector<2x4x4x128xbf16> to vector<32x128xbf16>
    %c0_56 = arith.constant 0 : index
    %c0_57 = arith.constant 0 : index
    %c0_58 = arith.constant 0 : index
    %c0_59 = arith.constant 0 : index
    %50 = vector.load %arg5[%c0_56, %c0_57, %c0_58, %c0_59] : memref<4x4x128x128xbf16, #tpu.memory_space<vmem>>, vector<1x1x128x128xbf16>
    %51 = vector.shape_cast %50 : vector<1x1x128x128xbf16> to vector<128x128xbf16>
    %cst_60 = arith.constant dense<0.000000e+00> : vector<32x128xf32>
    %52 = tpu.matmul %49, %51, %cst_60 {dimension_numbers = #tpu.dot_dimension_numbers<[1], [0], [0], [1], [0, 0, 1, 1], [], []>} : vector<32x128xbf16>, vector<128x128xbf16>, vector<32x128xf32> -> vector<32x128xf32>
    %53 = arith.addf %46, %52 : vector<32x128xf32>
    %c1_61 = arith.constant 1 : index
    %c0_62 = arith.constant 0 : index
    %c0_63 = arith.constant 0 : index
    %c0_64 = arith.constant 0 : index
    %c0_65 = arith.constant 0 : index
    %c0_66 = arith.constant 0 : index
    %54 = vector.load %arg14[%c1_61, %c0_62, %c0_63, %c0_64, %c0_65, %c0_66] : memref<2x2x5x2x5x128xbf16, #tpu.memory_space<vmem>>, vector<1x2x4x1x4x128xbf16>
    %55 = vector.shape_cast %54 : vector<1x2x4x1x4x128xbf16> to vector<2x4x4x128xbf16>
    %56 = vector.shape_cast %55 : vector<2x4x4x128xbf16> to vector<32x128xbf16>
    %c0_67 = arith.constant 0 : index
    %c1_68 = arith.constant 1 : index
    %c0_69 = arith.constant 0 : index
    %c0_70 = arith.constant 0 : index
    %57 = vector.load %arg5[%c0_67, %c1_68, %c0_69, %c0_70] : memref<4x4x128x128xbf16, #tpu.memory_space<vmem>>, vector<1x1x128x128xbf16>
    %58 = vector.shape_cast %57 : vector<1x1x128x128xbf16> to vector<128x128xbf16>
    %cst_71 = arith.constant dense<0.000000e+00> : vector<32x128xf32>
    %59 = tpu.matmul %56, %58, %cst_71 {dimension_numbers = #tpu.dot_dimension_numbers<[1], [0], [0], [1], [0, 0, 1, 1], [], []>} : vector<32x128xbf16>, vector<128x128xbf16>, vector<32x128xf32> -> vector<32x128xf32>
    %60 = arith.addf %53, %59 : vector<32x128xf32>
    %c0_72 = arith.constant 0 : index
    %c0_73 = arith.constant 0 : index
    %c0_74 = arith.constant 0 : index
    %c0_75 = arith.constant 0 : index
    %c1_76 = arith.constant 1 : index
    %c0_77 = arith.constant 0 : index
    %61 = vector.load %arg14[%c0_72, %c0_73, %c0_74, %c0_75, %c1_76, %c0_77] : memref<2x2x5x2x5x128xbf16, #tpu.memory_space<vmem>>, vector<1x2x4x1x4x128xbf16>
    %62 = vector.shape_cast %61 : vector<1x2x4x1x4x128xbf16> to vector<2x4x4x128xbf16>
    %63 = vector.shape_cast %62 : vector<2x4x4x128xbf16> to vector<32x128xbf16>
    %c0_78 = arith.constant 0 : index
    %c2 = arith.constant 2 : index
    %c0_79 = arith.constant 0 : index
    %c0_80 = arith.constant 0 : index
    %64 = vector.load %arg5[%c0_78, %c2, %c0_79, %c0_80] : memref<4x4x128x128xbf16, #tpu.memory_space<vmem>>, vector<1x1x128x128xbf16>
    %65 = vector.shape_cast %64 : vector<1x1x128x128xbf16> to vector<128x128xbf16>
    %cst_81 = arith.constant dense<0.000000e+00> : vector<32x128xf32>
    %66 = tpu.matmul %63, %65, %cst_81 {dimension_numbers = #tpu.dot_dimension_numbers<[1], [0], [0], [1], [0, 0, 1, 1], [], []>} : vector<32x128xbf16>, vector<128x128xbf16>, vector<32x128xf32> -> vector<32x128xf32>
    %67 = arith.addf %60, %66 : vector<32x128xf32>
    %c1_82 = arith.constant 1 : index
    %c0_83 = arith.constant 0 : index
    %c0_84 = arith.constant 0 : index
    %c0_85 = arith.constant 0 : index
    %c1_86 = arith.constant 1 : index
    %c0_87 = arith.constant 0 : index
    %68 = vector.load %arg14[%c1_82, %c0_83, %c0_84, %c0_85, %c1_86, %c0_87] : memref<2x2x5x2x5x128xbf16, #tpu.memory_space<vmem>>, vector<1x2x4x1x4x128xbf16>
    %69 = vector.shape_cast %68 : vector<1x2x4x1x4x128xbf16> to vector<2x4x4x128xbf16>
    %70 = vector.shape_cast %69 : vector<2x4x4x128xbf16> to vector<32x128xbf16>
    %c0_88 = arith.constant 0 : index
    %c3 = arith.constant 3 : index
    %c0_89 = arith.constant 0 : index
    %c0_90 = arith.constant 0 : index
    %71 = vector.load %arg5[%c0_88, %c3, %c0_89, %c0_90] : memref<4x4x128x128xbf16, #tpu.memory_space<vmem>>, vector<1x1x128x128xbf16>
    %72 = vector.shape_cast %71 : vector<1x1x128x128xbf16> to vector<128x128xbf16>
    %cst_91 = arith.constant dense<0.000000e+00> : vector<32x128xf32>
    %73 = tpu.matmul %70, %72, %cst_91 {dimension_numbers = #tpu.dot_dimension_numbers<[1], [0], [0], [1], [0, 0, 1, 1], [], []>} : vector<32x128xbf16>, vector<128x128xbf16>, vector<32x128xf32> -> vector<32x128xf32>
    %74 = arith.addf %67, %73 : vector<32x128xf32>
    %c0_92 = arith.constant 0 : index
    %c0_93 = arith.constant 0 : index
    %c0_94 = arith.constant 0 : index
    %c1_95 = arith.constant 1 : index
    %c0_96 = arith.constant 0 : index
    %c0_97 = arith.constant 0 : index
    %75 = vector.load %arg14[%c0_92, %c0_93, %c0_94, %c1_95, %c0_96, %c0_97] : memref<2x2x5x2x5x128xbf16, #tpu.memory_space<vmem>>, vector<1x2x4x1x4x128xbf16>
    %76 = vector.shape_cast %75 : vector<1x2x4x1x4x128xbf16> to vector<2x4x4x128xbf16>
    %77 = vector.shape_cast %76 : vector<2x4x4x128xbf16> to vector<32x128xbf16>
    %c1_98 = arith.constant 1 : index
    %c0_99 = arith.constant 0 : index
    %c0_100 = arith.constant 0 : index
    %c0_101 = arith.constant 0 : index
    %78 = vector.load %arg5[%c1_98, %c0_99, %c0_100, %c0_101] : memref<4x4x128x128xbf16, #tpu.memory_space<vmem>>, vector<1x1x128x128xbf16>
    %79 = vector.shape_cast %78 : vector<1x1x128x128xbf16> to vector<128x128xbf16>
    %cst_102 = arith.constant dense<0.000000e+00> : vector<32x128xf32>
    %80 = tpu.matmul %77, %79, %cst_102 {dimension_numbers = #tpu.dot_dimension_numbers<[1], [0], [0], [1], [0, 0, 1, 1], [], []>} : vector<32x128xbf16>, vector<128x128xbf16>, vector<32x128xf32> -> vector<32x128xf32>
    %81 = arith.addf %74, %80 : vector<32x128xf32>
    %c1_103 = arith.constant 1 : index
    %c0_104 = arith.constant 0 : index
    %c0_105 = arith.constant 0 : index
    %c1_106 = arith.constant 1 : index
    %c0_107 = arith.constant 0 : index
    %c0_108 = arith.constant 0 : index
    %82 = vector.load %arg14[%c1_103, %c0_104, %c0_105, %c1_106, %c0_107, %c0_108] : memref<2x2x5x2x5x128xbf16, #tpu.memory_space<vmem>>, vector<1x2x4x1x4x128xbf16>
    %83 = vector.shape_cast %82 : vector<1x2x4x1x4x128xbf16> to vector<2x4x4x128xbf16>
    %84 = vector.shape_cast %83 : vector<2x4x4x128xbf16> to vector<32x128xbf16>
    %c1_109 = arith.constant 1 : index
    %c1_110 = arith.constant 1 : index
    %c0_111 = arith.constant 0 : index
    %c0_112 = arith.constant 0 : index
    %85 = vector.load %arg5[%c1_109, %c1_110, %c0_111, %c0_112] : memref<4x4x128x128xbf16, #tpu.memory_space<vmem>>, vector<1x1x128x128xbf16>
    %86 = vector.shape_cast %85 : vector<1x1x128x128xbf16> to vector<128x128xbf16>
    %cst_113 = arith.constant dense<0.000000e+00> : vector<32x128xf32>
    %87 = tpu.matmul %84, %86, %cst_113 {dimension_numbers = #tpu.dot_dimension_numbers<[1], [0], [0], [1], [0, 0, 1, 1], [], []>} : vector<32x128xbf16>, vector<128x128xbf16>, vector<32x128xf32> -> vector<32x128xf32>
    %88 = arith.addf %81, %87 : vector<32x128xf32>
    %c0_114 = arith.constant 0 : index
    %c0_115 = arith.constant 0 : index
    %c0_116 = arith.constant 0 : index
    %c1_117 = arith.constant 1 : index
    %c1_118 = arith.constant 1 : index
    %c0_119 = arith.constant 0 : index
    %89 = vector.load %arg14[%c0_114, %c0_115, %c0_116, %c1_117, %c1_118, %c0_119] : memref<2x2x5x2x5x128xbf16, #tpu.memory_space<vmem>>, vector<1x2x4x1x4x128xbf16>
    %90 = vector.shape_cast %89 : vector<1x2x4x1x4x128xbf16> to vector<2x4x4x128xbf16>
    %91 = vector.shape_cast %90 : vector<2x4x4x128xbf16> to vector<32x128xbf16>
    %c1_120 = arith.constant 1 : index
    %c2_121 = arith.constant 2 : index
    %c0_122 = arith.constant 0 : index
    %c0_123 = arith.constant 0 : index
    %92 = vector.load %arg5[%c1_120, %c2_121, %c0_122, %c0_123] : memref<4x4x128x128xbf16, #tpu.memory_space<vmem>>, vector<1x1x128x128xbf16>
    %93 = vector.shape_cast %92 : vector<1x1x128x128xbf16> to vector<128x128xbf16>
    %cst_124 = arith.constant dense<0.000000e+00> : vector<32x128xf32>
    %94 = tpu.matmul %91, %93, %cst_124 {dimension_numbers = #tpu.dot_dimension_numbers<[1], [0], [0], [1], [0, 0, 1, 1], [], []>} : vector<32x128xbf16>, vector<128x128xbf16>, vector<32x128xf32> -> vector<32x128xf32>
    %95 = arith.addf %88, %94 : vector<32x128xf32>
    %c1_125 = arith.constant 1 : index
    %c0_126 = arith.constant 0 : index
    %c0_127 = arith.constant 0 : index
    %c1_128 = arith.constant 1 : index
    %c1_129 = arith.constant 1 : index
    %c0_130 = arith.constant 0 : index
    %96 = vector.load %arg14[%c1_125, %c0_126, %c0_127, %c1_128, %c1_129, %c0_130] : memref<2x2x5x2x5x128xbf16, #tpu.memory_space<vmem>>, vector<1x2x4x1x4x128xbf16>
    %97 = vector.shape_cast %96 : vector<1x2x4x1x4x128xbf16> to vector<2x4x4x128xbf16>
    %98 = vector.shape_cast %97 : vector<2x4x4x128xbf16> to vector<32x128xbf16>
    %c1_131 = arith.constant 1 : index
    %c3_132 = arith.constant 3 : index
    %c0_133 = arith.constant 0 : index
    %c0_134 = arith.constant 0 : index
    %99 = vector.load %arg5[%c1_131, %c3_132, %c0_133, %c0_134] : memref<4x4x128x128xbf16, #tpu.memory_space<vmem>>, vector<1x1x128x128xbf16>
    %100 = vector.shape_cast %99 : vector<1x1x128x128xbf16> to vector<128x128xbf16>
    %cst_135 = arith.constant dense<0.000000e+00> : vector<32x128xf32>
    %101 = tpu.matmul %98, %100, %cst_135 {dimension_numbers = #tpu.dot_dimension_numbers<[1], [0], [0], [1], [0, 0, 1, 1], [], []>} : vector<32x128xbf16>, vector<128x128xbf16>, vector<32x128xf32> -> vector<32x128xf32>
    %102 = arith.addf %95, %101 : vector<32x128xf32>
    %c0_136 = arith.constant 0 : index
    %c0_137 = arith.constant 0 : index
    %c1_138 = arith.constant 1 : index
    %c0_139 = arith.constant 0 : index
    %c0_140 = arith.constant 0 : index
    %c0_141 = arith.constant 0 : index
    %103 = vector.load %arg14[%c0_136, %c0_137, %c1_138, %c0_139, %c0_140, %c0_141] : memref<2x2x5x2x5x128xbf16, #tpu.memory_space<vmem>>, vector<1x2x4x1x4x128xbf16>
    %104 = vector.shape_cast %103 : vector<1x2x4x1x4x128xbf16> to vector<2x4x4x128xbf16>
    %105 = vector.shape_cast %104 : vector<2x4x4x128xbf16> to vector<32x128xbf16>
    %c2_142 = arith.constant 2 : index
    %c0_143 = arith.constant 0 : index
    %c0_144 = arith.constant 0 : index
    %c0_145 = arith.constant 0 : index
    %106 = vector.load %arg5[%c2_142, %c0_143, %c0_144, %c0_145] : memref<4x4x128x128xbf16, #tpu.memory_space<vmem>>, vector<1x1x128x128xbf16>
    %107 = vector.shape_cast %106 : vector<1x1x128x128xbf16> to vector<128x128xbf16>
    %cst_146 = arith.constant dense<0.000000e+00> : vector<32x128xf32>
    %108 = tpu.matmul %105, %107, %cst_146 {dimension_numbers = #tpu.dot_dimension_numbers<[1], [0], [0], [1], [0, 0, 1, 1], [], []>} : vector<32x128xbf16>, vector<128x128xbf16>, vector<32x128xf32> -> vector<32x128xf32>
    %109 = arith.addf %102, %108 : vector<32x128xf32>
    %c1_147 = arith.constant 1 : index
    %c0_148 = arith.constant 0 : index
    %c1_149 = arith.constant 1 : index
    %c0_150 = arith.constant 0 : index
    %c0_151 = arith.constant 0 : index
    %c0_152 = arith.constant 0 : index
    %110 = vector.load %arg14[%c1_147, %c0_148, %c1_149, %c0_150, %c0_151, %c0_152] : memref<2x2x5x2x5x128xbf16, #tpu.memory_space<vmem>>, vector<1x2x4x1x4x128xbf16>
    %111 = vector.shape_cast %110 : vector<1x2x4x1x4x128xbf16> to vector<2x4x4x128xbf16>
    %112 = vector.shape_cast %111 : vector<2x4x4x128xbf16> to vector<32x128xbf16>
    %c2_153 = arith.constant 2 : index
    %c1_154 = arith.constant 1 : index
    %c0_155 = arith.constant 0 : index
    %c0_156 = arith.constant 0 : index
    %113 = vector.load %arg5[%c2_153, %c1_154, %c0_155, %c0_156] : memref<4x4x128x128xbf16, #tpu.memory_space<vmem>>, vector<1x1x128x128xbf16>
    %114 = vector.shape_cast %113 : vector<1x1x128x128xbf16> to vector<128x128xbf16>
    %cst_157 = arith.constant dense<0.000000e+00> : vector<32x128xf32>
    %115 = tpu.matmul %112, %114, %cst_157 {dimension_numbers = #tpu.dot_dimension_numbers<[1], [0], [0], [1], [0, 0, 1, 1], [], []>} : vector<32x128xbf16>, vector<128x128xbf16>, vector<32x128xf32> -> vector<32x128xf32>
    %116 = arith.addf %109, %115 : vector<32x128xf32>
    %c0_158 = arith.constant 0 : index
    %c0_159 = arith.constant 0 : index
    %c1_160 = arith.constant 1 : index
    %c0_161 = arith.constant 0 : index
    %c1_162 = arith.constant 1 : index
    %c0_163 = arith.constant 0 : index
    %117 = vector.load %arg14[%c0_158, %c0_159, %c1_160, %c0_161, %c1_162, %c0_163] : memref<2x2x5x2x5x128xbf16, #tpu.memory_space<vmem>>, vector<1x2x4x1x4x128xbf16>
    %118 = vector.shape_cast %117 : vector<1x2x4x1x4x128xbf16> to vector<2x4x4x128xbf16>
    %119 = vector.shape_cast %118 : vector<2x4x4x128xbf16> to vector<32x128xbf16>
    %c2_164 = arith.constant 2 : index
    %c2_165 = arith.constant 2 : index
    %c0_166 = arith.constant 0 : index
    %c0_167 = arith.constant 0 : index
    %120 = vector.load %arg5[%c2_164, %c2_165, %c0_166, %c0_167] : memref<4x4x128x128xbf16, #tpu.memory_space<vmem>>, vector<1x1x128x128xbf16>
    %121 = vector.shape_cast %120 : vector<1x1x128x128xbf16> to vector<128x128xbf16>
    %cst_168 = arith.constant dense<0.000000e+00> : vector<32x128xf32>
    %122 = tpu.matmul %119, %121, %cst_168 {dimension_numbers = #tpu.dot_dimension_numbers<[1], [0], [0], [1], [0, 0, 1, 1], [], []>} : vector<32x128xbf16>, vector<128x128xbf16>, vector<32x128xf32> -> vector<32x128xf32>
    %123 = arith.addf %116, %122 : vector<32x128xf32>
    %c1_169 = arith.constant 1 : index
    %c0_170 = arith.constant 0 : index
    %c1_171 = arith.constant 1 : index
    %c0_172 = arith.constant 0 : index
    %c1_173 = arith.constant 1 : index
    %c0_174 = arith.constant 0 : index
    %124 = vector.load %arg14[%c1_169, %c0_170, %c1_171, %c0_172, %c1_173, %c0_174] : memref<2x2x5x2x5x128xbf16, #tpu.memory_space<vmem>>, vector<1x2x4x1x4x128xbf16>
    %125 = vector.shape_cast %124 : vector<1x2x4x1x4x128xbf16> to vector<2x4x4x128xbf16>
    %126 = vector.shape_cast %125 : vector<2x4x4x128xbf16> to vector<32x128xbf16>
    %c2_175 = arith.constant 2 : index
    %c3_176 = arith.constant 3 : index
    %c0_177 = arith.constant 0 : index
    %c0_178 = arith.constant 0 : index
    %127 = vector.load %arg5[%c2_175, %c3_176, %c0_177, %c0_178] : memref<4x4x128x128xbf16, #tpu.memory_space<vmem>>, vector<1x1x128x128xbf16>
    %128 = vector.shape_cast %127 : vector<1x1x128x128xbf16> to vector<128x128xbf16>
    %cst_179 = arith.constant dense<0.000000e+00> : vector<32x128xf32>
    %129 = tpu.matmul %126, %128, %cst_179 {dimension_numbers = #tpu.dot_dimension_numbers<[1], [0], [0], [1], [0, 0, 1, 1], [], []>} : vector<32x128xbf16>, vector<128x128xbf16>, vector<32x128xf32> -> vector<32x128xf32>
    %130 = arith.addf %123, %129 : vector<32x128xf32>
    %c0_180 = arith.constant 0 : index
    %c0_181 = arith.constant 0 : index
    %c1_182 = arith.constant 1 : index
    %c1_183 = arith.constant 1 : index
    %c0_184 = arith.constant 0 : index
    %c0_185 = arith.constant 0 : index
    %131 = vector.load %arg14[%c0_180, %c0_181, %c1_182, %c1_183, %c0_184, %c0_185] : memref<2x2x5x2x5x128xbf16, #tpu.memory_space<vmem>>, vector<1x2x4x1x4x128xbf16>
    %132 = vector.shape_cast %131 : vector<1x2x4x1x4x128xbf16> to vector<2x4x4x128xbf16>
    %133 = vector.shape_cast %132 : vector<2x4x4x128xbf16> to vector<32x128xbf16>
    %c3_186 = arith.constant 3 : index
    %c0_187 = arith.constant 0 : index
    %c0_188 = arith.constant 0 : index
    %c0_189 = arith.constant 0 : index
    %134 = vector.load %arg5[%c3_186, %c0_187, %c0_188, %c0_189] : memref<4x4x128x128xbf16, #tpu.memory_space<vmem>>, vector<1x1x128x128xbf16>
    %135 = vector.shape_cast %134 : vector<1x1x128x128xbf16> to vector<128x128xbf16>
    %cst_190 = arith.constant dense<0.000000e+00> : vector<32x128xf32>
    %136 = tpu.matmul %133, %135, %cst_190 {dimension_numbers = #tpu.dot_dimension_numbers<[1], [0], [0], [1], [0, 0, 1, 1], [], []>} : vector<32x128xbf16>, vector<128x128xbf16>, vector<32x128xf32> -> vector<32x128xf32>
    %137 = arith.addf %130, %136 : vector<32x128xf32>
    %c1_191 = arith.constant 1 : index
    %c0_192 = arith.constant 0 : index
    %c1_193 = arith.constant 1 : index
    %c1_194 = arith.constant 1 : index
    %c0_195 = arith.constant 0 : index
    %c0_196 = arith.constant 0 : index
    %138 = vector.load %arg14[%c1_191, %c0_192, %c1_193, %c1_194, %c0_195, %c0_196] : memref<2x2x5x2x5x128xbf16, #tpu.memory_space<vmem>>, vector<1x2x4x1x4x128xbf16>
    %139 = vector.shape_cast %138 : vector<1x2x4x1x4x128xbf16> to vector<2x4x4x128xbf16>
    %140 = vector.shape_cast %139 : vector<2x4x4x128xbf16> to vector<32x128xbf16>
    %c3_197 = arith.constant 3 : index
    %c1_198 = arith.constant 1 : index
    %c0_199 = arith.constant 0 : index
    %c0_200 = arith.constant 0 : index
    %141 = vector.load %arg5[%c3_197, %c1_198, %c0_199, %c0_200] : memref<4x4x128x128xbf16, #tpu.memory_space<vmem>>, vector<1x1x128x128xbf16>
    %142 = vector.shape_cast %141 : vector<1x1x128x128xbf16> to vector<128x128xbf16>
    %cst_201 = arith.constant dense<0.000000e+00> : vector<32x128xf32>
    %143 = tpu.matmul %140, %142, %cst_201 {dimension_numbers = #tpu.dot_dimension_numbers<[1], [0], [0], [1], [0, 0, 1, 1], [], []>} : vector<32x128xbf16>, vector<128x128xbf16>, vector<32x128xf32> -> vector<32x128xf32>
    %144 = arith.addf %137, %143 : vector<32x128xf32>
    %c0_202 = arith.constant 0 : index
    %c0_203 = arith.constant 0 : index
    %c1_204 = arith.constant 1 : index
    %c1_205 = arith.constant 1 : index
    %c1_206 = arith.constant 1 : index
    %c0_207 = arith.constant 0 : index
    %145 = vector.load %arg14[%c0_202, %c0_203, %c1_204, %c1_205, %c1_206, %c0_207] : memref<2x2x5x2x5x128xbf16, #tpu.memory_space<vmem>>, vector<1x2x4x1x4x128xbf16>
    %146 = vector.shape_cast %145 : vector<1x2x4x1x4x128xbf16> to vector<2x4x4x128xbf16>
    %147 = vector.shape_cast %146 : vector<2x4x4x128xbf16> to vector<32x128xbf16>
    %c3_208 = arith.constant 3 : index
    %c2_209 = arith.constant 2 : index
    %c0_210 = arith.constant 0 : index
    %c0_211 = arith.constant 0 : index
    %148 = vector.load %arg5[%c3_208, %c2_209, %c0_210, %c0_211] : memref<4x4x128x128xbf16, #tpu.memory_space<vmem>>, vector<1x1x128x128xbf16>
    %149 = vector.shape_cast %148 : vector<1x1x128x128xbf16> to vector<128x128xbf16>
    %cst_212 = arith.constant dense<0.000000e+00> : vector<32x128xf32>
    %150 = tpu.matmul %147, %149, %cst_212 {dimension_numbers = #tpu.dot_dimension_numbers<[1], [0], [0], [1], [0, 0, 1, 1], [], []>} : vector<32x128xbf16>, vector<128x128xbf16>, vector<32x128xf32> -> vector<32x128xf32>
    %151 = arith.addf %144, %150 : vector<32x128xf32>
    %c1_213 = arith.constant 1 : index
    %c0_214 = arith.constant 0 : index
    %c1_215 = arith.constant 1 : index
    %c1_216 = arith.constant 1 : index
    %c1_217 = arith.constant 1 : index
    %c0_218 = arith.constant 0 : index
    %152 = vector.load %arg14[%c1_213, %c0_214, %c1_215, %c1_216, %c1_217, %c0_218] : memref<2x2x5x2x5x128xbf16, #tpu.memory_space<vmem>>, vector<1x2x4x1x4x128xbf16>
    %153 = vector.shape_cast %152 : vector<1x2x4x1x4x128xbf16> to vector<2x4x4x128xbf16>
    %154 = vector.shape_cast %153 : vector<2x4x4x128xbf16> to vector<32x128xbf16>
    %c3_219 = arith.constant 3 : index
    %c3_220 = arith.constant 3 : index
    %c0_221 = arith.constant 0 : index
    %c0_222 = arith.constant 0 : index
    %155 = vector.load %arg5[%c3_219, %c3_220, %c0_221, %c0_222] : memref<4x4x128x128xbf16, #tpu.memory_space<vmem>>, vector<1x1x128x128xbf16>
    %156 = vector.shape_cast %155 : vector<1x1x128x128xbf16> to vector<128x128xbf16>
    %cst_223 = arith.constant dense<0.000000e+00> : vector<32x128xf32>
    %157 = tpu.matmul %154, %156, %cst_223 {dimension_numbers = #tpu.dot_dimension_numbers<[1], [0], [0], [1], [0, 0, 1, 1], [], []>} : vector<32x128xbf16>, vector<128x128xbf16>, vector<32x128xf32> -> vector<32x128xf32>
    %158 = arith.addf %151, %157 : vector<32x128xf32>
    %c0_224 = arith.constant 0 : index
    %c0_225 = arith.constant 0 : index
    %159 = vector.load %arg6[%c0_224, %c0_225] : memref<1x128xf32, #tpu.memory_space<vmem>>, vector<1x128xf32>
    %160 = vector.broadcast %159 : vector<1x128xf32> to vector<32x128xf32>
    %161 = arith.addf %158, %160 : vector<32x128xf32>
    %cst_226 = arith.constant 0.000000e+00 : f32
    %162 = vector.broadcast %cst_226 : f32 to vector<32x128xf32>
    %163 = arith.maximumf %161, %162 : vector<32x128xf32>
    %164 = arith.truncf %163 : vector<32x128xf32> to vector<32x128xbf16>
    %165 = vector.shape_cast %164 : vector<32x128xbf16> to vector<2x4x4x128xbf16>
    %cst_227 = arith.constant 0.000000e+00 : f32
    %166 = vector.broadcast %cst_227 : f32 to vector<8x128xf32>
    %167 = vector.extract_strided_slice %165 {offsets = [0, 0, 0, 0], sizes = [2, 2, 2, 128], strides = [1, 1, 1, 1]} : vector<2x4x4x128xbf16> to vector<2x2x2x128xbf16>
    %168 = vector.shape_cast %167 : vector<2x2x2x128xbf16> to vector<8x128xbf16>
    %c0_228 = arith.constant 0 : index
    %c0_229 = arith.constant 0 : index
    %c0_230 = arith.constant 0 : index
    %c0_231 = arith.constant 0 : index
    %169 = vector.load %arg7[%c0_228, %c0_229, %c0_230, %c0_231] : memref<3x3x128x128xbf16, #tpu.memory_space<vmem>>, vector<1x1x128x128xbf16>
    %170 = vector.shape_cast %169 : vector<1x1x128x128xbf16> to vector<128x128xbf16>
    %cst_232 = arith.constant dense<0.000000e+00> : vector<8x128xf32>
    %171 = tpu.matmul %168, %170, %cst_232 {dimension_numbers = #tpu.dot_dimension_numbers<[1], [0], [0], [1], [0, 0, 1, 1], [], []>} : vector<8x128xbf16>, vector<128x128xbf16>, vector<8x128xf32> -> vector<8x128xf32>
    %172 = arith.addf %166, %171 : vector<8x128xf32>
    %173 = vector.extract_strided_slice %165 {offsets = [0, 0, 1, 0], sizes = [2, 2, 2, 128], strides = [1, 1, 1, 1]} : vector<2x4x4x128xbf16> to vector<2x2x2x128xbf16>
    %174 = vector.shape_cast %173 : vector<2x2x2x128xbf16> to vector<8x128xbf16>
    %c0_233 = arith.constant 0 : index
    %c1_234 = arith.constant 1 : index
    %c0_235 = arith.constant 0 : index
    %c0_236 = arith.constant 0 : index
    %175 = vector.load %arg7[%c0_233, %c1_234, %c0_235, %c0_236] : memref<3x3x128x128xbf16, #tpu.memory_space<vmem>>, vector<1x1x128x128xbf16>
    %176 = vector.shape_cast %175 : vector<1x1x128x128xbf16> to vector<128x128xbf16>
    %cst_237 = arith.constant dense<0.000000e+00> : vector<8x128xf32>
    %177 = tpu.matmul %174, %176, %cst_237 {dimension_numbers = #tpu.dot_dimension_numbers<[1], [0], [0], [1], [0, 0, 1, 1], [], []>} : vector<8x128xbf16>, vector<128x128xbf16>, vector<8x128xf32> -> vector<8x128xf32>
    %178 = arith.addf %172, %177 : vector<8x128xf32>
    %179 = vector.extract_strided_slice %165 {offsets = [0, 0, 2, 0], sizes = [2, 2, 2, 128], strides = [1, 1, 1, 1]} : vector<2x4x4x128xbf16> to vector<2x2x2x128xbf16>
    %180 = vector.shape_cast %179 : vector<2x2x2x128xbf16> to vector<8x128xbf16>
    %c0_238 = arith.constant 0 : index
    %c2_239 = arith.constant 2 : index
    %c0_240 = arith.constant 0 : index
    %c0_241 = arith.constant 0 : index
    %181 = vector.load %arg7[%c0_238, %c2_239, %c0_240, %c0_241] : memref<3x3x128x128xbf16, #tpu.memory_space<vmem>>, vector<1x1x128x128xbf16>
    %182 = vector.shape_cast %181 : vector<1x1x128x128xbf16> to vector<128x128xbf16>
    %cst_242 = arith.constant dense<0.000000e+00> : vector<8x128xf32>
    %183 = tpu.matmul %180, %182, %cst_242 {dimension_numbers = #tpu.dot_dimension_numbers<[1], [0], [0], [1], [0, 0, 1, 1], [], []>} : vector<8x128xbf16>, vector<128x128xbf16>, vector<8x128xf32> -> vector<8x128xf32>
    %184 = arith.addf %178, %183 : vector<8x128xf32>
    %185 = vector.extract_strided_slice %165 {offsets = [0, 1, 0, 0], sizes = [2, 2, 2, 128], strides = [1, 1, 1, 1]} : vector<2x4x4x128xbf16> to vector<2x2x2x128xbf16>
    %186 = vector.shape_cast %185 : vector<2x2x2x128xbf16> to vector<8x128xbf16>
    %c1_243 = arith.constant 1 : index
    %c0_244 = arith.constant 0 : index
    %c0_245 = arith.constant 0 : index
    %c0_246 = arith.constant 0 : index
    %187 = vector.load %arg7[%c1_243, %c0_244, %c0_245, %c0_246] : memref<3x3x128x128xbf16, #tpu.memory_space<vmem>>, vector<1x1x128x128xbf16>
    %188 = vector.shape_cast %187 : vector<1x1x128x128xbf16> to vector<128x128xbf16>
    %cst_247 = arith.constant dense<0.000000e+00> : vector<8x128xf32>
    %189 = tpu.matmul %186, %188, %cst_247 {dimension_numbers = #tpu.dot_dimension_numbers<[1], [0], [0], [1], [0, 0, 1, 1], [], []>} : vector<8x128xbf16>, vector<128x128xbf16>, vector<8x128xf32> -> vector<8x128xf32>
    %190 = arith.addf %184, %189 : vector<8x128xf32>
    %191 = vector.extract_strided_slice %165 {offsets = [0, 1, 1, 0], sizes = [2, 2, 2, 128], strides = [1, 1, 1, 1]} : vector<2x4x4x128xbf16> to vector<2x2x2x128xbf16>
    %192 = vector.shape_cast %191 : vector<2x2x2x128xbf16> to vector<8x128xbf16>
    %c1_248 = arith.constant 1 : index
    %c1_249 = arith.constant 1 : index
    %c0_250 = arith.constant 0 : index
    %c0_251 = arith.constant 0 : index
    %193 = vector.load %arg7[%c1_248, %c1_249, %c0_250, %c0_251] : memref<3x3x128x128xbf16, #tpu.memory_space<vmem>>, vector<1x1x128x128xbf16>
    %194 = vector.shape_cast %193 : vector<1x1x128x128xbf16> to vector<128x128xbf16>
    %cst_252 = arith.constant dense<0.000000e+00> : vector<8x128xf32>
    %195 = tpu.matmul %192, %194, %cst_252 {dimension_numbers = #tpu.dot_dimension_numbers<[1], [0], [0], [1], [0, 0, 1, 1], [], []>} : vector<8x128xbf16>, vector<128x128xbf16>, vector<8x128xf32> -> vector<8x128xf32>
    %196 = arith.addf %190, %195 : vector<8x128xf32>
    %197 = vector.extract_strided_slice %165 {offsets = [0, 1, 2, 0], sizes = [2, 2, 2, 128], strides = [1, 1, 1, 1]} : vector<2x4x4x128xbf16> to vector<2x2x2x128xbf16>
    %198 = vector.shape_cast %197 : vector<2x2x2x128xbf16> to vector<8x128xbf16>
    %c1_253 = arith.constant 1 : index
    %c2_254 = arith.constant 2 : index
    %c0_255 = arith.constant 0 : index
    %c0_256 = arith.constant 0 : index
    %199 = vector.load %arg7[%c1_253, %c2_254, %c0_255, %c0_256] : memref<3x3x128x128xbf16, #tpu.memory_space<vmem>>, vector<1x1x128x128xbf16>
    %200 = vector.shape_cast %199 : vector<1x1x128x128xbf16> to vector<128x128xbf16>
    %cst_257 = arith.constant dense<0.000000e+00> : vector<8x128xf32>
    %201 = tpu.matmul %198, %200, %cst_257 {dimension_numbers = #tpu.dot_dimension_numbers<[1], [0], [0], [1], [0, 0, 1, 1], [], []>} : vector<8x128xbf16>, vector<128x128xbf16>, vector<8x128xf32> -> vector<8x128xf32>
    %202 = arith.addf %196, %201 : vector<8x128xf32>
    %203 = vector.extract_strided_slice %165 {offsets = [0, 2, 0, 0], sizes = [2, 2, 2, 128], strides = [1, 1, 1, 1]} : vector<2x4x4x128xbf16> to vector<2x2x2x128xbf16>
    %204 = vector.shape_cast %203 : vector<2x2x2x128xbf16> to vector<8x128xbf16>
    %c2_258 = arith.constant 2 : index
    %c0_259 = arith.constant 0 : index
    %c0_260 = arith.constant 0 : index
    %c0_261 = arith.constant 0 : index
    %205 = vector.load %arg7[%c2_258, %c0_259, %c0_260, %c0_261] : memref<3x3x128x128xbf16, #tpu.memory_space<vmem>>, vector<1x1x128x128xbf16>
    %206 = vector.shape_cast %205 : vector<1x1x128x128xbf16> to vector<128x128xbf16>
    %cst_262 = arith.constant dense<0.000000e+00> : vector<8x128xf32>
    %207 = tpu.matmul %204, %206, %cst_262 {dimension_numbers = #tpu.dot_dimension_numbers<[1], [0], [0], [1], [0, 0, 1, 1], [], []>} : vector<8x128xbf16>, vector<128x128xbf16>, vector<8x128xf32> -> vector<8x128xf32>
    %208 = arith.addf %202, %207 : vector<8x128xf32>
    %209 = vector.extract_strided_slice %165 {offsets = [0, 2, 1, 0], sizes = [2, 2, 2, 128], strides = [1, 1, 1, 1]} : vector<2x4x4x128xbf16> to vector<2x2x2x128xbf16>
    %210 = vector.shape_cast %209 : vector<2x2x2x128xbf16> to vector<8x128xbf16>
    %c2_263 = arith.constant 2 : index
    %c1_264 = arith.constant 1 : index
    %c0_265 = arith.constant 0 : index
    %c0_266 = arith.constant 0 : index
    %211 = vector.load %arg7[%c2_263, %c1_264, %c0_265, %c0_266] : memref<3x3x128x128xbf16, #tpu.memory_space<vmem>>, vector<1x1x128x128xbf16>
    %212 = vector.shape_cast %211 : vector<1x1x128x128xbf16> to vector<128x128xbf16>
    %cst_267 = arith.constant dense<0.000000e+00> : vector<8x128xf32>
    %213 = tpu.matmul %210, %212, %cst_267 {dimension_numbers = #tpu.dot_dimension_numbers<[1], [0], [0], [1], [0, 0, 1, 1], [], []>} : vector<8x128xbf16>, vector<128x128xbf16>, vector<8x128xf32> -> vector<8x128xf32>
    %214 = arith.addf %208, %213 : vector<8x128xf32>
    %215 = vector.extract_strided_slice %165 {offsets = [0, 2, 2, 0], sizes = [2, 2, 2, 128], strides = [1, 1, 1, 1]} : vector<2x4x4x128xbf16> to vector<2x2x2x128xbf16>
    %216 = vector.shape_cast %215 : vector<2x2x2x128xbf16> to vector<8x128xbf16>
    %c2_268 = arith.constant 2 : index
    %c2_269 = arith.constant 2 : index
    %c0_270 = arith.constant 0 : index
    %c0_271 = arith.constant 0 : index
    %217 = vector.load %arg7[%c2_268, %c2_269, %c0_270, %c0_271] : memref<3x3x128x128xbf16, #tpu.memory_space<vmem>>, vector<1x1x128x128xbf16>
    %218 = vector.shape_cast %217 : vector<1x1x128x128xbf16> to vector<128x128xbf16>
    %cst_272 = arith.constant dense<0.000000e+00> : vector<8x128xf32>
    %219 = tpu.matmul %216, %218, %cst_272 {dimension_numbers = #tpu.dot_dimension_numbers<[1], [0], [0], [1], [0, 0, 1, 1], [], []>} : vector<8x128xbf16>, vector<128x128xbf16>, vector<8x128xf32> -> vector<8x128xf32>
    %220 = arith.addf %214, %219 : vector<8x128xf32>
    %c0_273 = arith.constant 0 : index
    %c0_274 = arith.constant 0 : index
    %221 = vector.load %arg8[%c0_273, %c0_274] : memref<1x128xf32, #tpu.memory_space<vmem>>, vector<1x128xf32>
    %222 = vector.broadcast %221 : vector<1x128xf32> to vector<8x128xf32>
    %223 = arith.addf %220, %222 : vector<8x128xf32>
    %cst_275 = arith.constant 0.000000e+00 : f32
    %224 = vector.broadcast %cst_275 : f32 to vector<8x128xf32>
    %225 = arith.maximumf %223, %224 : vector<8x128xf32>
    %226 = arith.truncf %225 : vector<8x128xf32> to vector<8x128xbf16>
    %227 = vector.shape_cast %226 : vector<8x128xbf16> to vector<2x4x128xbf16>
    %228 = vector.extract_strided_slice %227 {offsets = [0, 0, 0], sizes = [2, 1, 128], strides = [1, 1, 1]} : vector<2x4x128xbf16> to vector<2x1x128xbf16>
    %229 = vector.shape_cast %228 : vector<2x1x128xbf16> to vector<2x128xbf16>
    %230 = vector.extract_strided_slice %227 {offsets = [0, 1, 0], sizes = [2, 1, 128], strides = [1, 1, 1]} : vector<2x4x128xbf16> to vector<2x1x128xbf16>
    %231 = vector.shape_cast %230 : vector<2x1x128xbf16> to vector<2x128xbf16>
    %232 = vector.extract_strided_slice %227 {offsets = [0, 2, 0], sizes = [2, 1, 128], strides = [1, 1, 1]} : vector<2x4x128xbf16> to vector<2x1x128xbf16>
    %233 = vector.shape_cast %232 : vector<2x1x128xbf16> to vector<2x128xbf16>
    %234 = vector.extract_strided_slice %227 {offsets = [0, 3, 0], sizes = [2, 1, 128], strides = [1, 1, 1]} : vector<2x4x128xbf16> to vector<2x1x128xbf16>
    %235 = vector.shape_cast %234 : vector<2x1x128xbf16> to vector<2x128xbf16>
    %236 = tpu.concatenate %229, %231, %233, %235 in 1 : vector<2x128xbf16>, vector<2x128xbf16>, vector<2x128xbf16>, vector<2x128xbf16> -> vector<2x512xbf16>
    %c0_276 = arith.constant 0 : index
    %c0_277 = arith.constant 0 : index
    %237 = vector.load %arg9[%c0_276, %c0_277] : memref<512x512xbf16, #tpu.memory_space<vmem>>, vector<512x512xbf16>
    %cst_278 = arith.constant dense<0.000000e+00> : vector<2x512xf32>
    %238 = tpu.matmul %236, %237, %cst_278 {dimension_numbers = #tpu.dot_dimension_numbers<[1], [0], [0], [1], [0, 0, 1, 1], [], []>} : vector<2x512xbf16>, vector<512x512xbf16>, vector<2x512xf32> -> vector<2x512xf32>
    %c0_279 = arith.constant 0 : index
    %c0_280 = arith.constant 0 : index
    %239 = vector.load %arg10[%c0_279, %c0_280] : memref<1x512xf32, #tpu.memory_space<vmem>>, vector<1x512xf32>
    %240 = vector.broadcast %239 : vector<1x512xf32> to vector<2x512xf32>
    %241 = arith.addf %238, %240 : vector<2x512xf32>
    %cst_281 = arith.constant 0.000000e+00 : f32
    %242 = vector.broadcast %cst_281 : f32 to vector<2x512xf32>
    %243 = arith.maximumf %241, %242 : vector<2x512xf32>
    %244 = arith.truncf %243 : vector<2x512xf32> to vector<2x512xbf16>
    %c0_282 = arith.constant 0 : index
    %c0_283 = arith.constant 0 : index
    %245 = vector.load %arg11[%c0_282, %c0_283] : memref<512x128xbf16, #tpu.memory_space<vmem>>, vector<512x128xbf16>
    %cst_284 = arith.constant dense<0.000000e+00> : vector<2x128xf32>
    %246 = tpu.matmul %244, %245, %cst_284 {dimension_numbers = #tpu.dot_dimension_numbers<[1], [0], [0], [1], [0, 0, 1, 1], [], []>} : vector<2x512xbf16>, vector<512x128xbf16>, vector<2x128xf32> -> vector<2x128xf32>
    %c0_285 = arith.constant 0 : index
    %c0_286 = arith.constant 0 : index
    %247 = vector.load %arg12[%c0_285, %c0_286] : memref<1x128xf32, #tpu.memory_space<vmem>>, vector<1x128xf32>
    %248 = vector.broadcast %247 : vector<1x128xf32> to vector<2x128xf32>
    %249 = arith.addf %246, %248 : vector<2x128xf32>
    %c0_287 = arith.constant 0 : index
    %c0_288 = arith.constant 0 : index
    %250 = vector.load %arg13[%c0_287, %c0_288] : memref<2x128xf32, #tpu.memory_space<vmem>>, vector<2x128xf32>
    tpu.vector_store %arg13[%c0_287, %c0_288], %249 {strides = array<i32>} : memref<2x128xf32, #tpu.memory_space<vmem>>, vector<2x128xf32>,
    return
  }
  func.func @transform_0(%arg0: i32) -> (i32, i32, i32, i32) {
    %c0_i32 = arith.constant 0 : i32
    %c0_i32_0 = arith.constant 0 : i32
    %c0_i32_1 = arith.constant 0 : i32
    %c0_i32_2 = arith.constant 0 : i32
    return %arg0, %c0_i32, %c0_i32_0, %c0_i32_1 : i32, i32, i32, i32
  }
  func.func @transform_1(%arg0: i32) -> (i32, i32, i32, i32) {
    %c0_i32 = arith.constant 0 : i32
    %c0_i32_0 = arith.constant 0 : i32
    %c0_i32_1 = arith.constant 0 : i32
    %c0_i32_2 = arith.constant 0 : i32
    return %arg0, %c0_i32, %c0_i32_0, %c0_i32_1 : i32, i32, i32, i32
  }
  func.func @transform_2(%arg0: i32) -> (i32, i32, i32) {
    %c0_i32 = arith.constant 0 : i32
    %c0_i32_0 = arith.constant 0 : i32
    %c0_i32_1 = arith.constant 0 : i32
    %c0_i32_2 = arith.constant 0 : i32
    return %c0_i32, %c0_i32_0, %c0_i32_1 : i32, i32, i32
  }
  func.func @transform_3(%arg0: i32) -> (i32, i32) {
    %c0_i32 = arith.constant 0 : i32
    %c0_i32_0 = arith.constant 0 : i32
    %c0_i32_1 = arith.constant 0 : i32
    return %c0_i32, %c0_i32_0 : i32, i32
  }
  func.func @transform_4(%arg0: i32) -> (i32, i32, i32, i32) {
    %c0_i32 = arith.constant 0 : i32
    %c0_i32_0 = arith.constant 0 : i32
    %c0_i32_1 = arith.constant 0 : i32
    %c0_i32_2 = arith.constant 0 : i32
    %c0_i32_3 = arith.constant 0 : i32
    return %c0_i32, %c0_i32_0, %c0_i32_1, %c0_i32_2 : i32, i32, i32, i32
  }
  func.func @transform_5(%arg0: i32) -> (i32, i32) {
    %c0_i32 = arith.constant 0 : i32
    %c0_i32_0 = arith.constant 0 : i32
    %c0_i32_1 = arith.constant 0 : i32
    return %c0_i32, %c0_i32_0 : i32, i32
  }
  func.func @transform_6(%arg0: i32) -> (i32, i32, i32, i32) {
    %c0_i32 = arith.constant 0 : i32
    %c0_i32_0 = arith.constant 0 : i32
    %c0_i32_1 = arith.constant 0 : i32
    %c0_i32_2 = arith.constant 0 : i32
    %c0_i32_3 = arith.constant 0 : i32
    return %c0_i32, %c0_i32_0, %c0_i32_1, %c0_i32_2 : i32, i32, i32, i32
  }
  func.func @transform_7(%arg0: i32) -> (i32, i32) {
    %c0_i32 = arith.constant 0 : i32
    %c0_i32_0 = arith.constant 0 : i32
    %c0_i32_1 = arith.constant 0 : i32
    return %c0_i32, %c0_i32_0 : i32, i32
  }
  func.func @transform_8(%arg0: i32) -> (i32, i32) {
    %c0_i32 = arith.constant 0 : i32
    %c0_i32_0 = arith.constant 0 : i32
    %c0_i32_1 = arith.constant 0 : i32
    return %c0_i32, %c0_i32_0 : i32, i32
  }
  func.func @transform_9(%arg0: i32) -> (i32, i32) {
    %c0_i32 = arith.constant 0 : i32
    %c0_i32_0 = arith.constant 0 : i32
    %c0_i32_1 = arith.constant 0 : i32
    return %c0_i32, %c0_i32_0 : i32, i32
  }
  func.func @transform_10(%arg0: i32) -> (i32, i32) {
    %c0_i32 = arith.constant 0 : i32
    %c0_i32_0 = arith.constant 0 : i32
    %c0_i32_1 = arith.constant 0 : i32
    return %c0_i32, %c0_i32_0 : i32, i32
  }
  func.func @transform_11(%arg0: i32) -> (i32, i32) {
    %c0_i32 = arith.constant 0 : i32
    %c0_i32_0 = arith.constant 0 : i32
    %c0_i32_1 = arith.constant 0 : i32
    return %c0_i32, %c0_i32_0 : i32, i32
  }
  func.func @transform_12(%arg0: i32) -> (i32, i32) {
    %c0_i32 = arith.constant 0 : i32
    %c0_i32_0 = arith.constant 0 : i32
    return %arg0, %c0_i32 : i32, i32
  }
}

</mosaic_0001>

<bundles_post_ra>
// kernel: simple_dqn_forward.1
= control target key start
LH: loop header
LB: loop body
LE: loop exit
PB: predicated region body
PF: predicated region fallthrough
CT: control target
= control target key end

     0   :  { %v16058_v1 = vmov 0.0   ;;  %vm16059_vm0 = vmmov 0   ;;  %v94_v9 = vlaneseq  ;;  %v16060_v16 = vmov 1966171168   ;;  %s19354_s0 = inlined_call_operand.vmem [shape: bf16[2,11,5,128], index: 0, kind: input, shape index: {}]   ;;  %s19355_s1 = inlined_call_operand.vmem [shape: bf16[2,11,5,128], index: 1, kind: input, shape index: {}]   ;;  %s19356_s2 = inlined_call_operand.vmem [shape: bf16[2,128,128], index: 2, kind: input, shape index: {}]   ;;  %s19357_s3 = inlined_call_operand.vmem [shape: f32[1,128], index: 3, kind: input, shape index: {}]   ;;  %s19358_s4 = inlined_call_operand.vmem [shape: bf16[4,4,128,128], index: 4, kind: input, shape index: {}]   ;;  %s19359_s5 = inlined_call_operand.vmem [shape: f32[1,128], index: 5, kind: input, shape index: {}]   ;;  %s19360_s6 = inlined_call_operand.vmem [shape: bf16[3,3,128,128], index: 6, kind: input, shape index: {}]   ;;  %s19361_s7 = inlined_call_operand.vmem [shape: f32[1,128], index: 7, kind: input, shape index: {}]   ;;  %s19362_s8 = inlined_call_operand.vmem [shape: bf16[512,512], index: 8, kind: input, shape index: {}]   ;;  %s19363_s9 = inlined_call_operand.vmem [shape: f32[1,512], index: 9, kind: input, shape index: {}]   ;;  %s19364_s10 = inlined_call_operand.vmem [shape: bf16[512,128], index: 10, kind: input, shape index: {}]   ;;  %s19365_s11 = inlined_call_operand.vmem [shape: f32[1,128], index: 11, kind: input, shape index: {}]   ;;  %s19366_s12 = inlined_call_operand.hbm [shape: f32[2,128], index: 12, kind: output, shape index: {}]  }
   0x1   :  { %v16132_v0 = vld [vmem:[%s19356_s2 + $0x78] sm:$0xff]   ;;  %14880 = vmatprep.subr.bf16.mxu0 %v16058_v1  ;;  %14924 = vmatprep.subr.bf16.mxu1 %v16058_v1  ;;  %v16145_v3 = vld [vmem:[%s19356_s2 + $0x70] sm:$0xff]   ;;  %v16163_v5 = vld [vmem:[%s19356_s2 + $0x68] sm:$0xff]   ;;  %v92_v17 = vunpack.c.l.s4 %v16060_v16  ;;  %vm5426_vm1 = vcmask 1042432   ;;  %vm5427_vm2 = vsmask.f32 2304 }
   0x2   :  { %v16139_v2 = vld [vmem:[%s19356_s2 + $0x38] sm:$0xff]   ;;  %14881 = vmatpush3.bf16.msra.mxu0 %v16132_v0  ;;  %14896 = vmatprep.mubr.msk.bf16.mxu0 %vm16059_vm0, %v16058_v1  ;;  %v16154_v4 = vld [vmem:[%s19356_s2 + $0x30] sm:$0xff]   ;;  %v16170_v6 = vld [vmem:[%s19356_s2 + $0x28] sm:$0xff]   ;;  %v16200_v12 = vshrl.u32 %v94_v9, 7 }
   0x3   :  { %14925 = vmatpush3.bf16.msra.mxu1 %v16139_v2  ;;  %14882 = vmatprep.subr.bf16.mxu0 %v16058_v1  ;;  %v16177_v7 = vld [vmem:[%s19356_s2 + $0x60] sm:$0xff]   ;;  %v16191_v10 = vld [vmem:[%s19356_s2 + $0x58] sm:$0xff]   ;;  %v16206_v13 = vld [vmem:[%s19356_s2 + $0x50] sm:$0xff]   ;;  %v93_v20 = vunpack.c.0.s8 %v92_v17 }
   0x4   :  { %14926 = vmatprep.subr.bf16.mxu1 %v16058_v1  ;;  %14940 = vmatprep.mubr.msk.bf16.mxu1 %vm16059_vm0, %v16058_v1  ;;  %v16184_v8 = vld [vmem:[%s19356_s2 + $0x20] sm:$0xff]   ;;  %v16198_v11 = vld [vmem:[%s19356_s2 + $0x18] sm:$0xff]   ;;  %v16214_v15 = vld [vmem:[%s19356_s2 + $0x10] sm:$0xff]  }
   0x5   :  { %v13459_v14 = vld.sshfl [vmem:[%s19354_s0 + $0x4] sm:$0x13 pattern:$0x75316420]  ;;  %v16235_v26 = vsub.s32 %v93_v20, %v16200_v12  ;;  %v16246_v28 = vld [vmem:[%s19356_s2 + $0x48] sm:$0xff]  }
   0x6   :  { %14883 = vmatpush3.bf16.msra.mxu0 %v16145_v3  ;;  %v13460_v18 = vld.sshfl [vmem:[%s19354_s0 + $0x8] sm:$0x13 pattern:$0x75316420]  ;;  %v1307_v22 = vcombine.high %v13459_v14, %v13459_v14  ;;  %v16278_v44 = vld [vmem:[%s19356_s2 + $0x40] sm:$0xff]  }
   0x7   :  { %14927 = vmatpush3.bf16.msra.mxu1 %v16154_v4  ;;  %14884 = vmatprep.subr.bf16.mxu0 %v16058_v1  ;;  %v13461_v19 = vld.sshfl [vmem:[%s19354_s0 + $0xc] sm:$0x13 pattern:$0x75316420]  ;;  %v1330_v23 = vcombine.high %v13460_v18, %v13460_v18  ;;  %v1314_v33 = vrot.slane %v13459_v14, %v16235_v26  ;;  %v1337_v35 = vrot.slane %v13460_v18, %v16235_v26  ;;  %v16291_v49 = vld [vmem:[%s19356_s2] sm:$0xff]  }
   0x8   :  { %14928 = vmatprep.subr.bf16.mxu1 %v16058_v1  ;;  %v16228_v21 = vld.sshfl [vmem:[%s19354_s0 + $0x10] sm:$0x13 pattern:$0x75316420]  ;;  %v1353_v24 = vcombine.high %v13461_v19, %v13461_v19  ;;  %v16257_v32 = vld [vmem:[%s19356_s2 + $0x8] sm:$0xff]   ;;  %v1321_v34 = vrot.slane %v1307_v22, %v16235_v26  ;;  %v16265_v37 = vrot.slane %v13461_v19, %v16235_v26 }
   0x9   :  { %v13399_v25 = vld.sshfl [vmem:[%s19354_s0] sm:$0x13 pattern:$0x75316420]  ;;  %v1376_v30 = vcombine.high %v16228_v21, %v16228_v21  ;;  %v1344_v36 = vrot.slane %v1330_v23, %v16235_v26  ;;  %v16272_v39 = vrot.slane %v16228_v21, %v16235_v26  ;;  %v1322_v40 = vcombine.high %v1314_v33, %v1314_v33 }
   0xa   :  { %14885 = vmatpush3.bf16.msra.mxu0 %v16163_v5  ;;  %v16240_v27 = vld.sshfl [vmem:[%s19354_s0 + $0x14] sm:$0x13 pattern:$0x75316420]  ;;  %v90_v29 = vcombine.high %v13399_v25, %v13399_v25  ;;  %v16268_v38 = vrot.slane %v1353_v24, %v16235_v26  ;;  %v1345_v41 = vcombine.high %v1337_v35, %v1337_v35  ;;  %v1766_v42 = vunpack.i.h.s16 %v1337_v35 }
   0xb   :  { %14929 = vmatpush3.bf16.msra.mxu1 %v16170_v6  ;;  %14886 = vmatprep.subr.bf16.mxu0 %v16058_v1  ;;  %v1399_v31 = vcombine.high %v16240_v27, %v16240_v27  ;;  %v1927_v43 = vcombine.low %v1314_v33, %v1321_v34  ;;  %v16282_v45 = vcombine.high %v16265_v37, %v16265_v37  ;;  %v1768_v46 = vunpack.i.h.s16 %v1344_v36  ;;  %v13464_v24 = vld.sshfl [vmem:[%s19354_s0 + $0x18] sm:$0x13 pattern:$0x75316420] }
   0xc   :  { %14930 = vmatprep.subr.bf16.mxu1 %v16058_v1  ;;  %v97_v47 = vrot.slane %v13399_v25, %v16235_v26  ;;  %v104_v48 = vrot.slane %v90_v29, %v16235_v26  ;;  %v13495_v50 = vpack.i.b16 %v1337_v35, %v1322_v40  ;;  %v13496_v51 = vpack.i.b16 %v1344_v36, %v1766_v42 }
   0xd   :  { %v1937_v52 = vrot.slane %v1927_v43, %v16235_v26  ;;  %v549_v53 = vunpack.i.h.s16 %v1314_v33  ;;  %v13497_v54 = vpack.i.b16 %v1345_v41, %v1768_v46  ;;  %v13498_v55 = vpack.i.b16 %v16272_v39, %v16282_v45 }
   0xe   :  { %14887 = vmatpush3.bf16.msra.mxu0 %v16177_v7  ;;  %v105_v56 = vcombine.high %v97_v47, %v97_v47  ;;  %v551_v57 = vunpack.i.h.s16 %v1321_v34  ;;  %v1928_v58 = vcombine.low %v13495_v50, %v13496_v51  ;;  %v13536_v60 = vpack.i.b16 %v16265_v37, %v1345_v41  ;;  %v16323_v41 = vld.sshfl [vmem:[%s19354_s0 + $0x1c] sm:$0x13 pattern:$0x75316420] }
   0xf   :  { %14931 = vmatpush3.bf16.msra.mxu1 %v16184_v8  ;;  %14888 = vmatprep.subr.bf16.mxu0 %v16058_v1  ;;  %v13534_v59 = vpack.i.b16 %v1321_v34, %v549_v53  ;;  %v2429_v61 = vcombine.low %v97_v47, %v104_v48  ;;  %v1929_v62 = vcombine.low %v13497_v54, %v16265_v37  ;;  %v1776_v19 = vunpack.i.h.s16 %v16272_v39 }
  0x10   :  { %14932 = vmatprep.subr.bf16.mxu1 %v16058_v1  ;;  %v1930_v63 = vcombine.low %v16268_v38, %v13498_v55  ;;  %v13533_v9 = vpack.i.b16 %v1314_v33, %v105_v56  ;;  %v13535_v14 = vpack.i.b16 %v1322_v40, %v551_v57  ;;  %v1944_v16 = vrot.slane %v1928_v58, %v16235_v26 }
  0x11   :  { %v2432_v17 = vcombine.low %v1344_v36, %v13536_v60  ;;  %v2439_v18 = vrot.slane %v2429_v61, %v16235_v26  ;;  %v1951_v20 = vrot.slane %v1929_v62, %v16235_v26  ;;  %v16314_v33 = vrot.slane %v1376_v30, %v16235_v26 }
  0x12   :  { %14889 = vmatpush3.bf16.msra.mxu0 %v16191_v10  ;;  %v1958_v21 = vrot.slane %v1930_v63, %v16235_v26  ;;  %v2430_v22 = vcombine.low %v13533_v9, %v13534_v59  ;;  %v2431_v23 = vcombine.low %v13535_v14, %v1337_v35  ;;  %v1959_v25 = vcombine.low %v1937_v52, %v1944_v16 }
  0x13   :  { %14933 = vmatpush3.bf16.msra.mxu1 %v16198_v11  ;;  %14890 = vmatprep.subr.bf16.mxu0 %v16058_v1  ;;  %v2460_v29 = vrot.slane %v2432_v17, %v16235_v26  ;;  %v1391_v34 = vcombine.high %v16272_v39, %v16272_v39  ;;  %v1406_v42 = vrot.slane %v16240_v27, %v16235_v26  ;;  %v559_v16 = vunpack.i.h.s16 %v16265_v37 }
  0x14   :  { %14934 = vmatprep.subr.bf16.mxu1 %v16058_v1  ;;  %v1960_v36 = vcombine.low %v1951_v20, %v1958_v21  ;;  %v2446_v40 = vrot.slane %v2430_v22, %v16235_v26  ;;  %v2453_v35 = vrot.slane %v2431_v23, %v16235_v26  ;;  %v1967_v43 = vrot.slane %v1959_v25, %v16235_v26 }
  0x15   :  { %v1413_v30 = vrot.slane %v1399_v31, %v16235_v26  ;;  %v1422_v46 = vcombine.high %v13464_v24, %v13464_v24  ;;  %v16333_v47 = vrot.slane %v13464_v24, %v16235_v26  ;;  %v1414_v52 = vcombine.high %v1406_v42, %v1406_v42 }
  0x16   :  { %14891 = vmatpush3.bf16.msra.mxu0 %v16206_v13  ;;  %v1974_v48 = vrot.slane %v1960_v36, %v16235_v26  ;;  %v2461_v50 = vcombine.low %v2439_v18, %v2446_v40  ;;  %v2462_v51 = vcombine.low %v2453_v35, %v2460_v29  ;;  %v16345_v27 = vrot.slane %v16323_v41, %v16235_v26 }
  0x17   :  { %14935 = vmatpush3.bf16.msra.mxu1 %v16214_v15  ;;  %14892 = vmatprep.subr.bf16.mxu0 %v16058_v1  ;;  %v16337_v53 = vrot.slane %v1422_v46, %v16235_v26  ;;  %v16341_v54 = vcombine.high %v16333_v47, %v16333_v47  ;;  %v1778_v31 = vunpack.i.h.s16 %v16314_v33  ;;  %v1786_v58 = vunpack.i.h.s16 %v16333_v47 }
  0x18   :  { %14936 = vmatprep.subr.bf16.mxu1 %v16058_v1  ;;  %v1975_v55 = vcombine.low %v1967_v43, %v1974_v48  ;;  %v2469_v56 = vrot.slane %v2461_v50, %v16235_v26  ;;  %v2476_v57 = vrot.slane %v2462_v51, %v16235_v26  ;;  %v13499_v60 = vpack.i.b16 %v16314_v33, %v1776_v19 }
  0x19   :  { %v1788_v59 = vunpack.i.h.s16 %v16337_v53  ;;  %v13500_v61 = vpack.i.b16 %v1391_v34, %v1778_v31  ;;  %v13501_v62 = vpack.i.b16 %v16333_v47, %v1414_v52  ;;  %v13502_v9 = vpack.i.b16 %v16337_v53, %v1786_v58 }
  0x1a   :  { %14893 = vmatpush3.bf16.msra.mxu0 %v16246_v28  ;;  %v2477_v63 = vcombine.low %v2469_v56, %v2476_v57  ;;  %v1977_v14 = vcombine.low %v1406_v42, %v1413_v30  ;;  %v561_v19 = vunpack.i.h.s16 %v16268_v38  ;;  %v569_v20 = vunpack.i.h.s16 %v1406_v42 }
  0x1b   :  { %14937 = vmatpush3.bf16.msra.mxu1 %v16257_v32  ;;  %14894 = vmatprep.subr.bf16.mxu0 %v16058_v1  ;;  %v13503_v17 = vpack.i.b16 %v16341_v54, %v1788_v59  ;;  %v1976_v18 = vcombine.low %v13499_v60, %v13500_v61  ;;  %v1978_v21 = vcombine.low %v13501_v62, %v13502_v9  ;;  %v571_v23 = vunpack.i.h.s16 %v1413_v30 }
  0x1c   :  { %14938 = vmatprep.subr.bf16.mxu1 %v16058_v1  ;;  %v1993_v22 = vrot.slane %v1977_v14, %v16235_v26  ;;  %v13537_v37 = vpack.i.b16 %v16268_v38, %v559_v16  ;;  %v13538_v25 = vpack.i.b16 %v16282_v45, %v561_v19  ;;  %v579_v29 = vunpack.i.h.s16 %v16345_v27  ;;  %v13466_v45 = vld.sshfl [vmem:[%s19354_s0 + $0x20] sm:$0x13 pattern:$0x75316420] }
  0x1d   :  { %v1986_v24 = vrot.slane %v1976_v18, %v16235_v26  ;;  %v2000_v36 = vrot.slane %v1978_v21, %v16235_v26  ;;  %v13539_v40 = vpack.i.b16 %v1406_v42, %v1391_v34  ;;  %v13540_v35 = vpack.i.b16 %v1413_v30, %v569_v20  ;;  %v13467_v34 = vld.sshfl [vmem:[%s19354_s0 + $0x24] sm:$0x13 pattern:$0x75316420] }
  0x1e   :  { %14895 = vmatpush3.bf16.msra.mxu0 %v16278_v44  ;;  %v13541_v38 = vpack.i.b16 %v1414_v52, %v571_v23  ;;  %v2478_v46 = vcombine.low %v13537_v37, %v13538_v25  ;;  %v2479_v48 = vcombine.low %v16272_v39, %v16314_v33  ;;  %v1445_v42 = vcombine.high %v16323_v41, %v16323_v41 }
  0x1f   :  { %14939 = vmatpush3.bf16.msra.mxu1 %v16291_v49  ;;  %14968 = vmatprep.subr.bf16.mxu0 %v16058_v1  ;;  %v2008_v43 = vcombine.low %v1986_v24, %v1993_v22  ;;  %v2480_v50 = vcombine.low %v13539_v40, %v13540_v35  ;;  %v1460_v39 = vcombine.high %v16345_v27, %v16345_v27 }
  0x20   :  { %15012 = vmatprep.subr.bf16.mxu1 %v16058_v1  ;;  %v2481_v51 = vcombine.low %v13541_v38, %v16333_v47  ;;  %v2488_v30 = vrot.slane %v2478_v46, %v16235_v26  ;;  %v2495_v52 = vrot.slane %v2479_v48, %v16235_v26  ;;  %v13468_v47 = vld.sshfl [vmem:[%s19354_s0 + $0x28] sm:$0x13 pattern:$0x75316420]  ;;  %v1468_v56 = vcombine.high %v13466_v45, %v13466_v45 }
  0x21   :  { %14897 = vmatmul.mubr.bf16.vlgmr.msra.gmra.mxu0 %v1975_v55  ;;  %v2016_v33 = vrot.slane %v2008_v43, %v16235_v26  ;;  %v2502_v31 = vrot.slane %v2480_v50, %v16235_v26  ;;  %v1459_v55 = vrot.slane %v1445_v42, %v16235_v26  ;;  %v1491_v59 = vcombine.high %v13467_v34, %v13467_v34  ;;  %v13470_v42 = vld.sshfl [vmem:[%s19354_s0 + $0x34] sm:$0x13 pattern:$0x75316420] }
  0x22   :  { %14969 = vmatpush3.bf16.msra.mxu0 %v16132_v0  ;;  %14900 = vmatprep.mubr.msk.bf16.mxu0 %vm16059_vm0, %v16058_v1  ;;  %v1979_v0 = vcombine.low %v13503_v17, %v16345_v27  ;;  %v2509_v41 = vrot.slane %v2481_v51, %v16235_v26  ;;  %v2510_v58 = vcombine.low %v2488_v30, %v2495_v52 }
  0x23   :  { %14941 = vmatmul.mubr.bf16.vlgmr.msra.gmra.mxu1 %v2477_v63  ;;  %14970 = vmatprep.subr.bf16.mxu0 %v16058_v1  ;;  %v1482_v61 = vrot.slane %v1468_v56, %v16235_v26  ;;  %v1498_v62 = vrot.slane %v13467_v34, %v16235_v26  ;;  %v1514_v63 = vcombine.high %v13468_v47, %v13468_v47  ;;  %v581_v25 = vunpack.i.h.s16 %v1459_v55 }
  0x24   :  { %15013 = vmatpush3.bf16.msra.mxu1 %v16139_v2  ;;  %14944 = vmatprep.mubr.msk.bf16.mxu1 %vm16059_vm0, %v16058_v1  ;;  %v2007_v2 = vrot.slane %v1979_v0, %v16235_v26  ;;  %v2511_v60 = vcombine.low %v2502_v31, %v2509_v41  ;;  %v2518_v14 = vrot.slane %v2510_v58, %v16235_v26 }
  0x25   :  { %15014 = vmatprep.subr.bf16.mxu1 %v16058_v1  ;;  %v16409_v17 = vrot.slane %v1491_v59, %v16235_v26  ;;  %v16412_v18 = vcombine.high %v1498_v62, %v1498_v62  ;;  %v16415_v19 = vrot.slane %v13468_v47, %v16235_v26  ;;  %v16418_v20 = vrot.slane %v1514_v63, %v16235_v26 }
  0x26   :  { %14971 = vmatpush3.bf16.msra.mxu0 %v16145_v3  ;;  %v2009_v3 = vcombine.low %v2000_v36, %v2007_v2  ;;  %v1798_v22 = vunpack.i.h.s16 %v1482_v61  ;;  %v589_v43 = vunpack.i.h.s16 %v1498_v62  ;;  %v13542_v46 = vpack.i.b16 %v16345_v27, %v16341_v54 }
  0x27   :  { %14972 = vmatprep.subr.bf16.mxu0 %v16058_v1  ;;  %v2027_v23 = vcombine.low %v1498_v62, %v16409_v17  ;;  %v1806_v0 = vunpack.i.h.s16 %v16415_v19  ;;  %v13507_v24 = vpack.i.b16 %v16415_v19, %v16412_v18  ;;  %v13543_v48 = vpack.i.b16 %v1459_v55, %v579_v29 }
  0x28   :  { %15015 = vmatpush3.bf16.msra.mxu1 %v16154_v4  ;;  %v2023_v57 = vrot.slane %v2009_v3, %v16235_v26  ;;  %v1475_v4 = vrot.slane %v13466_v45, %v16235_v26  ;;  %v13544_v50 = vpack.i.b16 %v1460_v39, %v581_v25  ;;  %v13546_v54 = vpack.i.b16 %v16409_v17, %v589_v43 }
  0x29   :  { %15016 = vmatprep.subr.bf16.mxu1 %v16058_v1  ;;  %v2049_v38 = vrot.slane %v2027_v23, %v16235_v26  ;;  %v13508_v2 = vpack.i.b16 %v16418_v20, %v1806_v0  ;;  %v2527_v27 = vcombine.low %v16337_v53, %v13542_v46  ;;  %v1529_v30 = vcombine.high %v16415_v19, %v16415_v19 }
  0x2a   :  { %14973 = vmatpush3.bf16.msra.mxu0 %v16163_v5  ;;  %v2024_v9 = vcombine.low %v2016_v33, %v2023_v57  ;;  %v1483_v16 = vcombine.high %v1475_v4, %v1475_v4  ;;  %v2525_v5 = vrot.slane %v2511_v60, %v16235_v26  ;;  %v1796_v21 = vunpack.i.h.s16 %v1475_v4 }
  0x2b   :  { %14974 = vmatprep.subr.bf16.mxu0 %v16058_v1  ;;  %v2028_v34 = vcombine.low %v13507_v24, %v13508_v2  ;;  %v2529_v29 = vcombine.low %v1475_v4, %v1482_v61  ;;  %v2528_v33 = vcombine.low %v13543_v48, %v13544_v50  ;;  %v2537_v31 = vrot.slane %v2527_v27, %v16235_v26 }
  0x2c   :  { %15017 = vmatpush3.bf16.msra.mxu1 %v16170_v6  ;;  %14901 = vmatmul.mubr.bf16.gmra.mxu0 %v2024_v9  ;;  %v13504_v6 = vpack.i.b16 %v1475_v4, %v1460_v39  ;;  %v2526_v37 = vcombine.low %v2518_v14, %v2525_v5  ;;  %v13505_v36 = vpack.i.b16 %v1482_v61, %v1796_v21  ;;  %v13471_v39 = vld.sshfl [vmem:[%s19354_s0 + $0x38] sm:$0x13 pattern:$0x75316420]  ;;  %v1808_v23 = vunpack.i.h.s16 %v16418_v20 }
  0x2d   :  { %15018 = vmatprep.subr.bf16.mxu1 %v16058_v1  ;;  %14904 = vmatprep.mubr.msk.bf16.mxu0 %vm16059_vm0, %v16058_v1  ;;  %v13506_v40 = vpack.i.b16 %v1483_v16, %v1798_v22  ;;  %v13545_v51 = vpack.i.b16 %v1498_v62, %v1483_v16  ;;  %v2056_v53 = vrot.slane %v2028_v34, %v16235_v26  ;;  %v13409_v9 = vld.sshfl [vmem:[%s19354_s0 + $0x2c] sm:$0x13 pattern:$0x75316420]  ;;  %v591_v50 = vunpack.i.h.s16 %v16409_v17 }
  0x2e   :  { %14975 = vmatpush3.bf16.msra.mxu0 %v16177_v7  ;;  %v2025_v35 = vcombine.low %v1459_v55, %v13504_v6  ;;  %14945 = vmatmul.mubr.bf16.gmra.mxu1 %v2526_v37  ;;  %v13469_v7 = vld.sshfl [vmem:[%s19354_s0 + $0x30] sm:$0x13 pattern:$0x75316420]  ;;  %v2551_v41 = vrot.slane %v2529_v29, %v16235_v26  ;;  %v2544_v56 = vrot.slane %v2528_v33, %v16235_v26 }
  0x2f   :  { %14976 = vmatprep.subr.bf16.mxu0 %v16058_v1  ;;  %14948 = vmatprep.mubr.msk.bf16.mxu1 %vm16059_vm0, %v16058_v1  ;;  %v1537_v52 = vcombine.high %v13469_v7, %v13469_v7  ;;  %v2530_v47 = vcombine.low %v13545_v51, %v13546_v54  ;;  %v1544_v57 = vrot.slane %v13469_v7, %v16235_v26  ;;  %v13473_v34 = vld.sshfl [vmem:[%s19354_s0 + $0x40] sm:$0x13 pattern:$0x75316420] }
  0x30   :  { %15019 = vmatpush3.bf16.msra.mxu1 %v16184_v8  ;;  %v2026_v8 = vcombine.low %v13505_v36, %v13506_v40  ;;  %v2035_v45 = vrot.slane %v2025_v35, %v16235_v26  ;;  %v1560_v59 = vcombine.high %v13470_v42, %v13470_v42  ;;  %v1567_v60 = vrot.slane %v13470_v42, %v16235_v26 }
  0x31   :  { %15020 = vmatprep.subr.bf16.mxu1 %v16058_v1  ;;  %v16462_v58 = vrot.slane %v1537_v52, %v16235_v26  ;;  %v2558_v4 = vrot.slane %v2530_v47, %v16235_v26  ;;  %v2559_v61 = vcombine.low %v2537_v31, %v2544_v56  ;;  %v1552_v62 = vcombine.high %v1544_v57, %v1544_v57  ;;  %v13474_v47 = vld.sshfl [vmem:[%s19354_s0 + $0x44] sm:$0x13 pattern:$0x75316420] }
  0x32   :  { %v2042_v3 = vrot.slane %v2026_v8, %v16235_v26  ;;  %14977 = vmatpush3.bf16.msra.mxu0 %v16191_v10  ;;  %v2058_v10 = vcombine.low %v2049_v38, %v2056_v53  ;;  %v1583_v63 = vcombine.high %v13471_v39, %v13471_v39  ;;  %v1574_v5 = vrot.slane %v1560_v59, %v16235_v26 }
  0x33   :  { %14978 = vmatprep.subr.bf16.mxu0 %v16058_v1  ;;  %v2560_v16 = vcombine.low %v2551_v41, %v2558_v4  ;;  %v16475_v19 = vcombine.high %v1567_v60, %v1567_v60  ;;  %v2567_v21 = vrot.slane %v2559_v61, %v16235_v26  ;;  %v16480_v22 = vrot.slane %v13471_v39, %v16235_v26 }
  0x34   :  { %15021 = vmatpush3.bf16.msra.mxu1 %v16198_v11  ;;  %v2057_v55 = vcombine.low %v2035_v45, %v2042_v3  ;;  %v2072_v14 = vrot.slane %v2058_v10, %v16235_v26  ;;  %v16483_v6 = vrot.slane %v1583_v63, %v16235_v26  ;;  %v1816_v0 = vunpack.i.h.s16 %v1567_v60 }
  0x35   :  { %15022 = vmatprep.subr.bf16.mxu1 %v16058_v1  ;;  %v2574_v37 = vrot.slane %v2560_v16, %v16235_v26  ;;  %v1818_v24 = vunpack.i.h.s16 %v1574_v5  ;;  %v13510_v25 = vpack.i.b16 %v1567_v60, %v1552_v62  ;;  %v320_v40 = vcombine.high %v13409_v9, %v13409_v9 }
  0x36   :  { %v2065_v11 = vrot.slane %v2057_v55, %v16235_v26  ;;  %14979 = vmatpush3.bf16.msra.mxu0 %v16206_v13  ;;  %v2077_v36 = vcombine.low %v16480_v22, %v16483_v6  ;;  %v13511_v20 = vpack.i.b16 %v1574_v5, %v1816_v0  ;;  %v327_v2 = vrot.slane %v13409_v9, %v16235_v26 }
  0x37   :  { %14980 = vmatprep.subr.bf16.mxu0 %v16058_v1  ;;  %v2575_v35 = vcombine.low %v2567_v21, %v2574_v37  ;;  %v13512_v38 = vpack.i.b16 %v16475_v19, %v1818_v24  ;;  %v2075_v46 = vcombine.low %v16462_v58, %v13510_v25  ;;  %v334_v7 = vrot.slane %v320_v40, %v16235_v26 }
  0x38   :  { %15023 = vmatpush3.bf16.msra.mxu1 %v16214_v15  ;;  %v2073_v13 = vcombine.low %v2065_v11, %v2072_v14  ;;  %v13509_v15 = vpack.i.b16 %v1529_v30, %v1808_v23  ;;  %v2105_v48 = vrot.slane %v2077_v36, %v16235_v26  ;;  %v335_v45 = vcombine.high %v327_v2, %v327_v2 }
  0x39   :  { %15024 = vmatprep.subr.bf16.mxu1 %v16058_v1  ;;  %14949 = vmatmul.mubr.bf16.gmra.mxu1 %v2575_v35  ;;  %v2076_v8 = vcombine.low %v13511_v20, %v13512_v38  ;;  %v599_v51 = vunpack.i.h.s16 %v1544_v57  ;;  %v2091_v27 = vrot.slane %v2075_v46, %v16235_v26  ;;  %v601_v29 = vunpack.i.h.s16 %v16462_v58 }
  0x3a   :  { %14981 = vmatpush3.bf16.msra.mxu0 %v16246_v28  ;;  %v2074_v43 = vcombine.low %v13509_v15, %v1544_v57  ;;  %v13472_v28 = vld.sshfl [vmem:[%s19354_s0 + $0x3c] sm:$0x13 pattern:$0x75316420]  ;;  %14952 = vmatprep.mubr.msk.bf16.mxu1 %vm16059_vm0, %v16058_v1  ;;  %v2579_v42 = vcombine.low %v1567_v60, %v1574_v5  ;;  %v13547_v3 = vpack.i.b16 %v16412_v18, %v591_v50 }
  0x3b   :  { %14905 = vmatmul.mubr.bf16.gmra.mxu0 %v2073_v13  ;;  %14982 = vmatprep.subr.bf16.mxu0 %v16058_v1  ;;  %v2098_v17 = vrot.slane %v2076_v8, %v16235_v26  ;;  %v13548_v33 = vpack.i.b16 %v1544_v57, %v335_v45  ;;  %v13549_v39 = vpack.i.b16 %v16462_v58, %v599_v51  ;;  %v13475_v8 = vld.sshfl [vmem:[%s19354_s0 + $0x48] sm:$0x13 pattern:$0x75316420] }
  0x3c   :  { %14908 = vmatprep.mubr.msk.bf16.mxu0 %vm16059_vm0, %v16058_v1  ;;  %v2084_v54 = vrot.slane %v2074_v43, %v16235_v26  ;;  %15025 = vmatpush3.bf16.msra.mxu1 %v16257_v32  ;;  %v13550_v52 = vpack.i.b16 %v1552_v62, %v601_v29  ;;  %v2607_v53 = vrot.slane %v2579_v42, %v16235_v26  ;;  %v609_v43 = vunpack.i.h.s16 %v16480_v22 }
  0x3d   :  { %15026 = vmatprep.subr.bf16.mxu1 %v16058_v1  ;;  %v1598_v32 = vcombine.high %v16480_v22, %v16480_v22  ;;  %v2107_v31 = vcombine.low %v2098_v17, %v2105_v48  ;;  %v2576_v18 = vcombine.low %v13547_v3, %v327_v2  ;;  %v2577_v41 = vcombine.low %v334_v7, %v13548_v33 }
  0x3e   :  { %v2106_v30 = vcombine.low %v2084_v54, %v2091_v27  ;;  %14983 = vmatpush3.bf16.msra.mxu0 %v16278_v44  ;;  %v1606_v55 = vcombine.high %v13472_v28, %v13472_v28  ;;  %v2578_v57 = vcombine.low %v13549_v39, %v13550_v52  ;;  %v16526_v58 = vrot.slane %v13472_v28, %v16235_v26 }
  0x3f   :  { %v1629_v10 = vcombine.high %v13473_v34, %v13473_v34  ;;  %v2121_v4 = vrot.slane %v2107_v31, %v16235_v26  ;;  %v2586_v59 = vrot.slane %v2576_v18, %v16235_v26  ;;  %v2593_v60 = vrot.slane %v2577_v41, %v16235_v26 }
  0x40   :  { %v2114_v56 = vrot.slane %v2106_v30, %v16235_v26  ;;  %15027 = vmatpush3.bf16.msra.mxu1 %v16291_v49  ;;  %v1620_v44 = vrot.slane %v1606_v55, %v16235_v26  ;;  %v2600_v11 = vrot.slane %v2578_v57, %v16235_v26  ;;  %v1621_v61 = vcombine.high %v16526_v58, %v16526_v58  ;;  %v13476_v30 = vld.sshfl [vmem:[%s19354_s0 + $0x4c] sm:$0x13 pattern:$0x75316420] }
  0x41   :  { %v1636_v62 = vrot.slane %v13473_v34, %v16235_v26  ;;  %v1643_v63 = vrot.slane %v1629_v10, %v16235_v26  ;;  %v2608_v14 = vcombine.low %v2586_v59, %v2593_v60  ;;  %v1652_v49 = vcombine.high %v13474_v47, %v13474_v47 }
  0x42   :  { %v2122_v9 = vcombine.low %v2114_v56, %v2121_v4  ;;  %v16539_v16 = vrot.slane %v13474_v47, %v16235_v26  ;;  %v2609_v5 = vcombine.low %v2600_v11, %v2607_v53  ;;  %v1826_v23 = vunpack.i.h.s16 %v16526_v58 }
  0x43   :  { %v1644_v21 = vcombine.high %v1636_v62, %v1636_v62  ;;  %v1828_v13 = vunpack.i.h.s16 %v1620_v44  ;;  %v2616_v37 = vrot.slane %v2608_v14, %v16235_v26  ;;  %v16544_v0 = vrot.slane %v1652_v49, %v16235_v26 }
  0x44   :  { %14909 = vmatmul.mubr.bf16.gmra.mxu0 %v2122_v9  ;;  %v16548_v24 = vcombine.high %v16539_v16, %v16539_v16  ;;  %v1836_v15 = vunpack.i.h.s16 %v16539_v16  ;;  %v2623_v25 = vrot.slane %v2609_v5, %v16235_v26  ;;  %v13513_v36 = vpack.i.b16 %v16526_v58, %v1598_v32 }
  0x45   :  { %14912 = vmatprep.mubr.msk.bf16.mxu0 %vm16059_vm0, %v16058_v1  ;;  %v13514_v40 = vpack.i.b16 %v1620_v44, %v1826_v23  ;;  %v13515_v35 = vpack.i.b16 %v1621_v61, %v1828_v13  ;;  %v1838_v20 = vunpack.i.h.s16 %v16544_v0  ;;  %v13516_v38 = vpack.i.b16 %v16539_v16, %v1644_v21 }
  0x46   :  { %v13517_v2 = vpack.i.b16 %v16544_v0, %v1836_v15  ;;  %v2624_v46 = vcombine.low %v2616_v37, %v2623_v25  ;;  %v611_v28 = vunpack.i.h.s16 %v16483_v6  ;;  %v619_v51 = vunpack.i.h.s16 %v1636_v62 }
  0x47   :  { %v2123_v48 = vcombine.low %v13513_v36, %v13514_v40  ;;  %v2124_v7 = vcombine.low %v13515_v35, %v1636_v62  ;;  %v13518_v45 = vpack.i.b16 %v16548_v24, %v1838_v20  ;;  %v2125_v50 = vcombine.low %v1643_v63, %v13516_v38 }
  0x48   :  { %v621_v34 = vunpack.i.h.s16 %v1643_v63  ;;  %14953 = vmatmul.mubr.bf16.gmra.mxu1 %v2624_v46  ;;  %v13551_v29 = vpack.i.b16 %v16480_v22, %v16475_v19  ;;  %v13552_v42 = vpack.i.b16 %v16483_v6, %v609_v43  ;;  %v13553_v33 = vpack.i.b16 %v1598_v32, %v611_v28  ;;  %v13477_v19 = vld.sshfl [vmem:[%s19354_s0 + $0x50] sm:$0x13 pattern:$0x75316420] }
  0x49   :  { %v2133_v54 = vrot.slane %v2123_v48, %v16235_v26  ;;  %v2140_v27 = vrot.slane %v2124_v7, %v16235_v26  ;;  %14956 = vmatprep.mubr.msk.bf16.mxu1 %vm16059_vm0, %v16058_v1  ;;  %v2126_v17 = vcombine.low %v13517_v2, %v13518_v45  ;;  %v2147_v3 = vrot.slane %v2125_v50, %v16235_v26  ;;  %v13478_v32 = vld.sshfl [vmem:[%s19354_s0 + $0x54] sm:$0x13 pattern:$0x75316420] }
  0x4a   :  { %v13554_v39 = vpack.i.b16 %v1636_v62, %v1621_v61  ;;  %v13555_v53 = vpack.i.b16 %v1643_v63, %v619_v51  ;;  %v13556_v47 = vpack.i.b16 %v1644_v21, %v621_v34  ;;  %v2625_v31 = vcombine.low %v13551_v29, %v13552_v42 }
  0x4b   :  { %v2155_v52 = vcombine.low %v2133_v54, %v2140_v27  ;;  %v2154_v22 = vrot.slane %v2126_v17, %v16235_v26  ;;  %v2626_v6 = vcombine.low %v13553_v33, %v16526_v58  ;;  %v1675_v41 = vcombine.high %v13475_v8, %v13475_v8 }
  0x4c   :  { %v2627_v18 = vcombine.low %v1620_v44, %v13554_v39  ;;  %v2628_v56 = vcombine.low %v13555_v53, %v13556_v47  ;;  %v2635_v57 = vrot.slane %v2625_v31, %v16235_v26  ;;  %v1682_v10 = vrot.slane %v13475_v8, %v16235_v26 }
  0x4d   :  { %v2163_v55 = vrot.slane %v2155_v52, %v16235_v26  ;;  %v2156_v4 = vcombine.low %v2147_v3, %v2154_v22  ;;  %v2642_v59 = vrot.slane %v2626_v6, %v16235_v26  ;;  %v1689_v58 = vrot.slane %v1675_v41, %v16235_v26  ;;  %v13591_v22 = vld.sshfl [vmem:[%s19355_s1 + $0x4] sm:$0x13 pattern:$0x75316420] }
  0x4e   :  { %v2649_v60 = vrot.slane %v2627_v18, %v16235_v26  ;;  %v2656_v44 = vrot.slane %v2628_v56, %v16235_v26  ;;  %v1690_v11 = vcombine.high %v1682_v10, %v1682_v10  ;;  %v1698_v61 = vcombine.high %v13476_v30, %v13476_v30 }
  0x4f   :  { %v1705_v62 = vrot.slane %v13476_v30, %v16235_v26  ;;  %v2170_v63 = vrot.slane %v2156_v4, %v16235_v26  ;;  %v2657_v9 = vcombine.low %v2635_v57, %v2642_v59  ;;  %v1721_v14 = vcombine.high %v13477_v19, %v13477_v19 }
  0x50   :  { %v1728_v49 = vrot.slane %v13477_v19, %v16235_v26  ;;  %v2658_v5 = vcombine.low %v2649_v60, %v2656_v44  ;;  %v1712_v21 = vrot.slane %v1698_v61, %v16235_v26  ;;  %v1751_v13 = vrot.slane %v13478_v32, %v16235_v26 }
  0x51   :  { %v1713_v23 = vcombine.high %v1705_v62, %v1705_v62  ;;  %v2171_v37 = vcombine.low %v2163_v55, %v2170_v63  ;;  %v2665_v15 = vrot.slane %v2657_v9, %v16235_v26  ;;  %v1735_v25 = vrot.slane %v1721_v14, %v16235_v26  ;;  %v13592_v55 = vld.sshfl [vmem:[%s19355_s1 + $0x8] sm:$0x13 pattern:$0x75316420] }
  0x52   :  { %v1736_v36 = vcombine.high %v1728_v49, %v1728_v49  ;;  %v2672_v40 = vrot.slane %v2658_v5, %v16235_v26  ;;  %v1846_v35 = vunpack.i.h.s16 %v1705_v62  ;;  %v1848_v20 = vunpack.i.h.s16 %v1712_v21  ;;  %v13593_v9 = vld.sshfl [vmem:[%s19355_s1 + $0xc] sm:$0x13 pattern:$0x75316420] }
  0x53   :  { %v13519_v38 = vpack.i.b16 %v1705_v62, %v1690_v11  ;;  %14913 = vmatmul.mubr.bf16.gmra.mxu0 %v2171_v37  ;;  %v2172_v43 = vcombine.low %v1682_v10, %v1689_v58  ;;  %v629_v46 = vunpack.i.h.s16 %v1682_v10  ;;  %v631_v48 = vunpack.i.h.s16 %v1689_v58  ;;  %v16629_v14 = vld.sshfl [vmem:[%s19355_s1 + $0x10] sm:$0x13 pattern:$0x75316420] }
  0x54   :  { %v13522_v2 = vpack.i.b16 %v1751_v13, %v1736_v36  ;;  %v2673_v7 = vcombine.low %v2665_v15, %v2672_v40  ;;  %14916 = vmatprep.mubr.msk.bf16.mxu0 %vm16059_vm0, %v16058_v1  ;;  %v13520_v28 = vpack.i.b16 %v1712_v21, %v1846_v35  ;;  %v13521_v8 = vpack.i.b16 %v1713_v23, %v1848_v20 }
  0x55   :  { %v13557_v45 = vpack.i.b16 %v1682_v10, %v16548_v24  ;;  %v2182_v51 = vrot.slane %v2172_v43, %v16235_v26  ;;  %v13558_v34 = vpack.i.b16 %v1689_v58, %v629_v46  ;;  %v13559_v54 = vpack.i.b16 %v1690_v11, %v631_v48 }
  0x56   :  { %v2175_v50 = vcombine.low %v1735_v25, %v13522_v2  ;;  %14957 = vmatmul.mubr.bf16.gmra.mxu1 %v2673_v7  ;;  %v2173_v27 = vcombine.low %v13519_v38, %v13520_v28  ;;  %v2174_v29 = vcombine.low %v13521_v8, %v1728_v49  ;;  %v13560_v42 = vpack.i.b16 %v1728_v49, %v1713_v23  ;;  %v13419_v38 = vld.sshfl [vmem:[%s19355_s1] sm:$0x13 pattern:$0x75316420] }
  0x57   :  { %v2674_v17 = vcombine.low %v16539_v16, %v16544_v0  ;;  %14960 = vmatprep.mubr.msk.bf16.mxu1 %vm16059_vm0, %v16058_v1  ;;  %v2675_v33 = vcombine.low %v13557_v45, %v13558_v34  ;;  %v2676_v39 = vcombine.low %v13559_v54, %v1705_v62  ;;  %v1744_v24 = vcombine.high %v13478_v32, %v13478_v32 }
  0x58   :  { %v2203_v3 = vrot.slane %v2175_v50, %v16235_v26  ;;  %v2189_v30 = vrot.slane %v2173_v27, %v16235_v26  ;;  %v2196_v52 = vrot.slane %v2174_v29, %v16235_v26  ;;  %v2677_v53 = vcombine.low %v1712_v21, %v13560_v42 }
  0x59   :  { %v2684_v47 = vrot.slane %v2674_v17, %v16235_v26  ;;  %v2691_v31 = vrot.slane %v2675_v33, %v16235_v26  ;;  %v2698_v19 = vrot.slane %v2676_v39, %v16235_v26  ;;  %v1758_v16 = vrot.slane %v1744_v24, %v16235_v26 }
  0x5a   :  { %v1759_v0 = vcombine.high %v1751_v13, %v1751_v13  ;;  %v2204_v6 = vcombine.low %v2182_v51, %v2189_v30  ;;  %v2205_v18 = vcombine.low %v2196_v52, %v2203_v3  ;;  %v2705_v32 = vrot.slane %v2677_v53, %v16235_v26 }
  0x5b   :  { %v1856_v41 = vunpack.i.h.s16 %v1751_v13  ;;  %v2706_v56 = vcombine.low %v2684_v47, %v2691_v31  ;;  %v1858_v57 = vunpack.i.h.s16 %v1758_v16  ;;  %v639_v10 = vunpack.i.h.s16 %v1728_v49 }
  0x5c   :  { %v641_v4 = vunpack.i.h.s16 %v1735_v25  ;;  %v2212_v59 = vrot.slane %v2204_v6, %v16235_v26  ;;  %v2219_v60 = vrot.slane %v2205_v18, %v16235_v26  ;;  %v2707_v58 = vcombine.low %v2698_v19, %v2705_v32 }
  0x5d   :  { %v13523_v44 = vpack.i.b16 %v1758_v16, %v1856_v41  ;;  %v2714_v11 = vrot.slane %v2706_v56, %v16235_v26  ;;  %v13524_v61 = vpack.i.b16 %v1759_v0, %v1858_v57  ;;  %v13561_v62 = vpack.i.b16 %v1735_v25, %v639_v10 }
  0x5e   :  { %v13562_v63 = vpack.i.b16 %v1736_v36, %v641_v4  ;;  %v2220_v49 = vcombine.low %v2212_v59, %v2219_v60  ;;  %v2721_v5 = vrot.slane %v2707_v58, %v16235_v26  ;;  %v2929_v21 = vcombine.high %v13591_v22, %v13591_v22  ;;  %v16682_v4 = vld.sshfl [vmem:[%s19355_s1 + $0x1c] sm:$0x13 pattern:$0x75316420] }
  0x5f   :  { %v2936_v23 = vrot.slane %v13591_v22, %v16235_v26  ;;  %v2221_v13 = vcombine.low %v13523_v44, %v13524_v61  ;;  %v2952_v15 = vcombine.high %v13592_v55, %v13592_v55  ;;  %v2959_v25 = vrot.slane %v13592_v55, %v16235_v26  ;;  %v13595_v22 = vld.sshfl [vmem:[%s19355_s1 + $0x14] sm:$0x13 pattern:$0x75316420] }
  0x60   :  { %v2723_v37 = vcombine.low %v13561_v62, %v13562_v63  ;;  %14917 = vmatmul.mubr.bf16.gmra.mxu0 %v2220_v49  ;;  %v2722_v36 = vcombine.low %v2714_v11, %v2721_v5  ;;  %v2943_v40 = vrot.slane %v2929_v21, %v16235_v26  ;;  %v2975_v20 = vcombine.high %v13593_v9, %v13593_v9  ;;  %v13596_v55 = vld.sshfl [vmem:[%s19355_s1 + $0x18] sm:$0x13 pattern:$0x75316420] }
  0x61   :  { %v2944_v35 = vcombine.high %v2936_v23, %v2936_v23  ;;  %14920 = vmatprep.mubr.msk.bf16.mxu0 %vm16059_vm0, %v16058_v1  ;;  %v2228_v2 = vrot.slane %v2221_v13, %v16235_v26  ;;  %v2966_v46 = vrot.slane %v2952_v15, %v16235_v26  ;;  %v2967_v48 = vcombine.high %v2959_v25, %v2959_v25 }
  0x62   :  { %v2730_v43 = vrot.slane %v2723_v37, %v16235_v26  ;;  %14961 = vmatmul.mubr.bf16.gmra.mxu1 %v2722_v36  ;;  %v16644_v7 = vrot.slane %v13593_v9, %v16235_v26  ;;  %v16647_v28 = vrot.slane %v2975_v20, %v16235_v26  ;;  %v16651_v8 = vrot.slane %v16629_v14, %v16235_v26 }
  0x63   :  { %v3388_v45 = vunpack.i.h.s16 %v2959_v25  ;;  %14964 = vmatprep.mubr.msk.bf16.mxu1 %vm16059_vm0, %v16058_v1  ;;  %v2235_v50 = vrot.slane %v2228_v2, %v16235_v26  ;;  %v3390_v34 = vunpack.i.h.s16 %v2966_v46  ;;  %v13611_v54 = vpack.i.b16 %v2959_v25, %v2944_v35 }
  0x64   :  { %v2737_v51 = vrot.slane %v2730_v43, %v16235_v26  ;;  %v16659_v27 = vcombine.high %v16644_v7, %v16644_v7  ;;  %v3532_v42 = vcombine.low %v2936_v23, %v2943_v40  ;;  %v706_v17 = vcombine.high %v13419_v38, %v13419_v38 }
  0x65   :  { %v13612_v29 = vpack.i.b16 %v2966_v46, %v3388_v45  ;;  %v13613_v3 = vpack.i.b16 %v2967_v48, %v3390_v34  ;;  %v713_v33 = vrot.slane %v13419_v38, %v16235_v26  ;;  %v1165_v39 = vunpack.i.h.s16 %v2936_v23 }
  0x66   :  { %v1167_v24 = vunpack.i.h.s16 %v2943_v40  ;;  %v13614_v30 = vpack.i.b16 %v16651_v8, %v16659_v27  ;;  %v3542_v53 = vrot.slane %v3532_v42, %v16235_v26  ;;  %v720_v47 = vrot.slane %v706_v17, %v16235_v26 }
  0x67   :  { %v3533_v52 = vcombine.low %v13611_v54, %v13612_v29  ;;  %v3534_v31 = vcombine.low %v13613_v3, %v16644_v7  ;;  %v721_v19 = vcombine.high %v713_v33, %v713_v33  ;;  %v13642_v16 = vpack.i.b16 %v2943_v40, %v1165_v39 }
  0x68   :  { %v13643_v0 = vpack.i.b16 %v2944_v35, %v1167_v24  ;;  %14921 = vmatmul.mubr.bf16.gmra.mxu0 %v2235_v50  ;;  %v3535_v6 = vcombine.low %v16647_v28, %v13614_v30  ;;  %v13644_v32 = vpack.i.b16 %v16644_v7, %v2967_v48  ;;  %v3986_v41 = vcombine.low %v713_v33, %v720_v47 }
  0x69   :  { %v3549_v18 = vrot.slane %v3533_v52, %v16235_v26  ;;  %14984 = vmatprep.mubr.msk.bf16.mxu0 %vm16059_vm0, %v16058_v1  ;;  %v3556_v56 = vrot.slane %v3534_v31, %v16235_v26  ;;  %v13641_v57 = vpack.i.b16 %v2936_v23, %v721_v19  ;;  %v2998_v59 = vcombine.high %v16629_v14, %v16629_v14 }
  0x6a   :  { %v3988_v10 = vcombine.low %v13643_v0, %v2959_v25  ;;  %14965 = vmatmul.mubr.bf16.gmra.mxu1 %v2737_v51  ;;  %v3563_v60 = vrot.slane %v3535_v6, %v16235_v26  ;;  %v3989_v44 = vcombine.low %v2966_v46, %v13644_v32  ;;  %v3996_v11 = vrot.slane %v3986_v41, %v16235_v26 }
  0x6b   :  { %v3564_v58 = vcombine.low %v3542_v53, %v3549_v18  ;;  %15028 = vmatprep.mubr.msk.bf16.mxu1 %vm16059_vm0, %v16058_v1  ;;  %v3987_v61 = vcombine.low %v13641_v57, %v13642_v16  ;;  %v16692_v63 = vrot.slane %v2998_v59, %v16235_v26  ;;  %v3013_v9 = vcombine.high %v16651_v8, %v16651_v8  ;;  %v13600_v59 = vld.sshfl [vmem:[%s19355_s1 + $0x28] sm:$0x13 pattern:$0x75316420] }
  0x6c   :  { %v4010_v62 = vrot.slane %v3988_v10, %v16235_v26  ;;  %v3565_v14 = vcombine.low %v3556_v56, %v3563_v60  ;;  %v4017_v5 = vrot.slane %v3989_v44, %v16235_v26  ;;  %v3021_v21 = vcombine.high %v13595_v22, %v13595_v22 }
  0x6d   :  { %v3572_v49 = vrot.slane %v3564_v58, %v16235_v26  ;;  %v4003_v23 = vrot.slane %v3987_v61, %v16235_v26  ;;  %v3028_v13 = vrot.slane %v13595_v22, %v16235_v26  ;;  %v3044_v37 = vcombine.high %v13596_v55, %v13596_v55 }
  0x6e   :  { %v3051_v15 = vrot.slane %v13596_v55, %v16235_v26  ;;  %v3579_v25 = vrot.slane %v3565_v14, %v16235_v26  ;;  %v4019_v36 = vcombine.low %v4010_v62, %v4017_v5  ;;  %v3035_v40 = vrot.slane %v3021_v21, %v16235_v26  ;;  %v13598_v55 = vld.sshfl [vmem:[%s19355_s1 + $0x20] sm:$0x13 pattern:$0x75316420] }
  0x6f   :  { %v16705_v35 = vrot.slane %v16682_v4, %v16235_v26  ;;  %v4018_v20 = vcombine.low %v3996_v11, %v4003_v23  ;;  %v3036_v38 = vcombine.high %v3028_v13, %v3028_v13  ;;  %v16708_v2 = vrot.slane %v3044_v37, %v16235_v26 }
  0x70   :  { %v16710_v43 = vcombine.high %v3051_v15, %v3051_v15  ;;  %v3580_v46 = vcombine.low %v3572_v49, %v3579_v25  ;;  %v4033_v48 = vrot.slane %v4019_v36, %v16235_v26  ;;  %v3398_v45 = vunpack.i.h.s16 %v16651_v8 }
  0x71   :  { %v3400_v50 = vunpack.i.h.s16 %v16692_v63  ;;  %v4026_v51 = vrot.slane %v4018_v20, %v16235_v26  ;;  %v3408_v34 = vunpack.i.h.s16 %v3051_v15  ;;  %v3410_v54 = vunpack.i.h.s16 %v16708_v2 }
  0x72   :  { %v13617_v29 = vpack.i.b16 %v3051_v15, %v3036_v38  ;;  %14985 = vmatmul.mubr.bf16.vlgmr.msra.gmra.mxu0 %v3580_v46  ;;  %v13615_v42 = vpack.i.b16 %v16692_v63, %v3398_v45  ;;  %v3582_v3 = vcombine.low %v3028_v13, %v3035_v40  ;;  %v1175_v33 = vunpack.i.h.s16 %v16644_v7 }
  0x73   :  { %v13616_v17 = vpack.i.b16 %v3013_v9, %v3400_v50  ;;  %v4034_v39 = vcombine.low %v4026_v51, %v4033_v48  ;;  %14988 = vmatprep.mubr.msk.bf16.mxu0 %vm16059_vm0, %v16058_v1  ;;  %v13618_v24 = vpack.i.b16 %v16708_v2, %v3408_v34  ;;  %v13619_v30 = vpack.i.b16 %v16710_v43, %v3410_v54 }
  0x74   :  { %v1177_v52 = vunpack.i.h.s16 %v16647_v28  ;;  %v3598_v47 = vrot.slane %v3582_v3, %v16235_v26  ;;  %v1185_v31 = vunpack.i.h.s16 %v3028_v13  ;;  %v1187_v19 = vunpack.i.h.s16 %v3035_v40 }
  0x75   :  { %v3581_v53 = vcombine.low %v13615_v42, %v13616_v17  ;;  %15029 = vmatmul.mubr.bf16.vlgmr.msra.gmra.mxu1 %v4034_v39  ;;  %v3583_v16 = vcombine.low %v13617_v29, %v13618_v24  ;;  %v3584_v0 = vcombine.low %v13619_v30, %v16705_v35  ;;  %v13645_v7 = vpack.i.b16 %v16647_v28, %v1175_v33 }
  0x76   :  { %v13646_v22 = vpack.i.b16 %v16659_v27, %v1177_v52  ;;  %15032 = vmatprep.mubr.msk.bf16.mxu1 %vm16059_vm0, %v16058_v1  ;;  %v13647_v18 = vpack.i.b16 %v3028_v13, %v3013_v9  ;;  %v13648_v32 = vpack.i.b16 %v3035_v40, %v1185_v31  ;;  %v13649_v41 = vpack.i.b16 %v3036_v38, %v1187_v19  ;;  %v13599_v27 = vld.sshfl [vmem:[%s19355_s1 + $0x24] sm:$0x13 pattern:$0x75316420] }
  0x77   :  { %v3591_v6 = vrot.slane %v3581_v53, %v16235_v26  ;;  %v3605_v56 = vrot.slane %v3583_v16, %v16235_v26  ;;  %v3612_v57 = vrot.slane %v3584_v0, %v16235_v26  ;;  %v4036_v28 = vcombine.low %v16651_v8, %v16692_v63 }
  0x78   :  { %v4035_v10 = vcombine.low %v13645_v7, %v13646_v22  ;;  %v4037_v58 = vcombine.low %v13647_v18, %v13648_v32  ;;  %v4038_v44 = vcombine.low %v13649_v41, %v3051_v15  ;;  %v3067_v11 = vcombine.high %v16682_v4, %v16682_v4 }
  0x79   :  { %v3613_v60 = vcombine.low %v3591_v6, %v3598_v47  ;;  %v3614_v61 = vcombine.low %v3605_v56, %v3612_v57  ;;  %v4052_v9 = vrot.slane %v4036_v28, %v16235_v26  ;;  %v3082_v8 = vcombine.high %v16705_v35, %v16705_v35  ;;  %v13601_v47 = vld.sshfl [vmem:[%s19355_s1 + $0x30] sm:$0x13 pattern:$0x75316420] }
  0x7a   :  { %v4045_v62 = vrot.slane %v4035_v10, %v16235_v26  ;;  %v4059_v14 = vrot.slane %v4037_v58, %v16235_v26  ;;  %v4066_v49 = vrot.slane %v4038_v44, %v16235_v26  ;;  %v3081_v5 = vrot.slane %v3067_v11, %v16235_v26  ;;  %v13602_v57 = vld.sshfl [vmem:[%s19355_s1 + $0x34] sm:$0x13 pattern:$0x75316420] }
  0x7b   :  { %v3621_v63 = vrot.slane %v3613_v60, %v16235_v26  ;;  %v3628_v21 = vrot.slane %v3614_v61, %v16235_v26  ;;  %v3090_v4 = vcombine.high %v13598_v55, %v13598_v55  ;;  %v3097_v13 = vrot.slane %v13598_v55, %v16235_v26 }
  0x7c   :  { %v4067_v23 = vcombine.low %v4045_v62, %v4052_v9  ;;  %v4068_v37 = vcombine.low %v4059_v14, %v4066_v49  ;;  %v3113_v15 = vcombine.high %v13599_v27, %v13599_v27  ;;  %v3120_v25 = vrot.slane %v13599_v27, %v16235_v26 }
  0x7d   :  { %v3136_v36 = vcombine.high %v13600_v59, %v13600_v59  ;;  %v3629_v40 = vcombine.low %v3621_v63, %v3628_v21  ;;  %v3104_v38 = vrot.slane %v3090_v4, %v16235_v26  ;;  %v3105_v46 = vcombine.high %v3097_v13, %v3097_v13 }
  0x7e   :  { %v4075_v20 = vrot.slane %v4067_v23, %v16235_v26  ;;  %v4082_v48 = vrot.slane %v4068_v37, %v16235_v26  ;;  %v16761_v45 = vrot.slane %v3113_v15, %v16235_v26  ;;  %v16763_v50 = vcombine.high %v3120_v25, %v3120_v25 }
  0x7f   :  { %v16766_v51 = vrot.slane %v13600_v59, %v16235_v26  ;;  %14989 = vmatmul.mubr.bf16.gmra.mxu0 %v3629_v40  ;;  %v16769_v34 = vrot.slane %v3136_v36, %v16235_v26  ;;  %v3418_v54 = vunpack.i.h.s16 %v3097_v13  ;;  %v3420_v29 = vunpack.i.h.s16 %v3104_v38  ;;  %v13603_v59 = vld.sshfl [vmem:[%s19355_s1 + $0x38] sm:$0x13 pattern:$0x75316420] }
  0x80   :  { %v13620_v42 = vpack.i.b16 %v3097_v13, %v3082_v8  ;;  %v4083_v17 = vcombine.low %v4075_v20, %v4082_v48  ;;  %14992 = vmatprep.mubr.msk.bf16.mxu0 %vm16059_vm0, %v16058_v1  ;;  %v3632_v39 = vcombine.low %v3120_v25, %v16761_v45  ;;  %v1195_v53 = vunpack.i.h.s16 %v16705_v35 }
  0x81   :  { %v3428_v3 = vunpack.i.h.s16 %v16766_v51  ;;  %v13623_v33 = vpack.i.b16 %v16766_v51, %v16763_v50  ;;  %v13621_v24 = vpack.i.b16 %v3104_v38, %v3418_v54  ;;  %v13622_v30 = vpack.i.b16 %v3105_v46, %v3420_v29 }
  0x82   :  { %v3630_v52 = vcombine.low %v3081_v5, %v13620_v42  ;;  %15033 = vmatmul.mubr.bf16.gmra.mxu1 %v4083_v17  ;;  %v3654_v19 = vrot.slane %v3632_v39, %v16235_v26  ;;  %v1197_v16 = vunpack.i.h.s16 %v3081_v5  ;;  %v1205_v0 = vunpack.i.h.s16 %v3120_v25 }
  0x83   :  { %v13624_v31 = vpack.i.b16 %v16769_v34, %v3428_v3  ;;  %15036 = vmatprep.mubr.msk.bf16.mxu1 %vm16059_vm0, %v16058_v1  ;;  %v3631_v7 = vcombine.low %v13621_v24, %v13622_v30  ;;  %v13650_v6 = vpack.i.b16 %v16705_v35, %v16710_v43  ;;  %v13651_v18 = vpack.i.b16 %v3081_v5, %v1195_v53 }
  0x84   :  { %v3640_v22 = vrot.slane %v3630_v52, %v16235_v26  ;;  %v13652_v41 = vpack.i.b16 %v3082_v8, %v1197_v16  ;;  %v13653_v55 = vpack.i.b16 %v3120_v25, %v3105_v46  ;;  %v13654_v56 = vpack.i.b16 %v16761_v45, %v1205_v0  ;;  %v13429_v25 = vld.sshfl [vmem:[%s19355_s1 + $0x2c] sm:$0x13 pattern:$0x75316420] }
  0x85   :  { %v3633_v32 = vcombine.low %v13623_v33, %v13624_v31  ;;  %v3647_v10 = vrot.slane %v3631_v7, %v16235_v26  ;;  %v4084_v28 = vcombine.low %v16708_v2, %v13650_v6  ;;  %v4086_v27 = vcombine.low %v3097_v13, %v3104_v38  ;;  %v13604_v7 = vld.sshfl [vmem:[%s19355_s1 + $0x3c] sm:$0x13 pattern:$0x75316420] }
  0x86   :  { %v3151_v35 = vcombine.high %v16766_v51, %v16766_v51  ;;  %v4085_v60 = vcombine.low %v13651_v18, %v13652_v41  ;;  %v4087_v58 = vcombine.low %v13653_v55, %v13654_v56  ;;  %v3159_v44 = vcombine.high %v13601_v47, %v13601_v47  ;;  %v13605_v41 = vld.sshfl [vmem:[%s19355_s1 + $0x40] sm:$0x13 pattern:$0x75316420] }
  0x87   :  { %v3661_v43 = vrot.slane %v3633_v32, %v16235_v26  ;;  %v3662_v11 = vcombine.low %v3640_v22, %v3647_v10  ;;  %v4094_v61 = vrot.slane %v4084_v28, %v16235_v26  ;;  %v4108_v62 = vrot.slane %v4086_v27, %v16235_v26 }
  0x88   :  { %v3166_v2 = vrot.slane %v13601_v47, %v16235_v26  ;;  %v4101_v8 = vrot.slane %v4085_v60, %v16235_v26  ;;  %v4115_v63 = vrot.slane %v4087_v58, %v16235_v26  ;;  %v3173_v14 = vrot.slane %v3159_v44, %v16235_v26 }
  0x89   :  { %v3663_v9 = vcombine.low %v3654_v19, %v3661_v43  ;;  %v3670_v49 = vrot.slane %v3662_v11, %v16235_v26  ;;  %v3182_v21 = vcombine.high %v13602_v57, %v13602_v57  ;;  %v3189_v23 = vrot.slane %v13602_v57, %v16235_v26 }
  0x8a   :  { %v3174_v5 = vcombine.high %v3166_v2, %v3166_v2  ;;  %v4116_v13 = vcombine.low %v4094_v61, %v4101_v8  ;;  %v4117_v37 = vcombine.low %v4108_v62, %v4115_v63  ;;  %v3205_v15 = vcombine.high %v13603_v59, %v13603_v59 }
  0x8b   :  { %v3677_v4 = vrot.slane %v3663_v9, %v16235_v26  ;;  %v3196_v36 = vrot.slane %v3182_v21, %v16235_v26  ;;  %v16813_v40 = vcombine.high %v3189_v23, %v3189_v23  ;;  %v16816_v20 = vrot.slane %v13603_v59, %v16235_v26  ;;  %v13606_v59 = vld.sshfl [vmem:[%s19355_s1 + $0x44] sm:$0x13 pattern:$0x75316420] }
  0x8c   :  { %v3430_v38 = vunpack.i.h.s16 %v16769_v34  ;;  %v4124_v48 = vrot.slane %v4116_v13, %v16235_v26  ;;  %v4131_v51 = vrot.slane %v4117_v37, %v16235_v26  ;;  %v16822_v54 = vrot.slane %v3205_v15, %v16235_v26 }
  0x8d   :  { %v3678_v46 = vcombine.low %v3670_v49, %v3677_v4  ;;  %v3438_v29 = vunpack.i.h.s16 %v3189_v23  ;;  %v3440_v42 = vunpack.i.h.s16 %v3196_v36  ;;  %v13626_v3 = vpack.i.b16 %v3189_v23, %v3174_v5 }
  0x8e   :  { %v13625_v17 = vpack.i.b16 %v3151_v35, %v3430_v38  ;;  %v4132_v33 = vcombine.low %v4124_v48, %v4131_v51  ;;  %v3682_v39 = vcombine.low %v16816_v20, %v16822_v54  ;;  %v936_v24 = vcombine.high %v13429_v25, %v13429_v25 }
  0x8f   :  { %14993 = vmatmul.mubr.bf16.gmra.mxu0 %v3678_v46  ;;  %v943_v34 = vrot.slane %v13429_v25, %v16235_v26  ;;  %v13627_v30 = vpack.i.b16 %v3196_v36, %v3438_v29  ;;  %v13628_v52 = vpack.i.b16 %v16813_v40, %v3440_v42  ;;  %v3680_v47 = vcombine.low %v3173_v14, %v13626_v3 }
  0x90   :  { %14996 = vmatprep.mubr.msk.bf16.mxu0 %vm16059_vm0, %v16058_v1  ;;  %v3679_v53 = vcombine.low %v13625_v17, %v3166_v2  ;;  %15037 = vmatmul.mubr.bf16.gmra.mxu1 %v4132_v33  ;;  %v3710_v31 = vrot.slane %v3682_v39, %v16235_v26  ;;  %v950_v19 = vrot.slane %v936_v24, %v16235_v26  ;;  %v1207_v0 = vunpack.i.h.s16 %v16761_v45 }
  0x91   :  { %v951_v16 = vcombine.high %v943_v34, %v943_v34  ;;  %15040 = vmatprep.mubr.msk.bf16.mxu1 %vm16059_vm0, %v16058_v1  ;;  %v3681_v22 = vcombine.low %v13627_v30, %v13628_v52  ;;  %v3696_v18 = vrot.slane %v3680_v47, %v16235_v26  ;;  %v1215_v32 = vunpack.i.h.s16 %v3166_v2 }
  0x92   :  { %v3689_v6 = vrot.slane %v3679_v53, %v16235_v26  ;;  %v1217_v55 = vunpack.i.h.s16 %v3173_v14  ;;  %v13655_v45 = vpack.i.b16 %v16763_v50, %v1207_v0  ;;  %v4136_v57 = vcombine.low %v3189_v23, %v3196_v36 }
  0x93   :  { %v13656_v56 = vpack.i.b16 %v3166_v2, %v951_v16  ;;  %v3703_v10 = vrot.slane %v3681_v22, %v16235_v26  ;;  %v13657_v27 = vpack.i.b16 %v3173_v14, %v1215_v32  ;;  %v3220_v35 = vcombine.high %v16816_v20, %v16816_v20 }
  0x94   :  { %v3711_v28 = vcombine.low %v3689_v6, %v3696_v18  ;;  %v13658_v43 = vpack.i.b16 %v3174_v5, %v1217_v55  ;;  %v4133_v60 = vcombine.low %v13655_v45, %v943_v34  ;;  %v4164_v44 = vrot.slane %v4136_v57, %v16235_v26 }
  0x95   :  { %v4134_v58 = vcombine.low %v950_v19, %v13656_v56  ;;  %v3712_v11 = vcombine.low %v3703_v10, %v3710_v31  ;;  %v3228_v61 = vcombine.high %v13604_v7, %v13604_v7  ;;  %v16853_v62 = vrot.slane %v13604_v7, %v16235_v26  ;;  %v13607_v19 = vld.sshfl [vmem:[%s19355_s1 + $0x48] sm:$0x13 pattern:$0x75316420] }
  0x96   :  { %v3719_v50 = vrot.slane %v3711_v28, %v16235_v26  ;;  %v4135_v2 = vcombine.low %v13657_v27, %v13658_v43  ;;  %v4143_v9 = vrot.slane %v4133_v60, %v16235_v26  ;;  %v3251_v63 = vcombine.high %v13605_v41, %v13605_v41  ;;  %v13608_v43 = vld.sshfl [vmem:[%s19355_s1 + $0x4c] sm:$0x13 pattern:$0x75316420] }
  0x97   :  { %v4150_v8 = vrot.slane %v4134_v58, %v16235_v26  ;;  %v3726_v14 = vrot.slane %v3712_v11, %v16235_v26  ;;  %v3242_v49 = vrot.slane %v3228_v61, %v16235_v26  ;;  %v3243_v5 = vcombine.high %v16853_v62, %v16853_v62  ;;  %v13609_v58 = vld.sshfl [vmem:[%s19355_s1 + $0x50] sm:$0x13 pattern:$0x75316420] }
  0x98   :  { %v3258_v21 = vrot.slane %v13605_v41, %v16235_v26  ;;  %v4157_v23 = vrot.slane %v4135_v2, %v16235_v26  ;;  %v3265_v13 = vrot.slane %v3251_v63, %v16235_v26  ;;  %v3274_v37 = vcombine.high %v13606_v59, %v13606_v59 }
  0x99   :  { %v4165_v4 = vcombine.low %v4143_v9, %v4150_v8  ;;  %v3727_v15 = vcombine.low %v3719_v50, %v3726_v14  ;;  %v16865_v36 = vrot.slane %v13606_v59, %v16235_v26  ;;  %v3448_v38 = vunpack.i.h.s16 %v16853_v62 }
  0x9a   :  { %v3266_v25 = vcombine.high %v3258_v21, %v3258_v21  ;;  %v4166_v46 = vcombine.low %v4157_v23, %v4164_v44  ;;  %v16870_v51 = vrot.slane %v3274_v37, %v16235_v26  ;;  %v3450_v29 = vunpack.i.h.s16 %v3242_v49 }
  0x9b   :  { %v4173_v48 = vrot.slane %v4165_v4, %v16235_v26  ;;  %14997 = vmatmul.mubr.bf16.gmra.mxu0 %v3727_v15  ;;  %v16874_v42 = vcombine.high %v16865_v36, %v16865_v36  ;;  %v3458_v17 = vunpack.i.h.s16 %v16865_v36  ;;  %v13629_v3 = vpack.i.b16 %v16853_v62, %v3220_v35 }
  0x9c   :  { %v13630_v33 = vpack.i.b16 %v3242_v49, %v3448_v38  ;;  %v4180_v39 = vrot.slane %v4166_v46, %v16235_v26  ;;  %15000 = vmatprep.mubr.msk.bf16.mxu0 %vm16059_vm0, %v16058_v1  ;;  %v3460_v24 = vunpack.i.h.s16 %v16870_v51  ;;  %v13631_v34 = vpack.i.b16 %v3243_v5, %v3450_v29 }
  0x9d   :  { %v13632_v30 = vpack.i.b16 %v16865_v36, %v3266_v25  ;;  %v13633_v52 = vpack.i.b16 %v16870_v51, %v3458_v17  ;;  %v1225_v47 = vunpack.i.h.s16 %v16816_v20  ;;  %v1227_v31 = vunpack.i.h.s16 %v16822_v54 }
  0x9e   :  { %v3728_v53 = vcombine.low %v13629_v3, %v13630_v33  ;;  %v4181_v16 = vcombine.low %v4173_v48, %v4180_v39  ;;  %v13634_v0 = vpack.i.b16 %v16874_v42, %v3460_v24  ;;  %v3729_v7 = vcombine.low %v13631_v34, %v3258_v21 }
  0x9f   :  { %v3730_v22 = vcombine.low %v3265_v13, %v13632_v30  ;;  %v1235_v18 = vunpack.i.h.s16 %v3258_v21  ;;  %v1237_v32 = vunpack.i.h.s16 %v3265_v13  ;;  %v13659_v41 = vpack.i.b16 %v16816_v20, %v16813_v40 }
  0xa0   :  { %v3738_v6 = vrot.slane %v3728_v53, %v16235_v26  ;;  %15041 = vmatmul.mubr.bf16.gmra.mxu1 %v4181_v16  ;;  %v3731_v55 = vcombine.low %v13633_v52, %v13634_v0  ;;  %v3745_v45 = vrot.slane %v3729_v7, %v16235_v26  ;;  %v13660_v57 = vpack.i.b16 %v16822_v54, %v1225_v47  ;;  %v13610_v54 = vld.sshfl [vmem:[%s19355_s1 + $0x54] sm:$0x13 pattern:$0x75316420] }
  0xa1   :  { %v3752_v56 = vrot.slane %v3730_v22, %v16235_v26  ;;  %15044 = vmatprep.mubr.msk.bf16.mxu1 %vm16059_vm0, %v16058_v1  ;;  %v13661_v10 = vpack.i.b16 %v3220_v35, %v1227_v31  ;;  %v13662_v28 = vpack.i.b16 %v3258_v21, %v3243_v5  ;;  %v13663_v27 = vpack.i.b16 %v3265_v13, %v1235_v18 }
  0xa2   :  { %v13664_v59 = vpack.i.b16 %v3266_v25, %v1237_v32  ;;  %v3759_v40 = vrot.slane %v3731_v55, %v16235_v26  ;;  %v3760_v20 = vcombine.low %v3738_v6, %v3745_v45  ;;  %v4182_v60 = vcombine.low %v13659_v41, %v13660_v57 }
  0xa3   :  { %v3297_v35 = vcombine.high %v13607_v19, %v13607_v19  ;;  %v4183_v44 = vcombine.low %v13661_v10, %v16853_v62  ;;  %v4184_v11 = vcombine.low %v3242_v49, %v13662_v28  ;;  %v3304_v61 = vrot.slane %v13607_v19, %v16235_v26 }
  0xa4   :  { %v4185_v50 = vcombine.low %v13663_v27, %v13664_v59  ;;  %v3761_v2 = vcombine.low %v3752_v56, %v3759_v40  ;;  %v3768_v9 = vrot.slane %v3760_v20, %v16235_v26  ;;  %v4192_v8 = vrot.slane %v4182_v60, %v16235_v26 }
  0xa5   :  { %v3311_v63 = vrot.slane %v3297_v35, %v16235_v26  ;;  %v4199_v14 = vrot.slane %v4183_v44, %v16235_v26  ;;  %v4206_v5 = vrot.slane %v4184_v11, %v16235_v26  ;;  %v3312_v23 = vcombine.high %v3304_v61, %v3304_v61 }
  0xa6   :  { %v4213_v21 = vrot.slane %v4185_v50, %v16235_v26  ;;  %v3775_v62 = vrot.slane %v3761_v2, %v16235_v26  ;;  %v3320_v49 = vcombine.high %v13608_v43, %v13608_v43  ;;  %v3327_v4 = vrot.slane %v13608_v43, %v16235_v26 }
  0xa7   :  { %v3343_v13 = vcombine.high %v13609_v58, %v13609_v58  ;;  %v4214_v37 = vcombine.low %v4192_v8, %v4199_v14  ;;  %v3350_v25 = vrot.slane %v13609_v58, %v16235_v26  ;;  %v3373_v38 = vrot.slane %v13610_v54, %v16235_v26 }
  0xa8   :  { %v4215_v15 = vcombine.low %v4206_v5, %v4213_v21  ;;  %v3776_v46 = vcombine.low %v3768_v9, %v3775_v62  ;;  %v3334_v48 = vrot.slane %v3320_v49, %v16235_v26  ;;  %v3335_v29 = vcombine.high %v3327_v4, %v3327_v4 }
  0xa9   :  { %v3357_v17 = vrot.slane %v3343_v13, %v16235_v26  ;;  %v4222_v3 = vrot.slane %v4214_v37, %v16235_v26  ;;  %v3358_v39 = vcombine.high %v3350_v25, %v3350_v25  ;;  %v3468_v24 = vunpack.i.h.s16 %v3327_v4 }
  0xaa   :  { %v4229_v33 = vrot.slane %v4215_v15, %v16235_v26  ;;  %15001 = vmatmul.mubr.bf16.gmra.mxu0 %v3776_v46  ;;  %v3470_v34 = vunpack.i.h.s16 %v3334_v48  ;;  %v13635_v30 = vpack.i.b16 %v3327_v4, %v3312_v23  ;;  %v3777_v52 = vcombine.low %v3304_v61, %v3311_v63 }
  0xab   :  { %v1245_v53 = vunpack.i.h.s16 %v3304_v61  ;;  %15004 = vmatprep.mubr.msk.bf16.mxu0 %vm16059_vm0, %v16058_v1  ;;  %v13636_v31 = vpack.i.b16 %v3334_v48, %v3468_v24  ;;  %v13638_v19 = vpack.i.b16 %v3373_v38, %v3358_v39  ;;  %v1247_v16 = vunpack.i.h.s16 %v3311_v63 }
  0xac   :  { %v4230_v47 = vcombine.low %v4222_v3, %v4229_v33  ;;  %v13637_v0 = vpack.i.b16 %v3335_v29, %v3470_v34  ;;  %v3787_v7 = vrot.slane %v3777_v52, %v16235_v26  ;;  %v13665_v22 = vpack.i.b16 %v3304_v61, %v16874_v42  ;;  %v15580_v3 = vld [vmem:[%s19358_s4 + $0x28] sm:$0xff]   ;;  %v15583_v33 = vld [vmem:[%s19358_s4 + $0x20] sm:$0xff]  }
  0xad   :  { %v13666_v6 = vpack.i.b16 %v3311_v63, %v1245_v53  ;;  %v3778_v18 = vcombine.low %v13635_v30, %v13636_v31  ;;  %v3780_v32 = vcombine.low %v3357_v17, %v13638_v19  ;;  %v13667_v41 = vpack.i.b16 %v3312_v23, %v1247_v16  ;;  %v16970_v34 = vld [vmem:[%s19357_s3] ss:$0 sm:$0xff] }
  0xae   :  { %15045 = vmatmul.mubr.bf16.gmra.mxu1 %v4230_v47  ;;  %v13668_v55 = vpack.i.b16 %v3350_v25, %v3335_v29  ;;  %v3779_v45 = vcombine.low %v13637_v0, %v3350_v25  ;;  %v4231_v56 = vcombine.low %v16865_v36, %v16870_v51  ;;  %v3366_v10 = vcombine.high %v13610_v54, %v13610_v54  ;;  %v15578_v29 = vld [vmem:[%s19358_s4 + $0x38] sm:$0xff]   ;;  %v15585_v47 = vld [vmem:[%s19358_s4 + $0x10] sm:$0xff]  }
  0xaf   :  { %15048 = vmatprep.mubr.msk.bf16.mxu1 %vm16059_vm0, %v16058_v1  ;;  %v4232_v57 = vcombine.low %v13665_v22, %v13666_v6  ;;  %v3794_v28 = vrot.slane %v3778_v18, %v16235_v26  ;;  %v3808_v27 = vrot.slane %v3780_v32, %v16235_v26  ;;  %v4233_v42 = vcombine.low %v13667_v41, %v3327_v4  ;;  %v15586_v6 = vld [vmem:[%s19358_s4 + $0x8] sm:$0xff]  }
  0xb0   :  { %v4234_v59 = vcombine.low %v3334_v48, %v13668_v55  ;;  %v3801_v43 = vrot.slane %v3779_v45, %v16235_v26  ;;  %v4241_v40 = vrot.slane %v4231_v56, %v16235_v26  ;;  %v3380_v60 = vrot.slane %v3366_v10, %v16235_v26  ;;  %15076 = vmatprep.subr.bf16.mxu1 %v15578_v29  ;;  %v15587_v45 = vld [vmem:[%s19358_s4] sm:$0xff]  }
  0xb1   :  { %v4248_v20 = vrot.slane %v4232_v57, %v16235_v26  ;;  %v3809_v58 = vcombine.low %v3787_v7, %v3794_v28  ;;  %v4255_v35 = vrot.slane %v4233_v42, %v16235_v26  ;;  %v3381_v51 = vcombine.high %v3373_v38, %v3373_v38  ;;  %15077 = vmatpush3.bf16.msra.mxu1 %v15578_v29 }
  0xb2   :  { %v4262_v36 = vrot.slane %v4234_v59, %v16235_v26  ;;  %v3810_v54 = vcombine.low %v3801_v43, %v3808_v27  ;;  %v3478_v11 = vunpack.i.h.s16 %v3373_v38  ;;  %v3480_v50 = vunpack.i.h.s16 %v3380_v60 }
  0xb3   :  { %v4263_v44 = vcombine.low %v4241_v40, %v4248_v20  ;;  %v3817_v61 = vrot.slane %v3809_v58, %v16235_v26  ;;  %v1255_v9 = vunpack.i.h.s16 %v3350_v25  ;;  %v1257_v8 = vunpack.i.h.s16 %v3357_v17 }
  0xb4   :  { %v4264_v2 = vcombine.low %v4255_v35, %v4262_v36  ;;  %v3824_v63 = vrot.slane %v3810_v54, %v16235_v26  ;;  %v13639_v5 = vpack.i.b16 %v3380_v60, %v3478_v11  ;;  %v13640_v21 = vpack.i.b16 %v3381_v51, %v3480_v50 }
  0xb5   :  { %v4271_v14 = vrot.slane %v4263_v44, %v16235_v26  ;;  %v13669_v62 = vpack.i.b16 %v3357_v17, %v1255_v9  ;;  %v13670_v49 = vpack.i.b16 %v3358_v39, %v1257_v8  ;;  %v15579_v17 = vld [vmem:[%s19358_s4 + $0x30] sm:$0xff]   ;;  %v15584_v39 = vld [vmem:[%s19358_s4 + $0x18] sm:$0xff]   ;;  %v16061_v28 = vmov 1935823168  }
  0xb6   :  { %v4278_v23 = vrot.slane %v4264_v2, %v16235_v26  ;;  %v3825_v4 = vcombine.low %v3817_v61, %v3824_v63  ;;  %v3826_v13 = vcombine.low %v13639_v5, %v13640_v21  ;;  %15078 = vmatprep.subr.bf16.mxu1 %v15579_v17  ;;  %v4948_v27 = vunpack.c.l.s4 %v16061_v28 }
  0xb7   :  { %v4280_v15 = vcombine.low %v13669_v62, %v13670_v49  ;;  %15079 = vmatpush3.bf16.msra.mxu1 %v15579_v17 }
  0xb8   :  { %v4279_v37 = vcombine.low %v4271_v14, %v4278_v23  ;;  %15005 = vmatmul.mubr.bf16.gmra.mxu0 %v3825_v4  ;;  %v3833_v38 = vrot.slane %v3826_v13, %v16235_v26  ;;  %15080 = vmatprep.subr.bf16.mxu1 %v15580_v3  ;;  %v4949_v51 = vunpack.c.0.s8 %v4948_v27 }
  0xb9   :  { %15008 = vmatprep.mubr.msk.bf16.mxu0 %vm16059_vm0, %v16058_v1  ;;  %v4287_v25 = vrot.slane %v4280_v15, %v16235_v26 }
  0xba   :  { %15049 = vmatmul.mubr.bf16.gmra.mxu1 %v4279_v37  ;;  %v3840_v46 = vrot.slane %v3833_v38, %v16235_v26  ;;  %v16992_v23 = vsub.s32 %v4949_v51, %v16200_v12 }
  0xbb   :  { %15052 = vmatprep.mubr.msk.bf16.mxu1 %vm16059_vm0, %v16058_v1  ;;  %v4294_v48 = vrot.slane %v4287_v25, %v16235_v26  ;;  %15081 = vmatpush3.bf16.msra.mxu1 %v15580_v3 }
  0xbc   :  { %15082 = vmatprep.subr.bf16.mxu1 %v15583_v33 }
  0xbf   :  { %15083 = vmatpush3.bf16.msra.mxu1 %v15583_v33 }
  0xc0   :  { %15009 = vmatmul.mubr.bf16.gmra.mxu0 %v3840_v46  ;;  %15084 = vmatprep.subr.bf16.mxu1 %v15584_v39 }
  0xc2   :  { %15053 = vmatmul.mubr.bf16.gmra.mxu1 %v4294_v48 }
  0xc3   :  { %15085 = vmatpush3.bf16.msra.mxu1 %v15584_v39 }
  0xc4   :  { %15086 = vmatprep.subr.bf16.mxu1 %v15585_v47 }
  0xc7   :  { %15087 = vmatpush3.bf16.msra.mxu1 %v15585_v47 }
  0xc8   :  { %15088 = vmatprep.subr.bf16.mxu1 %v15586_v6 }
  0xcb   :  { %15089 = vmatpush3.bf16.msra.mxu1 %v15586_v6 }
  0xcc   :  { %15090 = vmatprep.subr.bf16.mxu1 %v15587_v45 }
  0xcf   :  { %15091 = vmatpush3.bf16.msra.mxu1 %v15587_v45 }
  0xe1   :  { %v2325_v24 = vpop.f32.mrf.mxu0 }
  0xe3   :  { %v2827_v30 = vpop.f32.mrf.mxu1  ;;  %v14898_v52 = vpop.f32.mrf.mxu0 }
  0xe4   :  { %v2828_v53 = vadd.f32 %v2827_v30, %v2325_v24 }
  0xe5   :  { %v14942_v31 = vpop.f32.mrf.mxu1  ;;  %v2328_v19 = vpop.f32.mrf.mxu0 }
  0xe6   :  { %v4397_v16 = vadd.f32 %v16970_v34, %v2828_v53 }
  0xe7   :  { %v2830_v0 = vpop.f32.mrf.mxu1  ;;  %v14899_v7 = vpop.f32.mrf.mxu0 }
  0xe8   :  { %v2831_v22 = vadd.f32 %v2830_v0, %v2328_v19  ;;  %v4410_v18 = vmax.f32 %v4397_v16, 0.0 }
  0xe9   :  { %v14943_v32 = vpop.f32.mrf.mxu1 }
  0xea   :  { %v4398_v41 = vadd.f32 %v16970_v34, %v2831_v22 }
  0xec   :  { %v4411_v55 = vmax.f32 %v4398_v41, 0.0  ;;  %v2333_v10 = vpop.f32.mrf.mxu0 }
  0xee   :  { %v4423_v56 = vpack.c.bf16 %v4411_v55, %v4410_v18  ;;  %v13672_v57 = vpack.c.bf16 %v4411_v55, %v4411_v55  ;;  %v14902_v43 = vpop.f32.mrf.mxu0  ;;  %v2835_v40 = vpop.f32.mrf.mxu1 }
  0xef   :  { %v2836_v54 = vadd.f32 %v2835_v40, %v2333_v10 }
  0xf0   :  { %v4477_v42 = vrot.slane %v4423_v56, %v16235_v26  ;;  %v4484_v59 = vrot.slane %v13672_v57, %v16235_v26  ;;  %v2336_v35 = vpop.f32.mrf.mxu0  ;;  %v14946_v44 = vpop.f32.mrf.mxu1 }
  0xf1   :  { %v4399_v62 = vadd.f32 %v16970_v34, %v2836_v54 }
  0xf2   :  { %v4485_v20 = vcombine.high %v4477_v42, %v4477_v42  ;;  %v4486_v60 = vcombine.high %v4484_v59, %v4484_v59  ;;  %v4493_v58 = vrot.slane %v4477_v42, %v16235_v26  ;;  %v4500_v36 = vrot.slane %v4484_v59, %v16235_v26  ;;  %v14903_v2 = vpop.f32.mrf.mxu0  ;;  %v2838_v9 = vpop.f32.mrf.mxu1 }
  0xf3   :  { %v2839_v49 = vadd.f32 %v2838_v9, %v2336_v35 }
  0xf4   :  { %v4507_v11 = vrot.slane %v4485_v20, %v16235_v26  ;;  %v4514_v50 = vrot.slane %v4486_v60, %v16235_v26  ;;  %v4515_v61 = vcombine.high %v4493_v58, %v4493_v58  ;;  %v4516_v21 = vcombine.high %v4500_v36, %v4500_v36  ;;  %v14947_v4 = vpop.f32.mrf.mxu1 }
  0xf5   :  { %v4795_v37 = vunpack.i.h.s16 %v4500_v36  ;;  %v4400_v46 = vadd.f32 %v16970_v34, %v2839_v49 }
  0xf6   :  { %v4517_v8 = vcombine.high %v4507_v11, %v4507_v11  ;;  %v16989_v63 = vcombine.high %v4514_v50, %v4514_v50  ;;  %v4790_v14 = vunpack.i.l.s16 %v4515_v61  ;;  %v4791_v5 = vunpack.i.h.s16 %v4515_v61 }
  0xf8   :  { %v4793_v13 = vunpack.i.h.s16 %v4517_v8  ;;  %v4800_v15 = vunpack.i.l.s16 %v16989_v63  ;;  %v13678_v38 = vpack.i.b16 %v4517_v8, %v4791_v5  ;;  %v4946_v25 = vcombine.low %v4493_v58, %v4790_v14 }
  0xfa   :  { %v13679_v48 = vpack.i.b16 %v4500_v36, %v4793_v13  ;;  %v4969_v29 = vcombine.low %v13678_v38, %v4795_v37  ;;  %v4992_v17 = vcombine.low %v4514_v50, %v4800_v15 }
  0xfb   :  { %17 = vsyncpa [#allocation4], 0  ;;  %v4953_v3 = vrot.slane %v4946_v25, %v16992_v23  ;;  %v4960_v33 = vrot.slane %v4507_v11, %v16992_v23  ;;  %v4412_v39 = vmax.f32 %v4399_v62, 0.0  ;;  %v4413_v24 = vmax.f32 %v4400_v46, 0.0  ;;  %v2341_v0 = vpop.f32.mrf.mxu0  ;;  %v5429_v18 = vld [vmem:[#allocation2] sm:$0x7]  ;;  %v2843_v57 = vpop.f32.mrf.mxu1 }
  0xfc   :  { %v4976_v30 = vrot.slane %v4969_v29, %v16992_v23  ;;  %v4983_v52 = vrot.slane %v13679_v48, %v16992_v23  ;;  %v4999_v53 = vrot.slane %v4992_v17, %v16992_v23  ;;  %v5006_v47 = vrot.slane %v4516_v21, %v16992_v23  ;;  %vm17005_vm3 = vmand %vm5426_vm1, %vm5427_vm2  ;;  %v5432_v41 = vld [vmem:[#allocation2 + $0x4] sm:$0x7]  ;;  %v5435_v55 = vld [vmem:[#allocation2 + $0x8] sm:$0x7]  ;;  %s16063_s18 = smov [#allocation3]  }
  0xfd   :  { %v4961_v31 = vcombine.low %v4953_v3, %v4960_v33  ;;  %v4424_v19 = vpack.c.bf16 %v4413_v24, %v4412_v39  ;;  %v13673_v16 = vpack.c.bf16 %v4413_v24, %v4413_v24  ;;  %v14906_v10 = vpop.f32.mrf.mxu0  ;;  %v16062_v42 = vmov 1983009808   ;;  %v14950_v58 = vpop.f32.mrf.mxu1  ;;  %v15588_v3 = vld [vmem:[%s19358_s4 + $0x78] sm:$0xff]   ;;  %s13391_s19 = sshll.u32 %s16063_s18, 4  ;;  %s13392_s19 = int_to_ptr.vmem [resolvable:$true] %s13391_s19 }
  0xfe   :  { %v4984_v7 = vcombine.low %v4976_v30, %v4983_v52  ;;  %v5007_v22 = vcombine.low %v4999_v53, %v5006_v47  ;;  %v17014_v59 = vunpack.c.l.s4 %v16062_v42  ;;  %v4801_v36 = vunpack.i.h.s16 %v16989_v63  ;;  %15056 = vmatprep.subr.bf16.mxu0 %v15588_v3  ;;  %v5444_v42 = vld [vmem:[#allocation2 + $0x14] sm:$0x7]  ;;  %s16036_s20 = scalar_lea.vmem %s13392_s19, 32  ;;  %p16041_p1 = scmp.lt.s32.totalorder %s13392_s19, %s13392_s19 }
  0xff   :  { %v4968_v32 = vrot.slane %v4961_v31, %v16992_v23  ;;  %v4526_v45 = vrot.slane %v4424_v19, %v16235_v26  ;;  %v4533_v56 = vrot.slane %v13673_v16, %v16235_v26  ;;  %v2344_v35 = vpop.f32.mrf.mxu0  ;;  %v2846_v9 = vpop.f32.mrf.mxu1  ;;  %v2844_v21 = vadd.f32 %v2843_v57, %v2341_v0  ;;  %15057 = vmatpush3.bf16.msra.mxu0 %v15588_v3  ;;  %p16037_p0 = scmp.ne.s32.totalorder %s13392_s19, %s16036_s20  ;;  %p16042_p2 = scmp.lt.s32.totalorder %s16036_s20, %s16036_s20 }
 0x100   :  { %v4991_v28 = vrot.slane %v4984_v7, %v16992_v23  ;;  %v5014_v27 = vrot.slane %v5007_v22, %v16992_v23  ;;  %v2847_v30 = vadd.f32 %v2846_v9, %v2344_v35  ;;  %v6574_v19 = vunpack.c.0.s8 %v17014_v59  ;;  %v5438_v7 = vld [vmem:[#allocation2 + $0xc] sm:$0x7] }
 0x101   :  { %v5430_v43 = vsel %vm17005_vm3, %v4968_v32, %v5429_v18  ;;  %v4534_v40 = vcombine.high %v4526_v45, %v4526_v45  ;;  %v4535_v20 = vcombine.high %v4533_v56, %v4533_v56  ;;  %v4542_v60 = vrot.slane %v4526_v45, %v16235_v26  ;;  %v14907_v8 = vpop.f32.mrf.mxu0  ;;  %v14951_v37 = vpop.f32.mrf.mxu1  ;;  %v15591_v18 = vld [vmem:[%s19358_s4 + $0x70] sm:$0xff]   ;;  %p16043_p3 = por %p16042_p2, %p16041_p1 }
 0x102   :  { %5431 = vst [vmem:[#allocation2] sm:$0x7] %v5430_v43  ;;  %v5433_v51 = vsel %vm17005_vm3, %v4991_v28, %v5432_v41  ;;  %v5436_v54 = vsel %vm17005_vm3, %v5014_v27, %v5435_v55  ;;  %v4549_v44 = vrot.slane %v4533_v56, %v16235_v26  ;;  %v4401_v24 = vadd.f32 %v16970_v34, %v2844_v21  ;;  %v5441_v41 = vld [vmem:[#allocation2 + $0x10] sm:$0x7] }
 0x103   :  { %5434 = vst [vmem:[#allocation2 + $0x4] sm:$0x7] %v5433_v51  ;;  %5437 = vst [vmem:[#allocation2 + $0x8] sm:$0x7] %v5436_v54  ;;  %v4556_v11 = vrot.slane %v4534_v40, %v16235_v26  ;;  %v17027_v50 = vrot.slane %v4535_v20, %v16235_v26  ;;  %v4564_v61 = vcombine.high %v4542_v60, %v4542_v60  ;;  %v4803_v2 = vunpack.i.h.s16 %v4542_v60  ;;  %p16044_p4 = pnand %p16043_p3, %p16037_p0 }
 0x104   :  { %v4565_v63 = vcombine.high %v4549_v44, %v4549_v44  ;;  %v4810_v14 = vunpack.i.l.s16 %v4549_v44  ;;  %v4811_v5 = vunpack.i.h.s16 %v4549_v44  ;;  %v13680_v13 = vpack.i.b16 %v4542_v60, %v4801_v36  ;;  %v2349_v31 = vpop.f32.mrf.mxu0  ;;  %15058 = vmatprep.subr.bf16.mxu0 %v15591_v18 }
 0x105   :  { %v4566_v62 = vcombine.high %v4556_v11, %v4556_v11  ;;  %v4805_v49 = vunpack.i.h.s16 %v4556_v11  ;;  %v4813_v4 = vunpack.i.h.s16 %v17027_v50  ;;  %v13681_v38 = vpack.i.b16 %v4556_v11, %v4803_v2  ;;  %15059 = vmatpush3.bf16.msra.mxu0 %v15591_v18 }
 0x106   :  { %v4815_v15 = vunpack.i.h.s16 %v4565_v63  ;;  %v13682_v25 = vpack.i.b16 %v17027_v50, %v4811_v5  ;;  %v5038_v46 = vcombine.low %v4564_v61, %v4810_v14  ;;  %v4402_v22 = vadd.f32 %v16970_v34, %v2847_v30  ;;  %v14910_v55 = vpop.f32.mrf.mxu0 }
 0x107   :  { %v13683_v48 = vpack.i.b16 %v4565_v63, %v4813_v4  ;;  %v5015_v29 = vcombine.low %v13680_v13, %v4805_v49  ;;  %v5052_v17 = vrot.slane %v4566_v62, %v16992_v23  ;;  %v5029_v53 = vrot.slane %v13681_v38, %v16992_v23  ;;  %v15592_v49 = vld [vmem:[%s19358_s4 + $0x68] sm:$0xff]  }
 0x108   :  { %v5045_v33 = vrot.slane %v5038_v46, %v16992_v23  ;;  %v5061_v39 = vcombine.low %v13682_v25, %v4815_v15  ;;  %v4414_v10 = vmax.f32 %v4401_v24, 0.0  ;;  %v4415_v28 = vmax.f32 %v4402_v22, 0.0  ;;  %v2352_v59 = vpop.f32.mrf.mxu0  ;;  %v2851_v36 = vpop.f32.mrf.mxu1  ;;  %15060 = vmatprep.subr.bf16.mxu0 %v15592_v49 }
 0x109   :  { %v5022_v52 = vrot.slane %v5015_v29, %v16992_v23  ;;  %v5075_v47 = vrot.slane %v13683_v48, %v16992_v23  ;;  %v13756_v45 = vld.sshfl [vmem:[#allocation2] sm:$0x13 pattern:$0x76325410]  ;;  %v17049_v43 = vsub.s32 %v6574_v19, %v16200_v12  ;;  %v2852_v54 = vadd.f32 %v2851_v36, %v2349_v31  ;;  %15061 = vmatpush3.bf16.msra.mxu0 %v15592_v49 }
 0x10a   :  { %v5053_v16 = vcombine.low %v5045_v33, %v5052_v17  ;;  %v5068_v0 = vrot.slane %v5061_v39, %v16992_v23  ;;  %v17051_v40 = vld [vmem:[#allocation2] ss:$8 sps:$4 sm:$0x33]   ;;  %v4425_v58 = vpack.c.bf16 %v4415_v28, %v4414_v10  ;;  %v13674_v35 = vpack.c.bf16 %v4415_v28, %v4415_v28  ;;  %v14911_v44 = vpop.f32.mrf.mxu0  ;;  %v14954_v8 = vpop.f32.mrf.mxu1 }
 0x10b   :  { %v5030_v32 = vcombine.low %v5022_v52, %v5029_v53  ;;  %v6932_v11 = vshrl.u32 %v13756_v45, 16  ;;  %v17062_v63 = vld.sshfl [vmem:[#allocation2 + $0x8] sm:$0x13 pattern:$0x76325410]  ;;  %v6935_v14 = vshll.u32 %v13756_v45, 16  ;;  %v4567_v5 = vcombine.high %v17027_v50, %v17027_v50 }
 0x10c   :  { %v5060_v56 = vrot.slane %v5053_v16, %v16992_v23  ;;  %v5076_v57 = vcombine.low %v5068_v0, %v5075_v47  ;;  %v4575_v2 = vrot.slane %v4425_v58, %v16235_v26  ;;  %v4582_v9 = vrot.slane %v13674_v35, %v16235_v26  ;;  %v2854_v25 = vpop.f32.mrf.mxu1 }
 0x10d   :  { %v5037_v27 = vrot.slane %v5030_v32, %v16992_v23  ;;  %v4403_v21 = vadd.f32 %v16970_v34, %v2852_v54  ;;  %v6719_v62 = vrot.slane %v17051_v40, %v17049_v43  ;;  %v6867_v4 = vcombine.high %v13756_v45, %v13756_v45 }
 0x10e   :  { %v5083_v20 = vrot.slane %v5076_v57, %v16992_v23  ;;  %v5442_v60 = vsel %vm17005_vm3, %v5060_v56, %v5441_v41  ;;  %v4583_v13 = vcombine.high %v4575_v2, %v4575_v2  ;;  %v4584_v37 = vcombine.high %v4582_v9, %v4582_v9  ;;  %v14955_v39 = vpop.f32.mrf.mxu1 }
 0x10f   :  { %v5439_v51 = vsel %vm17005_vm3, %v5037_v27, %v5438_v7  ;;  %5443 = vst [vmem:[#allocation2 + $0x10] sm:$0x7] %v5442_v60  ;;  %v4591_v15 = vrot.slane %v4575_v2, %v16235_v26  ;;  %v4598_v38 = vrot.slane %v4582_v9, %v16235_v26  ;;  %vm6924_vm4 = vsmask.f32 1280 }
 0x110   :  { %5440 = vst [vmem:[#allocation2 + $0xc] sm:$0x7] %v5439_v51  ;;  %v5445_v61 = vsel %vm17005_vm3, %v5083_v20, %v5444_v42  ;;  %vm6925_vm5 = vsmask.f32 3336  ;;  %v2855_v50 = vadd.f32 %v2854_v25, %v2352_v59  ;;  %v17074_v46 = vrot.slane %v6932_v11, 6 }
 0x111   :  { %5446 = vst [vmem:[#allocation2 + $0x14] sm:$0x7] %v5445_v61  ;;  %v6946_v48 = vshrl.u32 %v17062_v63, 16  ;;  %v6949_v29 = vshll.u32 %v17062_v63, 16  ;;  %v4605_v17 = vrot.slane %v4583_v13, %v16235_v26  ;;  %v4613_v3 = vcombine.high %v4591_v15, %v4591_v15  ;;  %vm17099_vm8 = vmor %vm6924_vm4, %vm6925_vm5 }
 0x112   :  { %v4614_v33 = vcombine.high %v4598_v38, %v4598_v38  ;;  %v17079_v24 = vrot.slane %v6935_v14, 7  ;;  %v4416_v30 = vmax.f32 %v4403_v21, 0.0  ;;  %v4404_v52 = vadd.f32 %v16970_v34, %v2855_v50  ;;  %v5447_v14 = vld [vmem:[#allocation2 + $0x18] sm:$0x7]  ;;  %v5453_v50 = vld [vmem:[#allocation2 + $0x20] sm:$0x7] }
 0x113   :  { %vm6927_vm6 = vsmask.f32 5392  ;;  %v6875_v53 = vcombine.high %v17062_v63, %v17062_v63  ;;  %v17084_v47 = vshll.u32 %v6867_v4, 16  ;;  %v4612_v31 = vrot.slane %v4584_v37, %v16235_v26  ;;  %v2357_v42 = vpop.f32.mrf.mxu0 }
 0x114   :  { %v4615_v19 = vcombine.high %v4605_v17, %v4605_v17  ;;  %v4820_v16 = vunpack.i.l.s16 %v4605_v17  ;;  %v4821_v0 = vunpack.i.h.s16 %v4605_v17  ;;  %v4823_v7 = vunpack.i.h.s16 %v4613_v3  ;;  %v5450_v17 = vld [vmem:[#allocation2 + $0x1c] sm:$0x7]  ;;  %vm17120_vm9 = vmor %vm17099_vm8, %vm6927_vm6 }
 0x115   :  { %v4830_v22 = vunpack.i.l.s16 %v4614_v33  ;;  %v6948_v18 = vrot.slane %v6946_v48, 6  ;;  %v6951_v32 = vrot.slane %v6949_v29, 7  ;;  %vm6929_vm7 = vsmask.f32 7448  ;;  %v14914_v44 = vpop.f32.mrf.mxu0 }
 0x116   :  { %v4825_v41 = vunpack.i.h.s16 %v4615_v19  ;;  %v13684_v55 = vpack.i.b16 %v4613_v3, %v4821_v0  ;;  %v5084_v45 = vcombine.low %v4567_v5, %v4820_v16  ;;  %v6938_v56 = vor.u32 %v17079_v24, %v17074_v46  ;;  %v2859_v9 = vpop.f32.mrf.mxu1  ;;  %v17115_v16 = vld [vmem:[%s19358_s4 + $0xf8] sm:$0xff]   ;;  %vm17142_vm10 = vmor %vm17120_vm9, %vm6929_vm7 }
 0x117   :  { %v13685_v57 = vpack.i.b16 %v4615_v19, %v4823_v7  ;;  %v5098_v10 = vrot.slane %v4591_v15, %v16992_v23  ;;  %v5130_v28 = vcombine.low %v4598_v38, %v4830_v22  ;;  %v4417_v27 = vmax.f32 %v4404_v52, 0.0  ;;  %v2360_v49 = vpop.f32.mrf.mxu0  ;;  %15116 = vmatprep.subr.bf16.mxu1 %v17115_v16 }
 0x118   :  { %v4616_v59 = vcombine.high %v4612_v31, %v4612_v31  ;;  %v4831_v20 = vunpack.i.h.s16 %v4614_v33  ;;  %v5091_v60 = vrot.slane %v5084_v45, %v16992_v23  ;;  %v5107_v58 = vcombine.low %v13684_v55, %v4825_v41  ;;  %v14958_v48 = vpop.f32.mrf.mxu1  ;;  %v17127_v41 = vld.sshfl [vmem:[#allocation2 + $0x10] sm:$0x13 pattern:$0x76325410] }
 0x119   :  { %v5137_v35 = vrot.slane %v5130_v28, %v16992_v23  ;;  %v5144_v36 = vrot.slane %v4612_v31, %v16992_v23  ;;  %v4426_v51 = vpack.c.bf16 %v4417_v27, %v4416_v30  ;;  %v13675_v54 = vpack.c.bf16 %v4417_v27, %v4417_v27  ;;  %v14915_v30 = vpop.f32.mrf.mxu0 }
 0x11a   :  { %v5099_v11 = vcombine.low %v5091_v60, %v5098_v10  ;;  %v5114_v61 = vrot.slane %v5107_v58, %v16992_v23  ;;  %v5121_v2 = vrot.slane %v13685_v57, %v16992_v23  ;;  %v6952_v8 = vor.u32 %v6951_v32, %v6948_v18  ;;  %v2862_v19 = vpop.f32.mrf.mxu1  ;;  %v15738_v60 = vld [vmem:[%s19360_s6 + $0x38] sm:$0xff]  }
 0x11b   :  { %v5145_v63 = vcombine.low %v5137_v35, %v5144_v36  ;;  %v4624_v5 = vrot.slane %v4426_v51, %v16235_v26  ;;  %v4631_v21 = vrot.slane %v13675_v54, %v16235_v26  ;;  %v6955_v13 = vshll.u32 %v6875_v53, 16 }
 0x11c   :  { %v4833_v37 = vunpack.i.h.s16 %v4616_v59  ;;  %v13686_v15 = vpack.i.b16 %v4616_v59, %v4831_v20  ;;  %v5106_v38 = vrot.slane %v5099_v11, %v16992_v23  ;;  %v5122_v25 = vcombine.low %v5114_v61, %v5121_v2  ;;  %v14959_v27 = vpop.f32.mrf.mxu1  ;;  %v15593_v59 = vld [vmem:[%s19358_s4 + $0x60] sm:$0xff]  }
 0x11d   :  { %v5152_v29 = vrot.slane %v5145_v63, %v16992_v23  ;;  %v4632_v3 = vcombine.high %v4624_v5, %v4624_v5  ;;  %v4633_v33 = vcombine.high %v4631_v21, %v4631_v21  ;;  %v4640_v39 = vrot.slane %v4624_v5, %v16235_v26  ;;  %15062 = vmatprep.subr.bf16.mxu0 %v15593_v59 }
 0x11e   :  { %v5129_v52 = vrot.slane %v5122_v25, %v16992_v23  ;;  %v5448_v53 = vsel %vm17005_vm3, %v5106_v38, %v5447_v14  ;;  %v17110_v31 = vrot.slane %v4631_v21, %v16235_v26  ;;  %v6953_v7 = vrot.slane %v6952_v8, 2  ;;  %15063 = vmatpush3.bf16.msra.mxu0 %v15593_v59  ;;  %v15594_v14 = vld [vmem:[%s19358_s4 + $0x58] sm:$0xff]  }
 0x11f   :  { %5449 = vst [vmem:[#allocation2 + $0x18] sm:$0x7] %v5448_v53  ;;  %v5454_v22 = vsel %vm17005_vm3, %v5152_v29, %v5453_v50  ;;  %v4654_v18 = vrot.slane %v4632_v3, %v16235_v26  ;;  %v2860_v32 = vadd.f32 %v2859_v9, %v2357_v42  ;;  %v6957_v55 = vrot.slane %v6955_v13, 7  ;;  %15064 = vmatprep.subr.bf16.mxu0 %v15594_v14  ;;  %v5456_v3 = vld [vmem:[#allocation2 + $0x24] sm:$0x7] }
 0x120   :  { %v5451_v45 = vsel %vm17005_vm3, %v5129_v52, %v5450_v17  ;;  %5455 = vst [vmem:[#allocation2 + $0x20] sm:$0x7] %v5454_v22  ;;  %v17132_v57 = vrot.slane %v4633_v33, %v16235_v26  ;;  %v4835_v10 = vunpack.i.h.s16 %v4640_v39  ;;  %v4843_v28 = vunpack.i.h.s16 %v17110_v31  ;;  %v2365_v63 = vpop.f32.mrf.mxu0  ;;  %v15598_v22 = vld [vmem:[%s19358_s4 + $0x50] sm:$0xff]  }
 0x121   :  { %5452 = vst [vmem:[#allocation2 + $0x1c] sm:$0x7] %v5451_v45  ;;  %v4664_v42 = vcombine.high %v4654_v18, %v4654_v18  ;;  %v13687_v20 = vpack.i.b16 %v4640_v39, %v4833_v37  ;;  %v17149_v58 = vrot.slane %v6938_v56, 2  ;;  %v6943_v35 = vrot.slane %v17084_v47, 7 }
 0x122   :  { %v4662_v36 = vcombine.high %v4640_v39, %v4640_v39  ;;  %v5153_v51 = vcombine.low %v13686_v15, %v4835_v10  ;;  %v6883_v54 = vcombine.high %v17127_v41, %v17127_v41  ;;  %v17156_v44 = vsel %vm17142_vm10, %v6953_v7, %v6957_v55  ;;  %v2867_v25 = vpop.f32.mrf.mxu1  ;;  %v14918_v50 = vpop.f32.mrf.mxu0  ;;  %15065 = vmatpush3.bf16.msra.mxu0 %v15594_v14  ;;  %v5459_v10 = vld [vmem:[#allocation2 + $0x28] sm:$0x7] }
 0x123   :  { %v4840_v11 = vunpack.i.l.s16 %v4664_v42  ;;  %v4841_v61 = vunpack.i.h.s16 %v4664_v42  ;;  %v4405_v2 = vadd.f32 %v16970_v34, %v2860_v32  ;;  %v6960_v46 = vshrl.u32 %v17127_v41, 16  ;;  %15066 = vmatprep.subr.bf16.mxu0 %v15598_v22 }
 0x124   :  { %v13689_v24 = vpack.i.b16 %v17132_v57, %v4843_v28  ;;  %v5160_v56 = vrot.slane %v5153_v51, %v16992_v23  ;;  %v5167_v9 = vrot.slane %v13687_v20, %v16992_v23  ;;  %v2863_v8 = vadd.f32 %v2862_v19, %v2360_v49  ;;  %v14962_v19 = vpop.f32.mrf.mxu1  ;;  %v2368_v0 = vpop.f32.mrf.mxu0 }
 0x125   :  { %v4845_v5 = vunpack.i.h.s16 %v17132_v57  ;;  %v13688_v21 = vpack.i.b16 %v17110_v31, %v4841_v61  ;;  %v5176_v4 = vcombine.low %v4654_v18, %v4840_v11  ;;  %v6963_v13 = vshll.u32 %v17127_v41, 16 }
 0x126   :  { %v4665_v37 = vcombine.high %v17132_v57, %v17132_v57  ;;  %v5168_v15 = vcombine.low %v5160_v56, %v5167_v9  ;;  %v5190_v38 = vrot.slane %v4662_v36, %v16992_v23  ;;  %v4406_v49 = vadd.f32 %v16970_v34, %v2863_v8  ;;  %v15582_v48 = vld [vmem:[#allocation2 + $0x10] ss:$8 sps:$4 sm:$0x33]   ;;  %v2870_v59 = vpop.f32.mrf.mxu1  ;;  %v14919_v42 = vpop.f32.mrf.mxu0  ;;  %15067 = vmatpush3.bf16.msra.mxu0 %v15598_v22 }
 0x127   :  { %v5183_v29 = vrot.slane %v5176_v4, %v16992_v23  ;;  %v5199_v17 = vcombine.low %v13688_v21, %v4845_v5  ;;  %v4418_v33 = vmax.f32 %v4405_v2, 0.0  ;;  %v2868_v39 = vadd.f32 %v2867_v25, %v2365_v63 }
 0x128   :  { %v5175_v30 = vrot.slane %v5168_v15, %v16992_v23  ;;  %v5213_v52 = vrot.slane %v13689_v24, %v16992_v23  ;;  %v4419_v53 = vmax.f32 %v4406_v49, 0.0  ;;  %v6726_v7 = vrot.slane %v15582_v48, %v17049_v43  ;;  %v5462_v24 = vld [vmem:[#allocation2 + $0x2c] sm:$0x7]  ;;  %v2373_v9 = vpop.f32.mrf.mxu0  ;;  %v15604_v48 = vld [vmem:[%s19358_s4 + $0x40] sm:$0xff]  }
 0x129   :  { %v5191_v18 = vcombine.low %v5183_v29, %v5190_v38  ;;  %v5206_v32 = vrot.slane %v5199_v17, %v16992_v23  ;;  %v17181_v55 = vrot.slane %v6960_v46, 6  ;;  %v17183_v45 = vrot.slane %v6963_v13, 7  ;;  %v15601_v38 = vld [vmem:[%s19358_s4 + $0x48] sm:$0xff]  }
 0x12a   :  { %v5457_v57 = vsel %vm17005_vm3, %v5175_v30, %v5456_v3  ;;  %v4427_v28 = vpack.c.bf16 %v4419_v53, %v4418_v33  ;;  %v13676_v27 = vpack.c.bf16 %v4419_v53, %v4419_v53  ;;  %v6727_v20 = vcombine.low %v6719_v62, %v6726_v7  ;;  %v14963_v62 = vpop.f32.mrf.mxu1  ;;  %v14922_v15 = vpop.f32.mrf.mxu0  ;;  %15068 = vmatprep.subr.bf16.mxu0 %v15601_v38 }
 0x12b   :  { %v5198_v36 = vrot.slane %v5191_v18, %v16992_v23  ;;  %v5214_v51 = vcombine.low %v5206_v32, %v5213_v52  ;;  %5458 = vst [vmem:[#allocation2 + $0x24] sm:$0x7] %v5457_v57  ;;  %v4407_v11 = vadd.f32 %v16970_v34, %v2868_v39  ;;  %v2871_v61 = vadd.f32 %v2870_v59, %v2368_v0 }
 0x12c   :  { %v4663_v2 = vcombine.high %v17110_v31, %v17110_v31  ;;  %v17195_v46 = vrot.slane %v4665_v37, %v16992_v23  ;;  %v4673_v56 = vrot.slane %v4427_v28, %v16235_v26  ;;  %v4680_v40 = vrot.slane %v13676_v27, %v16235_v26  ;;  %15092 = vmatprep.mubr.bf16.mxu1 %v6727_v20  ;;  %v2875_v37 = vpop.f32.mrf.mxu1  ;;  %v2376_v30 = vpop.f32.mrf.mxu0  ;;  %v15606_v28 = vld [vmem:[%s19358_s4 + $0xb8] sm:$0xff]  }
 0x12d   :  { %v5221_v8 = vrot.slane %v5214_v51, %v16992_v23  ;;  %v5460_v63 = vsel %vm17005_vm3, %v5198_v36, %v5459_v10  ;;  %v4408_v14 = vadd.f32 %v16970_v34, %v2871_v61  ;;  %v6966_v31 = vor.u32 %v17183_v45, %v17181_v55  ;;  %15069 = vmatpush3.bf16.msra.mxu0 %v15601_v38 }
 0x12e   :  { %5461 = vst [vmem:[#allocation2 + $0x28] sm:$0x7] %v5460_v63  ;;  %v4681_v5 = vcombine.high %v4673_v56, %v4673_v56  ;;  %v4682_v21 = vcombine.high %v4680_v40, %v4680_v40  ;;  %v4689_v4 = vrot.slane %v4673_v56, %v16235_v26  ;;  %v4696_v13 = vrot.slane %v4680_v40, %v16235_v26  ;;  %v14966_v39 = vpop.f32.mrf.mxu1  ;;  %v14923_v10 = vpop.f32.mrf.mxu0 }
 0x12f   :  { %v5463_v49 = vsel %vm17005_vm3, %v5221_v8, %v5462_v24  ;;  %v4420_v34 = vmax.f32 %v4407_v11, 0.0  ;;  %v4421_v25 = vmax.f32 %v4408_v14, 0.0  ;;  %v17212_v50 = vadd.f32 %v2875_v37, %v2373_v9  ;;  %15070 = vmatprep.subr.bf16.mxu0 %v15604_v48 }
 0x130   :  { %5464 = vst [vmem:[#allocation2 + $0x2c] sm:$0x7] %v5463_v49  ;;  %v4703_v29 = vrot.slane %v4681_v5, %v16235_v26  ;;  %v4710_v17 = vrot.slane %v4682_v21, %v16235_v26  ;;  %v4711_v3 = vcombine.high %v4689_v4, %v4689_v4  ;;  %v4712_v33 = vcombine.high %v4696_v13, %v4696_v13  ;;  %v2878_v57 = vpop.f32.mrf.mxu1 }
 0x131   :  { %v4850_v52 = vunpack.i.l.s16 %v4689_v4  ;;  %v4851_v53 = vunpack.i.h.s16 %v4689_v4  ;;  %v5282_v19 = vrot.slane %v4696_v13, %v16992_v23  ;;  %v4428_v0 = vpack.c.bf16 %v4421_v25, %v4420_v34  ;;  %15071 = vmatpush3.bf16.msra.mxu0 %v15604_v48 }
 0x132   :  { %v4713_v7 = vcombine.high %v4703_v29, %v4703_v29  ;;  %v4714_v22 = vcombine.high %v4710_v17, %v4710_v17  ;;  %v4853_v18 = vunpack.i.h.s16 %v4703_v29  ;;  %v4855_v32 = vunpack.i.h.s16 %v4711_v3  ;;  %v14967_v24 = vpop.f32.mrf.mxu1  ;;  %v3882_v21 = vpop.f32.mrf.mxu0  ;;  %15096 = vmatprep.subr.bf16.mxu0 %v15606_v28  ;;  %v17239_v28 = vld.sshfl [vmem:[#allocation2 + $0x18] sm:$0x13 pattern:$0x76325410] }
 0x133   :  { %v4860_v27 = vunpack.i.l.s16 %v4710_v17  ;;  %v4861_v59 = vunpack.i.h.s16 %v4710_v17  ;;  %v4863_v42 = vunpack.i.h.s16 %v4712_v33  ;;  %v13690_v20 = vpack.i.b16 %v4703_v29, %v4851_v53  ;;  %v5471_v53 = vld [vmem:[#allocation2 + $0x38] sm:$0x7] }
 0x134   :  { %v4865_v36 = vunpack.i.h.s16 %v4714_v22  ;;  %v13691_v51 = vpack.i.b16 %v4711_v3, %v4853_v18  ;;  %v5222_v11 = vcombine.low %v4663_v2, %v4850_v52  ;;  %v13677_v61 = vpack.c.bf16 %v4421_v25, %v4421_v25  ;;  %v14986_v25 = vpop.f32.mrf.mxu0  ;;  %v5465_v3 = vld [vmem:[#allocation2 + $0x30] sm:$0x7]  ;;  %v5468_v52 = vld [vmem:[#allocation2 + $0x34] sm:$0x7] }
 0x135   :  { %v13692_v56 = vpack.i.b16 %v4712_v33, %v4861_v59  ;;  %v13693_v40 = vpack.i.b16 %v4714_v22, %v4863_v42  ;;  %v5245_v62 = vcombine.low %v13690_v20, %v4855_v32  ;;  %v5268_v9 = vcombine.low %v4713_v7, %v4860_v27  ;;  %v4336_v39 = vpop.f32.mrf.mxu1  ;;  %v5474_v59 = vld [vmem:[#allocation2 + $0x3c] sm:$0x7] }
 0x136   :  { %v5229_v8 = vrot.slane %v5222_v11, %v16992_v23  ;;  %v5259_v63 = vrot.slane %v13691_v51, %v16992_v23  ;;  %v4722_v14 = vrot.slane %v4428_v0, %v16235_v26  ;;  %v4729_v5 = vrot.slane %v13677_v61, %v16235_v26  ;;  %v3885_v22 = vpop.f32.mrf.mxu0 }
 0x137   :  { %v5252_v4 = vrot.slane %v5245_v62, %v16992_v23  ;;  %v5275_v2 = vrot.slane %v5268_v9, %v16992_v23  ;;  %v5291_v13 = vcombine.low %v13692_v56, %v4865_v36  ;;  %v5305_v37 = vrot.slane %v13693_v40, %v16992_v23  ;;  %v15030_v10 = vpop.f32.mrf.mxu1 }
 0x138   :  { %v5237_v15 = vcombine.low %v5229_v8, %v17195_v46  ;;  %v4730_v38 = vcombine.high %v4722_v14, %v4722_v14  ;;  %v4731_v49 = vcombine.high %v4729_v5, %v4729_v5  ;;  %v4738_v34 = vrot.slane %v4722_v14, %v16235_v26  ;;  %v14987_v51 = vpop.f32.mrf.mxu0 }
 0x139   :  { %v5260_v48 = vcombine.low %v5252_v4, %v5259_v63  ;;  %v5283_v29 = vcombine.low %v5275_v2, %v5282_v19  ;;  %v5298_v17 = vrot.slane %v5291_v13, %v16992_v23  ;;  %v4745_v33 = vrot.slane %v4729_v5, %v16235_v26  ;;  %v4339_v40 = vpop.f32.mrf.mxu1 }
 0x13a   :  { %v5244_v30 = vrot.slane %v5237_v15, %v16992_v23  ;;  %v4752_v0 = vrot.slane %v4730_v38, %v16235_v26  ;;  %v4759_v46 = vrot.slane %v4731_v49, %v16235_v26  ;;  %v4760_v7 = vcombine.high %v4738_v34, %v4738_v34  ;;  %v17259_v49 = vld [vmem:[%s19357_s3] ss:$0 sm:$0xff] }
 0x13b   :  { %v5267_v18 = vrot.slane %v5260_v48, %v16992_v23  ;;  %v5290_v19 = vrot.slane %v5283_v29, %v16992_v23  ;;  %v5306_v32 = vcombine.low %v5298_v17, %v5305_v37  ;;  %v4761_v57 = vcombine.high %v4745_v33, %v4745_v33  ;;  %v15031_v13 = vpop.f32.mrf.mxu1 }
 0x13c   :  { %v5466_v27 = vsel %vm17005_vm3, %v5244_v30, %v5465_v3  ;;  %v4762_v42 = vcombine.high %v4752_v0, %v4752_v0  ;;  %v17243_v20 = vcombine.high %v4759_v46, %v4759_v46  ;;  %v4870_v36 = vunpack.i.l.s16 %v4760_v7 }
 0x13d   :  { %v5313_v11 = vrot.slane %v5306_v32, %v16992_v23  ;;  %5467 = vst [vmem:[#allocation2 + $0x30] sm:$0x7] %v5466_v27  ;;  %v5469_v61 = vsel %vm17005_vm3, %v5267_v18, %v5468_v52  ;;  %v5472_v24 = vsel %vm17005_vm3, %v5290_v19, %v5471_v53  ;;  %v4871_v56 = vunpack.i.h.s16 %v4760_v7 }
 0x13e   :  { %5470 = vst [vmem:[#allocation2 + $0x34] sm:$0x7] %v5469_v61  ;;  %5473 = vst [vmem:[#allocation2 + $0x38] sm:$0x7] %v5472_v24  ;;  %v4873_v62 = vunpack.i.h.s16 %v4762_v42  ;;  %v4880_v9 = vunpack.i.l.s16 %v17243_v20  ;;  %v5314_v8 = vcombine.low %v4738_v34, %v4870_v36  ;;  %v6974_v63 = vshrl.u32 %v17239_v28, 16 }
 0x13f   :  { %v5475_v14 = vsel %vm17005_vm3, %v5313_v11, %v5474_v59  ;;  %v4875_v5 = vunpack.i.h.s16 %v4745_v33  ;;  %v13694_v4 = vpack.i.b16 %v4762_v42, %v4871_v56  ;;  %v5328_v2 = vrot.slane %v4752_v0, %v16992_v23  ;;  %v5477_v0 = vld [vmem:[#allocation2 + $0x40] sm:$0x7]  ;;  %v3890_v18 = vpop.f32.mrf.mxu0  ;;  %v5480_v36 = vld [vmem:[#allocation2 + $0x44] sm:$0x7] }
 0x140   :  { %5476 = vst [vmem:[#allocation2 + $0x3c] sm:$0x7] %v5475_v14  ;;  %v13695_v37 = vpack.i.b16 %v4745_v33, %v4873_v62  ;;  %v5321_v15 = vrot.slane %v5314_v8, %v16992_v23  ;;  %v5360_v38 = vcombine.low %v4759_v46, %v4880_v9  ;;  %v4409_v34 = vadd.f32 %v17259_v49, %v17212_v50 }
 0x141   :  { %v5337_v25 = vcombine.low %v13694_v4, %v4875_v5  ;;  %v5374_v48 = vrot.slane %v4761_v57, %v16992_v23  ;;  %v4337_v29 = vadd.f32 %v4336_v39, %v3882_v21  ;;  %v4340_v17 = vadd.f32 %v4339_v40, %v3885_v22  ;;  %v5483_v57 = vld [vmem:[#allocation2 + $0x48] sm:$0x7]  ;;  %v14990_v42 = vpop.f32.mrf.mxu0 }
 0x142   :  { %v5329_v3 = vcombine.low %v5321_v15, %v5328_v2  ;;  %v5351_v30 = vrot.slane %v13695_v37, %v16992_v23  ;;  %v5367_v33 = vrot.slane %v5360_v38, %v16992_v23  ;;  %v4422_v52 = vmax.f32 %v4409_v34, 0.0  ;;  %v4344_v11 = vpop.f32.mrf.mxu1 }
 0x143   :  { %v5344_v53 = vrot.slane %v5337_v25, %v16992_v23  ;;  %v4430_v46 = vadd.f32 %v17259_v49, %v4337_v29  ;;  %v4431_v7 = vadd.f32 %v17259_v49, %v4340_v17  ;;  %v17272_v50 = vshll.u32 %v6883_v54, 16  ;;  %v3893_v24 = vpop.f32.mrf.mxu0 }
 0x144   :  { %v5336_v21 = vrot.slane %v5329_v3, %v16992_v23  ;;  %v5375_v39 = vcombine.low %v5367_v33, %v5374_v48  ;;  %v4429_v22 = vpack.c.bf16 %v4422_v52, %v4422_v52  ;;  %v17278_v19 = vrot.slane %v6966_v31, 2  ;;  %v15034_v9 = vpop.f32.mrf.mxu1  ;;  %v17291_v8 = vld [vmem:[#allocation2 + $0x28] ss:$8 sps:$4 sm:$0x33]  }
 0x145   :  { %v5352_v32 = vcombine.low %v5344_v53, %v5351_v30  ;;  %v4881_v10 = vunpack.i.h.s16 %v17243_v20  ;;  %v4443_v27 = vmax.f32 %v4430_v46, 0.0  ;;  %v4444_v59 = vmax.f32 %v4431_v7, 0.0  ;;  %v14991_v2 = vpop.f32.mrf.mxu0  ;;  %v5486_v9 = vld [vmem:[#allocation2 + $0x4c] sm:$0x7] }
 0x146   :  { %v5382_v41 = vrot.slane %v5375_v39, %v16992_v23  ;;  %v5478_v54 = vsel %vm17005_vm3, %v5336_v21, %v5477_v0  ;;  %v4770_v51 = vrot.slane %v4429_v22, %v16235_v26  ;;  %v17285_v61 = vrot.slane %v6974_v63, 6  ;;  %v4347_v25 = vpop.f32.mrf.mxu1 }
 0x147   :  { %v5359_v55 = vrot.slane %v5352_v32, %v16992_v23  ;;  %5479 = vst [vmem:[#allocation2 + $0x40] sm:$0x7] %v5478_v54  ;;  %v4456_v45 = vpack.c.bf16 %v4444_v59, %v4443_v27  ;;  %v13698_v31 = vpack.c.bf16 %v4444_v59, %v4444_v59  ;;  %v4345_v20 = vadd.f32 %v4344_v11, %v3890_v18 }
 0x148   :  { %v5484_v56 = vsel %vm17005_vm3, %v5382_v41, %v5483_v57  ;;  %v4771_v40 = vcombine.high %v4770_v51, %v4770_v51  ;;  %v4778_v62 = vrot.slane %v4770_v51, %v16235_v26  ;;  %v6977_v14 = vshll.u32 %v17239_v28, 16  ;;  %v15035_v53 = vpop.f32.mrf.mxu1 }
 0x149   :  { %v5481_v63 = vsel %vm17005_vm3, %v5359_v55, %v5480_v36  ;;  %5485 = vst [vmem:[#allocation2 + $0x48] sm:$0x7] %v5484_v56  ;;  %v5503_v5 = vrot.slane %v4456_v45, %v16235_v26  ;;  %v5510_v4 = vrot.slane %v13698_v31, %v16235_v26  ;;  %v6891_v13 = vcombine.high %v17239_v28, %v17239_v28 }
 0x14a   :  { %5482 = vst [vmem:[#allocation2 + $0x44] sm:$0x7] %v5481_v63  ;;  %v4785_v37 = vrot.slane %v4771_v40, %v16235_v26  ;;  %v4883_v15 = vunpack.i.h.s16 %v4778_v62  ;;  %v13696_v38 = vpack.i.b16 %v4778_v62, %v4881_v10  ;;  %v4432_v34 = vadd.f32 %v17259_v49, %v4345_v20 }
 0x14b   :  { %v5511_v48 = vcombine.high %v5503_v5, %v5503_v5  ;;  %v5512_v29 = vcombine.high %v5510_v4, %v5510_v4  ;;  %v5519_v17 = vrot.slane %v5503_v5, %v16235_v26  ;;  %v5526_v3 = vrot.slane %v5510_v4, %v16235_v26 }
 0x14c   :  { %v4885_v30 = vunpack.i.h.s16 %v4785_v37  ;;  %v13697_v33 = vpack.i.b16 %v4785_v37, %v4883_v15  ;;  %v4348_v52 = vadd.f32 %v4347_v25, %v3893_v24  ;;  %v6736_v0 = vrot.slane %v17291_v8, %v17049_v43 }
 0x14d   :  { %v5533_v46 = vrot.slane %v5511_v48, %v16235_v26  ;;  %v5540_v7 = vrot.slane %v5512_v29, %v16235_v26  ;;  %v5541_v18 = vcombine.high %v5519_v17, %v5519_v17  ;;  %v17308_v21 = vrot.slane %v6977_v14, 7 }
 0x14e   :  { %v5383_v39 = vcombine.low %v13696_v38, %v4885_v30  ;;  %v5542_v22 = vcombine.high %v5526_v3, %v5526_v3  ;;  %v4445_v32 = vmax.f32 %v4432_v34, 0.0  ;;  %v4433_v57 = vadd.f32 %v17259_v49, %v4348_v52  ;;  %v13763_v6 = vld.sshfl [vmem:[#allocation2 + $0x40] sm:$0x13 pattern:$0x76325410] }
 0x14f   :  { %v5543_v10 = vcombine.high %v5533_v46, %v5533_v46  ;;  %v17311_v27 = vcombine.high %v5540_v7, %v5540_v7  ;;  %v5816_v59 = vunpack.i.l.s16 %v5541_v18  ;;  %v5817_v42 = vunpack.i.h.s16 %v5541_v18  ;;  %v3898_v62 = vpop.f32.mrf.mxu0  ;;  %v15590_v18 = vld [vmem:[#allocation2 + $0x38] ss:$8 sps:$4 sm:$0x33]  }
 0x150   :  { %v5390_v41 = vrot.slane %v5383_v39, %v16992_v23  ;;  %v5397_v54 = vrot.slane %v13697_v33, %v16992_v23  ;;  %v5821_v36 = vunpack.i.h.s16 %v5526_v3  ;;  %v4446_v51 = vmax.f32 %v4433_v57, 0.0  ;;  %v4352_v34 = vpop.f32.mrf.mxu1 }
 0x151   :  { %v5819_v11 = vunpack.i.h.s16 %v5543_v10  ;;  %v5826_v55 = vunpack.i.l.s16 %v17311_v27  ;;  %v13704_v45 = vpack.i.b16 %v5543_v10, %v5817_v42  ;;  %v5986_v31 = vrot.slane %v5533_v46, %v16992_v23  ;;  %v14994_v25 = vpop.f32.mrf.mxu0  ;;  %v6459_v42 = vld [vmem:[#allocation2 + $0x58] sm:$0x7] }
 0x152   :  { %v5398_v20 = vcombine.low %v5390_v41, %v5397_v54  ;;  %v5972_v24 = vcombine.low %v5519_v17, %v5816_v59  ;;  %v4457_v56 = vpack.c.bf16 %v4446_v51, %v4445_v32  ;;  %v13699_v40 = vpack.c.bf16 %v4446_v51, %v4446_v51  ;;  %v15038_v46 = vpop.f32.mrf.mxu1  ;;  %v6453_v32 = vld [vmem:[#allocation2 + $0x50] sm:$0x7]  ;;  %v6456_v59 = vld [vmem:[#allocation2 + $0x54] sm:$0x7] }
 0x153   :  { %v13705_v14 = vpack.i.b16 %v5526_v3, %v5819_v11  ;;  %v5995_v63 = vcombine.low %v13704_v45, %v5821_v36  ;;  %v6018_v5 = vcombine.low %v5540_v7, %v5826_v55  ;;  %v6032_v4 = vrot.slane %v5542_v22, %v16992_v23  ;;  %v3901_v7 = vpop.f32.mrf.mxu0 }
 0x154   :  { %v5405_v2 = vrot.slane %v5398_v20, %v16992_v23  ;;  %v5979_v37 = vrot.slane %v5972_v24, %v16992_v23  ;;  %v5552_v15 = vrot.slane %v4457_v56, %v16235_v26  ;;  %v5559_v38 = vrot.slane %v13699_v40, %v16235_v26  ;;  %v4355_v51 = vpop.f32.mrf.mxu1 }
 0x155   :  { %v5827_v48 = vunpack.i.h.s16 %v17311_v27  ;;  %v6002_v29 = vrot.slane %v5995_v63, %v16992_v23  ;;  %v6009_v17 = vrot.slane %v13705_v14, %v16992_v23  ;;  %v6025_v3 = vrot.slane %v6018_v5, %v16992_v23  ;;  %v14995_v11 = vpop.f32.mrf.mxu0 }
 0x156   :  { %v5487_v30 = vsel %vm17005_vm3, %v5405_v2, %v5486_v9  ;;  %v5987_v33 = vcombine.low %v5979_v37, %v5986_v31  ;;  %v5560_v52 = vcombine.high %v5552_v15, %v5552_v15  ;;  %v5561_v53 = vcombine.high %v5559_v38, %v5559_v38  ;;  %v15039_v9 = vpop.f32.mrf.mxu1 }
 0x157   :  { %5488 = vst [vmem:[#allocation2 + $0x4c] sm:$0x7] %v5487_v30  ;;  %v6010_v39 = vcombine.low %v6002_v29, %v6009_v17  ;;  %v6033_v22 = vcombine.low %v6025_v3, %v6032_v4  ;;  %v5568_v57 = vrot.slane %v5552_v15, %v16235_v26  ;;  %v5575_v10 = vrot.slane %v5559_v38, %v16235_v26 }
 0x158   :  { %v5994_v27 = vrot.slane %v5987_v33, %v16992_v23  ;;  %v5582_v41 = vrot.slane %v5560_v52, %v16235_v26  ;;  %v17333_v54 = vrot.slane %v5561_v53, %v16235_v26  ;;  %v4353_v36 = vadd.f32 %v4352_v34, %v3898_v62 }
 0x159   :  { %v6017_v55 = vrot.slane %v6010_v39, %v16992_v23  ;;  %v6040_v45 = vrot.slane %v6033_v22, %v16992_v23  ;;  %v5590_v31 = vcombine.high %v5568_v57, %v5568_v57  ;;  %v5591_v20 = vcombine.high %v5575_v10, %v5575_v10  ;;  %v15599_v39 = vld [vmem:[%s19358_s4 + $0xf0] sm:$0xff]  }
 0x15a   :  { %v6454_v24 = vsel %vm17005_vm3, %v5994_v27, %v6453_v32  ;;  %v5592_v56 = vcombine.high %v5582_v41, %v5582_v41  ;;  %v5829_v40 = vunpack.i.h.s16 %v5568_v57  ;;  %v6743_v14 = vrot.slane %v15590_v18, %v17049_v43 }
 0x15b   :  { %6455 = vst [vmem:[#allocation2 + $0x50] sm:$0x7] %v6454_v24  ;;  %v6457_v62 = vsel %vm17005_vm3, %v6017_v55, %v6456_v59  ;;  %v6460_v63 = vsel %vm17005_vm3, %v6040_v45, %v6459_v42  ;;  %v5831_v5 = vunpack.i.h.s16 %v5582_v41  ;;  %v5836_v4 = vunpack.i.l.s16 %v5575_v10  ;;  %v3906_v18 = vpop.f32.mrf.mxu0  ;;  %v6462_v59 = vld [vmem:[#allocation2 + $0x5c] sm:$0x7]  ;;  %v6468_v55 = vld [vmem:[#allocation2 + $0x64] sm:$0x7] }
 0x15c   :  { %6458 = vst [vmem:[#allocation2 + $0x54] sm:$0x7] %v6457_v62  ;;  %6461 = vst [vmem:[#allocation2 + $0x58] sm:$0x7] %v6460_v63  ;;  %v5837_v2 = vunpack.i.h.s16 %v5575_v10  ;;  %v5839_v37 = vunpack.i.h.s16 %v17333_v54  ;;  %v5841_v15 = vunpack.i.h.s16 %v5591_v20  ;;  %v13706_v38 = vpack.i.b16 %v5568_v57, %v5827_v48 }
 0x15d   :  { %v13707_v34 = vpack.i.b16 %v5582_v41, %v5829_v40  ;;  %v6064_v25 = vcombine.low %v5590_v31, %v5836_v4  ;;  %v6078_v29 = vrot.slane %v5592_v56, %v16992_v23  ;;  %v4434_v17 = vadd.f32 %v17259_v49, %v4353_v36  ;;  %v14998_v42 = vpop.f32.mrf.mxu0  ;;  %v6465_v36 = vld [vmem:[#allocation2 + $0x60] sm:$0x7] }
 0x15e   :  { %v13708_v3 = vpack.i.b16 %v17333_v54, %v5837_v2  ;;  %v13709_v30 = vpack.i.b16 %v5591_v20, %v5839_v37  ;;  %v6041_v33 = vcombine.low %v13706_v38, %v5831_v5  ;;  %v4356_v52 = vadd.f32 %v4355_v51, %v3901_v7 }
 0x15f   :  { %v6055_v53 = vrot.slane %v13707_v34, %v16992_v23  ;;  %v6071_v46 = vrot.slane %v6064_v25, %v16992_v23  ;;  %v6744_v48 = vcombine.low %v6736_v0, %v6743_v14  ;;  %v6980_v22 = vor.u32 %v17308_v21, %v17285_v61  ;;  %v3909_v45 = vpop.f32.mrf.mxu0 }
 0x160   :  { %v6048_v32 = vrot.slane %v6041_v33, %v16992_v23  ;;  %v6087_v57 = vcombine.low %v13708_v3, %v5841_v15  ;;  %v6101_v7 = vrot.slane %v13709_v30, %v16992_v23  ;;  %v4435_v10 = vadd.f32 %v17259_v49, %v4356_v52  ;;  %v4360_v24 = vpop.f32.mrf.mxu1 }
 0x161   :  { %v6079_v27 = vcombine.low %v6071_v46, %v6078_v29  ;;  %15093 = vmatmul.mubr.bf16.vlgmr.msra.gmra.mxu1 %v6744_v48  ;;  %v17366_v8 = vsel %vm17142_vm10, %v17149_v58, %v6943_v35  ;;  %v6971_v61 = vrot.slane %v17272_v50, 7  ;;  %v6983_v0 = vshll.u32 %v6891_v13, 16  ;;  %v15600_v58 = vld [vmem:[%s19358_s4 + $0xe8] sm:$0xff]  }
 0x162   :  { %v6056_v21 = vcombine.low %v6048_v32, %v6055_v53  ;;  %v6094_v41 = vrot.slane %v6087_v57, %v16992_v23  ;;  %v4447_v51 = vmax.f32 %v4434_v17, 0.0  ;;  %v4448_v11 = vmax.f32 %v4435_v10, 0.0  ;;  %15117 = vmatpush3.bf16.msra.mxu1 %v17115_v16  ;;  %v13788_v56 = vld.sshfl [vmem:[#allocation2 + $0x50] sm:$0x13 pattern:$0x76325410]  ;;  %v15042_v15 = vpop.f32.mrf.mxu1 }
 0x163   :  { %v6086_v47 = vrot.slane %v6079_v27, %v16992_v23  ;;  %15118 = vmatprep.subr.bf16.mxu1 %v15599_v39  ;;  %v17381_v35 = vsel %vm17142_vm10, %v17278_v19, %v6971_v61  ;;  %v6981_v28 = vrot.slane %v6980_v22, 2  ;;  %v7060_v50 = vcombine.low %v17366_v8, %v17156_v44  ;;  %v14999_v19 = vpop.f32.mrf.mxu0  ;;  %v17390_v62 = vld [vmem:[#allocation2 + $0x50] ss:$8 sps:$4 sm:$0x33]  }
 0x164   :  { %v6063_v16 = vrot.slane %v6056_v21, %v16992_v23  ;;  %v6102_v13 = vcombine.low %v6094_v41, %v6101_v7  ;;  %v4458_v31 = vpack.c.bf16 %v4448_v11, %v4447_v51  ;;  %v13700_v20 = vpack.c.bf16 %v4448_v11, %v4448_v11  ;;  %v17401_v34 = vld.sshfl [vmem:[#allocation2 + $0x58] sm:$0x13 pattern:$0x76325410]  ;;  %v4363_v53 = vpop.f32.mrf.mxu1 }
 0x165   :  { %v5593_v40 = vcombine.high %v17333_v54, %v17333_v54  ;;  %v6466_v9 = vsel %vm17005_vm3, %v6086_v47, %v6465_v36  ;;  %v4361_v14 = vadd.f32 %v4360_v24, %v3906_v18  ;;  %v6985_v63 = vrot.slane %v6983_v0, 7  ;;  %v15602_v54 = vld [vmem:[%s19358_s4 + $0xe0] sm:$0xff]   ;;  %v15603_v0 = vld [vmem:[%s19358_s4 + $0xd8] sm:$0xff]  }
 0x166   :  { %v6109_v5 = vrot.slane %v6102_v13, %v16992_v23  ;;  %v6463_v4 = vsel %vm17005_vm3, %v6063_v16, %v6462_v59  ;;  %6467 = vst [vmem:[#allocation2 + $0x60] sm:$0x7] %v6466_v9  ;;  %v5601_v2 = vrot.slane %v4458_v31, %v16235_v26  ;;  %v5608_v37 = vrot.slane %v13700_v20, %v16235_v26  ;;  %v15043_v7 = vpop.f32.mrf.mxu1 }
 0x167   :  { %15119 = vmatpush3.bf16.msra.mxu1 %v15599_v39  ;;  %6464 = vst [vmem:[#allocation2 + $0x5c] sm:$0x7] %v6463_v4  ;;  %v4436_v38 = vadd.f32 %v17259_v49, %v4361_v14  ;;  %v7278_v25 = vshrl.u32 %v13788_v56, 16  ;;  %v7281_v29 = vshll.u32 %v13788_v56, 16  ;;  %v17405_v17 = vsel %vm17142_vm10, %v6981_v28, %v6985_v63  ;;  %v15605_v14 = vld [vmem:[%s19358_s4 + $0xd0] sm:$0xff]  }
 0x168   :  { %15120 = vmatprep.subr.bf16.mxu1 %v15600_v58  ;;  %v6469_v3 = vsel %vm17005_vm3, %v6109_v5, %v6468_v55  ;;  %v5609_v30 = vcombine.high %v5601_v2, %v5601_v2  ;;  %v5610_v33 = vcombine.high %v5608_v37, %v5608_v37  ;;  %v5617_v52 = vrot.slane %v5601_v2, %v16235_v26 }
 0x169   :  { %6470 = vst [vmem:[#allocation2 + $0x64] sm:$0x7] %v6469_v3  ;;  %v5624_v46 = vrot.slane %v5608_v37, %v16235_v26  ;;  %v4364_v18 = vadd.f32 %v4363_v53, %v3909_v45  ;;  %v6578_v48 = vrot.slane %v17390_v62, %v17049_v43  ;;  %v7220_v39 = vcombine.high %v13788_v56, %v13788_v56 }
 0x16a   :  { %v5631_v22 = vrot.slane %v5609_v30, %v16235_v26  ;;  %v5638_v32 = vrot.slane %v5610_v33, %v16235_v26  ;;  %v5639_v57 = vcombine.high %v5617_v52, %v5617_v52  ;;  %v7228_v10 = vcombine.high %v17401_v34, %v17401_v34  ;;  %v3914_v13 = vpop.f32.mrf.mxu0 }
 0x16b   :  { %15121 = vmatpush3.bf16.msra.mxu1 %v15600_v58  ;;  %v5640_v27 = vcombine.high %v5624_v46, %v5624_v46  ;;  %v4449_v59 = vmax.f32 %v4436_v38, 0.0  ;;  %v4437_v42 = vadd.f32 %v17259_v49, %v4364_v18  ;;  %v7280_v61 = vrot.slane %v7278_v25, 6  ;;  %v6471_v18 = vld [vmem:[#allocation2 + $0x68] sm:$0x7] }
 0x16c   :  { %15122 = vmatprep.subr.bf16.mxu1 %v15602_v54  ;;  %v5641_v21 = vcombine.high %v5631_v22, %v5631_v22  ;;  %v5846_v41 = vunpack.i.l.s16 %v5631_v22  ;;  %v5847_v36 = vunpack.i.h.s16 %v5631_v22  ;;  %v7283_v51 = vrot.slane %v7281_v29, 7  ;;  %v15002_v4 = vpop.f32.mrf.mxu0 }
 0x16d   :  { %v17421_v11 = vcombine.high %v5638_v32, %v5638_v32  ;;  %v5849_v47 = vunpack.i.h.s16 %v5639_v57  ;;  %v5856_v55 = vunpack.i.l.s16 %v5640_v27  ;;  %v6124_v45 = vrot.slane %v5617_v52, %v16992_v23  ;;  %v17433_v25 = vld.sshfl [vmem:[#allocation2 + $0x60] sm:$0x13 pattern:$0x76325410] }
 0x16e   :  { %v5851_v58 = vunpack.i.h.s16 %v5641_v21  ;;  %v13710_v28 = vpack.i.b16 %v5639_v57, %v5847_v36  ;;  %v6110_v16 = vcombine.low %v5593_v40, %v5846_v41  ;;  %v17424_v31 = vshll.u32 %v7220_v39, 16  ;;  %v4368_v38 = vpop.f32.mrf.mxu1  ;;  %v3917_v52 = vpop.f32.mrf.mxu0  ;;  %v15609_v57 = vld [vmem:[%s19358_s4 + $0xc8] sm:$0xff]  }
 0x16f   :  { %15123 = vmatpush3.bf16.msra.mxu1 %v15602_v54  ;;  %v5857_v20 = vunpack.i.h.s16 %v5640_v27  ;;  %v13711_v24 = vpack.i.b16 %v5641_v21, %v5849_v47  ;;  %v6156_v56 = vcombine.low %v5624_v46, %v5856_v55  ;;  %v4450_v9 = vmax.f32 %v4437_v42, 0.0  ;;  %v6474_v41 = vld [vmem:[#allocation2 + $0x6c] sm:$0x7] }
 0x170   :  { %15124 = vmatprep.subr.bf16.mxu1 %v15603_v0  ;;  %v6117_v19 = vrot.slane %v6110_v16, %v16992_v23  ;;  %v6133_v63 = vcombine.low %v13710_v28, %v5851_v58  ;;  %v6170_v5 = vrot.slane %v5638_v32, %v16992_v23  ;;  %v7284_v40 = vor.u32 %v7283_v51, %v7280_v61  ;;  %v15046_v32 = vpop.f32.mrf.mxu1  ;;  %v15003_v42 = vpop.f32.mrf.mxu0 }
 0x171   :  { %v5859_v2 = vunpack.i.h.s16 %v17421_v11  ;;  %v6163_v37 = vrot.slane %v6156_v56, %v16992_v23  ;;  %v4459_v15 = vpack.c.bf16 %v4450_v9, %v4449_v59  ;;  %v13701_v54 = vpack.c.bf16 %v4450_v9, %v4450_v9  ;;  %v6477_v59 = vld [vmem:[#allocation2 + $0x70] sm:$0x7]  ;;  %v15611_v9 = vld [vmem:[%s19358_s4 + $0xc0] sm:$0xff]  }
 0x172   :  { %v6125_v29 = vcombine.low %v6117_v19, %v6124_v45  ;;  %v6140_v3 = vrot.slane %v6133_v63, %v16992_v23  ;;  %v6147_v30 = vrot.slane %v13711_v24, %v16992_v23  ;;  %v4369_v33 = vadd.f32 %v4368_v38, %v3914_v13  ;;  %v4371_v47 = vpop.f32.mrf.mxu1 }
 0x173   :  { %15125 = vmatpush3.bf16.msra.mxu1 %v15603_v0  ;;  %v13712_v53 = vpack.i.b16 %v17421_v11, %v5857_v20  ;;  %v6171_v46 = vcombine.low %v6163_v37, %v6170_v5  ;;  %v5650_v39 = vrot.slane %v4459_v15, %v16235_v26  ;;  %v5657_v22 = vrot.slane %v13701_v54, %v16235_v26 }
 0x174   :  { %15126 = vmatprep.subr.bf16.mxu1 %v15605_v14  ;;  %v6132_v7 = vrot.slane %v6125_v29, %v16992_v23  ;;  %v6148_v27 = vcombine.low %v6140_v3, %v6147_v30  ;;  %v7236_v61 = vcombine.high %v17433_v25, %v17433_v25  ;;  %v17446_v0 = vrot.slane %v7284_v40, 2  ;;  %v15047_v24 = vpop.f32.mrf.mxu1 }
 0x175   :  { %v6178_v21 = vrot.slane %v6171_v46, %v16992_v23  ;;  %v5658_v36 = vcombine.high %v5650_v39, %v5650_v39  ;;  %v5659_v51 = vcombine.high %v5657_v22, %v5657_v22  ;;  %v5666_v11 = vrot.slane %v5650_v39, %v16235_v26 }
 0x176   :  { %v6155_v55 = vrot.slane %v6148_v27, %v16992_v23  ;;  %v6472_v45 = vsel %vm17005_vm3, %v6132_v7, %v6471_v18  ;;  %v17454_v58 = vrot.slane %v5657_v22, %v16235_v26  ;;  %v4438_v28 = vadd.f32 %v17259_v49, %v4369_v33  ;;  %v17474_v18 = vld [vmem:[%s19358_s4 + $0x178] sm:$0xff]  }
 0x177   :  { %15127 = vmatpush3.bf16.msra.mxu1 %v15605_v14  ;;  %6473 = vst [vmem:[#allocation2 + $0x68] sm:$0x7] %v6472_v45  ;;  %v6478_v16 = vsel %vm17005_vm3, %v6178_v21, %v6477_v59  ;;  %v5680_v13 = vrot.slane %v5658_v36, %v16235_v26  ;;  %v5687_v20 = vrot.slane %v5659_v51, %v16235_v26  ;;  %v7289_v56 = vrot.slane %v17424_v31, 7  ;;  %v6480_v45 = vld [vmem:[#allocation2 + $0x74] sm:$0x7] }
 0x178   :  { %15128 = vmatprep.subr.bf16.mxu1 %v15609_v57  ;;  %v6475_v19 = vsel %vm17005_vm3, %v6155_v55, %v6474_v41  ;;  %6479 = vst [vmem:[#allocation2 + $0x70] sm:$0x7] %v6478_v16  ;;  %v5688_v14 = vcombine.high %v5666_v11, %v5666_v11  ;;  %v5861_v63 = vunpack.i.h.s16 %v5666_v11  ;;  %v5869_v5 = vunpack.i.h.s16 %v17454_v58  ;;  %v3922_v22 = vpop.f32.mrf.mxu0 }
 0x179   :  { %6476 = vst [vmem:[#allocation2 + $0x6c] sm:$0x7] %v6475_v19  ;;  %v5690_v4 = vcombine.high %v5680_v13, %v5680_v13  ;;  %v5691_v40 = vcombine.high %v5687_v20, %v5687_v20  ;;  %v13713_v37 = vpack.i.b16 %v5666_v11, %v5859_v2  ;;  %v7292_v15 = vshrl.u32 %v17401_v34, 16 }
 0x17a   :  { %v13715_v31 = vpack.i.b16 %v5687_v20, %v5869_v5  ;;  %v6179_v54 = vcombine.low %v13712_v53, %v5861_v63  ;;  %v4451_v38 = vmax.f32 %v4438_v28, 0.0  ;;  %v4372_v29 = vadd.f32 %v4371_v47, %v3917_v52  ;;  %v4376_v27 = vpop.f32.mrf.mxu1  ;;  %v15006_v51 = vpop.f32.mrf.mxu0 }
 0x17b   :  { %15129 = vmatpush3.bf16.msra.mxu1 %v15609_v57  ;;  %v5689_v3 = vcombine.high %v17454_v58, %v17454_v58  ;;  %v5866_v30 = vunpack.i.l.s16 %v5690_v4  ;;  %v5867_v33 = vunpack.i.h.s16 %v5690_v4  ;;  %v5871_v46 = vunpack.i.h.s16 %v5687_v20 }
 0x17c   :  { %15130 = vmatprep.subr.bf16.mxu1 %v15611_v9  ;;  %v6186_v2 = vrot.slane %v6179_v54, %v16992_v23  ;;  %v6193_v39 = vrot.slane %v13713_v37, %v16992_v23  ;;  %v6216_v53 = vrot.slane %v5688_v14, %v16992_v23  ;;  %v4439_v52 = vadd.f32 %v17259_v49, %v4372_v29  ;;  %v15050_v28 = vpop.f32.mrf.mxu1  ;;  %v3925_v14 = vpop.f32.mrf.mxu0  ;;  %v6483_v37 = vld [vmem:[#allocation2 + $0x78] sm:$0x7] }
 0x17d   :  { %v13714_v32 = vpack.i.b16 %v17454_v58, %v5867_v33  ;;  %v6202_v57 = vcombine.low %v5680_v13, %v5866_v30  ;;  %v17482_v7 = vrot.slane %v5691_v40, %v16992_v23  ;;  %v7295_v59 = vshll.u32 %v17401_v34, 16 }
 0x17e   :  { %v6194_v42 = vcombine.low %v6186_v2, %v6193_v39  ;;  %v6239_v21 = vrot.slane %v13715_v31, %v16992_v23  ;;  %v4452_v41 = vmax.f32 %v4439_v52, 0.0  ;;  %v4377_v36 = vadd.f32 %v4376_v27, %v3922_v22  ;;  %v15596_v11 = vld [vmem:[#allocation2 + $0x60] ss:$8 sps:$4 sm:$0x33]   ;;  %v4379_v40 = vpop.f32.mrf.mxu1  ;;  %v15007_v54 = vpop.f32.mrf.mxu0  ;;  %v6486_v39 = vld [vmem:[#allocation2 + $0x7c] sm:$0x7] }
 0x17f   :  { %15131 = vmatpush3.bf16.msra.mxu1 %v15611_v9  ;;  %v6209_v47 = vrot.slane %v6202_v57, %v16992_v23  ;;  %v6225_v55 = vcombine.low %v13714_v32, %v5871_v46  ;;  %v17490_v16 = vsel %vm17142_vm10, %v17446_v0, %v7289_v56  ;;  %v17492_v13 = vrot.slane %v7292_v15, 6 }
 0x180   :  { %15156 = vmatprep.subr.bf16.mxu1 %v17474_v18  ;;  %v6201_v20 = vrot.slane %v6194_v42, %v16992_v23  ;;  %v4460_v24 = vpack.c.bf16 %v4452_v41, %v4451_v38  ;;  %v13702_v19 = vpack.c.bf16 %v4452_v41, %v4452_v41  ;;  %v17496_v9 = vrot.slane %v7295_v59, 7  ;;  %v15051_v46 = vpop.f32.mrf.mxu1  ;;  %v3930_v34 = vpop.f32.mrf.mxu0 }
 0x181   :  { %v6217_v63 = vcombine.low %v6209_v47, %v6216_v53  ;;  %v6232_v5 = vrot.slane %v6225_v55, %v16992_v23  ;;  %v4440_v4 = vadd.f32 %v17259_v49, %v4377_v36  ;;  %v6585_v0 = vrot.slane %v15596_v11, %v17049_v43 }
 0x182   :  { %v6481_v56 = vsel %vm17005_vm3, %v6201_v20, %v6480_v45  ;;  %v5699_v15 = vrot.slane %v4460_v24, %v16235_v26  ;;  %v5706_v31 = vrot.slane %v13702_v19, %v16235_v26  ;;  %v17508_v38 = vshll.u32 %v7228_v10, 16  ;;  %v4384_v42 = vpop.f32.mrf.mxu1  ;;  %v15010_v36 = vpop.f32.mrf.mxu0 }
 0x183   :  { %v6224_v29 = vrot.slane %v6217_v63, %v16992_v23  ;;  %v6240_v30 = vcombine.low %v6232_v5, %v6239_v21  ;;  %6482 = vst [vmem:[#allocation2 + $0x74] sm:$0x7] %v6481_v56  ;;  %v4380_v33 = vadd.f32 %v4379_v40, %v3925_v14  ;;  %v6586_v2 = vcombine.low %v6578_v48, %v6585_v0 }
 0x184   :  { %v5707_v53 = vcombine.high %v5699_v15, %v5699_v15  ;;  %v5708_v52 = vcombine.high %v5706_v31, %v5706_v31  ;;  %v5715_v22 = vrot.slane %v5699_v15, %v16235_v26  ;;  %v5722_v32 = vrot.slane %v5706_v31, %v16235_v26  ;;  %v15054_v45 = vpop.f32.mrf.mxu1  ;;  %v3933_v14 = vpop.f32.mrf.mxu0 }
 0x185   :  { %v6247_v10 = vrot.slane %v6240_v30, %v16992_v23  ;;  %v6484_v57 = vsel %vm17005_vm3, %v6224_v29, %v6483_v37  ;;  %v4453_v27 = vmax.f32 %v4440_v4, 0.0  ;;  %v4441_v59 = vadd.f32 %v17259_v49, %v4380_v33  ;;  %15072 = vmatprep.mubr.bf16.mxu0 %v6586_v2  ;;  %v6492_v45 = vld [vmem:[#allocation2 + $0x84] sm:$0x7] }
 0x186   :  { %6485 = vst [vmem:[#allocation2 + $0x78] sm:$0x7] %v6484_v57  ;;  %v5729_v62 = vrot.slane %v5707_v53, %v16235_v26  ;;  %v5736_v48 = vrot.slane %v5708_v52, %v16235_v26  ;;  %v5737_v21 = vcombine.high %v5715_v22, %v5715_v22  ;;  %v5738_v41 = vcombine.high %v5722_v32, %v5722_v32  ;;  %v4387_v0 = vpop.f32.mrf.mxu1  ;;  %v15011_v54 = vpop.f32.mrf.mxu0 }
 0x187   :  { %v6487_v51 = vsel %vm17005_vm3, %v6247_v10, %v6486_v39  ;;  %v5876_v11 = vunpack.i.l.s16 %v5715_v22  ;;  %v5877_v47 = vunpack.i.h.s16 %v5715_v22  ;;  %v7298_v55 = vor.u32 %v17496_v9, %v17492_v13  ;;  %v13791_v0 = vld.sshfl [vmem:[#allocation2 + $0x68] sm:$0x13 pattern:$0x76325410] }
 0x188   :  { %6488 = vst [vmem:[#allocation2 + $0x7c] sm:$0x7] %v6487_v51  ;;  %v5739_v28 = vcombine.high %v5729_v62, %v5729_v62  ;;  %v5740_v20 = vcombine.high %v5736_v48, %v5736_v48  ;;  %v5879_v24 = vunpack.i.h.s16 %v5729_v62  ;;  %v5881_v19 = vunpack.i.h.s16 %v5737_v21  ;;  %v15055_v2 = vpop.f32.mrf.mxu1  ;;  %v6489_v51 = vld [vmem:[#allocation2 + $0x80] sm:$0x7] }
 0x189   :  { %v5886_v63 = vunpack.i.l.s16 %v5736_v48  ;;  %v5887_v5 = vunpack.i.h.s16 %v5736_v48  ;;  %v5889_v4 = vunpack.i.h.s16 %v5738_v41  ;;  %v13716_v40 = vpack.i.b16 %v5729_v62, %v5877_v47 }
 0x18a   :  { %v5891_v56 = vunpack.i.h.s16 %v5740_v20  ;;  %v13717_v37 = vpack.i.b16 %v5737_v21, %v5879_v24  ;;  %v6248_v15 = vcombine.low %v5689_v3, %v5876_v11  ;;  %v4454_v31 = vmax.f32 %v4441_v59, 0.0 }
 0x18b   :  { %v13718_v29 = vpack.i.b16 %v5738_v41, %v5887_v5  ;;  %v13719_v30 = vpack.i.b16 %v5740_v20, %v5889_v4  ;;  %v6271_v33 = vcombine.low %v13716_v40, %v5881_v19  ;;  %v6294_v46 = vcombine.low %v5739_v28, %v5886_v63  ;;  %v6495_v28 = vld [vmem:[#allocation2 + $0x88] sm:$0x7]  ;;  %v6498_v4 = vld [vmem:[#allocation2 + $0x8c] sm:$0x7] }
 0x18c   :  { %v6255_v39 = vrot.slane %v6248_v15, %v16992_v23  ;;  %v6285_v53 = vrot.slane %v13717_v37, %v16992_v23  ;;  %v4461_v52 = vpack.c.bf16 %v4454_v31, %v4453_v27  ;;  %v13703_v22 = vpack.c.bf16 %v4454_v31, %v4454_v31 }
 0x18d   :  { %v6278_v10 = vrot.slane %v6271_v33, %v16992_v23  ;;  %v6301_v57 = vrot.slane %v6294_v46, %v16992_v23  ;;  %v6308_v58 = vrot.slane %v5722_v32, %v16992_v23  ;;  %v6317_v3 = vcombine.low %v13718_v29, %v5891_v56 }
 0x18e   :  { %v6263_v59 = vcombine.low %v6255_v39, %v17482_v7  ;;  %v6331_v62 = vrot.slane %v13719_v30, %v16992_v23  ;;  %v5748_v48 = vrot.slane %v4461_v52, %v16235_v26  ;;  %v5755_v21 = vrot.slane %v13703_v22, %v16235_v26 }
 0x18f   :  { %v6286_v41 = vcombine.low %v6278_v10, %v6285_v53  ;;  %v6309_v36 = vcombine.low %v6301_v57, %v6308_v58  ;;  %v6324_v27 = vrot.slane %v6317_v3, %v16992_v23  ;;  %v4385_v11 = vadd.f32 %v4384_v42, %v3930_v34 }
 0x190   :  { %v6270_v47 = vrot.slane %v6263_v59, %v16992_v23  ;;  %v5756_v32 = vcombine.high %v5748_v48, %v5748_v48  ;;  %v5757_v20 = vcombine.high %v5755_v21, %v5755_v21  ;;  %v5764_v7 = vrot.slane %v5748_v48, %v16235_v26 }
 0x191   :  { %v6293_v24 = vrot.slane %v6286_v41, %v16992_v23  ;;  %v6316_v19 = vrot.slane %v6309_v36, %v16992_v23  ;;  %v6332_v14 = vcombine.low %v6324_v27, %v6331_v62  ;;  %v5771_v63 = vrot.slane %v5755_v21, %v16235_v26 }
 0x192   :  { %v6490_v5 = vsel %vm17005_vm3, %v6270_v47, %v6489_v51  ;;  %v5778_v34 = vrot.slane %v5756_v32, %v16235_v26  ;;  %v5785_v42 = vrot.slane %v5757_v20, %v16235_v26  ;;  %v5786_v40 = vcombine.high %v5764_v7, %v5764_v7 }
 0x193   :  { %v6339_v56 = vrot.slane %v6332_v14, %v16992_v23  ;;  %6491 = vst [vmem:[#allocation2 + $0x80] sm:$0x7] %v6490_v5  ;;  %v6493_v37 = vsel %vm17005_vm3, %v6293_v24, %v6492_v45  ;;  %v6496_v15 = vsel %vm17005_vm3, %v6316_v19, %v6495_v28  ;;  %v5787_v31 = vcombine.high %v5771_v63, %v5771_v63  ;;  %v6504_v5 = vld [vmem:[#allocation2 + $0x94] sm:$0x7] }
 0x194   :  { %6494 = vst [vmem:[#allocation2 + $0x84] sm:$0x7] %v6493_v37  ;;  %6497 = vst [vmem:[#allocation2 + $0x88] sm:$0x7] %v6496_v15  ;;  %v5788_v54 = vcombine.high %v5778_v34, %v5778_v34  ;;  %v5789_v29 = vcombine.high %v5785_v42, %v5785_v42  ;;  %v5896_v30 = vunpack.i.l.s16 %v5786_v40  ;;  %v5897_v33 = vunpack.i.h.s16 %v5786_v40 }
 0x195   :  { %v6499_v46 = vsel %vm17005_vm3, %v6339_v56, %v6498_v4  ;;  %v5901_v2 = vunpack.i.h.s16 %v5771_v63  ;;  %v7244_v39 = vcombine.high %v13791_v0, %v13791_v0  ;;  %v7299_v53 = vrot.slane %v7298_v55, 2  ;;  %v6507_v4 = vld [vmem:[#allocation2 + $0x98] sm:$0x7] }
 0x196   :  { %6500 = vst [vmem:[#allocation2 + $0x8c] sm:$0x7] %v6499_v46  ;;  %v5899_v52 = vunpack.i.h.s16 %v5788_v54  ;;  %v5906_v22 = vunpack.i.l.s16 %v5789_v29  ;;  %v13720_v10 = vpack.i.b16 %v5788_v54, %v5897_v33  ;;  %v6340_v57 = vcombine.low %v5764_v7, %v5896_v30 }
 0x197   :  { %v6354_v58 = vrot.slane %v5778_v34, %v16992_v23  ;;  %v6400_v3 = vrot.slane %v5787_v31, %v16992_v23  ;;  %v4442_v59 = vadd.f32 %v17259_v49, %v4385_v11  ;;  %v7306_v62 = vshrl.u32 %v17433_v25, 16  ;;  %v6501_v49 = vld [vmem:[#allocation2 + $0x90] sm:$0x7] }
 0x198   :  { %v13721_v48 = vpack.i.b16 %v5771_v63, %v5899_v52  ;;  %v6347_v21 = vrot.slane %v6340_v57, %v16992_v23  ;;  %v6363_v41 = vcombine.low %v13720_v10, %v5901_v2  ;;  %v6386_v36 = vcombine.low %v5785_v42, %v5906_v22  ;;  %v13792_v57 = vld.sshfl [vmem:[#allocation2 + $0x78] sm:$0x13 pattern:$0x76325410] }
 0x199   :  { %v4455_v13 = vmax.f32 %v4442_v59, 0.0  ;;  %v5907_v9 = vunpack.i.h.s16 %v5789_v29  ;;  %v7308_v55 = vrot.slane %v7306_v62, 6  ;;  %v7309_v27 = vshll.u32 %v17433_v25, 16 }
 0x19a   :  { %v6355_v51 = vcombine.low %v6347_v21, %v6354_v58  ;;  %v6370_v47 = vrot.slane %v6363_v41, %v16992_v23  ;;  %v6377_v45 = vrot.slane %v13721_v48, %v16992_v23  ;;  %v6393_v28 = vrot.slane %v6386_v36, %v16992_v23  ;;  %v15607_v59 = vld [vmem:[#allocation2 + $0x78] ss:$8 sps:$4 sm:$0x33]  }
 0x19b   :  { %v4462_v11 = vpack.c.bf16 %v4455_v13, %v4455_v13  ;;  %v7303_v32 = vrot.slane %v17508_v38, 7  ;;  %v7311_v20 = vrot.slane %v7309_v27, 7  ;;  %v7320_v7 = vshrl.u32 %v13791_v0, 16 }
 0x19c   :  { %v6362_v24 = vrot.slane %v6355_v51, %v16992_v23  ;;  %v6378_v19 = vcombine.low %v6370_v47, %v6377_v45  ;;  %v6401_v14 = vcombine.low %v6393_v28, %v6400_v3  ;;  %v7323_v63 = vshll.u32 %v13791_v0, 16  ;;  %v13793_v21 = vld.sshfl [vmem:[#allocation2 + $0x80] sm:$0x13 pattern:$0x76325410] }
 0x19d   :  { %v5796_v34 = vrot.slane %v4462_v11, %v16235_v26  ;;  %v7312_v42 = vor.u32 %v7311_v20, %v7308_v55  ;;  %v7315_v40 = vshll.u32 %v7236_v61, 16  ;;  %v7322_v56 = vrot.slane %v7320_v7, 6  ;;  %v13794_v27 = vld.sshfl [vmem:[#allocation2 + $0x88] sm:$0x13 pattern:$0x76325410] }
 0x19e   :  { %v6385_v37 = vrot.slane %v6378_v19, %v16992_v23  ;;  %v6408_v38 = vrot.slane %v6401_v14, %v16992_v23  ;;  %v6502_v15 = vsel %vm17005_vm3, %v6362_v24, %v6501_v49  ;;  %v7325_v31 = vrot.slane %v7323_v63, 7 }
 0x19f   :  { %6503 = vst [vmem:[#allocation2 + $0x90] sm:$0x7] %v6502_v15  ;;  %v5797_v0 = vcombine.high %v5796_v34, %v5796_v34  ;;  %v5804_v54 = vrot.slane %v5796_v34, %v16235_v26  ;;  %v7304_v29 = vsel %vm17142_vm10, %v7299_v53, %v7303_v32  ;;  %v7329_v30 = vshll.u32 %v7244_v39, 16  ;;  %v6510_v32 = vld [vmem:[#allocation2 + $0x9c] sm:$0x7] }
 0x1a0   :  { %v6505_v25 = vsel %vm17005_vm3, %v6385_v37, %v6504_v5  ;;  %v6508_v61 = vsel %vm17005_vm3, %v6408_v38, %v6507_v4  ;;  %v7313_v33 = vrot.slane %v7312_v42, 2  ;;  %v7326_v46 = vor.u32 %v7325_v31, %v7322_v56 }
 0x1a1   :  { %6506 = vst [vmem:[#allocation2 + $0x94] sm:$0x7] %v6505_v25  ;;  %6509 = vst [vmem:[#allocation2 + $0x98] sm:$0x7] %v6508_v61  ;;  %v5811_v2 = vrot.slane %v5797_v0, %v16235_v26  ;;  %v5909_v52 = vunpack.i.h.s16 %v5804_v54  ;;  %v13722_v22 = vpack.i.b16 %v5804_v54, %v5907_v9  ;;  %v7061_v10 = vcombine.low %v17381_v35, %v17405_v17 }
 0x1a2   :  { %v7317_v53 = vrot.slane %v7315_v40, 7  ;;  %v7327_v39 = vrot.slane %v7326_v46, 2  ;;  %v7331_v58 = vrot.slane %v7329_v30, 7  ;;  %v7406_v3 = vcombine.low %v17490_v16, %v7304_v29  ;;  %v15610_v40 = vld [vmem:[%s19358_s4 + $0xb0] sm:$0xff]  }
 0x1a3   :  { %v5911_v62 = vunpack.i.h.s16 %v5811_v2  ;;  %v13723_v48 = vpack.i.b16 %v5811_v2, %v5909_v52  ;;  %v7068_v35 = vrot.slane %v7060_v50, %v17049_v43  ;;  %v7334_v17 = vshrl.u32 %v13792_v57, 16  ;;  %v17607_v29 = vld.sshfl [vmem:[#allocation2 + $0x28] sm:$0x13 pattern:$0x76325410]  ;;  %v16035_v2 = vld [vmem:[%s19358_s4 + $0xb8] sm:$0xff]  }
 0x1a4   :  { %v7318_v41 = vsel %vm17142_vm10, %v7313_v33, %v7317_v53  ;;  %v7332_v36 = vsel %vm17142_vm10, %v7327_v39, %v7331_v58  ;;  %v7075_v55 = vrot.slane %v7061_v10, %v17049_v43  ;;  %v7414_v51 = vrot.slane %v7406_v3, %v17049_v43  ;;  %v17609_v33 = vld.sshfl [vmem:[#allocation2 + $0x30] sm:$0x13 pattern:$0x76325410]  ;;  %v15612_v10 = vld [vmem:[%s19358_s4 + $0xa8] sm:$0xff]  }
 0x1a5   :  { %v6409_v13 = vcombine.low %v13722_v22, %v5911_v62  ;;  %v6423_v9 = vrot.slane %v13723_v48, %v16992_v23  ;;  %v7407_v16 = vcombine.low %v7318_v41, %v7332_v36  ;;  %v6595_v45 = vrot.slane %v15607_v59, %v17049_v43  ;;  %v13762_v41 = vld.sshfl [vmem:[#allocation2 + $0x38] sm:$0x13 pattern:$0x76325410] }
 0x1a6   :  { %v15608_v47 = vld [vmem:[#allocation2 + $0x88] ss:$8 sps:$4 sm:$0x33]   ;;  %v7252_v28 = vcombine.high %v13792_v57, %v13792_v57  ;;  %v7260_v49 = vcombine.high %v13793_v21, %v13793_v21  ;;  %v7336_v8 = vrot.slane %v7334_v17, 6  ;;  %v7337_v50 = vshll.u32 %v13792_v57, 16 }
 0x1a7   :  { %v6416_v11 = vrot.slane %v6409_v13, %v16992_v23  ;;  %v7421_v44 = vrot.slane %v7407_v16, %v17049_v43  ;;  %v6602_v20 = vrot.slane %v15608_v47, %v17049_v43  ;;  %v7268_v7 = vcombine.high %v13794_v27, %v13794_v27  ;;  %v13795_v4 = vld.sshfl [vmem:[#allocation2 + $0x90] sm:$0x13 pattern:$0x76325410] }
 0x1a8   :  { %v7348_v24 = vshrl.u32 %v13793_v21, 16  ;;  %v7351_v19 = vshll.u32 %v13793_v21, 16  ;;  %v7076_v5 = vcombine.low %v7068_v35, %v7075_v55  ;;  %v7339_v34 = vrot.slane %v7337_v50, 7  ;;  %v15616_v55 = vld [vmem:[%s19358_s4 + $0xa0] sm:$0xff]  }
 0x1a9   :  { %v6424_v14 = vcombine.low %v6416_v11, %v6423_v9  ;;  %v7422_v63 = vcombine.low %v7414_v51, %v7421_v44  ;;  %v6603_v42 = vcombine.low %v6595_v45, %v6602_v20  ;;  %v7357_v38 = vshll.u32 %v7260_v49, 16  ;;  %v15615_v50 = vld [vmem:[#allocation2 + $0x64] ss:$8 sps:$4 sm:$0x33]  }
 0x1aa   :  { %v7350_v56 = vrot.slane %v7348_v24, 6  ;;  %v7353_v37 = vrot.slane %v7351_v19, 7  ;;  %v7340_v31 = vor.u32 %v7339_v34, %v7336_v8  ;;  %v7362_v0 = vshrl.u32 %v13794_v27, 16 }
 0x1ab   :  { %v6431_v15 = vrot.slane %v6424_v14, %v16992_v23  ;;  %15132 = vmatprep.mubr.bf16.mxu1 %v7422_v63  ;;  %v7365_v54 = vshll.u32 %v13794_v27, 16  ;;  %15073 = vmatmul.mubr.bf16.vlgmr.msra.gmra.mxu0 %v6603_v42  ;;  %v7276_v30 = vcombine.high %v13795_v4, %v13795_v4  ;;  %v7376_v61 = vshrl.u32 %v13795_v4, 16 }
 0x1ac   :  { %v7354_v25 = vor.u32 %v7353_v37, %v7350_v56  ;;  %15097 = vmatpush3.bf16.msra.mxu0 %v16035_v2  ;;  %15112 = vmatprep.mubr.bf16.mxu0 %v7076_v5  ;;  %v7343_v23 = vshll.u32 %v7252_v28, 16  ;;  %v7364_v52 = vrot.slane %v7362_v0, 6  ;;  %v7379_v39 = vshll.u32 %v13795_v4, 16  ;;  %v15614_v5 = vld [vmem:[#allocation2 + $0x54] ss:$8 sps:$4 sm:$0x33]  }
 0x1ad   :  { %v6511_v46 = vsel %vm17005_vm3, %v6431_v15, %v6510_v32  ;;  %v7367_v22 = vrot.slane %v7365_v54, 7  ;;  %15098 = vmatprep.subr.bf16.mxu0 %v15610_v40  ;;  %v7378_v53 = vrot.slane %v7376_v61, 6  ;;  %v7341_v58 = vrot.slane %v7340_v31, 2  ;;  %v15618_v4 = vld [vmem:[%s19358_s4 + $0x98] sm:$0xff]  }
 0x1ae   :  { %6512 = vst [vmem:[#allocation2 + $0x9c] sm:$0x7] %v6511_v46  ;;  %v7355_v57 = vrot.slane %v7354_v25, 2  ;;  %v7359_v3 = vrot.slane %v7357_v38, 7  ;;  %v7371_v62 = vshll.u32 %v7268_v7, 16  ;;  %v7381_v48 = vrot.slane %v7379_v39, 7 }
 0x1af   :  { %v7368_v59 = vor.u32 %v7367_v22, %v7364_v52  ;;  %v7385_v21 = vshll.u32 %v7276_v30, 16  ;;  %v6988_v36 = vshrl.u32 %v17607_v29, 16  ;;  %v7345_v35 = vrot.slane %v7343_v23, 7 }
 0x1b0   :  { %15099 = vmatpush3.bf16.msra.mxu0 %v15610_v40  ;;  %v7360_v17 = vsel %vm17142_vm10, %v7355_v57, %v7359_v3  ;;  %v6907_v13 = vcombine.high %v17609_v33, %v17609_v33  ;;  %v7382_v16 = vor.u32 %v7381_v48, %v7378_v53  ;;  %v6991_v27 = vshll.u32 %v17607_v29, 16  ;;  %v15619_v48 = vld [vmem:[%s19358_s4 + $0x168] sm:$0xff]  }
 0x1b1   :  { %15100 = vmatprep.subr.bf16.mxu0 %v15612_v10  ;;  %v7369_v9 = vrot.slane %v7368_v59, 2  ;;  %v7002_v51 = vshrl.u32 %v17609_v33, 16  ;;  %v7346_v47 = vsel %vm17142_vm10, %v7341_v58, %v7345_v35  ;;  %v7373_v45 = vrot.slane %v7371_v62, 7 }
 0x1b2   :  { %v6923_v28 = vcombine.high %v13763_v6, %v13763_v6  ;;  %v7005_v49 = vshll.u32 %v17609_v33, 16  ;;  %v7383_v11 = vrot.slane %v7382_v16, 2  ;;  %v7387_v44 = vrot.slane %v7385_v21, 7  ;;  %v15622_v21 = vld [vmem:[%s19358_s4 + $0x88] sm:$0xff]  }
 0x1b3   :  { %v7423_v8 = vcombine.low %v7346_v47, %v7360_v17  ;;  %v6990_v32 = vrot.slane %v6988_v36, 6  ;;  %v7004_v20 = vrot.slane %v7002_v51, 6  ;;  %v7016_v24 = vshrl.u32 %v13762_v41, 16 }
 0x1b4   :  { %15101 = vmatpush3.bf16.msra.mxu0 %v15612_v10  ;;  %v7007_v7 = vrot.slane %v7005_v49, 7  ;;  %v7019_v19 = vshll.u32 %v13762_v41, 16  ;;  %v7374_v14 = vsel %vm17142_vm10, %v7369_v9, %v7373_v45  ;;  %v7388_v63 = vsel %vm17142_vm10, %v7383_v11, %v7387_v44  ;;  %v15620_v10 = vld [vmem:[%s19358_s4 + $0x90] sm:$0xff]   ;;  %v15624_v45 = vld [vmem:[%s19358_s4 + $0x80] sm:$0xff]  }
 0x1b5   :  { %15102 = vmatprep.subr.bf16.mxu0 %v15616_v55  ;;  %v6993_v34 = vrot.slane %v6991_v27, 7  ;;  %v7030_v42 = vshrl.u32 %v13763_v6, 16  ;;  %v7424_v40 = vcombine.low %v7374_v14, %v7388_v63  ;;  %v6915_v56 = vcombine.high %v13762_v41, %v13762_v41  ;;  %v17651_v62 = vld.sshfl [vmem:[#allocation2 + $0x5c] sm:$0x13 pattern:$0x76325410] }
 0x1b6   :  { %v7018_v37 = vrot.slane %v7016_v24, 6  ;;  %v7021_v38 = vrot.slane %v7019_v19, 7  ;;  %v7763_v15 = vrot.slane %v15615_v50, %v17049_v43  ;;  %v6899_v31 = vcombine.high %v17607_v29, %v17607_v29  ;;  %v15617_v29 = vld [vmem:[%s19358_s4 + $0x170] sm:$0xff]  }
 0x1b7   :  { %v7032_v0 = vrot.slane %v7030_v42, 6  ;;  %v7033_v54 = vshll.u32 %v13763_v6, 16  ;;  %v7431_v30 = vrot.slane %v7423_v8, %v17049_v43  ;;  %v7438_v25 = vrot.slane %v7424_v40, %v17049_v43  ;;  %v17660_v9 = vld.sshfl [vmem:[#allocation2 + $0x64] sm:$0x13 pattern:$0x76325410] }
 0x1b8   :  { %15103 = vmatpush3.bf16.msra.mxu0 %v15616_v55  ;;  %v7008_v61 = vor.u32 %v7007_v7, %v7004_v20  ;;  %v7022_v33 = vor.u32 %v7021_v38, %v7018_v37  ;;  %v7756_v46 = vrot.slane %v15614_v5, %v17049_v43  ;;  %v6994_v2 = vor.u32 %v6993_v34, %v6990_v32  ;;  %v13903_v55 = vld.sshfl [vmem:[#allocation2 + $0x6c] sm:$0x13 pattern:$0x76325410]  ;;  %v15621_v8 = vld [vmem:[%s19358_s4 + $0x160] sm:$0xff]   ;;  %v15626_v42 = vld [vmem:[%s19358_s4 + $0x138] sm:$0xff]  }
 0x1b9   :  { %15104 = vmatprep.subr.bf16.mxu0 %v15618_v4  ;;  %v7035_v23 = vrot.slane %v7033_v54, 7  ;;  %v7039_v52 = vshll.u32 %v6923_v28, 16  ;;  %v7439_v22 = vcombine.low %v7431_v30, %v7438_v25  ;;  %v7011_v57 = vshll.u32 %v6907_v13, 16  ;;  %v15628_v11 = vld [vmem:[#allocation2 + $0x14] ss:$8 sps:$4 sm:$0x33]  }
 0x1ba   :  { %v7025_v53 = vshll.u32 %v6915_v56, 16  ;;  %v7764_v39 = vcombine.low %v7756_v46, %v7763_v15  ;;  %v6997_v6 = vshll.u32 %v6899_v31, 16  ;;  %v7009_v3 = vrot.slane %v7008_v61, 2  ;;  %v15627_v5 = vld [vmem:[#allocation2 + $0x4] ss:$8 sps:$4 sm:$0x33]  }
 0x1bb   :  { %v7036_v58 = vor.u32 %v7035_v23, %v7032_v0  ;;  %15133 = vmatmul.mubr.bf16.vlgmr.msra.gmra.mxu1 %v7439_v22  ;;  %v7023_v59 = vrot.slane %v7022_v33, 2  ;;  %v6995_v41 = vrot.slane %v6994_v2, 2  ;;  %v7041_v35 = vrot.slane %v7039_v52, 7  ;;  %v15623_v38 = vld [vmem:[%s19358_s4 + $0x158] sm:$0xff]   ;;  %v15630_v22 = vld [vmem:[%s19358_s4 + $0x130] sm:$0xff]  }
 0x1bc   :  { %15105 = vmatpush3.bf16.msra.mxu0 %v15618_v4  ;;  %15157 = vmatpush3.bf16.msra.mxu1 %v17474_v18  ;;  %v7013_v17 = vrot.slane %v7011_v57, 7  ;;  %v7027_v13 = vrot.slane %v7025_v53, 7  ;;  %v6999_v16 = vrot.slane %v6997_v6, 7  ;;  %v8326_v44 = vshrl.u32 %v17651_v62, 16 }
 0x1bd   :  { %15172 = vmatprep.mubr.bf16.mxu1 %v7764_v39  ;;  %v7037_v36 = vrot.slane %v7036_v58, 2  ;;  %15158 = vmatprep.subr.bf16.mxu1 %v15617_v29  ;;  %v17668_v47 = vld.sshfl [vmem:[#allocation2 + $0x54] sm:$0x13 pattern:$0x76325410]  ;;  %v8329_v50 = vshll.u32 %v17651_v62, 16  ;;  %v7592_v40 = vrot.slane %v15628_v11, %v17049_v43  ;;  %v8278_v56 = vcombine.high %v13903_v55, %v13903_v55 }
 0x1be   :  { %15106 = vmatprep.subr.bf16.mxu0 %v15620_v10  ;;  %v7014_v27 = vsel %vm17142_vm10, %v7009_v3, %v7013_v17  ;;  %v7028_v51 = vsel %vm17142_vm10, %v7023_v59, %v7027_v13  ;;  %v7000_v28 = vsel %vm17142_vm10, %v6995_v41, %v6999_v16  ;;  %v8340_v32 = vshrl.u32 %v17660_v9, 16  ;;  %v17706_v59 = vld.sshfl [vmem:[#allocation2 + $0xc] sm:$0x13 pattern:$0x76325410] }
 0x1bf   :  { %v7042_v18 = vsel %vm17142_vm10, %v7037_v36, %v7041_v35  ;;  %v8343_v20 = vshll.u32 %v17660_v9, 16  ;;  %v8354_v7 = vshrl.u32 %v13903_v55, 16  ;;  %v7077_v24 = vcombine.low %v7000_v28, %v7014_v27  ;;  %v15632_v41 = vld [vmem:[%s19358_s4 + $0x128] sm:$0xff]  }
 0x1c0   :  { %15107 = vmatpush3.bf16.msra.mxu0 %v15620_v10  ;;  %15159 = vmatpush3.bf16.msra.mxu1 %v15617_v29  ;;  %v7078_v49 = vcombine.low %v7028_v51, %v7042_v18  ;;  %v8312_v19 = vshrl.u32 %v17668_v47, 16  ;;  %v8315_v14 = vshll.u32 %v17668_v47, 16  ;;  %v8357_v63 = vshll.u32 %v13903_v55, 16  ;;  %v15625_v10 = vld [vmem:[%s19358_s4 + $0x150] sm:$0xff]   ;;  %v15629_v13 = vld [vmem:[%s19358_s4 + $0x148] sm:$0xff]  }
 0x1c1   :  { %15108 = vmatprep.subr.bf16.mxu0 %v15622_v21  ;;  %15160 = vmatprep.subr.bf16.mxu1 %v15619_v48  ;;  %v8356_v4 = vrot.slane %v8354_v7, 6  ;;  %v8328_v15 = vrot.slane %v8326_v44, 6  ;;  %v8331_v31 = vrot.slane %v8329_v50, 7  ;;  %v8342_v0 = vrot.slane %v8340_v32, 6  ;;  %v15636_v50 = vld [vmem:[%s19358_s4 + $0x120] sm:$0xff]  }
 0x1c2   :  { %v7092_v34 = vrot.slane %v7078_v49, %v17049_v43  ;;  %v8359_v37 = vrot.slane %v8357_v63, 7  ;;  %v8345_v54 = vrot.slane %v8343_v20, 7  ;;  %v7085_v30 = vrot.slane %v7077_v24, %v17049_v43  ;;  %v17713_v35 = vld.sshfl [vmem:[#allocation2 + $0x4] sm:$0x13 pattern:$0x76325410] }
 0x1c3   :  { %v8262_v25 = vcombine.high %v17651_v62, %v17651_v62  ;;  %v8314_v61 = vrot.slane %v8312_v19, 6  ;;  %v8317_v33 = vrot.slane %v8315_v14, 7  ;;  %v7585_v46 = vrot.slane %v15627_v5, %v17049_v43  ;;  %v17715_v17 = vld.sshfl [vmem:[#allocation2 + $0x14] sm:$0x13 pattern:$0x76325410] }
 0x1c4   :  { %15109 = vmatpush3.bf16.msra.mxu0 %v15622_v21  ;;  %15161 = vmatpush3.bf16.msra.mxu1 %v15619_v48  ;;  %v8270_v2 = vcombine.high %v17660_v9, %v17660_v9  ;;  %v8360_v23 = vor.u32 %v8359_v37, %v8356_v4  ;;  %v7093_v52 = vcombine.low %v7085_v30, %v7092_v34  ;;  %v8363_v6 = vshll.u32 %v8278_v56, 16  ;;  %v17708_v21 = vld.sshfl [vmem:[#allocation2 + $0x1c] sm:$0x13 pattern:$0x76325410]  ;;  %v15631_v7 = vld [vmem:[%s19358_s4 + $0x140] sm:$0xff]  }
 0x1c5   :  { %15110 = vmatprep.subr.bf16.mxu0 %v15624_v45  ;;  %15162 = vmatprep.subr.bf16.mxu1 %v15621_v8  ;;  %v8254_v29 = vcombine.high %v17668_v47, %v17668_v47  ;;  %v7593_v57 = vcombine.low %v7585_v46, %v7592_v40  ;;  %v8332_v53 = vor.u32 %v8331_v31, %v8328_v15  ;;  %v8335_v3 = vshll.u32 %v8262_v25, 16  ;;  %v15638_v31 = vld [vmem:[%s19358_s4 + $0x118] sm:$0xff]  }
 0x1c6   :  { %v8346_v39 = vor.u32 %v8345_v54, %v8342_v0  ;;  %v8318_v58 = vor.u32 %v8317_v33, %v8314_v61  ;;  %v8349_v62 = vshll.u32 %v8270_v2, 16  ;;  %v8361_v48 = vrot.slane %v8360_v23, 2  ;;  %v15635_v25 = vld [vmem:[%s19358_s4 + $0x1f8] sm:$0xff]  }
 0x1c7   :  { %v8321_v36 = vshll.u32 %v8254_v29, 16  ;;  %v8333_v9 = vrot.slane %v8332_v53, 2  ;;  %v8365_v18 = vrot.slane %v8363_v6, 7  ;;  %v8337_v27 = vrot.slane %v8335_v3, 7  ;;  %v15640_v3 = vld [vmem:[%s19358_s4 + $0x110] sm:$0xff]  }
 0x1c8   :  { %15111 = vmatpush3.bf16.msra.mxu0 %v15624_v45  ;;  %15163 = vmatpush3.bf16.msra.mxu1 %v15621_v8  ;;  %v8347_v16 = vrot.slane %v8346_v39, 2  ;;  %v8319_v55 = vrot.slane %v8318_v58, 2  ;;  %v8008_v51 = vshrl.u32 %v17708_v21, 16  ;;  %v8011_v47 = vshll.u32 %v17708_v21, 16  ;;  %v15637_v58 = vld [vmem:[%s19358_s4 + $0x1f0] sm:$0xff]  }
 0x1c9   :  { %15136 = vmatprep.subr.bf16.mxu0 %v15626_v42  ;;  %15164 = vmatprep.subr.bf16.mxu1 %v15623_v38  ;;  %v15634_v45 = vld [vmem:[#allocation2 + $0x8c] ss:$8 sps:$4 sm:$0x33]   ;;  %v8351_v28 = vrot.slane %v8349_v62, 7  ;;  %v8366_v49 = vsel %vm17142_vm10, %v8361_v48, %v8365_v18  ;;  %v7980_v11 = vshrl.u32 %v17706_v59, 16  ;;  %v7983_v44 = vshll.u32 %v17706_v59, 16 }
 0x1ca   :  { %v8323_v8 = vrot.slane %v8321_v36, 7  ;;  %v7994_v32 = vshrl.u32 %v17715_v17, 16  ;;  %v7997_v20 = vshll.u32 %v17715_v17, 16  ;;  %v8338_v24 = vsel %vm17142_vm10, %v8333_v9, %v8337_v27  ;;  %v15647_v9 = vld [vmem:[#allocation2 + $0x3c] ss:$8 sps:$4 sm:$0x33]  }
 0x1cb   :  { %15113 = vmatmul.mubr.bf16.vlgmr.msra.gmra.mxu0 %v7093_v52  ;;  %v8352_v19 = vsel %vm17142_vm10, %v8347_v16, %v8351_v28  ;;  %v7966_v14 = vshrl.u32 %v17713_v35, 16  ;;  %v7969_v63 = vshll.u32 %v17713_v35, 16  ;;  %v8010_v4 = vrot.slane %v8008_v51, 6 }
 0x1cc   :  { %15137 = vmatpush3.bf16.msra.mxu0 %v15626_v42  ;;  %15152 = vmatprep.mubr.bf16.mxu0 %v7593_v57  ;;  %v8441_v5 = vcombine.low %v8352_v19, %v8366_v49  ;;  %v8013_v34 = vrot.slane %v8011_v47, 7  ;;  %v15633_v42 = vld [vmem:[#allocation2 + $0x7c] ss:$8 sps:$4 sm:$0x33]   ;;  %v7780_v40 = vrot.slane %v15634_v45, %v17049_v43  ;;  %v8324_v56 = vsel %vm17142_vm10, %v8319_v55, %v8323_v8  ;;  %v15639_v47 = vld [vmem:[%s19358_s4 + $0x1e8] sm:$0xff]  }
 0x1cd   :  { %15165 = vmatpush3.bf16.msra.mxu1 %v15623_v38  ;;  %15138 = vmatprep.subr.bf16.mxu0 %v15630_v22  ;;  %v7982_v37 = vrot.slane %v7980_v11, 6  ;;  %v7985_v38 = vrot.slane %v7983_v44, 7  ;;  %v8440_v15 = vcombine.low %v8324_v56, %v8338_v24  ;;  %v7932_v0 = vcombine.high %v17708_v21, %v17708_v21  ;;  %v17773_v18 = vld.sshfl [vmem:[#allocation2 + $0x94] sm:$0x13 pattern:$0x76325410] }
 0x1ce   :  { %15166 = vmatprep.subr.bf16.mxu1 %v15625_v10  ;;  %v7996_v54 = vrot.slane %v7994_v32, 6  ;;  %v7999_v30 = vrot.slane %v7997_v20, 7  ;;  %v7908_v61 = vcombine.high %v17713_v35, %v17713_v35  ;;  %v7916_v33 = vcombine.high %v17706_v59, %v17706_v59  ;;  %v17766_v35 = vld.sshfl [vmem:[#allocation2 + $0x7c] sm:$0x13 pattern:$0x76325410] }
 0x1cf   :  { %v7968_v46 = vrot.slane %v7966_v14, 6  ;;  %v7971_v2 = vrot.slane %v7969_v63, 7  ;;  %v8455_v23 = vrot.slane %v8441_v5, %v17049_v43  ;;  %v7924_v52 = vcombine.high %v17715_v17, %v17715_v17  ;;  %v17768_v17 = vld.sshfl [vmem:[#allocation2 + $0x84] sm:$0x13 pattern:$0x76325410] }
 0x1d0   :  { %15139 = vmatpush3.bf16.msra.mxu0 %v15630_v22  ;;  %v8014_v22 = vor.u32 %v8013_v34, %v8010_v4  ;;  %v7773_v29 = vrot.slane %v15633_v42, %v17049_v43  ;;  %v8448_v57 = vrot.slane %v8440_v15, %v17049_v43  ;;  %v8000_v53 = vor.u32 %v7999_v30, %v7996_v54  ;;  %v17775_v51 = vld.sshfl [vmem:[#allocation2 + $0x8c] sm:$0x13 pattern:$0x76325410]  ;;  %v15644_v19 = vld [vmem:[%s19358_s4 + $0x100] sm:$0xff]  }
 0x1d1   :  { %15167 = vmatpush3.bf16.msra.mxu1 %v15625_v10  ;;  %15140 = vmatprep.subr.bf16.mxu0 %v15632_v41  ;;  %v7986_v10 = vor.u32 %v7985_v38, %v7982_v37  ;;  %v8017_v39 = vshll.u32 %v7932_v0, 16  ;;  %v7972_v59 = vor.u32 %v7971_v2, %v7968_v46  ;;  %v7975_v62 = vshll.u32 %v7908_v61, 16  ;;  %v15641_v34 = vld [vmem:[%s19358_s4 + $0x1e0] sm:$0xff]   ;;  %v15646_v42 = vld [vmem:[#allocation2 + $0x2c] ss:$8 sps:$4 sm:$0x33]  }
 0x1d2   :  { %15168 = vmatprep.subr.bf16.mxu1 %v15629_v13  ;;  %v7781_v6 = vcombine.low %v7773_v29, %v7780_v40  ;;  %v7989_v48 = vshll.u32 %v7916_v33, 16  ;;  %v8456_v21 = vcombine.low %v8448_v57, %v8455_v23  ;;  %v8015_v36 = vrot.slane %v8014_v22, 2  ;;  %v15648_v33 = vld [vmem:[%s19358_s4 + $0x1b8] sm:$0xff]  }
 0x1d3   :  { %v7987_v16 = vrot.slane %v7986_v10, 2  ;;  %v8001_v55 = vrot.slane %v8000_v53, 2  ;;  %v8019_v27 = vrot.slane %v8017_v39, 7  ;;  %v7973_v45 = vrot.slane %v7972_v59, 2  ;;  %v15643_v22 = vld [vmem:[%s19358_s4 + $0x1d8] sm:$0xff]   ;;  %v15650_v59 = vld [vmem:[%s19358_s4 + $0x1b0] sm:$0xff]  }
 0x1d4   :  { %15141 = vmatpush3.bf16.msra.mxu0 %v15632_v41  ;;  %v8003_v41 = vshll.u32 %v7924_v52, 16  ;;  %v7977_v28 = vrot.slane %v7975_v62, 7  ;;  %v7991_v49 = vrot.slane %v7989_v48, 7  ;;  %v8410_v8 = vshrl.u32 %v17773_v18, 16 }
 0x1d5   :  { %15169 = vmatpush3.bf16.msra.mxu1 %v15629_v13  ;;  %15142 = vmatprep.subr.bf16.mxu0 %v15636_v50  ;;  %v15642_v13 = vld [vmem:[%s19358_s4 + $0x108] sm:$0xff]   ;;  %v8020_v44 = vsel %vm17142_vm10, %v8015_v36, %v8019_v27  ;;  %v8368_v20 = vshrl.u32 %v17766_v35, 16  ;;  %v8382_v24 = vshrl.u32 %v17768_v17, 16  ;;  %v8385_v63 = vshll.u32 %v17768_v17, 16  ;;  %v15645_v36 = vld [vmem:[%s19358_s4 + $0x1d0] sm:$0xff]  }
 0x1d6   :  { %15170 = vmatprep.subr.bf16.mxu1 %v15631_v7  ;;  %v8005_v11 = vrot.slane %v8003_v41, 7  ;;  %v7992_v32 = vsel %vm17142_vm10, %v7987_v16, %v7991_v49  ;;  %v8396_v5 = vshrl.u32 %v17775_v51, 16  ;;  %v8399_v4 = vshll.u32 %v17775_v51, 16 }
 0x1d7   :  { %v7609_v40 = vrot.slane %v15647_v9, %v17049_v43  ;;  %v7978_v56 = vsel %vm17142_vm10, %v7973_v45, %v7977_v28  ;;  %v8286_v38 = vcombine.high %v17766_v35, %v17766_v35  ;;  %v8294_v15 = vcombine.high %v17768_v17, %v17768_v17  ;;  %v17828_v16 = vld.sshfl [vmem:[#allocation2 + $0x44] sm:$0x13 pattern:$0x76325410] }
 0x1d8   :  { %15143 = vmatpush3.bf16.msra.mxu0 %v15636_v50  ;;  %v8413_v50 = vshll.u32 %v17773_v18, 16  ;;  %v8006_v14 = vsel %vm17142_vm10, %v8001_v55, %v8005_v11  ;;  %v8094_v54 = vcombine.low %v7978_v56, %v7992_v32  ;;  %v8310_v30 = vcombine.high %v17773_v18, %v17773_v18  ;;  %v17830_v27 = vld.sshfl [vmem:[#allocation2 + $0x2c] sm:$0x13 pattern:$0x76325410] }
 0x1d9   :  { %15171 = vmatpush3.bf16.msra.mxu1 %v15631_v7  ;;  %15144 = vmatprep.subr.bf16.mxu0 %v15638_v31  ;;  %v8371_v7 = vshll.u32 %v17766_v35, 16  ;;  %v8095_v37 = vcombine.low %v8006_v14, %v8020_v44  ;;  %v8384_v46 = vrot.slane %v8382_v24, 6  ;;  %v8387_v2 = vrot.slane %v8385_v63, 7  ;;  %v15649_v44 = vld [vmem:[%s19358_s4 + $0x1c8] sm:$0xff]   ;;  %v15651_v63 = vld [vmem:[%s19358_s4 + $0x1c0] sm:$0xff]  }
 0x1da   :  { %15196 = vmatprep.subr.bf16.mxu1 %v15635_v25  ;;  %v8415_v0 = vrot.slane %v8413_v50, 7  ;;  %v8398_v23 = vrot.slane %v8396_v5, 6  ;;  %v8401_v52 = vrot.slane %v8399_v4, 7  ;;  %v7602_v29 = vrot.slane %v15646_v42, %v17049_v43  ;;  %v15656_v42 = vld [vmem:[%s19358_s4 + $0x1a0] sm:$0xff]  }
 0x1db   :  { %v8373_v61 = vrot.slane %v8371_v7, 7  ;;  %v8109_v10 = vrot.slane %v8095_v37, %v17049_v43  ;;  %v8302_v57 = vcombine.high %v17775_v51, %v17775_v51  ;;  %v8388_v48 = vor.u32 %v8387_v2, %v8384_v46  ;;  %v17832_v51 = vld.sshfl [vmem:[#allocation2 + $0x3c] sm:$0x13 pattern:$0x76325410] }
 0x1dc   :  { %15173 = vmatmul.mubr.bf16.vlgmr.msra.gmra.mxu1 %v7781_v6  ;;  %15145 = vmatpush3.bf16.msra.mxu0 %v15638_v31  ;;  %v8412_v31 = vrot.slane %v8410_v8, 6  ;;  %v7610_v39 = vcombine.low %v7602_v29, %v7609_v40  ;;  %v8102_v6 = vrot.slane %v8094_v54, %v17049_v43  ;;  %v8419_v41 = vshll.u32 %v8310_v30, 16  ;;  %v15655_v37 = vld [vmem:[#allocation2 + $0x68] ss:$8 sps:$4 sm:$0x33]   ;;  %v15658_v2 = vld [vmem:[%s19358_s4 + $0x198] sm:$0xff]  }
 0x1dd   :  { %15197 = vmatpush3.bf16.msra.mxu1 %v15635_v25  ;;  %15212 = vmatprep.mubr.bf16.mxu1 %v8456_v21  ;;  %v8370_v25 = vrot.slane %v8368_v20, 6  ;;  %v8402_v21 = vor.u32 %v8401_v52, %v8398_v23  ;;  %v8405_v17 = vshll.u32 %v8302_v57, 16  ;;  %v8389_v28 = vrot.slane %v8388_v48, 2  ;;  %v15654_v46 = vld [vmem:[#allocation2 + $0x58] ss:$8 sps:$4 sm:$0x33]  }
 0x1de   :  { %15198 = vmatprep.subr.bf16.mxu1 %v15637_v58  ;;  %15146 = vmatprep.subr.bf16.mxu0 %v15640_v3  ;;  %v8416_v53 = vor.u32 %v8415_v0, %v8412_v31  ;;  %v8110_v35 = vcombine.low %v8102_v6, %v8109_v10  ;;  %v8421_v11 = vrot.slane %v8419_v41, 7  ;;  %v8064_v32 = vshrl.u32 %v17828_v16, 16  ;;  %v15653_v29 = vld [vmem:[%s19358_s4 + $0x278] sm:$0xff]  }
 0x1df   :  { %v8374_v62 = vor.u32 %v8373_v61, %v8370_v25  ;;  %v8403_v49 = vrot.slane %v8402_v21, 2  ;;  %v8407_v8 = vrot.slane %v8405_v17, 7  ;;  %v8067_v20 = vshll.u32 %v17828_v16, 16  ;;  %v15660_v17 = vld [vmem:[%s19358_s4 + $0x190] sm:$0xff]  }
 0x1e0   :  { %15147 = vmatpush3.bf16.msra.mxu0 %v15640_v3  ;;  %v8391_v3 = vshll.u32 %v8294_v15, 16  ;;  %v8417_v9 = vrot.slane %v8416_v53, 2  ;;  %v8053_v14 = vshll.u32 %v17832_v51, 16  ;;  %v8022_v40 = vshrl.u32 %v17830_v27, 16 }
 0x1e1   :  { %15199 = vmatpush3.bf16.msra.mxu1 %v15637_v58  ;;  %15148 = vmatprep.subr.bf16.mxu0 %v15642_v13  ;;  %v8377_v58 = vshll.u32 %v8286_v38, 16  ;;  %v8375_v45 = vrot.slane %v8374_v62, 2  ;;  %v8025_v38 = vshll.u32 %v17830_v27, 16  ;;  %v8066_v15 = vrot.slane %v8064_v32, 6 }
 0x1e2   :  { %15200 = vmatprep.subr.bf16.mxu1 %v15639_v47  ;;  %v8393_v55 = vrot.slane %v8391_v3, 7  ;;  %v8422_v7 = vsel %vm17142_vm10, %v8417_v9, %v8421_v11  ;;  %v8069_v31 = vrot.slane %v8067_v20, 7  ;;  %v8055_v25 = vrot.slane %v8053_v14, 7 }
 0x1e3   :  { %v8379_v18 = vrot.slane %v8377_v58, 7  ;;  %v7956_v52 = vcombine.high %v17832_v51, %v17832_v51  ;;  %v8024_v10 = vrot.slane %v8022_v40, 6  ;;  %v8027_v57 = vrot.slane %v8025_v38, 7 }
 0x1e4   :  { %15149 = vmatpush3.bf16.msra.mxu0 %v15642_v13  ;;  %v17826_v13 = vld.sshfl [vmem:[#allocation2 + $0x34] sm:$0x13 pattern:$0x76325410]  ;;  %v8394_v4 = vsel %vm17142_vm10, %v8389_v28, %v8393_v55  ;;  %v8070_v53 = vor.u32 %v8069_v31, %v8066_v15  ;;  %v7940_v6 = vcombine.high %v17830_v27, %v17830_v27  ;;  %v8790_v48 = vrot.slane %v15654_v46, %v17049_v43 }
 0x1e5   :  { %15201 = vmatpush3.bf16.msra.mxu1 %v15639_v47  ;;  %15150 = vmatprep.subr.bf16.mxu0 %v15644_v19  ;;  %v15652_v47 = vld [vmem:[%s19358_s4 + $0x1a8] sm:$0xff]   ;;  %v8036_v50 = vshrl.u32 %v17826_v13, 16  ;;  %v8039_v24 = vshll.u32 %v17826_v13, 16  ;;  %v8380_v5 = vsel %vm17142_vm10, %v8375_v45, %v8379_v18  ;;  %v7948_v23 = vcombine.high %v17826_v13, %v17826_v13  ;;  %v15668_v15 = vld [vmem:[#allocation2 + $0x18] ss:$8 sps:$4 sm:$0x33]  }
 0x1e6   :  { %15202 = vmatprep.subr.bf16.mxu1 %v15641_v34  ;;  %v8457_v61 = vcombine.low %v8380_v5, %v8394_v4  ;;  %v8059_v41 = vshll.u32 %v7956_v52, 16  ;;  %v8028_v13 = vor.u32 %v8027_v57, %v8024_v10  ;;  %v8071_v9 = vrot.slane %v8070_v53, 2  ;;  %v17889_v45 = vld.sshfl [vmem:[#allocation2 + $0x68] sm:$0x13 pattern:$0x76325410] }
 0x1e7   :  { %v8038_v0 = vrot.slane %v8036_v50, 6  ;;  %v8041_v54 = vrot.slane %v8039_v24, 7  ;;  %v8045_v21 = vshll.u32 %v7948_v23, 16  ;;  %v8031_v18 = vshll.u32 %v7940_v6, 16  ;;  %v15666_v23 = vld [vmem:[%s19358_s4 + $0x238] sm:$0xff]  }
 0x1e8   :  { %15151 = vmatpush3.bf16.msra.mxu0 %v15644_v19  ;;  %v8050_v19 = vshrl.u32 %v17832_v51, 16  ;;  %v15662_v51 = vld [vmem:[%s19358_s4 + $0x188] sm:$0xff]   ;;  %v17891_v11 = vld.sshfl [vmem:[#allocation2 + $0x70] sm:$0x13 pattern:$0x76325410]  ;;  %v8626_v10 = vrot.slane %v15668_v15, %v17049_v43  ;;  %v9304_v57 = vcombine.high %v17889_v45, %v17889_v45 }
 0x1e9   :  { %15203 = vmatpush3.bf16.msra.mxu1 %v15641_v34  ;;  %15176 = vmatprep.subr.bf16.mxu0 %v15648_v33  ;;  %v8408_v34 = vsel %vm17142_vm10, %v8403_v49, %v8407_v8  ;;  %v8042_v58 = vor.u32 %v8041_v54, %v8038_v0  ;;  %v8047_v28 = vrot.slane %v8045_v21, 7  ;;  %v8061_v49 = vrot.slane %v8059_v41, 7  ;;  %v14013_v32 = vld.sshfl [vmem:[#allocation2 + $0x60] sm:$0x13 pattern:$0x76325410] }
 0x1ea   :  { %15204 = vmatprep.subr.bf16.mxu1 %v15643_v22  ;;  %v8458_v56 = vcombine.low %v8408_v34, %v8422_v7  ;;  %v8052_v30 = vrot.slane %v8050_v19, 6  ;;  %v8029_v8 = vrot.slane %v8028_v13, 2  ;;  %v8033_v20 = vrot.slane %v8031_v18, 7  ;;  %v15664_v34 = vld [vmem:[%s19358_s4 + $0x180] sm:$0xff]   ;;  %v15670_v41 = vld [vmem:[%s19358_s4 + $0x230] sm:$0xff]  }
 0x1eb   :  { %15153 = vmatmul.mubr.bf16.vlgmr.msra.gmra.mxu0 %v7610_v39  ;;  %v8797_v39 = vrot.slane %v15655_v37, %v17049_v43  ;;  %v8043_v55 = vrot.slane %v8042_v58, 2  ;;  %v17902_v19 = vld.sshfl [vmem:[#allocation2 + $0x58] sm:$0x13 pattern:$0x76325410]  ;;  %v9374_v14 = vshrl.u32 %v17889_v45, 16  ;;  %v9312_v53 = vcombine.high %v17891_v11, %v17891_v11 }
 0x1ec   :  { %15177 = vmatpush3.bf16.msra.mxu0 %v15648_v33  ;;  %15192 = vmatprep.mubr.bf16.mxu0 %v8110_v35  ;;  %v7964_v33 = vcombine.high %v17828_v16, %v17828_v16  ;;  %v8056_v3 = vor.u32 %v8055_v25, %v8052_v30  ;;  %v15657_v35 = vld [vmem:[%s19358_s4 + $0x270] sm:$0xff]   ;;  %v9388_v5 = vshrl.u32 %v17891_v11, 16  ;;  %v9391_v4 = vshll.u32 %v17891_v11, 16  ;;  %v15661_v37 = vld [vmem:[%s19358_s4 + $0x260] sm:$0xff]  }
 0x1ed   :  { %15205 = vmatpush3.bf16.msra.mxu1 %v15643_v22  ;;  %15178 = vmatprep.subr.bf16.mxu0 %v15650_v59  ;;  %v8472_v22 = vrot.slane %v8458_v56, %v17049_v43  ;;  %v8798_v16 = vcombine.low %v8790_v48, %v8797_v39  ;;  %v8048_v7 = vsel %vm17142_vm10, %v8043_v55, %v8047_v28  ;;  %v9360_v40 = vshrl.u32 %v14013_v32, 16  ;;  %v15667_v0 = vld [vmem:[#allocation2 + $0x8] ss:$8 sps:$4 sm:$0x33]  }
 0x1ee   :  { %15206 = vmatprep.subr.bf16.mxu1 %v15645_v36  ;;  %v8073_v62 = vshll.u32 %v7964_v33, 16  ;;  %v8057_v27 = vrot.slane %v8056_v3, 2  ;;  %v9363_v56 = vshll.u32 %v14013_v32, 16  ;;  %v8034_v38 = vsel %vm17142_vm10, %v8029_v8, %v8033_v20 }
 0x1ef   :  { %v8111_v31 = vcombine.low %v8034_v38, %v8048_v7  ;;  %v9346_v54 = vshrl.u32 %v17902_v19, 16  ;;  %v9349_v30 = vshll.u32 %v17902_v19, 16  ;;  %v9376_v25 = vrot.slane %v9374_v14, 6 }
 0x1f0   :  { %15179 = vmatpush3.bf16.msra.mxu0 %v15650_v59  ;;  %v8465_v59 = vrot.slane %v8457_v61, %v17049_v43  ;;  %v8062_v24 = vsel %vm17142_vm10, %v8057_v27, %v8061_v49  ;;  %v9390_v33 = vrot.slane %v9388_v5, 6  ;;  %v9393_v46 = vrot.slane %v9391_v4, 7  ;;  %v17940_v55 = vld.sshfl [vmem:[#allocation2 + $0x18] sm:$0x13 pattern:$0x76325410] }
 0x1f1   :  { %15207 = vmatpush3.bf16.msra.mxu1 %v15645_v36  ;;  %15180 = vmatprep.subr.bf16.mxu0 %v15652_v47  ;;  %v9362_v52 = vrot.slane %v9360_v40, 6  ;;  %v8119_v39 = vrot.slane %v8111_v31, %v17049_v43  ;;  %v8619_v6 = vrot.slane %v15667_v0, %v17049_v43  ;;  %v9296_v58 = vcombine.high %v14013_v32, %v14013_v32  ;;  %v17944_v28 = vld.sshfl [vmem:[#allocation2 + $0x20] sm:$0x13 pattern:$0x76325410]  ;;  %v15672_v49 = vld [vmem:[%s19358_s4 + $0x228] sm:$0xff]  }
 0x1f2   :  { %15208 = vmatprep.subr.bf16.mxu1 %v15649_v44  ;;  %v8473_v36 = vcombine.low %v8465_v59, %v8472_v22  ;;  %v9365_v22 = vrot.slane %v9363_v56, 7  ;;  %v9348_v3 = vrot.slane %v9346_v54, 6  ;;  %v9351_v59 = vrot.slane %v9349_v30, 7  ;;  %v15674_v5 = vld [vmem:[#allocation2 + $0x90] ss:$8 sps:$4 sm:$0x33]  }
 0x1f3   :  { %v9394_v48 = vor.u32 %v9393_v46, %v9390_v33  ;;  %v8627_v13 = vcombine.low %v8619_v6, %v8626_v10  ;;  %v9369_v18 = vshll.u32 %v9296_v58, 16  ;;  %v17949_v8 = vld.sshfl [vmem:[#allocation2 + $0x8] sm:$0x13 pattern:$0x76325410]  ;;  %v9028_v7 = vshrl.u32 %v17940_v55, 16 }
 0x1f4   :  { %15181 = vmatpush3.bf16.msra.mxu0 %v15652_v47  ;;  %v8075_v47 = vrot.slane %v8073_v62, 7  ;;  %v9352_v27 = vor.u32 %v9351_v59, %v9348_v3  ;;  %v9042_v14 = vshrl.u32 %v17944_v28, 16  ;;  %v15671_v31 = vld [vmem:[%s19358_s4 + $0x240] sm:$0xff]   ;;  %v9000_v0 = vshrl.u32 %v17949_v8, 16  ;;  %v15678_v10 = vld [vmem:[%s19358_s4 + $0x218] sm:$0xff]  }
 0x1f5   :  { %15209 = vmatpush3.bf16.msra.mxu1 %v15649_v44  ;;  %15182 = vmatprep.subr.bf16.mxu0 %v15656_v42  ;;  %v15659_v44 = vld [vmem:[%s19358_s4 + $0x268] sm:$0xff]   ;;  %v9003_v54 = vshll.u32 %v17949_v8, 16  ;;  %v9030_v30 = vrot.slane %v9028_v7, 6  ;;  %v15675_v6 = vld [vmem:[%s19358_s4 + $0x2f8] sm:$0xff]   ;;  %vm10746_vm11 = vsmask.f32 256 }
 0x1f6   :  { %15210 = vmatprep.subr.bf16.mxu1 %v15651_v63  ;;  %v8076_v50 = vsel %vm17142_vm10, %v8071_v9, %v8075_v47  ;;  %v9383_v9 = vshll.u32 %v9304_v57, 16  ;;  %v9395_v47 = vrot.slane %v9394_v48, 2  ;;  %v9353_v4 = vrot.slane %v9352_v27, 2 }
 0x1f7   :  { %v9044_v33 = vrot.slane %v9042_v14, 6  ;;  %v8966_v57 = vcombine.high %v17944_v28, %v17944_v28  ;;  %v9002_v3 = vrot.slane %v9000_v0, 6  ;;  %v9005_v59 = vrot.slane %v9003_v54, 7 }
 0x1f8   :  { %15183 = vmatpush3.bf16.msra.mxu0 %v15656_v42  ;;  %v8112_v42 = vcombine.low %v8062_v24, %v8076_v50  ;;  %v15669_v50 = vld [vmem:[%s19358_s4 + $0x248] sm:$0xff]   ;;  %v9385_v32 = vrot.slane %v9383_v9, 7  ;;  %v9031_v24 = vshll.u32 %v17940_v55, 16  ;;  %vm10747_vm12 = vsmask.f32 1284 }
 0x1f9   :  { %15211 = vmatpush3.bf16.msra.mxu1 %v15651_v63  ;;  %15184 = vmatprep.subr.bf16.mxu0 %v15658_v2  ;;  %v9377_v63 = vshll.u32 %v17889_v45, 16  ;;  %v17942_v45 = vld.sshfl [vmem:[#allocation2 + $0x10] sm:$0x13 pattern:$0x76325410]  ;;  %v9051_v9 = vshll.u32 %v8966_v57, 16  ;;  %v9006_v27 = vor.u32 %v9005_v59, %v9002_v3  ;;  %vm10748_vm13 = vmor %vm10746_vm11, %vm10747_vm12 }
 0x1fa   :  { %15236 = vmatprep.subr.bf16.mxu1 %v15653_v29  ;;  %v9014_v38 = vshrl.u32 %v17942_v45, 16  ;;  %v9017_v15 = vshll.u32 %v17942_v45, 16  ;;  %v8950_v58 = vcombine.high %v17942_v45, %v17942_v45  ;;  %v18007_v7 = vld.sshfl [vmem:[#allocation2 + $0x80] sm:$0x13 pattern:$0x76325410] }
 0x1fb   :  { %v9379_v61 = vrot.slane %v9377_v63, 7  ;;  %v9045_v63 = vshll.u32 %v17944_v28, 16  ;;  %v15682_v28 = vld [vmem:[%s19358_s4 + $0x208] sm:$0xff]   ;;  %v9007_v14 = vrot.slane %v9006_v27, 2  ;;  %v15683_v59 = vld [vmem:[%s19358_s4 + $0x2d8] sm:$0xff]  }
 0x1fc   :  { %15213 = vmatmul.mubr.bf16.vlgmr.msra.gmra.mxu1 %v8473_v36  ;;  %15185 = vmatpush3.bf16.msra.mxu0 %v15658_v2  ;;  %v8126_v2 = vrot.slane %v8112_v42, %v17049_v43  ;;  %v9288_v36 = vcombine.high %v17902_v19, %v17902_v19  ;;  %v9371_v19 = vrot.slane %v9369_v18, 7  ;;  %v15677_v18 = vld [vmem:[%s19358_s4 + $0x2f0] sm:$0xff]   ;;  %vm10749_vm14 = vsmask.f32 2312 }
 0x1fd   :  { %15237 = vmatpush3.bf16.msra.mxu1 %v15653_v29  ;;  %15252 = vmatprep.mubr.bf16.mxu1 %v8798_v16  ;;  %v15663_v29 = vld [vmem:[%s19358_s4 + $0x258] sm:$0xff]   ;;  %v9380_v62 = vor.u32 %v9379_v61, %v9376_v25  ;;  %v9397_v16 = vshll.u32 %v9312_v53, 16  ;;  %v9033_v25 = vrot.slane %v9031_v24, 7  ;;  %v9047_v46 = vrot.slane %v9045_v63, 7  ;;  %vm10750_vm15 = vmor %vm10748_vm13, %vm10749_vm14 }
 0x1fe   :  { %15238 = vmatprep.subr.bf16.mxu1 %v15657_v35  ;;  %15186 = vmatprep.subr.bf16.mxu0 %v15660_v17  ;;  %v8127_v21 = vcombine.low %v8119_v39, %v8126_v2  ;;  %v9355_v11 = vshll.u32 %v9288_v36, 16  ;;  %v15673_v2 = vld [vmem:[#allocation2 + $0x80] ss:$8 sps:$4 sm:$0x33]   ;;  %v9016_v53 = vrot.slane %v9014_v38, 6  ;;  %v9019_v39 = vrot.slane %v9017_v15, 7 }
 0x1ff   :  { %v9399_v20 = vrot.slane %v9397_v16, 7  ;;  %v8942_v36 = vcombine.high %v17949_v8, %v17949_v8  ;;  %v18009_v24 = vld.sshfl [vmem:[#allocation2 + $0x90] sm:$0x13 pattern:$0x76325410]  ;;  %v15684_v15 = vld [vmem:[%s19358_s4 + $0x200] sm:$0xff]  }
 0x200   :  { %15187 = vmatpush3.bf16.msra.mxu0 %v15660_v17  ;;  %v15665_v17 = vld [vmem:[%s19358_s4 + $0x250] sm:$0xff]   ;;  %v9357_v40 = vrot.slane %v9355_v11, 7  ;;  %v18003_v11 = vld.sshfl [vmem:[#allocation2 + $0x88] sm:$0x13 pattern:$0x76325410] }
 0x201   :  { %15239 = vmatpush3.bf16.msra.mxu1 %v15657_v35  ;;  %15188 = vmatprep.subr.bf16.mxu0 %v15662_v51  ;;  %v9366_v35 = vor.u32 %v9365_v22, %v9362_v52  ;;  %v9400_v42 = vsel %vm17142_vm10, %v9395_v47, %v9399_v20  ;;  %v8958_v22 = vcombine.high %v17940_v55, %v17940_v55  ;;  %v15680_v55 = vld [vmem:[%s19358_s4 + $0x210] sm:$0xff]   ;;  %v9053_v20 = vrot.slane %v9051_v9, 7 }
 0x202   :  { %15240 = vmatprep.subr.bf16.mxu1 %v15659_v44  ;;  %v9358_v52 = vsel %vm17142_vm10, %v9353_v4, %v9357_v40  ;;  %v9416_v4 = vshrl.u32 %v18003_v11, 16  ;;  %v9430_v0 = vshrl.u32 %v18009_v24, 16  ;;  %v9433_v54 = vshll.u32 %v18009_v24, 16 }
 0x203   :  { %vm10751_vm1 = vsmask.f32 3340  ;;  %vm10753_vm3 = vsmask.f32 4368  ;;  %vm10755_vm5 = vsmask.f32 5396 }
 0x204   :  { %15189 = vmatpush3.bf16.msra.mxu0 %v15662_v51  ;;  %v9381_v51 = vrot.slane %v9380_v62, 2  ;;  %v9034_v62 = vor.u32 %v9033_v25, %v9030_v30  ;;  %v15681_v30 = vld [vmem:[%s19358_s4 + $0x2e0] sm:$0xff]   ;;  %v15686_v25 = vld [vmem:[#allocation2 + $0x30] ss:$8 sps:$4 sm:$0x33]   ;;  %v9435_v3 = vrot.slane %v9433_v54, 7  ;;  %vm10752_vm2 = vmor %vm10750_vm15, %vm10751_vm1 }
 0x205   :  { %15241 = vmatpush3.bf16.msra.mxu1 %v15659_v44  ;;  %15190 = vmatprep.subr.bf16.mxu0 %v15664_v34  ;;  %v9367_v44 = vrot.slane %v9366_v35, 2  ;;  %v9037_v35 = vshll.u32 %v8958_v22, 16  ;;  %vm10754_vm4 = vmor %vm10752_vm2, %vm10753_vm3  ;;  %vm10757_vm7 = vsmask.f32 6424  ;;  %vm10759_vm9 = vsmask.f32 7452 }
 0x206   :  { %15242 = vmatprep.subr.bf16.mxu1 %v15661_v37  ;;  %v9035_v47 = vrot.slane %v9034_v62, 2  ;;  %v8636_v62 = vrot.slane %v15686_v25, %v17049_v43  ;;  %v15696_v25 = vld [vmem:[%s19358_s4 + $0x2a0] sm:$0xff]   ;;  %vm10756_vm6 = vmor %vm10754_vm4, %vm10755_vm5 }
 0x207   :  { %v9372_v56 = vsel %vm17142_vm10, %v9367_v44, %v9371_v19  ;;  %v9009_v44 = vshll.u32 %v8942_v36, 16  ;;  %v9039_v8 = vrot.slane %v9037_v35, 7  ;;  %v15679_v19 = vld [vmem:[%s19358_s4 + $0x2e8] sm:$0xff]   ;;  %v9320_v36 = vcombine.high %v18007_v7, %v18007_v7  ;;  %vm10758_vm8 = vmor %vm10756_vm6, %vm10757_vm7 }
 0x208   :  { %15191 = vmatpush3.bf16.msra.mxu0 %v15664_v34  ;;  %v9386_v34 = vsel %vm17142_vm10, %v9381_v51, %v9385_v32  ;;  %v9023_v51 = vshll.u32 %v8950_v58, 16  ;;  %v9432_v58 = vrot.slane %v9430_v0, 6  ;;  %v9336_v35 = vcombine.high %v18009_v24, %v18009_v24  ;;  %v15692_v24 = vld [vmem:[%s19358_s4 + $0x2a8] sm:$0xff]  }
 0x209   :  { %15243 = vmatpush3.bf16.msra.mxu1 %v15661_v37  ;;  %15216 = vmatprep.subr.bf16.mxu0 %v15666_v23  ;;  %v15676_v37 = vld [vmem:[%s19358_s4 + $0x220] sm:$0xff]   ;;  %v9475_v61 = vcombine.low %v9386_v34, %v9400_v42  ;;  %v9419_v42 = vshll.u32 %v18003_v11, 16  ;;  %v9011_v38 = vrot.slane %v9009_v44, 7 }
 0x20a   :  { %15244 = vmatprep.subr.bf16.mxu1 %v15663_v29  ;;  %v9025_v63 = vrot.slane %v9023_v51, 7  ;;  %v9436_v27 = vor.u32 %v9435_v3, %v9432_v58  ;;  %v15694_v3 = vld [vmem:[#allocation2 + $0x5c] ss:$8 sps:$4 sm:$0x33]  }
 0x20b   :  { %15193 = vmatmul.mubr.bf16.vlgmr.msra.gmra.mxu0 %v8127_v21  ;;  %v9489_v48 = vrot.slane %v9475_v61, %v17049_v43  ;;  %v9048_v21 = vor.u32 %v9047_v46, %v9044_v33  ;;  %v9012_v61 = vsel %vm17142_vm10, %v9007_v14, %v9011_v38  ;;  %v9402_v46 = vshrl.u32 %v18007_v7, 16 }
 0x20c   :  { %15217 = vmatpush3.bf16.msra.mxu0 %v15666_v23  ;;  %15232 = vmatprep.mubr.bf16.mxu0 %v8627_v13  ;;  %v8814_v23 = vrot.slane %v15674_v5, %v17049_v43  ;;  %v9020_v13 = vor.u32 %v9019_v39, %v9016_v53  ;;  %v9040_v5 = vsel %vm17142_vm10, %v9035_v47, %v9039_v8  ;;  %v15688_v53 = vld [vmem:[%s19358_s4 + $0x2b8] sm:$0xff]   ;;  %v15685_v47 = vld [vmem:[%s19358_s4 + $0x2d0] sm:$0xff]   ;;  %v9439_v8 = vshll.u32 %v9336_v35, 16 }
 0x20d   :  { %15245 = vmatpush3.bf16.msra.mxu1 %v15663_v29  ;;  %15218 = vmatprep.subr.bf16.mxu0 %v15670_v41  ;;  %v9474_v29 = vcombine.low %v9358_v52, %v9372_v56  ;;  %v9421_v52 = vrot.slane %v9419_v42, 7  ;;  %v9328_v39 = vcombine.high %v18003_v11, %v18003_v11  ;;  %v9411_v11 = vshll.u32 %v9320_v36, 16 }
 0x20e   :  { %15246 = vmatprep.subr.bf16.mxu1 %v15665_v17  ;;  %v9021_v32 = vrot.slane %v9020_v13, 2  ;;  %v9437_v14 = vrot.slane %v9436_v27, 2 }
 0x210   :  { %15219 = vmatpush3.bf16.msra.mxu0 %v15670_v41  ;;  %v8807_v41 = vrot.slane %v15673_v2, %v17049_v43  ;;  %v9405_v2 = vshll.u32 %v18007_v7, 16  ;;  %v18066_v7 = vld.sshfl [vmem:[#allocation2 + $0x40] sm:$0x13 pattern:$0x76325410] }
 0x211   :  { %15247 = vmatpush3.bf16.msra.mxu1 %v15665_v17  ;;  %15220 = vmatprep.subr.bf16.mxu0 %v15672_v49  ;;  %v9482_v17 = vrot.slane %v9474_v29, %v17049_v43  ;;  %v9084_v0 = vshrl.u32 %v18066_v7, 16  ;;  %v9087_v54 = vshll.u32 %v18066_v7, 16  ;;  %v8990_v35 = vcombine.high %v18066_v7, %v18066_v7 }
 0x212   :  { %15248 = vmatprep.subr.bf16.mxu1 %v15669_v50  ;;  %v8815_v16 = vcombine.low %v8807_v41, %v8814_v23  ;;  %v9418_v23 = vrot.slane %v9416_v4, 6  ;;  %v9407_v41 = vrot.slane %v9405_v2, 7 }
 0x213   :  { %v9490_v45 = vcombine.low %v9482_v17, %v9489_v48  ;;  %v9089_v58 = vrot.slane %v9087_v54, 7 }
 0x214   :  { %15221 = vmatpush3.bf16.msra.mxu0 %v15672_v49  ;;  %v9049_v49 = vrot.slane %v9048_v21, 2  ;;  %v9404_v21 = vrot.slane %v9402_v46, 6  ;;  %v9422_v17 = vor.u32 %v9421_v52, %v9418_v23  ;;  %v15691_v46 = vld [vmem:[%s19358_s4 + $0x2c0] sm:$0xff]  }
 0x215   :  { %15249 = vmatpush3.bf16.msra.mxu1 %v15669_v50  ;;  %15222 = vmatprep.subr.bf16.mxu0 %v15676_v37  ;;  %v18005_v50 = vld.sshfl [vmem:[#allocation2 + $0x98] sm:$0x13 pattern:$0x76325410] }
 0x216   :  { %15250 = vmatprep.subr.bf16.mxu1 %v15671_v31  ;;  %v9054_v34 = vsel %vm17142_vm10, %v9049_v49, %v9053_v20  ;;  %v9444_v40 = vshrl.u32 %v18005_v50, 16  ;;  %v9447_v56 = vshll.u32 %v18005_v50, 16  ;;  %v18060_v49 = vld.sshfl [vmem:[#allocation2 + $0x48] sm:$0x13 pattern:$0x76325410] }
 0x217   :  { %v9129_v33 = vcombine.low %v9040_v5, %v9054_v34  ;;  %v9423_v44 = vrot.slane %v9422_v17, 2  ;;  %v18064_v20 = vld.sshfl [vmem:[#allocation2 + $0x30] sm:$0x13 pattern:$0x76325410]  ;;  %v15689_v5 = vld [vmem:[%s19358_s4 + $0x2c8] sm:$0xff]  }
 0x218   :  { %15223 = vmatpush3.bf16.msra.mxu0 %v15676_v37  ;;  %v15687_v37 = vld [vmem:[#allocation2 + $0x40] ss:$8 sps:$4 sm:$0x33]   ;;  %v9446_v22 = vrot.slane %v9444_v40, 6  ;;  %v9449_v29 = vrot.slane %v9447_v56, 7  ;;  %v9098_v34 = vshrl.u32 %v18060_v49, 16 }
 0x219   :  { %15251 = vmatpush3.bf16.msra.mxu1 %v15671_v31  ;;  %15224 = vmatprep.subr.bf16.mxu0 %v15678_v10  ;;  %v9026_v31 = vsel %vm17142_vm10, %v9021_v32, %v9025_v63  ;;  %v9143_v48 = vrot.slane %v9129_v33, %v17049_v43  ;;  %v18062_v32 = vld.sshfl [vmem:[#allocation2 + $0x38] sm:$0x13 pattern:$0x76325410]  ;;  %v9101_v42 = vshll.u32 %v18060_v49, 16  ;;  %v9413_v40 = vrot.slane %v9411_v11, 7 }
 0x21a   :  { %15276 = vmatprep.subr.bf16.mxu1 %v15675_v6  ;;  %v9128_v57 = vcombine.low %v9012_v61, %v9026_v31  ;;  %v9450_v13 = vor.u32 %v9449_v29, %v9446_v22  ;;  %v9073_v31 = vshll.u32 %v18062_v32, 16  ;;  %v9056_v61 = vshrl.u32 %v18064_v20, 16 }
 0x21b   :  { %v9059_v33 = vshll.u32 %v18064_v20, 16  ;;  %v9100_v52 = vrot.slane %v9098_v34, 6  ;;  %v9103_v22 = vrot.slane %v9101_v42, 7  ;;  %v8982_v36 = vcombine.high %v18062_v32, %v18062_v32 }
 0x21c   :  { %15253 = vmatmul.mubr.bf16.vlgmr.msra.gmra.mxu1 %v8815_v16  ;;  %15225 = vmatpush3.bf16.msra.mxu0 %v15678_v10  ;;  %v8643_v10 = vrot.slane %v15687_v37, %v17049_v43  ;;  %v9136_v9 = vrot.slane %v9128_v57, %v17049_v43  ;;  %v9441_v37 = vrot.slane %v9439_v8, 7  ;;  %v8998_v57 = vcombine.high %v18060_v49, %v18060_v49  ;;  %v15700_v49 = vld [vmem:[%s19358_s4 + $0x290] sm:$0xff]  }
 0x21d   :  { %15277 = vmatpush3.bf16.msra.mxu1 %v15675_v6  ;;  %15292 = vmatprep.mubr.bf16.mxu1 %v9490_v45  ;;  %v9344_v6 = vcombine.high %v18005_v50, %v18005_v50  ;;  %v9451_v50 = vrot.slane %v9450_v13, 2  ;;  %v9104_v17 = vor.u32 %v9103_v22, %v9100_v52  ;;  %v9079_v11 = vshll.u32 %v8982_v36, 16  ;;  %v18128_v34 = vld.sshfl [vmem:[#allocation2 + $0x74] sm:$0x13 pattern:$0x76325410] }
 0x21e   :  { %15278 = vmatprep.subr.bf16.mxu1 %v15677_v18  ;;  %15226 = vmatprep.subr.bf16.mxu0 %v15680_v55  ;;  %v8644_v16 = vcombine.low %v8636_v62, %v8643_v10  ;;  %v9144_v45 = vcombine.low %v9136_v9, %v9143_v48  ;;  %v15695_v10 = vld [vmem:[#allocation2 + $0x6c] ss:$8 sps:$4 sm:$0x33]   ;;  %v9058_v62 = vrot.slane %v9056_v61, 6  ;;  %v9061_v48 = vrot.slane %v9059_v33, 7 }
 0x21f   :  { %v9453_v51 = vshll.u32 %v9344_v6, 16  ;;  %v9086_v6 = vrot.slane %v9084_v0, 6  ;;  %v9831_v13 = vrot.slane %v15695_v10, %v17049_v43  ;;  %v8974_v9 = vcombine.high %v18064_v20, %v18064_v20  ;;  %v15699_v20 = vld [vmem:[%s19358_s4 + $0x368] sm:$0xff]  }
 0x220   :  { %15227 = vmatpush3.bf16.msra.mxu0 %v15680_v55  ;;  %v9425_v55 = vshll.u32 %v9328_v39, 16  ;;  %v9075_v39 = vrot.slane %v9073_v31, 7  ;;  %v9107_v27 = vshll.u32 %v8998_v57, 16  ;;  %v9105_v8 = vrot.slane %v9104_v17, 2 }
 0x221   :  { %15279 = vmatpush3.bf16.msra.mxu1 %v15677_v18  ;;  %15228 = vmatprep.subr.bf16.mxu0 %v15682_v28  ;;  %v15690_v18 = vld [vmem:[%s19358_s4 + $0x2b0] sm:$0xff]   ;;  %v9455_v63 = vrot.slane %v9453_v51, 7  ;;  %v9824_v51 = vrot.slane %v15694_v3, %v17049_v43  ;;  %v9081_v42 = vrot.slane %v9079_v11, 7  ;;  %v10422_v54 = vshrl.u32 %v18128_v34, 16 }
 0x222   :  { %15280 = vmatprep.subr.bf16.mxu1 %v15679_v19 }
 0x223   :  { %v9456_v38 = vsel %vm17142_vm10, %v9451_v50, %v9455_v63  ;;  %v9832_v50 = vcombine.low %v9824_v51, %v9831_v13  ;;  %v15702_v63 = vld [vmem:[%s19358_s4 + $0x288] sm:$0xff]   ;;  %v10424_v3 = vrot.slane %v10422_v54, 6 }
 0x224   :  { %15229 = vmatpush3.bf16.msra.mxu0 %v15682_v28  ;;  %v9408_v28 = vor.u32 %v9407_v41, %v9404_v21  ;;  %v15693_v41 = vld [vmem:[%s19358_s4 + $0x378] sm:$0xff]  }
 0x225   :  { %15281 = vmatpush3.bf16.msra.mxu1 %v15679_v19  ;;  %15230 = vmatprep.subr.bf16.mxu0 %v15684_v15  ;;  %v9427_v19 = vrot.slane %v9425_v55, 7  ;;  %v9090_v55 = vor.u32 %v9089_v58, %v9086_v6 }
 0x226   :  { %15282 = vmatprep.subr.bf16.mxu1 %v15681_v30  ;;  %v9409_v4 = vrot.slane %v9408_v28, 2  ;;  %v15697_v28 = vld [vmem:[%s19358_s4 + $0x370] sm:$0xff]  }
 0x227   :  { %v9428_v56 = vsel %vm17142_vm10, %v9423_v44, %v9427_v19  ;;  %v9093_v44 = vshll.u32 %v8990_v35, 16  ;;  %v9109_v19 = vrot.slane %v9107_v27, 7  ;;  %v15703_v35 = vld [vmem:[%s19358_s4 + $0x358] sm:$0xff]  }
 0x228   :  { %15231 = vmatpush3.bf16.msra.mxu0 %v15684_v15  ;;  %v9070_v15 = vshrl.u32 %v18062_v32, 16  ;;  %v9414_v2 = vsel %vm17142_vm10, %v9409_v4, %v9413_v40  ;;  %v9065_v32 = vshll.u32 %v8974_v9, 16  ;;  %v15708_v4 = vld [vmem:[#allocation2 + $0x1c] ss:$8 sps:$4 sm:$0x33]  }
 0x229   :  { %15283 = vmatpush3.bf16.msra.mxu1 %v15681_v30  ;;  %15256 = vmatprep.subr.bf16.mxu0 %v15688_v53  ;;  %v9442_v30 = vsel %vm17142_vm10, %v9437_v14, %v9441_v37  ;;  %v9491_v29 = vcombine.low %v9414_v2, %v9428_v56  ;;  %v18123_v14 = vld.sshfl [vmem:[#allocation2 + $0x5c] sm:$0x13 pattern:$0x76325410]  ;;  %v9095_v40 = vrot.slane %v9093_v44, 7  ;;  %v9110_v56 = vsel %vm17142_vm10, %v9105_v8, %v9109_v19  ;;  %v15705_v44 = vld [vmem:[%s19358_s4 + $0x350] sm:$0xff]  }
 0x22a   :  { %15284 = vmatprep.subr.bf16.mxu1 %v15683_v59  ;;  %v9492_v23 = vcombine.low %v9442_v30, %v9456_v38  ;;  %v14125_v37 = vld.sshfl [vmem:[#allocation2 + $0x64] sm:$0x13 pattern:$0x76325410]  ;;  %v9067_v38 = vrot.slane %v9065_v32, 7  ;;  %v10425_v30 = vshll.u32 %v18128_v34, 16  ;;  %v10322_v6 = vcombine.high %v18123_v14, %v18123_v14 }
 0x22b   :  { %15233 = vmatmul.mubr.bf16.vlgmr.msra.gmra.mxu0 %v8644_v16  ;;  %v9499_v16 = vrot.slane %v9491_v29, %v17049_v43  ;;  %v10383_v2 = vshll.u32 %v18123_v14, 16  ;;  %v10394_v52 = vshrl.u32 %v14125_v37, 16  ;;  %v10397_v22 = vshll.u32 %v14125_v37, 16 }
 0x22c   :  { %15257 = vmatpush3.bf16.msra.mxu0 %v15688_v53  ;;  %15272 = vmatprep.mubr.bf16.mxu0 %v9144_v45  ;;  %v9072_v53 = vrot.slane %v9070_v15, 6  ;;  %v9506_v21 = vrot.slane %v9492_v23, %v17049_v43  ;;  %v14126_v15 = vld.sshfl [vmem:[#allocation2 + $0x6c] sm:$0x13 pattern:$0x76325410]  ;;  %v15701_v23 = vld [vmem:[%s19358_s4 + $0x360] sm:$0xff]   ;;  %v10330_v58 = vcombine.high %v14125_v37, %v14125_v37 }
 0x22d   :  { %15285 = vmatpush3.bf16.msra.mxu1 %v15683_v59  ;;  %15258 = vmatprep.subr.bf16.mxu0 %v15690_v18  ;;  %v15698_v59 = vld [vmem:[%s19358_s4 + $0x298] sm:$0xff]   ;;  %v10408_v29 = vshrl.u32 %v14126_v15, 16  ;;  %v10411_v10 = vshll.u32 %v14126_v15, 16  ;;  %v10385_v36 = vrot.slane %v10383_v2, 7  ;;  %v10396_v17 = vrot.slane %v10394_v52, 6  ;;  %v15716_v2 = vld [vmem:[%s19358_s4 + $0x320] sm:$0xff]  }
 0x22e   :  { %15286 = vmatprep.subr.bf16.mxu1 %v15685_v47  ;;  %v9507_v45 = vcombine.low %v9499_v16, %v9506_v21  ;;  %v10346_v21 = vcombine.high %v18128_v34, %v18128_v34  ;;  %v10399_v13 = vrot.slane %v10397_v22, 7  ;;  %v10338_v27 = vcombine.high %v14126_v15, %v14126_v15  ;;  %v18170_v19 = vld.sshfl [vmem:[#allocation2 + $0x14] sm:$0x13 pattern:$0x76325410]  ;;  %v15711_v22 = vld [vmem:[%s19358_s4 + $0x340] sm:$0xff]  }
 0x22f   :  { %v10410_v9 = vrot.slane %v10408_v29, 6  ;;  %v10413_v16 = vrot.slane %v10411_v10, 7  ;;  %v10403_v11 = vshll.u32 %v10330_v58, 16  ;;  %v15714_v29 = vld [vmem:[#allocation2 + $0x94] ss:$8 sps:$4 sm:$0x33]  }
 0x230   :  { %15259 = vmatpush3.bf16.msra.mxu0 %v15690_v18  ;;  %v9076_v18 = vor.u32 %v9075_v39, %v9072_v53  ;;  %v15707_v53 = vld [vmem:[#allocation2 + $0xc] ss:$8 sps:$4 sm:$0x33]   ;;  %v9660_v39 = vrot.slane %v15708_v4, %v17049_v43 }
 0x231   :  { %15287 = vmatpush3.bf16.msra.mxu1 %v15685_v47  ;;  %15260 = vmatprep.subr.bf16.mxu0 %v15692_v24  ;;  %v9062_v47 = vor.u32 %v9061_v48, %v9058_v62  ;;  %v15706_v48 = vld [vmem:[%s19358_s4 + $0x338] sm:$0xff]   ;;  %v10414_v32 = vor.u32 %v10413_v16, %v10410_v9  ;;  %v15712_v4 = vld [vmem:[%s19358_s4 + $0x328] sm:$0xff]   ;;  %v9848_v9 = vrot.slane %v15714_v29, %v17049_v43 }
 0x232   :  { %15288 = vmatprep.subr.bf16.mxu1 %v15689_v5  ;;  %v9077_v7 = vrot.slane %v9076_v18, 2  ;;  %v15715_v16 = vld [vmem:[%s19358_s4 + $0x3f8] sm:$0xff]  }
 0x234   :  { %15261 = vmatpush3.bf16.msra.mxu0 %v15692_v24  ;;  %v9091_v24 = vrot.slane %v9090_v55, 2  ;;  %v9082_v31 = vsel %vm17142_vm10, %v9077_v7, %v9081_v42  ;;  %v9653_v55 = vrot.slane %v15707_v53, %v17049_v43  ;;  %v18168_v7 = vld.sshfl [vmem:[#allocation2 + $0xc] sm:$0x13 pattern:$0x76325410]  ;;  %v10405_v42 = vrot.slane %v10403_v11, 7 }
 0x235   :  { %15289 = vmatpush3.bf16.msra.mxu1 %v15689_v5  ;;  %15262 = vmatprep.subr.bf16.mxu0 %v15696_v25  ;;  %v9063_v5 = vrot.slane %v9062_v47, 2 }
 0x236   :  { %15290 = vmatprep.subr.bf16.mxu1 %v15691_v46  ;;  %v9096_v0 = vsel %vm17142_vm10, %v9091_v24, %v9095_v40  ;;  %v10417_v24 = vshll.u32 %v10338_v27, 16  ;;  %v15709_v40 = vld [vmem:[%s19358_s4 + $0x348] sm:$0xff]  }
 0x237   :  { %v9068_v61 = vsel %vm17142_vm10, %v9063_v5, %v9067_v38  ;;  %v9146_v33 = vcombine.low %v9096_v0, %v9110_v56  ;;  %v18174_v5 = vld.sshfl [vmem:[#allocation2 + $0x24] sm:$0x13 pattern:$0x76325410]  ;;  %v10415_v38 = vrot.slane %v10414_v32, 2  ;;  %v10034_v0 = vshrl.u32 %v18168_v7, 16 }
 0x238   :  { %15263 = vmatpush3.bf16.msra.mxu0 %v15696_v25  ;;  %v15704_v25 = vld [vmem:[%s19358_s4 + $0x280] sm:$0xff]   ;;  %v9145_v57 = vcombine.low %v9068_v61, %v9082_v31  ;;  %v10419_v31 = vrot.slane %v10417_v24, 7  ;;  %v10076_v54 = vshrl.u32 %v18174_v5, 16  ;;  %v10037_v61 = vshll.u32 %v18168_v7, 16  ;;  %v15717_v32 = vld [vmem:[%s19358_s4 + $0x3f0] sm:$0xff]  }
 0x239   :  { %15291 = vmatpush3.bf16.msra.mxu1 %v15691_v46  ;;  %15264 = vmatprep.subr.bf16.mxu0 %v15698_v59  ;;  %v10380_v46 = vshrl.u32 %v18123_v14, 16  ;;  %v9160_v62 = vrot.slane %v9146_v33, %v17049_v43  ;;  %v10048_v33 = vshrl.u32 %v18170_v19, 16 }
 0x23a   :  { %15316 = vmatprep.subr.bf16.mxu1 %v15693_v41  ;;  %v9153_v18 = vrot.slane %v9145_v57, %v17049_v43  ;;  %v10420_v53 = vsel %vm17142_vm10, %v10415_v38, %v10419_v31  ;;  %v10078_v58 = vrot.slane %v10076_v54, 6  ;;  %v15719_v31 = vld [vmem:[%s19358_s4 + $0x3e8] sm:$0xff]  }
 0x23c   :  { %15293 = vmatmul.mubr.bf16.vlgmr.msra.gmra.mxu1 %v9507_v45  ;;  %15265 = vmatpush3.bf16.msra.mxu0 %v15698_v59  ;;  %v10427_v59 = vrot.slane %v10425_v30, 7  ;;  %v9161_v47 = vcombine.low %v9153_v18, %v9160_v62  ;;  %v9661_v45 = vcombine.low %v9653_v55, %v9660_v39  ;;  %v10079_v30 = vshll.u32 %v18174_v5, 16  ;;  %v15713_v39 = vld [vmem:[#allocation2 + $0x84] ss:$8 sps:$4 sm:$0x33]  }
 0x23d   :  { %15317 = vmatpush3.bf16.msra.mxu1 %v15693_v41  ;;  %15332 = vmatprep.mubr.bf16.mxu1 %v9832_v50  ;;  %v10382_v41 = vrot.slane %v10380_v46, 6  ;;  %v10400_v50 = vor.u32 %v10399_v13, %v10396_v17  ;;  %v10051_v46 = vshll.u32 %v18170_v19, 16  ;;  %v10039_v62 = vrot.slane %v10037_v61, 7 }
 0x23e   :  { %15318 = vmatprep.subr.bf16.mxu1 %v15697_v28  ;;  %15266 = vmatprep.subr.bf16.mxu0 %v15700_v49  ;;  %v10428_v51 = vor.u32 %v10427_v59, %v10424_v3  ;;  %v10081_v3 = vrot.slane %v10079_v30, 7  ;;  %v10036_v59 = vrot.slane %v10034_v0, 6  ;;  %v9976_v18 = vcombine.high %v18168_v7, %v18168_v7 }
 0x23f   :  { %v10386_v8 = vor.u32 %v10385_v36, %v10382_v41  ;;  %v10401_v37 = vrot.slane %v10400_v50, 2  ;;  %v15718_v36 = vld [vmem:[%s19358_s4 + $0x318] sm:$0xff]   ;;  %v9984_v55 = vcombine.high %v18170_v19, %v18170_v19 }
 0x240   :  { %15267 = vmatpush3.bf16.msra.mxu0 %v15700_v49  ;;  %v10389_v49 = vshll.u32 %v10322_v6, 16  ;;  %v10429_v14 = vrot.slane %v10428_v51, 2  ;;  %v10043_v7 = vshll.u32 %v9976_v18, 16 }
 0x241   :  { %15319 = vmatpush3.bf16.msra.mxu1 %v15697_v28  ;;  %15268 = vmatprep.subr.bf16.mxu0 %v15702_v63  ;;  %v15710_v28 = vld [vmem:[%s19358_s4 + $0x330] sm:$0xff]   ;;  %v10387_v56 = vrot.slane %v10386_v8, 2  ;;  %v10406_v57 = vsel %vm17142_vm10, %v10401_v37, %v10405_v42  ;;  %v10057_v24 = vshll.u32 %v9984_v55, 16 }
 0x242   :  { %15320 = vmatprep.subr.bf16.mxu1 %v15699_v20  ;;  %v10391_v34 = vrot.slane %v10389_v49, 7  ;;  %v10045_v0 = vrot.slane %v10043_v7, 7 }
 0x243   :  { %v10059_v54 = vrot.slane %v10057_v24, 7 }
 0x244   :  { %15269 = vmatpush3.bf16.msra.mxu0 %v15702_v63  ;;  %v18172_v63 = vld.sshfl [vmem:[#allocation2 + $0x1c] sm:$0x13 pattern:$0x76325410]  ;;  %v10392_v10 = vsel %vm17142_vm10, %v10387_v56, %v10391_v34 }
 0x245   :  { %15321 = vmatpush3.bf16.msra.mxu1 %v15699_v20  ;;  %15270 = vmatprep.subr.bf16.mxu0 %v15704_v25  ;;  %v10431_v20 = vshll.u32 %v10346_v21, 16  ;;  %v10065_v52 = vshll.u32 %v18172_v63, 16  ;;  %v10053_v21 = vrot.slane %v10051_v46, 7  ;;  %v10508_v41 = vcombine.low %v10392_v10, %v10406_v57  ;;  %v15724_v10 = vld [vmem:[%s19358_s4 + $0x300] sm:$0xff]  }
 0x246   :  { %15322 = vmatprep.subr.bf16.mxu1 %v15701_v23  ;;  %v9992_v27 = vcombine.high %v18172_v63, %v18172_v63  ;;  %v18233_v34 = vld.sshfl [vmem:[#allocation2 + $0x8c] sm:$0x13 pattern:$0x76325410] }
 0x247   :  { %v10433_v15 = vrot.slane %v10431_v20, 7  ;;  %v10067_v13 = vrot.slane %v10065_v52, 7  ;;  %v10516_v11 = vrot.slane %v10508_v41, %v17049_v43  ;;  %v15720_v20 = vld [vmem:[%s19358_s4 + $0x310] sm:$0xff]  }
 0x248   :  { %15271 = vmatpush3.bf16.msra.mxu0 %v15704_v25  ;;  %v10071_v19 = vshll.u32 %v9992_v27, 16  ;;  %v18235_v56 = vld.sshfl [vmem:[#allocation2 + $0x9c] sm:$0x13 pattern:$0x76325410] }
 0x249   :  { %15323 = vmatpush3.bf16.msra.mxu1 %v15701_v23  ;;  %15296 = vmatprep.subr.bf16.mxu0 %v15706_v48  ;;  %v10434_v25 = vsel %vm17142_vm10, %v10429_v14, %v10433_v15  ;;  %v10062_v23 = vshrl.u32 %v18172_v63, 16  ;;  %v15722_v63 = vld [vmem:[%s19358_s4 + $0x308] sm:$0xff]   ;;  %v18237_v15 = vld.sshfl [vmem:[#allocation2 + $0x94] sm:$0x13 pattern:$0x76325410] }
 0x24a   :  { %15324 = vmatprep.subr.bf16.mxu1 %v15703_v35  ;;  %v10509_v6 = vcombine.low %v10420_v53, %v10434_v25  ;;  %v10073_v30 = vrot.slane %v10071_v19, 7  ;;  %v10450_v25 = vshrl.u32 %v18233_v34, 16  ;;  %v10478_v46 = vshrl.u32 %v18235_v56, 16 }
 0x24b   :  { %15273 = vmatmul.mubr.bf16.vlgmr.msra.gmra.mxu0 %v9161_v47  ;;  %v10064_v17 = vrot.slane %v10062_v23, 6  ;;  %v10082_v47 = vor.u32 %v10081_v3, %v10078_v58  ;;  %v15727_v23 = vld [vmem:[#allocation2 + $0x44] ss:$8 sps:$4 sm:$0x33]  }
 0x24c   :  { %15297 = vmatpush3.bf16.msra.mxu0 %v15706_v48  ;;  %15312 = vmatprep.mubr.bf16.mxu0 %v9661_v45  ;;  %v10050_v48 = vrot.slane %v10048_v33, 6  ;;  %v10523_v51 = vrot.slane %v10509_v6, %v17049_v43  ;;  %v9841_v45 = vrot.slane %v15713_v39, %v17049_v43  ;;  %v10453_v33 = vshll.u32 %v18233_v34, 16  ;;  %v15721_v58 = vld [vmem:[%s19358_s4 + $0x3e0] sm:$0xff]   ;;  %v15726_v3 = vld [vmem:[#allocation2 + $0x34] ss:$8 sps:$4 sm:$0x33]  }
 0x24d   :  { %15325 = vmatpush3.bf16.msra.mxu1 %v15703_v35  ;;  %15298 = vmatprep.subr.bf16.mxu0 %v15710_v28  ;;  %v10000_v35 = vcombine.high %v18174_v5, %v18174_v5  ;;  %v10083_v5 = vrot.slane %v10082_v47, 2  ;;  %v10464_v39 = vshrl.u32 %v18237_v15, 16  ;;  %v10467_v6 = vshll.u32 %v18237_v15, 16 }
 0x24e   :  { %15326 = vmatprep.subr.bf16.mxu1 %v15705_v44  ;;  %v10054_v49 = vor.u32 %v10053_v21, %v10050_v48  ;;  %v9849_v50 = vcombine.low %v9841_v45, %v9848_v9  ;;  %v10524_v14 = vcombine.low %v10516_v11, %v10523_v51  ;;  %v10455_v48 = vrot.slane %v10453_v33, 7  ;;  %v15728_v9 = vld [vmem:[%s19358_s4 + $0x3b8] sm:$0xff]  }
 0x24f   :  { %v10085_v8 = vshll.u32 %v10000_v35, 16  ;;  %v10480_v21 = vrot.slane %v10478_v46, 6  ;;  %v10466_v55 = vrot.slane %v10464_v39, 6  ;;  %v10469_v27 = vrot.slane %v10467_v6, 7  ;;  %v15723_v51 = vld [vmem:[%s19358_s4 + $0x3d8] sm:$0xff]   ;;  %v15733_v6 = vld [vmem:[%s19358_s4 + $0x3a0] sm:$0xff]  }
 0x250   :  { %15299 = vmatpush3.bf16.msra.mxu0 %v15710_v28  ;;  %v10040_v28 = vor.u32 %v10039_v62, %v10036_v59  ;;  %v10452_v62 = vrot.slane %v10450_v25, 6  ;;  %v9670_v47 = vrot.slane %v15726_v3, %v17049_v43  ;;  %v15729_v25 = vld [vmem:[%s19358_s4 + $0x3c8] sm:$0xff]   ;;  %v15731_v3 = vld [vmem:[%s19358_s4 + $0x3c0] sm:$0xff]  }
 0x251   :  { %15327 = vmatpush3.bf16.msra.mxu1 %v15705_v44  ;;  %15300 = vmatprep.subr.bf16.mxu0 %v15712_v4  ;;  %v10068_v44 = vor.u32 %v10067_v13, %v10064_v17  ;;  %v10087_v38 = vrot.slane %v10085_v8, 7  ;;  %v10362_v17 = vcombine.high %v18233_v34, %v18233_v34  ;;  %v10378_v13 = vcombine.high %v18235_v56, %v18235_v56 }
 0x252   :  { %15328 = vmatprep.subr.bf16.mxu1 %v15709_v40  ;;  %v10041_v42 = vrot.slane %v10040_v28, 2  ;;  %v10456_v11 = vor.u32 %v10455_v48, %v10452_v62  ;;  %v10470_v24 = vor.u32 %v10469_v27, %v10466_v55 }
 0x253   :  { %v10069_v37 = vrot.slane %v10068_v44, 2  ;;  %v10088_v61 = vsel %vm17142_vm10, %v10083_v5, %v10087_v38  ;;  %v10459_v7 = vshll.u32 %v10362_v17, 16  ;;  %v10487_v19 = vshll.u32 %v10378_v13, 16 }
 0x254   :  { %15301 = vmatpush3.bf16.msra.mxu0 %v15712_v4  ;;  %v18231_v4 = vld.sshfl [vmem:[#allocation2 + $0x84] sm:$0x13 pattern:$0x76325410]  ;;  %v10046_v52 = vsel %vm17142_vm10, %v10041_v42, %v10045_v0  ;;  %v10457_v34 = vrot.slane %v10456_v11, 2 }
 0x255   :  { %15329 = vmatpush3.bf16.msra.mxu1 %v15709_v40  ;;  %15302 = vmatprep.subr.bf16.mxu0 %v15716_v2  ;;  %v10055_v40 = vrot.slane %v10054_v49, 2  ;;  %v10436_v29 = vshrl.u32 %v18231_v4, 16  ;;  %v10074_v57 = vsel %vm17142_vm10, %v10069_v37, %v10073_v30  ;;  %v10439_v53 = vshll.u32 %v18231_v4, 16 }
 0x256   :  { %15330 = vmatprep.subr.bf16.mxu1 %v15711_v22  ;;  %v10163_v59 = vcombine.low %v10074_v57, %v10088_v61  ;;  %v10354_v28 = vcombine.high %v18231_v4, %v18231_v4  ;;  %v10370_v49 = vcombine.high %v18237_v15, %v18237_v15  ;;  %v18288_v5 = vld.sshfl [vmem:[#allocation2 + $0x4c] sm:$0x13 pattern:$0x76325410]  ;;  %v10461_v0 = vrot.slane %v10459_v7, 7 }
 0x257   :  { %v10441_v18 = vrot.slane %v10439_v53, 7  ;;  %v18292_v37 = vld.sshfl [vmem:[#allocation2 + $0x34] sm:$0x13 pattern:$0x76325410]  ;;  %v15732_v15 = vld [vmem:[%s19358_s4 + $0x3a8] sm:$0xff]  }
 0x258   :  { %15303 = vmatpush3.bf16.msra.mxu0 %v15716_v2  ;;  %v10481_v2 = vshll.u32 %v18235_v56, 16  ;;  %v10177_v45 = vrot.slane %v10163_v59, %v17049_v43  ;;  %v10445_v4 = vshll.u32 %v10354_v28, 16  ;;  %v10473_v42 = vshll.u32 %v10370_v49, 16 }
 0x259   :  { %15331 = vmatpush3.bf16.msra.mxu1 %v15711_v22  ;;  %15304 = vmatprep.subr.bf16.mxu0 %v15718_v36  ;;  %v10060_v22 = vsel %vm17142_vm10, %v10055_v40, %v10059_v54  ;;  %v18290_v56 = vld.sshfl [vmem:[#allocation2 + $0x3c] sm:$0x13 pattern:$0x76325410]  ;;  %v10471_v54 = vrot.slane %v10470_v24, 2  ;;  %v10489_v30 = vrot.slane %v10487_v19, 7  ;;  %v10008_v28 = vcombine.high %v18292_v37, %v18292_v37 }
 0x25a   :  { %15356 = vmatprep.subr.bf16.mxu1 %v15715_v16  ;;  %v10483_v41 = vrot.slane %v10481_v2, 7  ;;  %v10162_v35 = vcombine.low %v10046_v52, %v10060_v22  ;;  %v14098_v38 = vld.sshfl [vmem:[#allocation2 + $0x44] sm:$0x13 pattern:$0x76325410]  ;;  %v10132_v61 = vshrl.u32 %v18288_v5, 16  ;;  %v10462_v2 = vsel %vm17142_vm10, %v10457_v34, %v10461_v0 }
 0x25b   :  { %v10135_v33 = vshll.u32 %v18288_v5, 16  ;;  %v10447_v46 = vrot.slane %v10445_v4, 7  ;;  %v10104_v22 = vshrl.u32 %v18290_v56, 16  ;;  %v10121_v57 = vshll.u32 %v14098_v38, 16  ;;  %v15736_v34 = vld [vmem:[%s19358_s4 + $0x388] sm:$0xff]   ;;  %v15737_v0 = vld [vmem:[%s19358_s4 + $0x380] sm:$0xff]  }
 0x25c   :  { %15333 = vmatmul.mubr.bf16.vlgmr.msra.gmra.mxu1 %v9849_v50  ;;  %15305 = vmatpush3.bf16.msra.mxu0 %v15718_v36  ;;  %v9677_v36 = vrot.slane %v15727_v23, %v17049_v43  ;;  %v10484_v44 = vor.u32 %v10483_v41, %v10480_v21  ;;  %v10170_v50 = vrot.slane %v10162_v35, %v17049_v43  ;;  %v10475_v23 = vrot.slane %v10473_v42, 7 }
 0x25d   :  { %15357 = vmatpush3.bf16.msra.mxu1 %v15715_v16  ;;  %15372 = vmatprep.mubr.bf16.mxu1 %v10524_v14  ;;  %v10438_v16 = vrot.slane %v10436_v29, 6  ;;  %v15725_v14 = vld [vmem:[%s19358_s4 + $0x3d0] sm:$0xff]   ;;  %v10107_v29 = vshll.u32 %v18290_v56, 16  ;;  %v10093_v62 = vshll.u32 %v18292_v37, 16  ;;  %v10134_v48 = vrot.slane %v10132_v61, 6 }
 0x25e   :  { %15358 = vmatprep.subr.bf16.mxu1 %v15717_v32  ;;  %15306 = vmatprep.subr.bf16.mxu0 %v15720_v20  ;;  %v9678_v8 = vcombine.low %v9670_v47, %v9677_v36  ;;  %v10485_v40 = vrot.slane %v10484_v44, 2  ;;  %v10476_v39 = vsel %vm17142_vm10, %v10471_v54, %v10475_v23  ;;  %v10137_v21 = vrot.slane %v10135_v33, 7  ;;  %v15740_v23 = vld [vmem:[%s19360_s6 + $0x78] sm:$0xff]  }
 0x25f   :  { %v10032_v36 = vcombine.high %v18288_v5, %v18288_v5  ;;  %v10106_v35 = vrot.slane %v10104_v22, 6  ;;  %v10109_v17 = vrot.slane %v10107_v29, 7  ;;  %v10024_v55 = vcombine.high %v14098_v38, %v14098_v38  ;;  %v15742_v22 = vld [vmem:[%s19360_s6 + $0x70] sm:$0xff]   ;;  %v15743_v29 = vld [vmem:[%s19360_s6 + $0x20] sm:$0xff]  }
 0x260   :  { %15307 = vmatpush3.bf16.msra.mxu0 %v15720_v20  ;;  %v10442_v20 = vor.u32 %v10441_v18, %v10438_v16  ;;  %v10490_v52 = vsel %vm17142_vm10, %v10485_v40, %v10489_v30  ;;  %v15734_v16 = vld [vmem:[%s19358_s4 + $0x398] sm:$0xff]   ;;  %v10016_v18 = vcombine.high %v18290_v56, %v18290_v56  ;;  %v10095_v47 = vrot.slane %v10093_v62, 7 }
 0x261   :  { %15359 = vmatpush3.bf16.msra.mxu1 %v15717_v32  ;;  %15308 = vmatprep.subr.bf16.mxu0 %v15722_v63  ;;  %v15730_v32 = vld [vmem:[%s19358_s4 + $0x3b0] sm:$0xff]   ;;  %v10526_v59 = vcombine.low %v10476_v39, %v10490_v52  ;;  %v10110_v11 = vor.u32 %v10109_v17, %v10106_v35  ;;  %v10127_v24 = vshll.u32 %v10024_v55, 16  ;;  %v15741_v52 = vld [vmem:[%s19360_s6 + $0x28] sm:$0xff]   ;;  %v15751_v17 = vld [vmem:[%s19360_s6] sm:$0xff]  }
 0x262   :  { %15360 = vmatprep.subr.bf16.mxu1 %v15719_v31  ;;  %v15750_v35 = vld [vmem:[%s19360_s6 + $0x50] sm:$0xff]  }
 0x263   :  { %v10540_v27 = vrot.slane %v10526_v59, %v17049_v43  ;;  %v10129_v56 = vrot.slane %v10127_v24, 7 }
 0x264   :  { %15309 = vmatpush3.bf16.msra.mxu0 %v15722_v63  ;;  %v10178_v63 = vcombine.low %v10170_v50, %v10177_v45  ;;  %v10138_v45 = vor.u32 %v10137_v21, %v10134_v48  ;;  %v15735_v50 = vld [vmem:[%s19358_s4 + $0x390] sm:$0xff]   ;;  %v15748_v48 = vld [vmem:[%s19360_s6 + $0x58] sm:$0xff]   ;;  %v15749_v21 = vld [vmem:[%s19360_s6 + $0x8] sm:$0xff]  }
 0x265   :  { %15361 = vmatpush3.bf16.msra.mxu1 %v15719_v31  ;;  %15310 = vmatprep.subr.bf16.mxu0 %v15724_v10  ;;  %v10443_v31 = vrot.slane %v10442_v20, 2 }
 0x266   :  { %15362 = vmatprep.subr.bf16.mxu1 %v15721_v58  ;;  %v10139_v19 = vrot.slane %v10138_v45, 2 }
 0x267   :  { %v10448_v53 = vsel %vm17142_vm10, %v10443_v31, %v10447_v46 }
 0x268   :  { %15311 = vmatpush3.bf16.msra.mxu0 %v15724_v10  ;;  %v10118_v10 = vshrl.u32 %v14098_v38, 16  ;;  %v10525_v41 = vcombine.low %v10448_v53, %v10462_v2  ;;  %v15739_v2 = vld [vmem:[%s19360_s6 + $0x30] sm:$0xff]   ;;  %v15745_v53 = vld [vmem:[%s19360_s6 + $0x18] sm:$0xff]  }
 0x269   :  { %15363 = vmatpush3.bf16.msra.mxu1 %v15721_v58  ;;  %15336 = vmatprep.subr.bf16.mxu0 %v15728_v9  ;;  %v10090_v58 = vshrl.u32 %v18292_v37, 16 }
 0x26a   :  { %15364 = vmatprep.subr.bf16.mxu1 %v15723_v51  ;;  %v10120_v13 = vrot.slane %v10118_v10, 6  ;;  %v10533_v49 = vrot.slane %v10525_v41, %v17049_v43  ;;  %v18378_v10 = vpop.f32.mrf.mxu1 }
 0x26b   :  { %15313 = vmatmul.mubr.bf16.vlgmr.msra.gmra.mxu0 %v9678_v8  ;;  %v10141_v8 = vshll.u32 %v10032_v36, 16 }
 0x26c   :  { %15337 = vmatpush3.bf16.msra.mxu0 %v15728_v9  ;;  %15352 = vmatprep.mubr.bf16.mxu0 %v10178_v63  ;;  %v10123_v9 = vrot.slane %v10121_v57, 7  ;;  %v10541_v20 = vcombine.low %v10533_v49, %v10540_v27  ;;  %v10111_v63 = vrot.slane %v10110_v11, 2  ;;  %v15744_v57 = vld [vmem:[%s19360_s6 + $0x68] sm:$0xff]   ;;  %v18388_v39 = vpop.f32.mrf.mxu1  ;;  %v15754_v27 = vld [vmem:[%s19360_s6 + $0x40] sm:$0xff]  }
 0x26d   :  { %15365 = vmatpush3.bf16.msra.mxu1 %v15723_v51  ;;  %15338 = vmatprep.subr.bf16.mxu0 %v15730_v32  ;;  %v10092_v51 = vrot.slane %v10090_v58, 6  ;;  %v10143_v4 = vrot.slane %v10141_v8, 7  ;;  %v15746_v58 = vld [vmem:[%s19360_s6 + $0x60] sm:$0xff]  }
 0x26e   :  { %15366 = vmatprep.subr.bf16.mxu1 %v15725_v14  ;;  %v10124_v44 = vor.u32 %v10123_v9, %v10120_v13  ;;  %v15095_v59 = vpop.f32.mrf.mxu1 }
 0x26f   :  { %v10096_v7 = vor.u32 %v10095_v47, %v10092_v51  ;;  %v10144_v37 = vsel %vm17142_vm10, %v10139_v19, %v10143_v4 }
 0x270   :  { %15339 = vmatpush3.bf16.msra.mxu0 %v15730_v32  ;;  %v10113_v32 = vshll.u32 %v10016_v18, 16  ;;  %v10125_v5 = vrot.slane %v10124_v44, 2  ;;  %v6832_v41 = vpop.f32.mrf.mxu1 }
 0x271   :  { %15367 = vmatpush3.bf16.msra.mxu1 %v15725_v14  ;;  %15340 = vmatprep.subr.bf16.mxu0 %v15732_v15  ;;  %v10099_v14 = vshll.u32 %v10008_v28, 16  ;;  %v10097_v42 = vrot.slane %v10096_v7, 2 }
 0x272   :  { %15368 = vmatprep.subr.bf16.mxu1 %v15729_v25  ;;  %v10115_v40 = vrot.slane %v10113_v32, 7  ;;  %v10130_v31 = vsel %vm17142_vm10, %v10125_v5, %v10129_v56 }
 0x273   :  { %v10101_v38 = vrot.slane %v10099_v14, 7  ;;  %v10180_v54 = vcombine.low %v10130_v31, %v10144_v37 }
 0x274   :  { %15341 = vmatpush3.bf16.msra.mxu0 %v15732_v15  ;;  %v10116_v15 = vsel %vm17142_vm10, %v10111_v63, %v10115_v40 }
 0x275   :  { %15369 = vmatpush3.bf16.msra.mxu1 %v15729_v25  ;;  %15342 = vmatprep.subr.bf16.mxu0 %v15733_v6  ;;  %v10102_v30 = vsel %vm17142_vm10, %v10097_v42, %v10101_v38  ;;  %v10194_v61 = vrot.slane %v10180_v54, %v17049_v43  ;;  %vm18466_vm10 = vmor %vm10758_vm8, %vm10759_vm9 }
 0x276   :  { %15370 = vmatprep.subr.bf16.mxu1 %v15731_v3  ;;  %v10179_v25 = vcombine.low %v10102_v30, %v10116_v15 }
 0x278   :  { %15343 = vmatpush3.bf16.msra.mxu0 %v15733_v6  ;;  %v10187_v33 = vrot.slane %v10179_v25, %v17049_v43  ;;  %v18390_v6 = vpop.f32.mrf.mxu0 }
 0x279   :  { %15371 = vmatpush3.bf16.msra.mxu1 %v15731_v3  ;;  %15344 = vmatprep.subr.bf16.mxu0 %v15734_v16  ;;  %v15747_v3 = vld [vmem:[%s19360_s6 + $0x10] sm:$0xff]  }
 0x27a   :  { %15396 = vmatprep.subr.bf16.mxu1 %v16058_v1  ;;  %v10195_v46 = vcombine.low %v10187_v33, %v10194_v61  ;;  %v6688_v62 = vpop.f32.mrf.mxu0 }
 0x27b   :  { %v15134_v13 = vpop.f32.mrf.mxu1  ;;  %v6830_v54 = vadd.f32 %v18388_v39, %v6688_v62 }
 0x27c   :  { %15373 = vmatmul.mubr.bf16.vlgmr.msra.gmra.mxu1 %v10541_v20  ;;  %15345 = vmatpush3.bf16.msra.mxu0 %v15734_v16  ;;  %v15075_v36 = vpop.f32.mrf.mxu0  ;;  %v15752_v16 = vld [vmem:[%s19360_s6 + $0x48] sm:$0xff]  }
 0x27d   :  { %15346 = vmatprep.subr.bf16.mxu0 %v15735_v50  ;;  %15412 = vmatprep.mubr.msk.bf16.mxu1 %vm16059_vm0, %v16058_v1  ;;  %v7524_v18 = vpop.f32.mrf.mxu1  ;;  %v6841_v33 = vadd.f32 %v15095_v59, %v15075_v36 }
 0x27e   :  { %15397 = vmatpush3.bf16.msra.mxu1 %v15738_v60  ;;  %v6691_v9 = vpop.f32.mrf.mxu0 }
 0x27f   :  { %15398 = vmatprep.subr.bf16.mxu1 %v16058_v1  ;;  %v15135_v51 = vpop.f32.mrf.mxu1 }
 0x280   :  { %15347 = vmatpush3.bf16.msra.mxu0 %v15735_v50 }
 0x281   :  { %15348 = vmatprep.subr.bf16.mxu0 %v15736_v34  ;;  %v7527_v45 = vpop.f32.mrf.mxu1 }
 0x282   :  { %15399 = vmatpush3.bf16.msra.mxu1 %v15739_v2  ;;  %v6833_v2 = vadd.f32 %v6832_v41, %v6691_v9 }
 0x283   :  { %15400 = vmatprep.subr.bf16.mxu1 %v16058_v1 }
 0x284   :  { %15349 = vmatpush3.bf16.msra.mxu0 %v15736_v34 }
 0x285   :  { %15350 = vmatprep.subr.bf16.mxu0 %v15737_v0 }
 0x286   :  { %15401 = vmatpush3.bf16.msra.mxu1 %v15741_v52 }
 0x287   :  { %15402 = vmatprep.subr.bf16.mxu1 %v16058_v1 }
 0x288   :  { %15351 = vmatpush3.bf16.msra.mxu0 %v15737_v0  ;;  %v6838_v0 = vadd.f32 %v18378_v10, %v18390_v6 }
 0x289   :  { %15376 = vmatprep.subr.bf16.mxu0 %v16058_v1 }
 0x28a   :  { %15403 = vmatpush3.bf16.msra.mxu1 %v15743_v29 }
 0x28b   :  { %15353 = vmatmul.mubr.bf16.vlgmr.msra.gmra.mxu0 %v10195_v46  ;;  %15404 = vmatprep.subr.bf16.mxu1 %v16058_v1  ;;  %v15114_v55 = vpop.f32.mrf.mxu0 }
 0x28c   :  { %15392 = vmatprep.mubr.msk.bf16.mxu0 %vm16059_vm0, %v16058_v1  ;;  %15377 = vmatpush3.bf16.msra.mxu0 %v15740_v23  ;;  %v7195_v30 = vadd.f32 %v15114_v55, %v6838_v0 }
 0x28d   :  { %15378 = vmatprep.subr.bf16.mxu0 %v16058_v1  ;;  %v7178_v47 = vpop.f32.mrf.mxu0 }
 0x28e   :  { %15405 = vmatpush3.bf16.msra.mxu1 %v15745_v53  ;;  %v7193_v46 = vadd.f32 %v7178_v47, %v6830_v54  ;;  %v7541_v52 = vadd.f32 %v15134_v13, %v7195_v30 }
 0x28f   :  { %15406 = vmatprep.subr.bf16.mxu1 %v16058_v1  ;;  %v15115_v28 = vpop.f32.mrf.mxu0 }
 0x290   :  { %15379 = vmatpush3.bf16.msra.mxu0 %v15742_v22  ;;  %v7196_v23 = vadd.f32 %v15115_v28, %v6841_v33  ;;  %v7539_v53 = vadd.f32 %v7524_v18, %v7193_v46 }
 0x291   :  { %15380 = vmatprep.subr.bf16.mxu0 %v16058_v1  ;;  %v7181_v11 = vpop.f32.mrf.mxu0 }
 0x292   :  { %15407 = vmatpush3.bf16.msra.mxu1 %v15747_v3  ;;  %v7194_v29 = vadd.f32 %v7181_v11, %v6833_v2 }
 0x293   :  { %15408 = vmatprep.subr.bf16.mxu1 %v16058_v1 }
 0x294   :  { %15381 = vmatpush3.bf16.msra.mxu0 %v15744_v57  ;;  %v7540_v6 = vadd.f32 %v7527_v45, %v7194_v29 }
 0x295   :  { %15382 = vmatprep.subr.bf16.mxu0 %v16058_v1 }
 0x296   :  { %15409 = vmatpush3.bf16.msra.mxu1 %v15749_v21  ;;  %v7542_v21 = vadd.f32 %v15135_v51, %v7196_v23 }
 0x297   :  { %15410 = vmatprep.subr.bf16.mxu1 %v16058_v1 }
 0x298   :  { %15383 = vmatpush3.bf16.msra.mxu0 %v15746_v58 }
 0x299   :  { %15384 = vmatprep.subr.bf16.mxu0 %v16058_v1 }
 0x29a   :  { %15411 = vmatpush3.bf16.msra.mxu1 %v15751_v17 }
 0x29b   :  { %15436 = vmatprep.subr.bf16.mxu1 %v16058_v1 }
 0x29c   :  { %15385 = vmatpush3.bf16.msra.mxu0 %v15748_v48  ;;  %v15174_v49 = vpop.f32.mrf.mxu1 }
 0x29d   :  { %15386 = vmatprep.subr.bf16.mxu0 %v16058_v1 }
 0x29e   :  { %v7866_v44 = vpop.f32.mrf.mxu1 }
 0x2a0   :  { %15387 = vmatpush3.bf16.msra.mxu0 %v15750_v35  ;;  %v15175_v50 = vpop.f32.mrf.mxu1 }
 0x2a1   :  { %15388 = vmatprep.subr.bf16.mxu0 %v16058_v1 }
 0x2a2   :  { %v7869_v20 = vpop.f32.mrf.mxu1 }
 0x2a4   :  { %15389 = vmatpush3.bf16.msra.mxu0 %v15752_v16 }
 0x2a5   :  { %15390 = vmatprep.subr.bf16.mxu0 %v16058_v1 }
 0x2a8   :  { %15391 = vmatpush3.bf16.msra.mxu0 %v15754_v27 }
 0x2a9   :  { %15416 = vmatprep.subr.bf16.mxu0 %v16058_v1 }
 0x2ab   :  { %v15154_v8 = vpop.f32.mrf.mxu0 }
 0x2ac   :  { %v7712_v57 = vadd.f32 %v15154_v8, %v7541_v52 }
 0x2ad   :  { %v7695_v32 = vpop.f32.mrf.mxu0 }
 0x2ae   :  { %v7710_v48 = vadd.f32 %v7695_v32, %v7539_v53  ;;  %v7883_v39 = vadd.f32 %v15174_v49, %v7712_v57 }
 0x2af   :  { %v15155_v7 = vpop.f32.mrf.mxu0 }
 0x2b0   :  { %v7713_v10 = vadd.f32 %v15155_v7, %v7542_v21  ;;  %v7881_v36 = vadd.f32 %v7866_v44, %v7710_v48 }
 0x2b1   :  { %v7698_v19 = vpop.f32.mrf.mxu0 }
 0x2b2   :  { %v7711_v17 = vadd.f32 %v7698_v19, %v7540_v6  ;;  %v7884_v41 = vadd.f32 %v15175_v50, %v7713_v10 }
 0x2b4   :  { %v7882_v27 = vadd.f32 %v7869_v20, %v7711_v17 }
 0x2bc   :  { %v15214_v24 = vpop.f32.mrf.mxu1 }
 0x2be   :  { %v8558_v14 = vpop.f32.mrf.mxu1 }
 0x2c0   :  { %v15215_v5 = vpop.f32.mrf.mxu1 }
 0x2c2   :  { %v8561_v34 = vpop.f32.mrf.mxu1 }
 0x2cb   :  { %v15194_v63 = vpop.f32.mrf.mxu0 }
 0x2cc   :  { %v8229_v59 = vadd.f32 %v15194_v63, %v7883_v39 }
 0x2cd   :  { %v8212_v4 = vpop.f32.mrf.mxu0 }
 0x2ce   :  { %v8227_v16 = vadd.f32 %v8212_v4, %v7881_v36  ;;  %v8575_v47 = vadd.f32 %v15214_v24, %v8229_v59 }
 0x2cf   :  { %v15195_v42 = vpop.f32.mrf.mxu0 }
 0x2d0   :  { %v8230_v55 = vadd.f32 %v15195_v42, %v7884_v41  ;;  %v8573_v8 = vadd.f32 %v8558_v14, %v8227_v16 }
 0x2d1   :  { %v8215_v56 = vpop.f32.mrf.mxu0 }
 0x2d2   :  { %v8228_v28 = vadd.f32 %v8215_v56, %v7882_v27  ;;  %v8576_v45 = vadd.f32 %v15215_v5, %v8230_v55 }
 0x2d4   :  { %v8574_v19 = vadd.f32 %v8561_v34, %v8228_v28 }
 0x2dc   :  { %v15254_v40 = vpop.f32.mrf.mxu1 }
 0x2de   :  { %v8900_v37 = vpop.f32.mrf.mxu1 }
 0x2e0   :  { %v15255_v15 = vpop.f32.mrf.mxu1 }
 0x2e2   :  { %v8903_v25 = vpop.f32.mrf.mxu1 }
 0x2eb   :  { %v15234_v38 = vpop.f32.mrf.mxu0 }
 0x2ec   :  { %v8746_v11 = vadd.f32 %v15234_v38, %v8575_v47 }
 0x2ed   :  { %v8729_v31 = vpop.f32.mrf.mxu0 }
 0x2ee   :  { %v8744_v32 = vadd.f32 %v8729_v31, %v8573_v8  ;;  %v8917_v63 = vadd.f32 %v15254_v40, %v8746_v11 }
 0x2ef   :  { %v15235_v61 = vpop.f32.mrf.mxu0 }
 0x2f0   :  { %v8747_v0 = vadd.f32 %v15235_v61, %v8576_v45  ;;  %v8915_v50 = vadd.f32 %v8900_v37, %v8744_v32 }
 0x2f1   :  { %v8732_v22 = vpop.f32.mrf.mxu0 }
 0x2f2   :  { %v8745_v44 = vadd.f32 %v8732_v22, %v8574_v19  ;;  %v8918_v20 = vadd.f32 %v15255_v15, %v8747_v0 }
 0x2f4   :  { %v8916_v33 = vadd.f32 %v8903_v25, %v8745_v44 }
 0x2fc   :  { %v15294_v60 = vpop.f32.mrf.mxu1 }
 0x2fe   :  { %v9592_v58 = vpop.f32.mrf.mxu1 }
 0x300   :  { %v15295_v62 = vpop.f32.mrf.mxu1 }
 0x302   :  { %v9595_v9 = vpop.f32.mrf.mxu1 }
 0x30b   :  { %v15274_v3 = vpop.f32.mrf.mxu0 }
 0x30c   :  { %v9263_v4 = vadd.f32 %v15274_v3, %v8917_v63 }
 0x30d   :  { %v9246_v35 = vpop.f32.mrf.mxu0 }
 0x30e   :  { %v9261_v42 = vadd.f32 %v9246_v35, %v8915_v50  ;;  %v9609_v56 = vadd.f32 %v15294_v60, %v9263_v4 }
 0x30f   :  { %v15275_v13 = vpop.f32.mrf.mxu0 }
 0x310   :  { %v9264_v24 = vadd.f32 %v15275_v13, %v8918_v20  ;;  %v9607_v5 = vadd.f32 %v9592_v58, %v9261_v42  ;;  %v14156_v58 = vld [vmem:[%s19359_s5] ss:$0 sm:$0xff] }
 0x311   :  { %v9249_v51 = vpop.f32.mrf.mxu0 }
 0x312   :  { %v9262_v46 = vadd.f32 %v9249_v51, %v8916_v33  ;;  %v9610_v61 = vadd.f32 %v15295_v62, %v9264_v24 }
 0x314   :  { %v9608_v52 = vadd.f32 %v9595_v9, %v9262_v46 }
 0x31c   :  { %v15334_v18 = vpop.f32.mrf.mxu1 }
 0x31e   :  { %v9934_v49 = vpop.f32.mrf.mxu1 }
 0x320   :  { %v15335_v54 = vpop.f32.mrf.mxu1 }
 0x322   :  { %v9937_v38 = vpop.f32.mrf.mxu1 }
 0x32b   :  { %v15314_v7 = vpop.f32.mrf.mxu0 }
 0x32c   :  { %v9780_v31 = vadd.f32 %v15314_v7, %v9609_v56 }
 0x32d   :  { %v9763_v30 = vpop.f32.mrf.mxu0 }
 0x32e   :  { %v9778_v23 = vadd.f32 %v9763_v30, %v9607_v5  ;;  %v9951_v22 = vadd.f32 %v15334_v18, %v9780_v31 }
 0x32f   :  { %v15315_v14 = vpop.f32.mrf.mxu0 }
 0x330   :  { %v9781_v40 = vadd.f32 %v15315_v14, %v9610_v61  ;;  %v9949_v15 = vadd.f32 %v9934_v49, %v9778_v23 }
 0x331   :  { %v9766_v34 = vpop.f32.mrf.mxu0 }
 0x332   :  { %v9779_v57 = vadd.f32 %v9766_v34, %v9608_v52  ;;  %v9952_v48 = vadd.f32 %v15335_v54, %v9781_v40 }
 0x334   :  { %v9950_v62 = vadd.f32 %v9937_v38, %v9779_v57 }
 0x33c   :  { %v15374_v2 = vpop.f32.mrf.mxu1 }
 0x33e   :  { %v10626_v37 = vpop.f32.mrf.mxu1 }
 0x340   :  { %v15375_v21 = vpop.f32.mrf.mxu1 }
 0x342   :  { %v10629_v16 = vpop.f32.mrf.mxu1 }
 0x34b   :  { %v15354_v29 = vpop.f32.mrf.mxu0 }
 0x34c   :  { %v10297_v53 = vadd.f32 %v15354_v29, %v9951_v22 }
 0x34d   :  { %v10280_v3 = vpop.f32.mrf.mxu0 }
 0x34e   :  { %v10643_v25 = vadd.f32 %v15374_v2, %v10297_v53  ;;  %v10295_v60 = vadd.f32 %v10280_v3, %v9949_v15  ;;  %v15753_v3 = vld [vmem:[%s19360_s6 + $0xf8] sm:$0xff]  }
 0x34f   :  { %v15355_v10 = vpop.f32.mrf.mxu0 }
 0x350   :  { %v10641_v6 = vadd.f32 %v10626_v37, %v10295_v60  ;;  %v10298_v39 = vadd.f32 %v15355_v10, %v9952_v48  ;;  %v10654_v17 = vadd.f32 %v14156_v58, %v10643_v25 }
 0x351   :  { %v10283_v35 = vpop.f32.mrf.mxu0 }
 0x352   :  { %v10644_v59 = vadd.f32 %v15375_v21, %v10298_v39  ;;  %v10296_v36 = vadd.f32 %v10283_v35, %v9950_v62  ;;  %v10652_v41 = vadd.f32 %v14156_v58, %v10641_v6  ;;  %v10658_v55 = vmax.f32 %v10654_v17, 0.0 }
 0x354   :  { %v10655_v9 = vadd.f32 %v14156_v58, %v10644_v59  ;;  %v10642_v13 = vadd.f32 %v10629_v16, %v10296_v36  ;;  %v10656_v18 = vmax.f32 %v10652_v41, 0.0 }
 0x356   :  { %v10659_v27 = vmax.f32 %v10655_v9, 0.0  ;;  %v10653_v47 = vadd.f32 %v14156_v58, %v10642_v13  ;;  %v15755_v9 = vld [vmem:[%s19360_s6 + $0xf0] sm:$0xff]  }
 0x358   :  { %v10661_v28 = vpack.c.bf16 %v10659_v27, %v10658_v55  ;;  %v10657_v11 = vmax.f32 %v10653_v47, 0.0  ;;  %v14158_v32 = vpack.c.bf16 %v10659_v27, %v10659_v27 }
 0x35a   :  { %v10688_v8 = vrot.slane %v10661_v28, %v17049_v43  ;;  %v10660_v51 = vpack.c.bf16 %v10657_v11, %v10656_v18  ;;  %v14157_v7 = vpack.c.bf16 %v10657_v11, %v10657_v11  ;;  %v18446_v44 = vrot.slane %v14158_v32, %v17049_v43  ;;  %v15756_v28 = vld [vmem:[%s19360_s6 + $0xb8] sm:$0xff]  }
 0x35c   :  { %v18433_v45 = vcombine.high %v10688_v8, %v10688_v8  ;;  %v18436_v49 = vrot.slane %v10688_v8, %v16235_v26  ;;  %v10671_v0 = vrot.slane %v10660_v51, %v17049_v43  ;;  %v18454_v54 = vrot.slane %v14157_v7, %v17049_v43 }
 0x35d   :  { %v18474_v5 = vrot.slane %v18446_v44, %v16235_v26  ;;  %v10697_v58 = vcombine.high %v18446_v44, %v18446_v44 }
 0x35e   :  { %v10737_v19 = vcombine.high %v18436_v49, %v18436_v49  ;;  %v18443_v63 = vrot.slane %v18433_v45, %v16235_v26  ;;  %v18448_v4 = vcombine.high %v10671_v0, %v10671_v0  ;;  %v18451_v50 = vrot.slane %v10671_v0, %v16235_v26 }
 0x35f   :  { %v10928_v30 = vcombine.low %v10688_v8, %v18433_v45  ;;  %v10780_v31 = vshrl.u32 %v18436_v49, 16  ;;  %v18480_v61 = vrot.slane %v18454_v54, %v16235_v26  ;;  %v11317_v17 = vcombine.high %v18474_v5, %v18474_v5 }
 0x360   :  { %v10745_v42 = vcombine.high %v18443_v63, %v18443_v63  ;;  %v10785_v20 = vshll.u32 %v10737_v19, 16  ;;  %v10721_v24 = vcombine.high %v18451_v50, %v18451_v50  ;;  %v18463_v33 = vrot.slane %v18448_v4, %v16235_v26 }
 0x361   :  { %v10927_v56 = vcombine.low %v10671_v0, %v18448_v4  ;;  %v10789_v14 = vshrl.u32 %v18443_v63, 16  ;;  %v10942_v40 = vrot.slane %v10928_v30, %v16235_v26  ;;  %v10762_v22 = vshrl.u32 %v18451_v50, 16  ;;  %v15757_v30 = vld [vmem:[%s19360_s6 + $0xe8] sm:$0xff]  }
 0x362   :  { %v10794_v46 = vshll.u32 %v10745_v42, 16  ;;  %v10767_v2 = vshll.u32 %v10721_v24, 16  ;;  %v10729_v23 = vcombine.high %v18463_v33, %v18463_v33  ;;  %v10771_v37 = vshrl.u32 %v18463_v33, 16 }
 0x363   :  { %v10935_v34 = vrot.slane %v10927_v56, %v16235_v26  ;;  %v10787_v57 = vsel %vm18466_vm10, %v10780_v31, %v10785_v20  ;;  %v14287_v48 = vcombine.high %v18463_v33, %v18480_v61  ;;  %v14288_v21 = vcombine.high %v18443_v63, %v18474_v5 }
 0x364   :  { %v10796_v52 = vsel %vm18466_vm10, %v10789_v14, %v10794_v46  ;;  %v10776_v29 = vshll.u32 %v10729_v23, 16  ;;  %v10769_v25 = vsel %vm18466_vm10, %v10762_v22, %v10767_v2  ;;  %v11309_v35 = vcombine.high %v18480_v61, %v18480_v61  ;;  %v15758_v14 = vld [vmem:[%s19360_s6 + $0xb0] sm:$0xff]  }
 0x365   :  { %v10943_v53 = vcombine.low %v10935_v34, %v10942_v40  ;;  %v10815_v15 = vcombine.low %v10787_v57, %v10796_v52  ;;  %v18505_v39 = vrot.slane %v14287_v48, %v16235_v26  ;;  %v18508_v62 = vrot.slane %v14288_v21, %v16235_v26  ;;  %v15759_v34 = vld [vmem:[%s19360_s6 + $0xe0] sm:$0xff]  }
 0x366   :  { %v10778_v60 = vsel %vm18466_vm10, %v10771_v37, %v10776_v29  ;;  %v10680_v59 = vcombine.high %v18454_v54, %v18454_v54  ;;  %v11319_v41 = vshrl.u32 %v18480_v61, 16  ;;  %v11324_v55 = vshll.u32 %v11309_v35, 16  ;;  %v15762_v57 = vld [vmem:[%s19360_s6 + $0xa0] sm:$0xff]  }
 0x367   :  { %v10950_v10 = vrot.slane %v10943_v53, %v16235_v26  ;;  %v10814_v6 = vcombine.low %v10769_v25, %v10778_v60  ;;  %v10829_v16 = vrot.slane %v10815_v15, %v16235_v26  ;;  %v11500_v13 = vcombine.low %v18505_v39, %v18508_v62  ;;  %v15763_v53 = vld [vmem:[%s19360_s6 + $0xd0] sm:$0xff]   ;;  %v15788_v39 = vld [vmem:[%s19360_s6 + $0x1b8] sm:$0xff]  }
 0x368   :  { %v11328_v27 = vshrl.u32 %v18474_v5, 16  ;;  %v11333_v47 = vshll.u32 %v11317_v17, 16  ;;  %v18533_v11 = vsel %vm18466_vm10, %v11319_v41, %v11324_v55  ;;  %v18540_v51 = vrot.slane %v10680_v59, %v16235_v26  ;;  %v15771_v17 = vld [vmem:[%s19360_s6 + $0x170] sm:$0xff]   ;;  %v15776_v55 = vld [vmem:[%s19360_s6 + $0x128] sm:$0xff]  }
 0x369   :  { %15413 = vmatmul.mubr.bf16.vlgmr.msra.gmra.mxu1 %v10950_v10  ;;  %v10822_v36 = vrot.slane %v10814_v6, %v16235_v26  ;;  %v11353_v7 = vcombine.low %v10778_v60, %v18533_v11  ;;  %v18546_v19 = vrot.slane %v10697_v58, %v16235_v26  ;;  %v11615_v42 = vcombine.low %v18454_v54, %v10680_v59  ;;  %v15765_v60 = vld [vmem:[%s19360_s6 + $0xc8] sm:$0xff]   ;;  %v15772_v59 = vld [vmem:[%s19360_s6 + $0x138] sm:$0xff]   ;;  %v15774_v41 = vld [vmem:[%s19360_s6 + $0x130] sm:$0xff]  }
 0x36a   :  { %15437 = vmatpush3.bf16.msra.mxu1 %v15753_v3  ;;  %15452 = vmatprep.mubr.msk.bf16.mxu1 %vm16059_vm0, %v16058_v1  ;;  %v18537_v8 = vsel %vm18466_vm10, %v11328_v27, %v11333_v47  ;;  %v11616_v20 = vcombine.low %v18446_v44, %v10697_v58  ;;  %v14363_v23 = vcombine.high %v18480_v61, %v18540_v51  ;;  %v15760_v61 = vld [vmem:[%s19360_s6 + $0xa8] sm:$0xff]   ;;  %v15764_v3 = vld [vmem:[%s19360_s6 + $0x98] sm:$0xff]   ;;  %v15778_v47 = vld [vmem:[%s19360_s6 + $0x120] sm:$0xff]  }
 0x36b   :  { %15438 = vmatprep.subr.bf16.mxu1 %v16058_v1  ;;  %v10830_v18 = vcombine.low %v10822_v36, %v10829_v16  ;;  %v11354_v0 = vcombine.low %v10796_v52, %v18537_v8  ;;  %v18555_v24 = vrot.slane %v11353_v7, %v16235_v26  ;;  %v18566_v46 = vrot.slane %v11615_v42, %v16235_v26  ;;  %v15768_v10 = vld [vmem:[%s19360_s6 + $0x88] sm:$0xff]   ;;  %v15777_v27 = vld [vmem:[%s19360_s6 + $0x158] sm:$0xff]   ;;  %v15782_v7 = vld [vmem:[%s19360_s6 + $0x110] sm:$0xff]  }
 0x36c   :  { %v18572_v2 = vrot.slane %v11616_v20, %v16235_v26  ;;  %v14364_v40 = vcombine.high %v18474_v5, %v18546_v19  ;;  %v18585_v22 = vrot.slane %v14363_v23, %v16235_v26  ;;  %v15761_v5 = vld [vmem:[%s19360_s6 + $0xd8] sm:$0xff]   ;;  %v11188_v15 = vcombine.low %v18448_v4, %v18454_v54  ;;  %v15766_v4 = vld [vmem:[%s19360_s6 + $0x90] sm:$0xff]   ;;  %v15773_v16 = vld [vmem:[%s19360_s6 + $0x168] sm:$0xff]  }
 0x36d   :  { %v10837_v32 = vrot.slane %v10830_v18, %v16235_v26  ;;  %v18558_v56 = vrot.slane %v11354_v0, %v16235_v26  ;;  %v11189_v25 = vcombine.low %v18433_v45, %v18446_v44  ;;  %v14211_v45 = vcombine.high %v18451_v50, %v18463_v33  ;;  %v15767_v44 = vld [vmem:[%s19360_s6 + $0xc0] sm:$0xff]   ;;  %v15769_v33 = vld [vmem:[%s19360_s6 + $0x178] sm:$0xff]   ;;  %v15779_v18 = vld [vmem:[%s19360_s6 + $0x150] sm:$0xff]  }
 0x36e   :  { %15439 = vmatpush3.bf16.msra.mxu1 %v15755_v9  ;;  %v11631_v52 = vcombine.low %v18566_v46, %v18572_v2  ;;  %v18591_v37 = vrot.slane %v14364_v40, %v16235_v26  ;;  %v11196_v48 = vrot.slane %v11188_v15, %v16235_v26  ;;  %v14212_v58 = vcombine.high %v18436_v49, %v18443_v63  ;;  %v15770_v63 = vld [vmem:[%s19360_s6 + $0x80] sm:$0xff]   ;;  %v15785_v42 = vld [vmem:[%s19360_s6 + $0x1f8] sm:$0xff]   ;;  %v15787_v23 = vld [vmem:[%s19360_s6 + $0x1f0] sm:$0xff]  }
 0x36f   :  { %15393 = vmatmul.mubr.bf16.vlgmr.msra.gmra.mxu0 %v10837_v32  ;;  %15440 = vmatprep.subr.bf16.mxu1 %v16058_v1  ;;  %v11369_v31 = vcombine.low %v18555_v24, %v18558_v56  ;;  %v11203_v54 = vrot.slane %v11189_v25, %v16235_v26  ;;  %v11065_v50 = vrot.slane %v14211_v45, %v16235_v26  ;;  %v15775_v9 = vld [vmem:[%s19360_s6 + $0x160] sm:$0xff]   ;;  %v15781_v32 = vld [vmem:[%s19360_s6 + $0x148] sm:$0xff]   ;;  %v11755_v25 = vshrl.u32 %v18546_v19, 16  ;;  %v15806_v2 = vld [vmem:[%s19360_s6 + $0x218] sm:$0xff]  }
 0x370   :  { %15417 = vmatpush3.bf16.msra.mxu0 %v15756_v28  ;;  %15432 = vmatprep.mubr.msk.bf16.mxu0 %vm16059_vm0, %v16058_v1  ;;  %v11927_v29 = vcombine.low %v18585_v22, %v18591_v37  ;;  %v11072_v49 = vrot.slane %v14212_v58, %v16235_v26  ;;  %v15780_v28 = vld [vmem:[%s19360_s6 + $0x118] sm:$0xff]   ;;  %v15783_v0 = vld [vmem:[%s19360_s6 + $0x140] sm:$0xff]   ;;  %v11507_v20 = vrot.slane %v11500_v13, %v16235_v26  ;;  %v15789_v13 = vld [vmem:[%s19360_s6 + $0x1e8] sm:$0xff]  }
 0x371   :  { %15418 = vmatprep.subr.bf16.mxu0 %v16058_v1  ;;  %v11204_v21 = vcombine.low %v11196_v48, %v11203_v54  ;;  %v11376_v62 = vrot.slane %v11369_v31, %v16235_v26  ;;  %v11736_v40 = vcombine.high %v18540_v51, %v18540_v51  ;;  %v15791_v24 = vld [vmem:[%s19360_s6 + $0x1e0] sm:$0xff]   ;;  %v11744_v56 = vcombine.high %v18546_v19, %v18546_v19  ;;  %v15792_v31 = vld [vmem:[%s19360_s6 + $0x1a8] sm:$0xff]  }
 0x372   :  { %15441 = vmatpush3.bf16.msra.mxu1 %v15757_v30  ;;  %v11073_v35 = vcombine.low %v11065_v50, %v11072_v49  ;;  %v15784_v30 = vld [vmem:[%s19360_s6 + $0x108] sm:$0xff]   ;;  %v15794_v15 = vld [vmem:[%s19360_s6 + $0x1a0] sm:$0xff]   ;;  %v15802_v50 = vld [vmem:[%s19360_s6 + $0x238] sm:$0xff]  }
 0x373   :  { %15442 = vmatprep.subr.bf16.mxu1 %v16058_v1  ;;  %v11211_v6 = vrot.slane %v11204_v21, %v16235_v26  ;;  %v15797_v54 = vld [vmem:[%s19360_s6 + $0x1c8] sm:$0xff]   ;;  %v15805_v46 = vld [vmem:[%s19360_s6 + $0x220] sm:$0xff]  }
 0x374   :  { %15419 = vmatpush3.bf16.msra.mxu0 %v15758_v14  ;;  %v11080_v36 = vrot.slane %v11073_v35, %v16235_v26  ;;  %v15786_v14 = vld [vmem:[%s19360_s6 + $0x100] sm:$0xff]   ;;  %v15800_v21 = vld [vmem:[%s19360_s6 + $0x188] sm:$0xff]  }
 0x375   :  { %15420 = vmatprep.subr.bf16.mxu0 %v16058_v1  ;;  %v15804_v49 = vld [vmem:[%s19360_s6 + $0x228] sm:$0xff]   ;;  %v15809_v35 = vld [vmem:[%s19360_s6 + $0x200] sm:$0xff]  }
 0x376   :  { %15443 = vmatpush3.bf16.msra.mxu1 %v15759_v34  ;;  %v15790_v34 = vld [vmem:[%s19360_s6 + $0x1b0] sm:$0xff]  }
 0x377   :  { %15444 = vmatprep.subr.bf16.mxu1 %v16058_v1  ;;  %v15818_v22 = vld [vmem:[%s19362_s8 + $0xc4] ss:$16 sps:$4 sm:$0xff]   ;;  %v15819_v37 = vld [vmem:[%s19362_s8 + $0x2c0] ss:$16 sps:$4 sm:$0xff]  }
 0x378   :  { %15421 = vmatpush3.bf16.msra.mxu0 %v15760_v61  ;;  %v11751_v61 = vshll.u32 %v11736_v40, 16  ;;  %v15849_v40 = vld [vmem:[%s19362_s8 + $0x220] ss:$16 sps:$4 sm:$0xff]  }
 0x379   :  { %15422 = vmatprep.subr.bf16.mxu0 %v16058_v1 }
 0x37a   :  { %15445 = vmatpush3.bf16.msra.mxu1 %v15761_v5  ;;  %v15793_v5 = vld [vmem:[%s19360_s6 + $0x1d8] sm:$0xff]  }
 0x37b   :  { %15446 = vmatprep.subr.bf16.mxu1 %v16058_v1 }
 0x37c   :  { %15423 = vmatpush3.bf16.msra.mxu0 %v15762_v57  ;;  %v11746_v57 = vshrl.u32 %v18540_v51, 16  ;;  %v15795_v51 = vld [vmem:[%s19360_s6 + $0x1d0] sm:$0xff]  }
 0x37d   :  { %15424 = vmatprep.subr.bf16.mxu0 %v16058_v1 }
 0x37e   :  { %15447 = vmatpush3.bf16.msra.mxu1 %v15763_v53  ;;  %v11760_v53 = vshll.u32 %v11744_v56, 16  ;;  %v15857_v56 = vld [vmem:[%s19362_s8 + $0x204] ss:$16 sps:$4 sm:$0xff]  }
 0x37f   :  { %15448 = vmatprep.subr.bf16.mxu1 %v16058_v1 }
 0x380   :  { %15425 = vmatpush3.bf16.msra.mxu0 %v15764_v3  ;;  %v11753_v3 = vsel %vm18466_vm10, %v11746_v57, %v11751_v61  ;;  %v15855_v61 = vld [vmem:[%s19362_s8 + $0x200] ss:$16 sps:$4 sm:$0xff]   ;;  %v15863_v57 = vld [vmem:[%s19362_s8 + $0x3e4] ss:$16 sps:$4 sm:$0xff]  }
 0x381   :  { %15426 = vmatprep.subr.bf16.mxu0 %v16058_v1  ;;  %v11780_v48 = vcombine.low %v18533_v11, %v11753_v3  ;;  %v15798_v11 = vld [vmem:[%s19360_s6 + $0x190] sm:$0xff]  }
 0x382   :  { %15449 = vmatpush3.bf16.msra.mxu1 %v15765_v60  ;;  %v11762_v60 = vsel %vm18466_vm10, %v11755_v25, %v11760_v53  ;;  %v15858_v53 = vld [vmem:[%s19362_s8 + $0x1e0] ss:$16 sps:$4 sm:$0xff]   ;;  %v15866_v3 = vld [vmem:[%s19362_s8 + $0x1c4] ss:$16 sps:$4 sm:$0xff]  }
 0x383   :  { %15450 = vmatprep.subr.bf16.mxu1 %v16058_v1  ;;  %v11781_v19 = vcombine.low %v18537_v8, %v11762_v60  ;;  %v11788_v38 = vrot.slane %v11780_v48, %v16235_v26  ;;  %v15799_v8 = vld [vmem:[%s19360_s6 + $0x1c0] sm:$0xff]  }
 0x384   :  { %15427 = vmatpush3.bf16.msra.mxu0 %v15766_v4  ;;  %v15796_v4 = vld [vmem:[%s19360_s6 + $0x198] sm:$0xff]   ;;  %v15869_v25 = vld [vmem:[%s19362_s8 + $0x3c4] ss:$16 sps:$4 sm:$0xff]   ;;  %v15867_v48 = vld [vmem:[%s19362_s8 + $0x3c0] ss:$16 sps:$4 sm:$0xff]  }
 0x385   :  { %15428 = vmatprep.subr.bf16.mxu0 %v16058_v1  ;;  %v11795_v45 = vrot.slane %v11781_v19, %v16235_v26  ;;  %v15875_v19 = vld [vmem:[%s19362_s8 + $0x3a4] ss:$16 sps:$4 sm:$0xff]  }
 0x386   :  { %15451 = vmatpush3.bf16.msra.mxu1 %v15767_v44 }
 0x387   :  { %15476 = vmatprep.subr.bf16.mxu1 %v16058_v1  ;;  %v11796_v44 = vcombine.low %v11788_v38, %v11795_v45  ;;  %v15870_v38 = vld [vmem:[%s19362_s8 + $0x1a0] ss:$16 sps:$4 sm:$0xff]  }
 0x388   :  { %15429 = vmatpush3.bf16.msra.mxu0 %v15768_v10  ;;  %v15801_v10 = vld [vmem:[%s19360_s6 + $0x180] sm:$0xff]  }
 0x389   :  { %15453 = vmatmul.mubr.bf16.vlgmr.msra.gmra.mxu1 %v11211_v6  ;;  %15430 = vmatprep.subr.bf16.mxu0 %v16058_v1  ;;  %v11803_v58 = vrot.slane %v11796_v44, %v16235_v26  ;;  %v15803_v6 = vld [vmem:[%s19360_s6 + $0x230] sm:$0xff]  }
 0x38a   :  { %15477 = vmatpush3.bf16.msra.mxu1 %v15769_v33  ;;  %15492 = vmatprep.mubr.msk.bf16.mxu1 %vm16059_vm0, %v16058_v1  ;;  %v11638_v33 = vrot.slane %v11631_v52, %v16235_v26  ;;  %v15807_v52 = vld [vmem:[%s19360_s6 + $0x210] sm:$0xff]  }
 0x38b   :  { %15478 = vmatprep.subr.bf16.mxu1 %v16058_v1  ;;  %v15873_v45 = vld [vmem:[%s19362_s8 + $0x3a0] ss:$16 sps:$4 sm:$0xff]  }
 0x38c   :  { %15431 = vmatpush3.bf16.msra.mxu0 %v15770_v63  ;;  %v15808_v63 = vld [vmem:[%s19360_s6 + $0x208] sm:$0xff]  }
 0x38d   :  { %15456 = vmatprep.subr.bf16.mxu0 %v16058_v1 }
 0x38e   :  { %15479 = vmatpush3.bf16.msra.mxu1 %v15771_v17  ;;  %v11934_v17 = vrot.slane %v11927_v29, %v16235_v26  ;;  %v15816_v26 = vld [vmem:[%s19362_s8 + $0xc0] ss:$16 sps:$4 sm:$0xff]   ;;  %v15821_v29 = vld [vmem:[%s19362_s8 + $0x2c4] ss:$16 sps:$4 sm:$0xff]  }
 0x38f   :  { %15433 = vmatmul.mubr.bf16.vlgmr.msra.gmra.mxu0 %v11080_v36  ;;  %15480 = vmatprep.subr.bf16.mxu1 %v16058_v1  ;;  %v15812_v36 = vld [vmem:[%s19362_s8 + $0xe4] ss:$16 sps:$4 sm:$0xff]  }
 0x390   :  { %15457 = vmatpush3.bf16.msra.mxu0 %v15772_v59  ;;  %15472 = vmatprep.mubr.msk.bf16.mxu0 %vm16059_vm0, %v16058_v1  ;;  %v15810_v59 = vld [vmem:[%s19362_s8 + $0xe0] ss:$16 sps:$4 sm:$0xff]  }
 0x391   :  { %15458 = vmatprep.subr.bf16.mxu0 %v16058_v1 }
 0x392   :  { %15481 = vmatpush3.bf16.msra.mxu1 %v15773_v16  ;;  %v15813_v16 = vld [vmem:[%s19362_s8 + $0x2e0] ss:$16 sps:$4 sm:$0xff]  }
 0x393   :  { %15482 = vmatprep.subr.bf16.mxu1 %v16058_v1 }
 0x394   :  { %15459 = vmatpush3.bf16.msra.mxu0 %v15774_v41  ;;  %v15822_v41 = vld [vmem:[%s19362_s8 + $0xa0] ss:$16 sps:$4 sm:$0xff]  }
 0x395   :  { %15460 = vmatprep.subr.bf16.mxu0 %v16058_v1 }
 0x396   :  { %15483 = vmatpush3.bf16.msra.mxu1 %v15775_v9  ;;  %v15824_v9 = vld [vmem:[%s19362_s8 + $0xa4] ss:$16 sps:$4 sm:$0xff]  }
 0x397   :  { %15484 = vmatprep.subr.bf16.mxu1 %v16058_v1 }
 0x398   :  { %15461 = vmatpush3.bf16.msra.mxu0 %v15776_v55  ;;  %v15825_v55 = vld [vmem:[%s19362_s8 + $0x2a0] ss:$16 sps:$4 sm:$0xff]  }
 0x399   :  { %15462 = vmatprep.subr.bf16.mxu0 %v16058_v1 }
 0x39a   :  { %15485 = vmatpush3.bf16.msra.mxu1 %v15777_v27  ;;  %v15827_v27 = vld [vmem:[%s19362_s8 + $0x2a4] ss:$16 sps:$4 sm:$0xff]  }
 0x39b   :  { %15486 = vmatprep.subr.bf16.mxu1 %v16058_v1 }
 0x39c   :  { %15463 = vmatpush3.bf16.msra.mxu0 %v15778_v47  ;;  %v15828_v47 = vld [vmem:[%s19362_s8 + $0x80] ss:$16 sps:$4 sm:$0xff]  }
 0x39d   :  { %15464 = vmatprep.subr.bf16.mxu0 %v16058_v1 }
 0x39e   :  { %15487 = vmatpush3.bf16.msra.mxu1 %v15779_v18  ;;  %v15830_v18 = vld [vmem:[%s19362_s8 + $0x84] ss:$16 sps:$4 sm:$0xff]  }
 0x39f   :  { %15488 = vmatprep.subr.bf16.mxu1 %v16058_v1 }
 0x3a0   :  { %15465 = vmatpush3.bf16.msra.mxu0 %v15780_v28  ;;  %v15831_v28 = vld [vmem:[%s19362_s8 + $0x280] ss:$16 sps:$4 sm:$0xff]  }
 0x3a1   :  { %15466 = vmatprep.subr.bf16.mxu0 %v16058_v1 }
 0x3a2   :  { %15489 = vmatpush3.bf16.msra.mxu1 %v15781_v32  ;;  %v15833_v32 = vld [vmem:[%s19362_s8 + $0x284] ss:$16 sps:$4 sm:$0xff]  }
 0x3a3   :  { %15490 = vmatprep.subr.bf16.mxu1 %v16058_v1 }
 0x3a4   :  { %15467 = vmatpush3.bf16.msra.mxu0 %v15782_v7  ;;  %v15836_v7 = vld [vmem:[%s19362_s8 + $0x64] ss:$16 sps:$4 sm:$0xff]  }
 0x3a5   :  { %15468 = vmatprep.subr.bf16.mxu0 %v16058_v1 }
 0x3a6   :  { %15491 = vmatpush3.bf16.msra.mxu1 %v15783_v0  ;;  %v15834_v0 = vld [vmem:[%s19362_s8 + $0x60] ss:$16 sps:$4 sm:$0xff]  }
 0x3a7   :  { %15516 = vmatprep.subr.bf16.mxu1 %v16058_v1 }
 0x3a8   :  { %15469 = vmatpush3.bf16.msra.mxu0 %v15784_v30  ;;  %v15837_v30 = vld [vmem:[%s19362_s8 + $0x260] ss:$16 sps:$4 sm:$0xff]  }
 0x3a9   :  { %15493 = vmatmul.mubr.bf16.vlgmr.msra.gmra.mxu1 %v11507_v20  ;;  %15470 = vmatprep.subr.bf16.mxu0 %v16058_v1  ;;  %v15842_v20 = vld [vmem:[%s19362_s8 + $0x44] ss:$16 sps:$4 sm:$0xff]  }
 0x3aa   :  { %15517 = vmatpush3.bf16.msra.mxu1 %v15785_v42  ;;  %15532 = vmatprep.mubr.msk.bf16.mxu1 %vm16059_vm0, %v16058_v1  ;;  %v15839_v42 = vld [vmem:[%s19362_s8 + $0x264] ss:$16 sps:$4 sm:$0xff]  }
 0x3ab   :  { %15518 = vmatprep.subr.bf16.mxu1 %v16058_v1 }
 0x3ac   :  { %15471 = vmatpush3.bf16.msra.mxu0 %v15786_v14  ;;  %v15845_v14 = vld [vmem:[%s19362_s8 + $0x244] ss:$16 sps:$4 sm:$0xff]  }
 0x3ad   :  { %15496 = vmatprep.subr.bf16.mxu0 %v16058_v1 }
 0x3ae   :  { %15519 = vmatpush3.bf16.msra.mxu1 %v15787_v23  ;;  %v15840_v23 = vld [vmem:[%s19362_s8 + $0x40] ss:$16 sps:$4 sm:$0xff]  }
 0x3af   :  { %15473 = vmatmul.mubr.bf16.vlgmr.msra.gmra.mxu0 %v11376_v62  ;;  %15520 = vmatprep.subr.bf16.mxu1 %v16058_v1  ;;  %v15848_v62 = vld [vmem:[%s19362_s8 + $0x24] ss:$16 sps:$4 sm:$0xff]  }
 0x3b0   :  { %15497 = vmatpush3.bf16.msra.mxu0 %v15788_v39  ;;  %15512 = vmatprep.mubr.msk.bf16.mxu0 %vm16059_vm0, %v16058_v1  ;;  %v15843_v39 = vld [vmem:[%s19362_s8 + $0x240] ss:$16 sps:$4 sm:$0xff]  }
 0x3b1   :  { %15498 = vmatprep.subr.bf16.mxu0 %v16058_v1 }
 0x3b2   :  { %15521 = vmatpush3.bf16.msra.mxu1 %v15789_v13  ;;  %v15851_v13 = vld [vmem:[%s19362_s8 + $0x224] ss:$16 sps:$4 sm:$0xff]  }
 0x3b3   :  { %15522 = vmatprep.subr.bf16.mxu1 %v16058_v1 }
 0x3b4   :  { %15499 = vmatpush3.bf16.msra.mxu0 %v15790_v34  ;;  %v15846_v34 = vld [vmem:[%s19362_s8 + $0x20] ss:$16 sps:$4 sm:$0xff]  }
 0x3b5   :  { %15500 = vmatprep.subr.bf16.mxu0 %v16058_v1 }
 0x3b6   :  { %15523 = vmatpush3.bf16.msra.mxu1 %v15791_v24  ;;  %v15854_v24 = vld [vmem:[%s19362_s8 + $0x4] ss:$16 sps:$4 sm:$0xff]  }
 0x3b7   :  { %15524 = vmatprep.subr.bf16.mxu1 %v16058_v1 }
 0x3b8   :  { %15501 = vmatpush3.bf16.msra.mxu0 %v15792_v31  ;;  %v15852_v31 = vld [vmem:[%s19362_s8] ss:$16 sps:$4 sm:$0xff]  }
 0x3b9   :  { %15502 = vmatprep.subr.bf16.mxu0 %v16058_v1 }
 0x3ba   :  { %15525 = vmatpush3.bf16.msra.mxu1 %v15793_v5  ;;  %v15860_v5 = vld [vmem:[%s19362_s8 + $0x1e4] ss:$16 sps:$4 sm:$0xff]  }
 0x3bb   :  { %15526 = vmatprep.subr.bf16.mxu1 %v16058_v1 }
 0x3bc   :  { %15503 = vmatpush3.bf16.msra.mxu0 %v15794_v15  ;;  %v15861_v15 = vld [vmem:[%s19362_s8 + $0x3e0] ss:$16 sps:$4 sm:$0xff]  }
 0x3bd   :  { %15504 = vmatprep.subr.bf16.mxu0 %v16058_v1 }
 0x3be   :  { %15527 = vmatpush3.bf16.msra.mxu1 %v15795_v51  ;;  %v15864_v51 = vld [vmem:[%s19362_s8 + $0x1c0] ss:$16 sps:$4 sm:$0xff]  }
 0x3bf   :  { %15528 = vmatprep.subr.bf16.mxu1 %v16058_v1 }
 0x3c0   :  { %15505 = vmatpush3.bf16.msra.mxu0 %v15796_v4  ;;  %v15872_v4 = vld [vmem:[%s19362_s8 + $0x1a4] ss:$16 sps:$4 sm:$0xff]  }
 0x3c1   :  { %15506 = vmatprep.subr.bf16.mxu0 %v16058_v1 }
 0x3c2   :  { %15529 = vmatpush3.bf16.msra.mxu1 %v15797_v54 }
 0x3c3   :  { %15530 = vmatprep.subr.bf16.mxu1 %v16058_v1 }
 0x3c4   :  { %15507 = vmatpush3.bf16.msra.mxu0 %v15798_v11 }
 0x3c5   :  { %15508 = vmatprep.subr.bf16.mxu0 %v16058_v1 }
 0x3c6   :  { %15531 = vmatpush3.bf16.msra.mxu1 %v15799_v8 }
 0x3c7   :  { %12869 = vmatprep.subr.bf16.mxu1 %v15812_v36  ;;  %v15888_v36 = vld [vmem:[%s19362_s8 + $0x140] ss:$16 sps:$4 sm:$0xff]  }
 0x3c8   :  { %15509 = vmatpush3.bf16.msra.mxu0 %v15800_v21 }
 0x3c9   :  { %15533 = vmatmul.mubr.bf16.vlgmr.msra.gmra.mxu1 %v11803_v58  ;;  %15510 = vmatprep.subr.bf16.mxu0 %v16058_v1 }
 0x3ca   :  { %12870 = vmatpush1.bf16.msra.mxu1 %v15810_v59  ;;  %v15893_v59 = vld [vmem:[%s19362_s8 + $0x344] ss:$16 sps:$4 sm:$0xff]  }
 0x3cb   :  { %12871 = vmatprep.subr.bf16.mxu1 %v15818_v22 }
 0x3cc   :  { %15511 = vmatpush3.bf16.msra.mxu0 %v15801_v10 }
 0x3cd   :  { %15536 = vmatprep.subr.bf16.mxu0 %v16058_v1 }
 0x3ce   :  { %12872 = vmatpush1.bf16.msra.mxu1 %v15816_v26  ;;  %v15899_v26 = vld [vmem:[%s19362_s8 + $0x324] ss:$16 sps:$4 sm:$0xff]  }
 0x3cf   :  { %15513 = vmatmul.mubr.bf16.vlgmr.msra.gmra.mxu0 %v11638_v33  ;;  %12873 = vmatprep.subr.bf16.mxu1 %v15824_v9  ;;  %v15876_v33 = vld [vmem:[%s19362_s8 + $0x180] ss:$16 sps:$4 sm:$0xff]  }
 0x3d0   :  { %15537 = vmatpush3.bf16.msra.mxu0 %v15802_v50  ;;  %15552 = vmatprep.mubr.msk.bf16.mxu0 %vm16059_vm0, %v16058_v1  ;;  %vm12061_vm0 = vcmask 1041409  }
 0x3d1   :  { %15538 = vmatprep.subr.bf16.mxu0 %v16058_v1 }
 0x3d2   :  { %12874 = vmatpush1.bf16.msra.mxu1 %v15822_v41  ;;  %v15902_v41 = vld [vmem:[%s19362_s8 + $0x104] ss:$16 sps:$4 sm:$0xff]  }
 0x3d3   :  { %12875 = vmatprep.subr.bf16.mxu1 %v15830_v18  ;;  %v15903_v18 = vld [vmem:[%s19362_s8 + $0x300] ss:$16 sps:$4 sm:$0xff]  }
 0x3d4   :  { %15539 = vmatpush3.bf16.msra.mxu0 %v15803_v6  ;;  %v15878_v6 = vld [vmem:[%s19362_s8 + $0x184] ss:$16 sps:$4 sm:$0xff]  }
 0x3d5   :  { %15540 = vmatprep.subr.bf16.mxu0 %v16058_v1 }
 0x3d6   :  { %12876 = vmatpush1.bf16.msra.mxu1 %v15828_v47  ;;  %v15900_v47 = vld [vmem:[%s19362_s8 + $0x100] ss:$16 sps:$4 sm:$0xff]  }
 0x3d7   :  { %12877 = vmatprep.subr.bf16.mxu1 %v15836_v7 }
 0x3d8   :  { %15541 = vmatpush3.bf16.msra.mxu0 %v15804_v49  ;;  %v15879_v49 = vld [vmem:[%s19362_s8 + $0x380] ss:$16 sps:$4 sm:$0xff]  }
 0x3d9   :  { %15542 = vmatprep.subr.bf16.mxu0 %v16058_v1 }
 0x3da   :  { %12878 = vmatpush1.bf16.msra.mxu1 %v15834_v0  ;;  %v15911_v0 = vld [vmem:[%s19362_s8 + $0x2ec] ss:$16 sps:$4 sm:$0xff]  }
 0x3db   :  { %12879 = vmatprep.subr.bf16.mxu1 %v15842_v20 }
 0x3dc   :  { %15543 = vmatpush3.bf16.msra.mxu0 %v15805_v46  ;;  %v15881_v46 = vld [vmem:[%s19362_s8 + $0x384] ss:$16 sps:$4 sm:$0xff]  }
 0x3dd   :  { %15544 = vmatprep.subr.bf16.mxu0 %v16058_v1 }
 0x3de   :  { %12880 = vmatpush1.bf16.msra.mxu1 %v15840_v23 }
 0x3df   :  { %12881 = vmatprep.subr.bf16.mxu1 %v15848_v62 }
 0x3e0   :  { %15545 = vmatpush3.bf16.msra.mxu0 %v15806_v2  ;;  %v15884_v2 = vld [vmem:[%s19362_s8 + $0x164] ss:$16 sps:$4 sm:$0xff]  }
 0x3e1   :  { %15546 = vmatprep.subr.bf16.mxu0 %v16058_v1 }
 0x3e2   :  { %12882 = vmatpush1.bf16.msra.mxu1 %v15846_v34 }
 0x3e3   :  { %12883 = vmatprep.subr.bf16.mxu1 %v15854_v24 }
 0x3e4   :  { %15547 = vmatpush3.bf16.msra.mxu0 %v15807_v52  ;;  %v15887_v52 = vld [vmem:[%s19362_s8 + $0x364] ss:$16 sps:$4 sm:$0xff]  }
 0x3e5   :  { %15548 = vmatprep.subr.bf16.mxu0 %v16058_v1 }
 0x3e6   :  { %12884 = vmatpush1.bf16.msra.mxu1 %v15852_v31 }
 0x3e7   :  { %12885 = vmatprep.subr.bf16.mxu1 %v15860_v5 }
 0x3e8   :  { %15549 = vmatpush3.bf16.msra.mxu0 %v15808_v63  ;;  %v15882_v63 = vld [vmem:[%s19362_s8 + $0x160] ss:$16 sps:$4 sm:$0xff]  }
 0x3e9   :  { %15550 = vmatprep.subr.bf16.mxu0 %v16058_v1  ;;  %v15815_v1 = vld [vmem:[%s19362_s8 + $0x2e4] ss:$16 sps:$4 sm:$0xff]  }
 0x3ea   :  { %12886 = vmatpush2.bf16.msra.mxu1 %v15858_v53 }
 0x3eb   :  { %12887 = vmatprep.subr.bf16.mxu1 %v15866_v3 }
 0x3ec   :  { %15551 = vmatpush3.bf16.msra.mxu0 %v15809_v35  ;;  %v15885_v35 = vld [vmem:[%s19362_s8 + $0x360] ss:$16 sps:$4 sm:$0xff]  }
 0x3ed   :  { %12910 = vmatprep.subr.bf16.mxu0 %v15815_v1  ;;  %v15896_v1 = vld [vmem:[%s19362_s8 + $0x124] ss:$16 sps:$4 sm:$0xff]  }
 0x3ee   :  { %12888 = vmatpush2.bf16.msra.mxu1 %v15864_v51 }
 0x3ef   :  { %15553 = vmatmul.mubr.bf16.vlgmr.msra.gmra.mxu0 %v11934_v17  ;;  %12889 = vmatprep.subr.bf16.mxu1 %v15872_v4  ;;  %v15890_v17 = vld [vmem:[%s19362_s8 + $0x144] ss:$16 sps:$4 sm:$0xff]  }
 0x3f0   :  { %12911 = vmatpush1.bf16.msra.mxu0 %v15813_v16  ;;  %v15891_v16 = vld [vmem:[%s19362_s8 + $0x340] ss:$16 sps:$4 sm:$0xff]  }
 0x3f1   :  { %12912 = vmatprep.subr.bf16.mxu0 %v15821_v29  ;;  %v15897_v29 = vld [vmem:[%s19362_s8 + $0x320] ss:$16 sps:$4 sm:$0xff]  }
 0x3f2   :  { %12890 = vmatpush2.bf16.msra.mxu1 %v15870_v38  ;;  %v14373_v38 = vld [vmem:[%s19361_s7] ss:$0 sm:$0xff] }
 0x3f3   :  { %12891 = vmatprep.subr.bf16.mxu1 %v15878_v6 }
 0x3f4   :  { %12913 = vmatpush1.bf16.msra.mxu0 %v15819_v37  ;;  %v15894_v37 = vld [vmem:[%s19362_s8 + $0x120] ss:$16 sps:$4 sm:$0xff]  }
 0x3f5   :  { %12914 = vmatprep.subr.bf16.mxu0 %v15827_v27 }
 0x3f6   :  { %12892 = vmatpush2.bf16.msra.mxu1 %v15876_v33 }
 0x3f7   :  { %12893 = vmatprep.subr.bf16.mxu1 %v15884_v2 }
 0x3f8   :  { %12915 = vmatpush1.bf16.msra.mxu0 %v15825_v55  ;;  %v15905_v55 = vld [vmem:[%s19362_s8 + $0x304] ss:$16 sps:$4 sm:$0xff]  }
 0x3f9   :  { %12916 = vmatprep.subr.bf16.mxu0 %v15833_v32 }
 0x3fa   :  { %12894 = vmatpush2.bf16.msra.mxu1 %v15882_v63 }
 0x3fb   :  { %12895 = vmatprep.subr.bf16.mxu1 %v15890_v17 }
 0x3fc   :  { %12917 = vmatpush1.bf16.msra.mxu0 %v15831_v28  ;;  %v15908_v28 = vld [vmem:[%s19362_s8 + $0xec] ss:$16 sps:$4 sm:$0xff]  }
 0x3fd   :  { %12918 = vmatprep.subr.bf16.mxu0 %v15839_v42 }
 0x3fe   :  { %12896 = vmatpush2.bf16.msra.mxu1 %v15888_v36 }
 0x3ff   :  { %12897 = vmatprep.subr.bf16.mxu1 %v15896_v1 }
 0x400   :  { %12919 = vmatpush1.bf16.msra.mxu0 %v15837_v30 }
 0x401   :  { %12920 = vmatprep.subr.bf16.mxu0 %v15845_v14 }
 0x402   :  { %12898 = vmatpush2.bf16.msra.mxu1 %v15894_v37 }
 0x403   :  { %12899 = vmatprep.subr.bf16.mxu1 %v15902_v41 }
 0x404   :  { %12921 = vmatpush1.bf16.msra.mxu0 %v15843_v39 }
 0x405   :  { %12922 = vmatprep.subr.bf16.mxu0 %v15851_v13 }
 0x406   :  { %12900 = vmatpush2.bf16.msra.mxu1 %v15900_v47  ;;  %v15917_v47 = vld [vmem:[%s19362_s8 + $0x2cc] ss:$16 sps:$4 sm:$0xff]  }
 0x407   :  { %12951 = vmatprep.subr.bf16.mxu1 %v15908_v28  ;;  %v15915_v28 = vld [vmem:[%s19362_s8 + $0x2c8] ss:$16 sps:$4 sm:$0xff]  }
 0x408   :  { %12923 = vmatpush1.bf16.msra.mxu0 %v15849_v40 }
 0x409   :  { %12924 = vmatprep.subr.bf16.mxu0 %v15857_v56 }
 0x40c   :  { %12925 = vmatpush1.bf16.msra.mxu0 %v15855_v61 }
 0x40d   :  { %12926 = vmatprep.subr.bf16.mxu0 %v15863_v57 }
 0x410   :  { %12927 = vmatpush2.bf16.msra.mxu0 %v15861_v15 }
 0x411   :  { %12928 = vmatprep.subr.bf16.mxu0 %v15869_v25 }
 0x414   :  { %12929 = vmatpush2.bf16.msra.mxu0 %v15867_v48 }
 0x415   :  { %12930 = vmatprep.subr.bf16.mxu0 %v15875_v19 }
 0x418   :  { %12931 = vmatpush2.bf16.msra.mxu0 %v15873_v45 }
 0x419   :  { %12932 = vmatprep.subr.bf16.mxu0 %v15881_v46 }
 0x41c   :  { %12933 = vmatpush2.bf16.msra.mxu0 %v15879_v49 }
 0x41d   :  { %12934 = vmatprep.subr.bf16.mxu0 %v15887_v52 }
 0x420   :  { %12935 = vmatpush2.bf16.msra.mxu0 %v15885_v35 }
 0x421   :  { %12936 = vmatprep.subr.bf16.mxu0 %v15893_v59 }
 0x424   :  { %12937 = vmatpush2.bf16.msra.mxu0 %v15891_v16 }
 0x425   :  { %12938 = vmatprep.subr.bf16.mxu0 %v15899_v26  ;;  %v15906_v26 = vld [vmem:[%s19362_s8 + $0xe8] ss:$16 sps:$4 sm:$0xff]  }
 0x428   :  { %12939 = vmatpush2.bf16.msra.mxu0 %v15897_v29 }
 0x429   :  { %v11034_v60 = vpop.f32.mrf.mxu1  ;;  %12940 = vmatprep.subr.bf16.mxu0 %v15905_v55 }
 0x42b   :  { %v15414_v54 = vpop.f32.mrf.mxu1 }
 0x42c   :  { %12941 = vmatpush2.bf16.msra.mxu0 %v15903_v18  ;;  %v15912_v18 = vld [vmem:[%s19362_s8 + $0xc8] ss:$16 sps:$4 sm:$0xff]  }
 0x42d   :  { %v11037_v11 = vpop.f32.mrf.mxu1  ;;  %12992 = vmatprep.subr.bf16.mxu0 %v15911_v0  ;;  %v15918_v0 = vld [vmem:[%s19362_s8 + $0xa8] ss:$16 sps:$4 sm:$0xff]  }
 0x42f   :  { %v15415_v8 = vpop.f32.mrf.mxu1  ;;  %v10921_v44 = vpop.f32.mrf.mxu0 }
 0x430   :  { %v11035_v21 = vadd.f32 %v11034_v60, %v10921_v44 }
 0x431   :  { %v15394_v58 = vpop.f32.mrf.mxu0 }
 0x433   :  { %v10924_v10 = vpop.f32.mrf.mxu0 }
 0x435   :  { %v15395_v50 = vpop.f32.mrf.mxu0 }
 0x449   :  { %v11295_v22 = vpop.f32.mrf.mxu1 }
 0x44b   :  { %v15454_v9 = vpop.f32.mrf.mxu1 }
 0x44c   :  { %v15909_v9 = vld [vmem:[%s19362_s8 + $0x2e8] ss:$16 sps:$4 sm:$0xff]  }
 0x44d   :  { %v11298_v27 = vpop.f32.mrf.mxu1 }
 0x44e   :  { %v15914_v27 = vld [vmem:[%s19362_s8 + $0xcc] ss:$16 sps:$4 sm:$0xff]  }
 0x44f   :  { %v15455_v32 = vpop.f32.mrf.mxu1  ;;  %v11164_v7 = vpop.f32.mrf.mxu0 }
 0x450   :  { %v11170_v30 = vadd.f32 %v11164_v7, %v11035_v21  ;;  %v15920_v32 = vld [vmem:[%s19362_s8 + $0xac] ss:$16 sps:$4 sm:$0xff]  }
 0x451   :  { %v15434_v42 = vpop.f32.mrf.mxu0  ;;  %v15923_v7 = vld [vmem:[%s19362_s8 + $0x2ac] ss:$16 sps:$4 sm:$0xff]  }
 0x452   :  { %v11301_v20 = vadd.f32 %v11295_v22, %v11170_v30  ;;  %v15921_v30 = vld [vmem:[%s19362_s8 + $0x2a8] ss:$16 sps:$4 sm:$0xff]   ;;  %v15926_v42 = vld [vmem:[%s19362_s8 + $0x8c] ss:$16 sps:$4 sm:$0xff]  }
 0x453   :  { %v11167_v14 = vpop.f32.mrf.mxu0 }
 0x454   :  { %v15924_v14 = vld [vmem:[%s19362_s8 + $0x88] ss:$16 sps:$4 sm:$0xff]  }
 0x455   :  { %v15435_v23 = vpop.f32.mrf.mxu0 }
 0x456   :  { %v15927_v23 = vld [vmem:[%s19362_s8 + $0x288] ss:$16 sps:$4 sm:$0xff]  }
 0x469   :  { %v11591_v39 = vpop.f32.mrf.mxu1 }
 0x46b   :  { %v15494_v62 = vpop.f32.mrf.mxu1 }
 0x46c   :  { %v15935_v62 = vld [vmem:[%s19362_s8 + $0x26c] ss:$16 sps:$4 sm:$0xff]  }
 0x46d   :  { %v11594_v13 = vpop.f32.mrf.mxu1 }
 0x46e   :  { %v15930_v13 = vld [vmem:[%s19362_s8 + $0x68] ss:$16 sps:$4 sm:$0xff]  }
 0x46f   :  { %v15495_v34 = vpop.f32.mrf.mxu1  ;;  %v11460_v40 = vpop.f32.mrf.mxu0 }
 0x470   :  { %v11466_v24 = vadd.f32 %v11460_v40, %v11301_v20  ;;  %v15929_v20 = vld [vmem:[%s19362_s8 + $0x28c] ss:$16 sps:$4 sm:$0xff]   ;;  %v15933_v34 = vld [vmem:[%s19362_s8 + $0x268] ss:$16 sps:$4 sm:$0xff]  }
 0x471   :  { %v15474_v56 = vpop.f32.mrf.mxu0  ;;  %v15938_v40 = vld [vmem:[%s19362_s8 + $0x4c] ss:$16 sps:$4 sm:$0xff]  }
 0x472   :  { %v11597_v31 = vadd.f32 %v11591_v39, %v11466_v24  ;;  %v15932_v39 = vld [vmem:[%s19362_s8 + $0x6c] ss:$16 sps:$4 sm:$0xff]   ;;  %v15936_v56 = vld [vmem:[%s19362_s8 + $0x48] ss:$16 sps:$4 sm:$0xff]  }
 0x473   :  { %v11463_v61 = vpop.f32.mrf.mxu0  ;;  %v15941_v24 = vld [vmem:[%s19362_s8 + $0x24c] ss:$16 sps:$4 sm:$0xff]  }
 0x474   :  { %v15944_v61 = vld [vmem:[%s19362_s8 + $0x2c] ss:$16 sps:$4 sm:$0xff]  }
 0x475   :  { %v15475_v5 = vpop.f32.mrf.mxu0 }
 0x476   :  { %v15947_v5 = vld [vmem:[%s19362_s8 + $0x22c] ss:$16 sps:$4 sm:$0xff]  }
 0x489   :  { %v11887_v57 = vpop.f32.mrf.mxu1 }
 0x48b   :  { %v15534_v53 = vpop.f32.mrf.mxu1 }
 0x48c   :  { %v15945_v53 = vld [vmem:[%s19362_s8 + $0x228] ss:$16 sps:$4 sm:$0xff]  }
 0x48d   :  { %v11890_v15 = vpop.f32.mrf.mxu1 }
 0x48e   :  { %v15950_v15 = vld [vmem:[%s19362_s8 + $0xc] ss:$16 sps:$4 sm:$0xff]  }
 0x48f   :  { %v15535_v3 = vpop.f32.mrf.mxu1  ;;  %v11722_v25 = vpop.f32.mrf.mxu0 }
 0x490   :  { %v11728_v4 = vadd.f32 %v11722_v25, %v11597_v31  ;;  %v15939_v31 = vld [vmem:[%s19362_s8 + $0x248] ss:$16 sps:$4 sm:$0xff]   ;;  %v15953_v3 = vld [vmem:[%s19362_s8 + $0x20c] ss:$16 sps:$4 sm:$0xff]  }
 0x491   :  { %v15514_v51 = vpop.f32.mrf.mxu0  ;;  %v15948_v25 = vld [vmem:[%s19362_s8 + $0x8] ss:$16 sps:$4 sm:$0xff]  }
 0x492   :  { %v11893_v19 = vadd.f32 %v11887_v57, %v11728_v4  ;;  %v15942_v57 = vld [vmem:[%s19362_s8 + $0x28] ss:$16 sps:$4 sm:$0xff]  }
 0x493   :  { %v11725_v60 = vpop.f32.mrf.mxu0  ;;  %v15951_v51 = vld [vmem:[%s19362_s8 + $0x208] ss:$16 sps:$4 sm:$0xff]  }
 0x494   :  { %v15956_v60 = vld [vmem:[%s19362_s8 + $0x1ec] ss:$16 sps:$4 sm:$0xff]   ;;  %v15954_v4 = vld [vmem:[%s19362_s8 + $0x1e8] ss:$16 sps:$4 sm:$0xff]  }
 0x495   :  { %v15515_v48 = vpop.f32.mrf.mxu0 }
 0x496   :  { %v15959_v48 = vld [vmem:[%s19362_s8 + $0x3ec] ss:$16 sps:$4 sm:$0xff]  }
 0x4af   :  { %v12018_v54 = vpop.f32.mrf.mxu0 }
 0x4b0   :  { %v12024_v11 = vadd.f32 %v12018_v54, %v11893_v19  ;;  %v15957_v19 = vld [vmem:[%s19362_s8 + $0x3e8] ss:$16 sps:$4 sm:$0xff]   ;;  %v15962_v54 = vld [vmem:[%s19362_s8 + $0x1cc] ss:$16 sps:$4 sm:$0xff]  }
 0x4b1   :  { %v15554_v45 = vpop.f32.mrf.mxu0 }
 0x4b2   :  { %v12032_v8 = vadd.f32 %v14373_v38, %v12024_v11  ;;  %v15965_v38 = vld [vmem:[%s19362_s8 + $0x3cc] ss:$16 sps:$4 sm:$0xff]   ;;  %v15960_v11 = vld [vmem:[%s19362_s8 + $0x1c8] ss:$16 sps:$4 sm:$0xff]  }
 0x4b3   :  { %v12021_v44 = vpop.f32.mrf.mxu0  ;;  %v15963_v45 = vld [vmem:[%s19362_s8 + $0x3c8] ss:$16 sps:$4 sm:$0xff]  }
 0x4b4   :  { %v12033_v21 = vmax.f32 %v12032_v8, 0.0  ;;  %v15968_v8 = vld [vmem:[%s19362_s8 + $0x1ac] ss:$16 sps:$4 sm:$0xff]  }
 0x4b5   :  { %v15555_v58 = vpop.f32.mrf.mxu0  ;;  %v15971_v44 = vld [vmem:[%s19362_s8 + $0x3ac] ss:$16 sps:$4 sm:$0xff]  }
 0x4b6   :  { %v12034_v10 = vpack.c.bf16 %v12033_v21, %v12033_v21  ;;  %v15966_v21 = vld [vmem:[%s19362_s8 + $0x1a8] ss:$16 sps:$4 sm:$0xff]  }
 0x4b7   :  { %v15969_v58 = vld [vmem:[%s19362_s8 + $0x3a8] ss:$16 sps:$4 sm:$0xff]  }
 0x4b8   :  { %v12042_v50 = vrot.slane %v12034_v10, %v17049_v43  ;;  %v15974_v10 = vld [vmem:[%s19362_s8 + $0x18c] ss:$16 sps:$4 sm:$0xff]  }
 0x4ba   :  { %v12043_v33 = vcombine.high %v12042_v50, %v12042_v50  ;;  %v12050_v6 = vrot.slane %v12042_v50, %v17049_v43  ;;  %v15977_v50 = vld [vmem:[%s19362_s8 + $0x38c] ss:$16 sps:$4 sm:$0xff]  }
 0x4bc   :  { %v12057_v49 = vrot.slane %v12043_v33, %v17049_v43  ;;  %v12058_v46 = vunpack.c.l.b16 %v12050_v6  ;;  %v15972_v33 = vld [vmem:[%s19362_s8 + $0x188] ss:$16 sps:$4 sm:$0xff]  }
 0x4bd   :  { %v15975_v6 = vld [vmem:[%s19362_s8 + $0x388] ss:$16 sps:$4 sm:$0xff]  }
 0x4be   :  { %v12059_v2 = vunpack.c.l.b16 %v12057_v49  ;;  %v12065_v52 = vrot.slane %v12058_v46, 1  ;;  %v12074_v63 = vrot.slane %v12058_v46, 3  ;;  %v12069_v35 = vrot.slane %v12058_v46, 2  ;;  %v15980_v49 = vld [vmem:[%s19362_s8 + $0x16c] ss:$16 sps:$4 sm:$0xff]  }
 0x4c0   :  { %v12066_v17 = vsel %vm12061_vm0, %v12059_v2, %v12065_v52  ;;  %v12060_v59 = vrot.slane %v12059_v2, 7  ;;  %v12075_v36 = vrot.slane %v12059_v2, 2  ;;  %v12070_v16 = vrot.slane %v12059_v2, 1  ;;  %v15978_v2 = vld [vmem:[%s19362_s8 + $0x168] ss:$16 sps:$4 sm:$0xff]  }
 0x4c1   :  { %v12067_v1 = vpack.c.b16 %v12066_v17, %v12066_v17  ;;  %v15981_v52 = vld [vmem:[%s19362_s8 + $0x368] ss:$16 sps:$4 sm:$0xff]  }
 0x4c2   :  { %v12062_v22 = vsel %vm12061_vm0, %v12060_v59, %v12058_v46  ;;  %v12076_v37 = vsel %vm12061_vm0, %v12075_v36, %v12074_v63  ;;  %v12071_v29 = vsel %vm12061_vm0, %v12070_v16, %v12069_v35  ;;  %v15983_v46 = vld [vmem:[%s19362_s8 + $0x36c] ss:$16 sps:$4 sm:$0xff]   ;;  %v15984_v17 = vld [vmem:[%s19362_s8 + $0x148] ss:$16 sps:$4 sm:$0xff]  }
 0x4c3   :  { %12901 = vmatprep.mubr.bf16.mxu1 %v12067_v1  ;;  %v19054_v43 = vpack.c.b16 %v12062_v22, %v12062_v22  ;;  %v12077_v41 = vpack.c.b16 %v12076_v37, %v12076_v37  ;;  %v19059_v55 = vpack.c.b16 %v12071_v29, %v12071_v29  ;;  %v15986_v63 = vld [vmem:[%s19362_s8 + $0x14c] ss:$16 sps:$4 sm:$0xff]   ;;  %v15987_v59 = vld [vmem:[%s19362_s8 + $0x348] ss:$16 sps:$4 sm:$0xff]  }
 0x4c4   :  { %v15989_v35 = vld [vmem:[%s19362_s8 + $0x34c] ss:$16 sps:$4 sm:$0xff]   ;;  %v15996_v29 = vld [vmem:[%s19362_s8 + $0x108] ss:$16 sps:$4 sm:$0xff]  }
 0x4c5   :  { %12902 = vmatmul.mubr.bf16.vlgmr.msra.gmra.mxu1 %v19054_v43  ;;  %12942 = vmatprep.mubr.bf16.mxu0 %v12077_v41  ;;  %v15992_v36 = vld [vmem:[%s19362_s8 + $0x12c] ss:$16 sps:$4 sm:$0xff]  }
 0x4c6   :  { %12952 = vmatpush1.bf16.msra.mxu1 %v15906_v26  ;;  %12943 = vmatmul.mubr.bf16.vlgmr.msra.gmra.mxu0 %v19059_v55  ;;  %v15995_v16 = vld [vmem:[%s19362_s8 + $0x32c] ss:$16 sps:$4 sm:$0xff]   ;;  %v15993_v26 = vld [vmem:[%s19362_s8 + $0x328] ss:$16 sps:$4 sm:$0xff]  }
 0x4c7   :  { %12983 = vmatprep.mubr.bf16.mxu1 %v12067_v1  ;;  %12993 = vmatpush1.bf16.msra.mxu0 %v15909_v9  ;;  %v15990_v1 = vld [vmem:[%s19362_s8 + $0x128] ss:$16 sps:$4 sm:$0xff]   ;;  %v15998_v22 = vld [vmem:[%s19362_s8 + $0x10c] ss:$16 sps:$4 sm:$0xff]  }
 0x4c8   :  { %13024 = vmatprep.mubr.bf16.mxu0 %v12077_v41  ;;  %12953 = vmatprep.subr.bf16.mxu1 %v15914_v27  ;;  %v16001_v37 = vld [vmem:[%s19362_s8 + $0x30c] ss:$16 sps:$4 sm:$0xff]   ;;  %v15999_v41 = vld [vmem:[%s19362_s8 + $0x308] ss:$16 sps:$4 sm:$0xff]  }
 0x4c9   :  { %12994 = vmatprep.subr.bf16.mxu0 %v15917_v47  ;;  %v16002_v9 = vld [vmem:[%s19364_s10 + $0x78] sm:$0xff]   ;;  %v16004_v47 = vld [vmem:[%s19364_s10 + $0x70] sm:$0xff]  }
 0x4ca   :  { %12954 = vmatpush1.bf16.msra.mxu1 %v15912_v18  ;;  %v16003_v27 = vld [vmem:[%s19364_s10 + $0x38] sm:$0xff]   ;;  %v16005_v18 = vld [vmem:[%s19364_s10 + $0x30] sm:$0xff]  }
 0x4cb   :  { %12995 = vmatpush1.bf16.msra.mxu0 %v15915_v28  ;;  %12955 = vmatprep.subr.bf16.mxu1 %v15920_v32  ;;  %v16006_v28 = vld [vmem:[%s19364_s10 + $0x68] sm:$0xff]  }
 0x4cc   :  { %12996 = vmatprep.subr.bf16.mxu0 %v15923_v7  ;;  %v16007_v32 = vld [vmem:[%s19364_s10 + $0x28] sm:$0xff]   ;;  %v16010_v7 = vld [vmem:[%s19364_s10 + $0x58] sm:$0xff]  }
 0x4ce   :  { %12956 = vmatpush1.bf16.msra.mxu1 %v15918_v0  ;;  %v16018_v0 = vld [vmem:[%s19364_s10 + $0xf8] sm:$0xff]  }
 0x4cf   :  { %12997 = vmatpush1.bf16.msra.mxu0 %v15921_v30  ;;  %12957 = vmatprep.subr.bf16.mxu1 %v15926_v42  ;;  %v16019_v30 = vld [vmem:[%s19364_s10 + $0xb8] sm:$0xff]   ;;  %v16020_v42 = vld [vmem:[%s19364_s10 + $0xf0] sm:$0xff]  }
 0x4d0   :  { %12998 = vmatprep.subr.bf16.mxu0 %v15929_v20  ;;  %v16011_v20 = vld [vmem:[%s19364_s10 + $0x18] sm:$0xff]  }
 0x4d2   :  { %12958 = vmatpush1.bf16.msra.mxu1 %v15924_v14  ;;  %v16012_v14 = vld [vmem:[%s19364_s10 + $0x50] sm:$0xff]  }
 0x4d3   :  { %12999 = vmatpush1.bf16.msra.mxu0 %v15927_v23  ;;  %12959 = vmatprep.subr.bf16.mxu1 %v15932_v39  ;;  %v16021_v23 = vld [vmem:[%s19364_s10 + $0xb0] sm:$0xff]   ;;  %v16022_v39 = vld [vmem:[%s19364_s10 + $0xe8] sm:$0xff]  }
 0x4d4   :  { %13000 = vmatprep.subr.bf16.mxu0 %v15935_v62  ;;  %v16013_v62 = vld [vmem:[%s19364_s10 + $0x10] sm:$0xff]  }
 0x4d6   :  { %12960 = vmatpush1.bf16.msra.mxu1 %v15930_v13  ;;  %v16014_v13 = vld [vmem:[%s19364_s10 + $0x48] sm:$0xff]  }
 0x4d7   :  { %13001 = vmatpush1.bf16.msra.mxu0 %v15933_v34  ;;  %12961 = vmatprep.subr.bf16.mxu1 %v15938_v40  ;;  %v16023_v34 = vld [vmem:[%s19364_s10 + $0xa8] sm:$0xff]   ;;  %v16024_v40 = vld [vmem:[%s19364_s10 + $0xe0] sm:$0xff]  }
 0x4d8   :  { %13002 = vmatprep.subr.bf16.mxu0 %v15941_v24  ;;  %v16015_v24 = vld [vmem:[%s19364_s10 + $0x8] sm:$0xff]  }
 0x4da   :  { %12962 = vmatpush1.bf16.msra.mxu1 %v15936_v56  ;;  %v16016_v56 = vld [vmem:[%s19364_s10 + $0x40] sm:$0xff]  }
 0x4db   :  { %13003 = vmatpush1.bf16.msra.mxu0 %v15939_v31  ;;  %12963 = vmatprep.subr.bf16.mxu1 %v15944_v61  ;;  %v16025_v31 = vld [vmem:[%s19364_s10 + $0xa0] sm:$0xff]   ;;  %v16026_v61 = vld [vmem:[%s19364_s10 + $0xd8] sm:$0xff]  }
 0x4dc   :  { %13004 = vmatprep.subr.bf16.mxu0 %v15947_v5  ;;  %v16017_v5 = vld [vmem:[%s19364_s10] sm:$0xff]  }
 0x4de   :  { %12964 = vmatpush1.bf16.msra.mxu1 %v15942_v57  ;;  %v16027_v57 = vld [vmem:[%s19364_s10 + $0x98] sm:$0xff]  }
 0x4df   :  { %13005 = vmatpush1.bf16.msra.mxu0 %v15945_v53  ;;  %12965 = vmatprep.subr.bf16.mxu1 %v15950_v15  ;;  %v16028_v53 = vld [vmem:[%s19364_s10 + $0xd0] sm:$0xff]  }
 0x4e0   :  { %13006 = vmatprep.subr.bf16.mxu0 %v15953_v3  ;;  %v16029_v15 = vld [vmem:[%s19364_s10 + $0x90] sm:$0xff]   ;;  %v16030_v3 = vld [vmem:[%s19364_s10 + $0xc8] sm:$0xff]  }
 0x4e2   :  { %12966 = vmatpush1.bf16.msra.mxu1 %v15948_v25  ;;  %v16031_v25 = vld [vmem:[%s19364_s10 + $0x88] sm:$0xff]  }
 0x4e3   :  { %13007 = vmatpush1.bf16.msra.mxu0 %v15951_v51  ;;  %12967 = vmatprep.subr.bf16.mxu1 %v15956_v60  ;;  %v16032_v51 = vld [vmem:[%s19364_s10 + $0xc0] sm:$0xff]  }
 0x4e4   :  { %13008 = vmatprep.subr.bf16.mxu0 %v15959_v48  ;;  %v16033_v60 = vld [vmem:[%s19364_s10 + $0x80] sm:$0xff]   ;;  %v12211_v48 = vsub.s32 0, %v16200_v12 }
 0x4e6   :  { %12968 = vmatpush2.bf16.msra.mxu1 %v15954_v4  ;;  %v12207_v4 = vld [vmem:[%s19363_s9] sm:$0xf] }
 0x4e7   :  { %13009 = vmatpush2.bf16.msra.mxu0 %v15957_v19  ;;  %12969 = vmatprep.subr.bf16.mxu1 %v15962_v54  ;;  %v12215_v19 = vsub.s32 1, %v16200_v12  ;;  %v12212_v54 = vrot.slane %v12207_v4, %v12211_v48 }
 0x4e8   :  { %13010 = vmatprep.subr.bf16.mxu0 %v15965_v38 }
 0x4e9   :  { %v12216_v38 = vrot.slane %v12207_v4, %v12215_v19 }
 0x4ea   :  { %12970 = vmatpush2.bf16.msra.mxu1 %v15960_v11 }
 0x4eb   :  { %13011 = vmatpush2.bf16.msra.mxu0 %v15963_v45  ;;  %12971 = vmatprep.subr.bf16.mxu1 %v15968_v8 }
 0x4ec   :  { %13012 = vmatprep.subr.bf16.mxu0 %v15971_v44 }
 0x4ee   :  { %12972 = vmatpush2.bf16.msra.mxu1 %v15966_v21 }
 0x4ef   :  { %13013 = vmatpush2.bf16.msra.mxu0 %v15969_v58  ;;  %12973 = vmatprep.subr.bf16.mxu1 %v15974_v10 }
 0x4f0   :  { %13014 = vmatprep.subr.bf16.mxu0 %v15977_v50 }
 0x4f2   :  { %12974 = vmatpush2.bf16.msra.mxu1 %v15972_v33 }
 0x4f3   :  { %13015 = vmatpush2.bf16.msra.mxu0 %v15975_v6  ;;  %12975 = vmatprep.subr.bf16.mxu1 %v15980_v49 }
 0x4f4   :  { %13016 = vmatprep.subr.bf16.mxu0 %v15983_v46 }
 0x4f6   :  { %12976 = vmatpush2.bf16.msra.mxu1 %v15978_v2 }
 0x4f7   :  { %13017 = vmatpush2.bf16.msra.mxu0 %v15981_v52  ;;  %12977 = vmatprep.subr.bf16.mxu1 %v15986_v63 }
 0x4f8   :  { %13018 = vmatprep.subr.bf16.mxu0 %v15989_v35 }
 0x4fa   :  { %12978 = vmatpush2.bf16.msra.mxu1 %v15984_v17  ;;  %v12219_v17 = vsub.s32 2, %v16200_v12 }
 0x4fb   :  { %13019 = vmatpush2.bf16.msra.mxu0 %v15987_v59  ;;  %12979 = vmatprep.subr.bf16.mxu1 %v15992_v36  ;;  %v12223_v59 = vsub.s32 3, %v16200_v12 }
 0x4fc   :  { %13020 = vmatprep.subr.bf16.mxu0 %v15995_v16  ;;  %v12220_v36 = vrot.slane %v12207_v4, %v12219_v17 }
 0x4fd   :  { %v12224_v16 = vrot.slane %v12207_v4, %v12223_v59 }
 0x4fe   :  { %12980 = vmatpush2.bf16.msra.mxu1 %v15990_v1 }
 0x4ff   :  { %13021 = vmatpush2.bf16.msra.mxu0 %v15993_v26  ;;  %12981 = vmatprep.subr.bf16.mxu1 %v15998_v22 }
 0x500   :  { %13022 = vmatprep.subr.bf16.mxu0 %v16001_v37 }
 0x502   :  { %12982 = vmatpush2.bf16.msra.mxu1 %v15996_v29 }
 0x503   :  { %13023 = vmatpush2.bf16.msra.mxu0 %v15999_v41  ;;  %14836 = vmatprep.subr.bf16.mxu1 %v16002_v9 }
 0x504   :  { %14858 = vmatprep.subr.bf16.mxu0 %v16018_v0 }
 0x505   :  { %12984 = vmatmul.mubr.bf16.vlgmr.msra.gmra.mxu1 %v19054_v43  ;;  %v16008_v43 = vld [vmem:[%s19364_s10 + $0x60] sm:$0xff]  }
 0x506   :  { %13025 = vmatmul.mubr.bf16.vlgmr.msra.gmra.mxu0 %v19059_v55  ;;  %14837 = vmatpush3.bf16.msra.mxu1 %v16003_v27  ;;  %v16009_v55 = vld [vmem:[%s19364_s10 + $0x20] sm:$0xff]  }
 0x507   :  { %14838 = vmatprep.subr.bf16.mxu1 %v16004_v47  ;;  %14859 = vmatpush3.bf16.msra.mxu0 %v16019_v30 }
 0x508   :  { %14860 = vmatprep.subr.bf16.mxu0 %v16020_v42 }
 0x50a   :  { %14839 = vmatpush3.bf16.msra.mxu1 %v16005_v18 }
 0x50b   :  { %14840 = vmatprep.subr.bf16.mxu1 %v16006_v28  ;;  %14861 = vmatpush3.bf16.msra.mxu0 %v16021_v23  ;;  %v14502_v23 = vld [vmem:[%s19365_s11] ss:$0 sm:$0xff] }
 0x50c   :  { %14862 = vmatprep.subr.bf16.mxu0 %v16022_v39 }
 0x50e   :  { %14841 = vmatpush3.bf16.msra.mxu1 %v16007_v32 }
 0x50f   :  { %14842 = vmatprep.subr.bf16.mxu1 %v16008_v43  ;;  %14863 = vmatpush3.bf16.msra.mxu0 %v16023_v34 }
 0x510   :  { %14864 = vmatprep.subr.bf16.mxu0 %v16024_v40 }
 0x512   :  { %14843 = vmatpush3.bf16.msra.mxu1 %v16009_v55 }
 0x513   :  { %14844 = vmatprep.subr.bf16.mxu1 %v16010_v7  ;;  %14865 = vmatpush3.bf16.msra.mxu0 %v16025_v31 }
 0x514   :  { %14866 = vmatprep.subr.bf16.mxu0 %v16026_v61 }
 0x516   :  { %14845 = vmatpush3.bf16.msra.mxu1 %v16011_v20 }
 0x517   :  { %14846 = vmatprep.subr.bf16.mxu1 %v16012_v14  ;;  %14867 = vmatpush3.bf16.msra.mxu0 %v16027_v57 }
 0x518   :  { %14868 = vmatprep.subr.bf16.mxu0 %v16028_v53 }
 0x51a   :  { %14847 = vmatpush3.bf16.msra.mxu1 %v16013_v62 }
 0x51b   :  { %14848 = vmatprep.subr.bf16.mxu1 %v16014_v13  ;;  %14869 = vmatpush3.bf16.msra.mxu0 %v16029_v15 }
 0x51c   :  { %14870 = vmatprep.subr.bf16.mxu0 %v16030_v3 }
 0x51e   :  { %14849 = vmatpush3.bf16.msra.mxu1 %v16015_v24 }
 0x51f   :  { %14850 = vmatprep.subr.bf16.mxu1 %v16016_v56  ;;  %14871 = vmatpush3.bf16.msra.mxu0 %v16031_v25 }
 0x520   :  { %14872 = vmatprep.subr.bf16.mxu0 %v16032_v51 }
 0x522   :  { %14851 = vmatpush3.bf16.msra.mxu1 %v16017_v5 }
 0x523   :  { %14873 = vmatpush3.bf16.msra.mxu0 %v16033_v60 }
 0x585   :  { %v12903_v11 = vpop.f32.mrf.mxu1 }
 0x586   :  { %v12904_v45 = vadd.f32 %v12903_v11, %v12212_v54  ;;  %v12944_v8 = vpop.f32.mrf.mxu0 }
 0x587   :  { %v12905_v44 = vpop.f32.mrf.mxu1 }
 0x588   :  { %v12945_v21 = vadd.f32 %v12944_v8, %v12904_v45  ;;  %v12906_v58 = vadd.f32 %v12905_v44, %v12216_v38  ;;  %v12946_v10 = vpop.f32.mrf.mxu0 }
 0x589   :  { %v12907_v50 = vpop.f32.mrf.mxu1 }
 0x58a   :  { %v12947_v33 = vadd.f32 %v12946_v10, %v12906_v58  ;;  %v12948_v6 = vpop.f32.mrf.mxu0  ;;  %v13033_v49 = vmax.f32 %v12945_v21, 0.0 }
 0x58b   :  { %v12908_v46 = vpop.f32.mrf.mxu1 }
 0x58c   :  { %v13034_v2 = vmax.f32 %v12947_v33, 0.0  ;;  %v12949_v52 = vpop.f32.mrf.mxu0  ;;  %v13037_v35 = vpack.c.bf16 %v13033_v49, %v13033_v49 }
 0x58e   :  { %v13038_v63 = vpack.c.bf16 %v13034_v2, %v13034_v2 }
 0x590   :  { %13336 = vmatprep.mubr.bf16.mxu1 %v13038_v63 }
 0x591   :  { %13337 = vmatmul.mubr.bf16.vlgmr.msra.gmra.mxu1 %v13037_v35 }
 0x5c5   :  { %v12985_v1 = vpop.f32.mrf.mxu1 }
 0x5c6   :  { %v12986_v26 = vadd.f32 %v12985_v1, %v12220_v36  ;;  %v13026_v22 = vpop.f32.mrf.mxu0 }
 0x5c7   :  { %v12987_v37 = vpop.f32.mrf.mxu1 }
 0x5c8   :  { %v13027_v29 = vadd.f32 %v13026_v22, %v12986_v26  ;;  %v12988_v41 = vadd.f32 %v12987_v37, %v12224_v16  ;;  %v13028_v9 = vpop.f32.mrf.mxu0 }
 0x5c9   :  { %v12989_v27 = vpop.f32.mrf.mxu1 }
 0x5ca   :  { %v13029_v47 = vadd.f32 %v13028_v9, %v12988_v41  ;;  %v13030_v18 = vpop.f32.mrf.mxu0  ;;  %v13035_v28 = vmax.f32 %v13027_v29, 0.0 }
 0x5cb   :  { %v12990_v32 = vpop.f32.mrf.mxu1 }
 0x5cc   :  { %v13036_v43 = vmax.f32 %v13029_v47, 0.0  ;;  %v13031_v55 = vpop.f32.mrf.mxu0  ;;  %v13039_v0 = vpack.c.bf16 %v13035_v28, %v13035_v28 }
 0x5ce   :  { %v13040_v7 = vpack.c.bf16 %v13036_v43, %v13036_v43 }
 0x5d0   :  { %13376 = vmatprep.mubr.bf16.mxu0 %v13040_v7 }
 0x5d1   :  { %13377 = vmatmul.mubr.bf16.vlgmr.msra.gmra.mxu0 %v13039_v0 }
 0x651   :  { %v14852_v12 = vpop.f32.mrf.mxu1 }
 0x653   :  { %v14853_v30 = vpop.f32.mrf.mxu1 }
 0x654   :  { %v14854_v14 = vadd.f32 %v14853_v30, %v14852_v12 }
 0x655   :  { %v14855_v42 = vpop.f32.mrf.mxu1 }
 0x656   :  { %v13339_v13 = vadd.f32 %v14854_v14, %v14502_v23 }
 0x657   :  { %v14856_v20 = vpop.f32.mrf.mxu1 }
 0x691   :  { %v14874_v39 = vpop.f32.mrf.mxu0 }
 0x693   :  { %v14875_v62 = vpop.f32.mrf.mxu0 }
 0x694   :  { %v14876_v34 = vadd.f32 %v14875_v62, %v14874_v39 }
 0x695   :  { %v14877_v40 = vpop.f32.mrf.mxu0 }
 0x696   :  { %v13379_v24 = vadd.f32 %v14876_v34, %v13339_v13 }
 0x697   :  { %v14878_v56 = vpop.f32.mrf.mxu0 }
 0x698   :  { %13384 = vst [vmem:[#allocation3] sm:$0x3] %v13379_v24 }
 0x699   :  { %16047 = shalt.err (!%p16044_p4)
}
 0x69a   :  { %13394 = dma.vmem_to_hbm [thread:$0]  %s13392_s19, 32, %s19366_s12, [#allocation4]  }
 0x69b   :  { %16056 = dma.done.wait [#allocation4], 32  }
 0x69c   :  { %16057 = vsyncadd [#allocation4], 4294967264 }
 0x69d   :  { %13398 = vsyncpa [#allocation4], 1 }

</bundles_post_ra>
